<compile_context>
chip_gen: v7x
topology: tpu7x:2x2x1
jax: 0.10.0
libtpu: 0.0.40
codegen_flags: <defaults>
</compile_context>

<pallas_src>
import numpy as np
import jax
import jax.numpy as jnp
from jax import lax
from jax.experimental import pallas as pl
from jax.experimental.pallas import tpu as pltpu

LEAKY_SLOPE = 0.01          # nn.LeakyReLU default negative_slope
BN_EPS = 1e-5               # nn.BatchNorm3d default eps
VMEM_LIMIT = 32 * 1024 * 1024

# bf16 MXU inputs, f32 accumulation + f32 epilogue (perf review item).
USE_BF16_MATMUL = True


# --------------------------- Pallas kernels ---------------------------------

def _conv_bn_lrelu_kernel(w_ref, x_ref, b_ref, g_ref, beta_ref, o_ref):
    """Channel-major fused 3x3x3 conv branch.

    w: (Cout, K), patches: (K, M) with M = B*Do*Ho*Wo on the lane axis.
    y = w @ patches + bias, then BatchNorm3d (train-mode batch stats, biased
    variance, one-pass sum/sumsq) and LeakyReLU, all on the lane-dense
    (Cout, M) tile.  Per-channel stats == reduction over axis 1.
    """
    y = jnp.dot(w_ref[...], x_ref[...], preferred_element_type=jnp.float32)
    y = y + b_ref[...]                                   # (Cout, M), f32
    inv_m = 1.0 / y.shape[1]
    s = jnp.sum(y, axis=1, keepdims=True)                # (Cout, 1)
    ss = jnp.sum(y * y, axis=1, keepdims=True)           # (Cout, 1)
    mean = s * inv_m
    var = jnp.maximum(ss * inv_m - mean * mean, 0.0)     # biased (BN train mode)
    scale = g_ref[...] * lax.rsqrt(var + BN_EPS)
    shift = beta_ref[...] - mean * scale
    y = y * scale + shift                                # single normalize pass
    o_ref[...] = jnp.where(y > 0, y, LEAKY_SLOPE * y).astype(o_ref.dtype)


def _make_cat_mm_lrelu_kernel(nparts):
    """1x1x1 conv over a channel-concat of `nparts` inputs without an HBM
    concat: parts are concatenated on the sublane axis in VMEM and fed to one
    MXU dot.  y = w @ cat(parts) + b, then LeakyReLU."""
    def kernel(*refs):
        w_ref = refs[0]
        xs = refs[1:1 + nparts]
        b_ref = refs[1 + nparts]
        o_ref = refs[2 + nparts]
        xcat = jnp.concatenate([x[...] for x in xs], axis=0)   # (sum Ci, blk_m)
        y = jnp.dot(w_ref[...], xcat, preferred_element_type=jnp.float32)
        y = y + b_ref[...]
        o_ref[...] = jnp.where(y > 0, y, LEAKY_SLOPE * y).astype(o_ref.dtype)
    return kernel


# ------------------------------ wrappers -------------------------------------

def im2col_3d(xc, stride):
    """3x3x3 patches, padding=1, given stride, channel-first layout.

    xc: (C, B, D, H, W) -> patches (27*C, B*Do*Ho*Wo) with K index = tap*C + c.
    """
    C, B, D, H, W = xc.shape
    xp = jnp.pad(xc, ((0, 0), (0, 0), (1, 1), (1, 1), (1, 1)))
    Do = (D - 1) // stride + 1
    Ho = (H - 1) // stride + 1
    Wo = (W - 1) // stride + 1
    cols = []
    for kd in range(3):
        for kh in range(3):
            for kw in range(3):
                cols.append(xp[:, :,
                               kd:kd + (Do - 1) * stride + 1:stride,
                               kh:kh + (Ho - 1) * stride + 1:stride,
                               kw:kw + (Wo - 1) * stride + 1:stride])
    patches = jnp.stack(cols, axis=0)                     # (27, C, B, Do, Ho, Wo)
    # TODO(synk): for large spatial sizes, move this 27-tap gather in-kernel
    # (tap grid axis + VMEM accumulator) to avoid the 27x im2col HBM tensor;
    # at 16^3 in bf16 it is only ~1.8 MB so it is kept in glue.
    return patches.reshape(27 * C, B * Do * Ho * Wo), (Do, Ho, Wo)


def conv3x3_bn_lrelu(xc, w, b, gamma, beta, stride):
    """Conv3d(k=3, p=1, stride, bias) + BatchNorm3d(train stats) + LeakyReLU,
    fused in one pallas_call.  xc: (C, B, D, H, W), w: (Cout, 27*C).
    Returns (Cout, B, Do, Ho, Wo)."""
    B = xc.shape[1]
    patches, (Do, Ho, Wo) = im2col_3d(xc, stride)
    K, M = patches.shape
    N = w.shape[0]
    if USE_BF16_MATMUL:
        patches = patches.astype(jnp.bfloat16)
        w = w.astype(jnp.bfloat16)
    # TODO(synk): for larger B/S, M-tile this kernel (stats accumulation on an
    # "arbitrary" axis + a "parallel" normalize pass) so both v7x TensorCores
    # and the DMA pipeline engage; at B=2, S=16 a single block is optimal.
    out = pl.pallas_call(
        _conv_bn_lrelu_kernel,
        out_shape=jax.ShapeDtypeStruct((N, M), jnp.float32),
        grid=(1,),
        in_specs=[
            pl.BlockSpec((N, K), lambda i: (0, 0)),   # weight
            pl.BlockSpec((K, M), lambda i: (0, 0)),   # im2col patches
            pl.BlockSpec((N, 1), lambda i: (0, 0)),   # conv bias
            pl.BlockSpec((N, 1), lambda i: (0, 0)),   # BN gamma
            pl.BlockSpec((N, 1), lambda i: (0, 0)),   # BN beta
        ],
        out_specs=pl.BlockSpec((N, M), lambda i: (0, 0)),
        compiler_params=pltpu.CompilerParams(
            dimension_semantics=("arbitrary",),
            vmem_limit_bytes=VMEM_LIMIT),
    )(w, patches, b.reshape(N, 1), gamma.reshape(N, 1), beta.reshape(N, 1))
    return out.reshape(N, B, Do, Ho, Wo)


def conv1x1_cat_lrelu(parts, w, b, tm=4096):
    """Conv3d(k=1, bias) + LeakyReLU on the channel concat of `parts` without
    materializing the concat.  parts: list of (Ci, M) channel-major;
    w: (N, sum Ci).  M-tiled along the lane axis (grid=2 for the big call)."""
    M = int(parts[0].shape[1])
    dims = [int(pa.shape[0]) for pa in parts]
    N = int(w.shape[0])
    Kcat = sum(dims)
    if USE_BF16_MATMUL:
        parts = [pa.astype(jnp.bfloat16) for pa in parts]
        w = w.astype(jnp.bfloat16)
    # Only tile if M splits cleanly (true here: 8192/4096, 1024 stays whole).
    blk_m = tm if (M > tm and M % tm == 0) else M
    grid_m = M // blk_m

    in_specs = [pl.BlockSpec((N, Kcat), lambda i: (0, 0))]
    in_specs += [pl.BlockSpec((d, blk_m), lambda i: (0, i)) for d in dims]
    in_specs += [pl.BlockSpec((N, 1), lambda i: (0, 0))]

    out = pl.pallas_call(
        _make_cat_mm_lrelu_kernel(len(parts)),
        out_shape=jax.ShapeDtypeStruct((N, M), jnp.float32),
        grid=(grid_m,),
        in_specs=in_specs,
        out_specs=pl.BlockSpec((N, blk_m), lambda i: (0, i)),
        compiler_params=pltpu.CompilerParams(
            dimension_semantics=("parallel",),
            vmem_limit_bytes=VMEM_LIMIT),
    )(w, *parts, b.reshape(N, 1))
    return out


def trilinear_resize(x, out_size):
    """F.interpolate(..., mode='trilinear', align_corners=True).
    x: (C, B, D, H, W) channel-first; resizes axes 2, 3, 4 (XLA glue)."""
    def resize_axis(arr, axis, out_s):
        in_s = arr.shape[axis]
        if out_s == in_s:
            return arr
        if out_s == 1 or in_s == 1:
            idx = jnp.zeros((out_s,), jnp.int32)
            return jnp.take(arr, idx, axis=axis)
        pos = jnp.arange(out_s, dtype=jnp.float32) * ((in_s - 1) / (out_s - 1))
        lo = jnp.clip(jnp.floor(pos).astype(jnp.int32), 0, in_s - 2)
        hi = lo + 1
        f = pos - lo.astype(jnp.float32)
        shape = [1] * arr.ndim
        shape[axis] = out_s
        f = f.reshape(shape)
        return (jnp.take(arr, lo, axis=axis) * (1.0 - f)
                + jnp.take(arr, hi, axis=axis) * f)

    x = resize_axis(x, 2, out_size[0])
    x = resize_axis(x, 3, out_size[1])
    x = resize_axis(x, 4, out_size[2])
    return x


# ------------------------------ module forward --------------------------------

def mutil_stride_module_v2_1(p, x_ncdhw):
    """Forward pass of MutilStrideModule_V2_1.  Input/output: NCDHW (torch layout).

    Internal layout is channel-first (C, B, D, H, W) / (C, B*D*H*W) so the
    channel axis sits on sublanes and the large flattened spatial axis sits on
    the 128-lane axis inside every Pallas kernel."""
    xc = jnp.transpose(x_ncdhw, (1, 0, 2, 3, 4)).astype(jnp.float32)   # (C,B,D,H,W)
    B = xc.shape[1]

    s1 = conv3x3_bn_lrelu(xc, p["s1w"], p["s1b"], p["s1g"], p["s1beta"], 1)
    s2 = conv3x3_bn_lrelu(xc, p["s2w"], p["s2b"], p["s2g"], p["s2beta"], 2)
    s3 = conv3x3_bn_lrelu(xc, p["s3w"], p["s3b"], p["s3g"], p["s3beta"], 3)

    size1 = s1.shape[2:5]
    size2 = s2.shape[2:5]
    O = s1.shape[0]

    # scale3 -> size_2, then that result -> size_1 (two-stage, matching torch)
    s3 = trilinear_resize(s3, size2)
    s3_1 = trilinear_resize(s3, size1)

    # conv1 on cat([scale2, scale3], C), then upsample to size_1
    M2 = B * size2[0] * size2[1] * size2[2]
    c1 = conv1x1_cat_lrelu([s2.reshape(O, M2), s3.reshape(O, M2)],
                           p["c1w"], p["c1b"])
    s2u = trilinear_resize(c1.reshape(O, B, *size2), size1)

    # conv2 on cat([scale1, scale2_up, scale3_1], C)
    M1 = B * size1[0] * size1[1] * size1[2]
    out = conv1x1_cat_lrelu(
        [s1.reshape(O, M1), s2u.reshape(O, M1), s3_1.reshape(O, M1)],
        p["c2w"], p["c2b"])
    out = out.reshape(O, B, *size1)
    # (C, B, D, H, W) -> (B, C, D, H, W): cheap major-axis swap (no minor-dim relayout)
    return jnp.transpose(out, (1, 0, 2, 3, 4))


# ------------------------------ params ---------------------------------------

def _uniform(key, shape, fan_in):
    bound = 1.0 / np.sqrt(fan_in)
    return jax.random.uniform(key, shape, jnp.float32, minval=-bound, maxval=bound)


def init_params(key, in_dim, out_dim):
    """Matches torch default inits (Conv3d kaiming_uniform(a=sqrt(5)) ==
    U(+-1/sqrt(fan_in)); BN gamma=1, beta=0).  Weights stored in channel-major
    matmul layout (Cout, K)."""
    keys = iter(jax.random.split(key, 32))
    p = {}
    fan3 = 27 * in_dim
    for name in ("s1", "s2", "s3"):                 # 3x3x3 convs
        p[name + "w"] = _uniform(next(keys), (out_dim, 27 * in_dim), fan3)
        p[name + "b"] = _uniform(next(keys), (out_dim,), fan3)
        p[name + "g"] = jnp.ones((out_dim,), jnp.float32)      # BN gamma
        p[name + "beta"] = jnp.zeros((out_dim,), jnp.float32)  # BN beta
    p["c1w"] = _uniform(next(keys), (out_dim, 2 * out_dim), 2 * out_dim)
    p["c1b"] = _uniform(next(keys), (out_dim,), 2 * out_dim)
    p["c2w"] = _uniform(next(keys), (out_dim, 3 * out_dim), 3 * out_dim)
    p["c2b"] = _uniform(next(keys), (out_dim,), 3 * out_dim)
    return p


# -------------------------------- main ----------------------------------------

if __name__ == "__main__":
    key = jax.random.PRNGKey(0)
    k_p, k_x = jax.random.split(key)

    B, in_dim, S = 2, 4, 16
    out_dim = 16

    params = init_params(k_p, in_dim, out_dim)
    x = jax.random.normal(k_x, (B, in_dim, S, S, S), jnp.float32)

    fwd = jax.jit(mutil_stride_module_v2_1)
    y = fwd(params, x)
    jax.block_until_ready(y)

    assert y.shape == (B, out_dim, S, S, S), y.shape
    assert bool(jnp.all(jnp.isfinite(y)))
    print("KERNEL_OK")
</pallas_src>

<mosaic_0001>
module attributes {stable_mosaic.version = 11 : i64} {
  func.func @_conv_bn_lrelu_kernel(%arg0: i32, %arg1: memref<16x108xbf16, #tpu.memory_space<vmem>>, %arg2: memref<108x8192xbf16, #tpu.memory_space<vmem>>, %arg3: memref<16x1xf32, #tpu.memory_space<vmem>>, %arg4: memref<16x1xf32, #tpu.memory_space<vmem>>, %arg5: memref<16x1xf32, #tpu.memory_space<vmem>>, %arg6: memref<16x8192xf32, #tpu.memory_space<vmem>>) attributes {dimension_semantics = [#tpu.dimension_semantics<arbitrary>], iteration_bounds = array<i64: 1>, scalar_prefetch = 0 : i64, scratch_operands = 0 : i64, tpu.core_type = #tpu.core_type<tc>, window_params = [{pipeline_mode = #tpu.pipeline_mode<synchronous>, transform_indices = @transform_0, window_bounds = array<i64: 16, 108>}, {pipeline_mode = #tpu.pipeline_mode<synchronous>, transform_indices = @transform_1, window_bounds = array<i64: 108, 8192>}, {pipeline_mode = #tpu.pipeline_mode<synchronous>, transform_indices = @transform_2, window_bounds = array<i64: 16, 1>}, {pipeline_mode = #tpu.pipeline_mode<synchronous>, transform_indices = @transform_3, window_bounds = array<i64: 16, 1>}, {pipeline_mode = #tpu.pipeline_mode<synchronous>, transform_indices = @transform_4, window_bounds = array<i64: 16, 1>}, {pipeline_mode = #tpu.pipeline_mode<synchronous>, transform_indices = @transform_5, window_bounds = array<i64: 16, 8192>}]} {
    %c0 = arith.constant 0 : index
    %c0_0 = arith.constant 0 : index
    %0 = vector.load %arg1[%c0, %c0_0] : memref<16x108xbf16, #tpu.memory_space<vmem>>, vector<16x108xbf16>
    %c0_1 = arith.constant 0 : index
    %c0_2 = arith.constant 0 : index
    %1 = vector.load %arg2[%c0_1, %c0_2] : memref<108x8192xbf16, #tpu.memory_space<vmem>>, vector<108x8192xbf16>
    %cst = arith.constant dense<0.000000e+00> : vector<16x8192xf32>
    %2 = tpu.matmul %0, %1, %cst {dimension_numbers = #tpu.dot_dimension_numbers<[1], [0], [0], [1], [0, 0, 1, 1], [], []>} : vector<16x108xbf16>, vector<108x8192xbf16>, vector<16x8192xf32> -> vector<16x8192xf32>
    %c0_3 = arith.constant 0 : index
    %c0_4 = arith.constant 0 : index
    %3 = vector.load %arg3[%c0_3, %c0_4] : memref<16x1xf32, #tpu.memory_space<vmem>>, vector<16x1xf32>
    %4 = vector.broadcast %3 : vector<16x1xf32> to vector<16x8192xf32>
    %5 = arith.addf %2, %4 : vector<16x8192xf32>
    %cst_5 = arith.constant dense<0.000000e+00> : vector<16xf32>
    %6 = vector.multi_reduction <add>, %5, %cst_5 [1] : vector<16x8192xf32> to vector<16xf32>
    %7 = vector.shape_cast %6 : vector<16xf32> to vector<16x1xf32>
    %8 = arith.mulf %5, %5 : vector<16x8192xf32>
    %cst_6 = arith.constant dense<0.000000e+00> : vector<16xf32>
    %9 = vector.multi_reduction <add>, %8, %cst_6 [1] : vector<16x8192xf32> to vector<16xf32>
    %10 = vector.shape_cast %9 : vector<16xf32> to vector<16x1xf32>
    %cst_7 = arith.constant 1.22070313E-4 : f32
    %11 = vector.broadcast %cst_7 : f32 to vector<16x1xf32>
    %12 = arith.mulf %7, %11 : vector<16x1xf32>
    %cst_8 = arith.constant 1.22070313E-4 : f32
    %13 = vector.broadcast %cst_8 : f32 to vector<16x1xf32>
    %14 = arith.mulf %10, %13 : vector<16x1xf32>
    %15 = arith.mulf %12, %12 : vector<16x1xf32>
    %16 = arith.subf %14, %15 : vector<16x1xf32>
    %cst_9 = arith.constant 0.000000e+00 : f32
    %17 = vector.broadcast %cst_9 : f32 to vector<16x1xf32>
    %18 = arith.maximumf %16, %17 : vector<16x1xf32>
    %c0_10 = arith.constant 0 : index
    %c0_11 = arith.constant 0 : index
    %19 = vector.load %arg4[%c0_10, %c0_11] : memref<16x1xf32, #tpu.memory_space<vmem>>, vector<16x1xf32>
    %cst_12 = arith.constant 9.99999974E-6 : f32
    %20 = vector.broadcast %cst_12 : f32 to vector<16x1xf32>
    %21 = arith.addf %18, %20 : vector<16x1xf32>
    %22 = math.rsqrt %21 : vector<16x1xf32>
    %23 = arith.mulf %19, %22 : vector<16x1xf32>
    %c0_13 = arith.constant 0 : index
    %c0_14 = arith.constant 0 : index
    %24 = vector.load %arg5[%c0_13, %c0_14] : memref<16x1xf32, #tpu.memory_space<vmem>>, vector<16x1xf32>
    %25 = arith.mulf %12, %23 : vector<16x1xf32>
    %26 = arith.subf %24, %25 : vector<16x1xf32>
    %27 = vector.broadcast %23 : vector<16x1xf32> to vector<16x8192xf32>
    %28 = arith.mulf %5, %27 : vector<16x8192xf32>
    %29 = vector.broadcast %26 : vector<16x1xf32> to vector<16x8192xf32>
    %30 = arith.addf %28, %29 : vector<16x8192xf32>
    %cst_15 = arith.constant 0.000000e+00 : f32
    %31 = vector.broadcast %cst_15 : f32 to vector<16x8192xf32>
    %32 = arith.cmpf ogt, %30, %31 : vector<16x8192xf32>
    %cst_16 = arith.constant 0.00999999977 : f32
    %33 = vector.broadcast %cst_16 : f32 to vector<16x8192xf32>
    %34 = arith.mulf %33, %30 : vector<16x8192xf32>
    %35 = arith.select %32, %30, %34 : vector<16x8192xi1>, vector<16x8192xf32>
    %c0_17 = arith.constant 0 : index
    %c0_18 = arith.constant 0 : index
    %36 = vector.load %arg6[%c0_17, %c0_18] : memref<16x8192xf32, #tpu.memory_space<vmem>>, vector<16x8192xf32>
    tpu.vector_store %arg6[%c0_17, %c0_18], %35 {strides = array<i32>} : memref<16x8192xf32, #tpu.memory_space<vmem>>, vector<16x8192xf32>,
    return
  }
  func.func @transform_0(%arg0: i32) -> (i32, i32) {
    %c0_i32 = arith.constant 0 : i32
    %c0_i32_0 = arith.constant 0 : i32
    %c0_i32_1 = arith.constant 0 : i32
    return %c0_i32, %c0_i32_0 : i32, i32
  }
  func.func @transform_1(%arg0: i32) -> (i32, i32) {
    %c0_i32 = arith.constant 0 : i32
    %c0_i32_0 = arith.constant 0 : i32
    %c0_i32_1 = arith.constant 0 : i32
    return %c0_i32, %c0_i32_0 : i32, i32
  }
  func.func @transform_2(%arg0: i32) -> (i32, i32) {
    %c0_i32 = arith.constant 0 : i32
    %c0_i32_0 = arith.constant 0 : i32
    %c0_i32_1 = arith.constant 0 : i32
    return %c0_i32, %c0_i32_0 : i32, i32
  }
  func.func @transform_3(%arg0: i32) -> (i32, i32) {
    %c0_i32 = arith.constant 0 : i32
    %c0_i32_0 = arith.constant 0 : i32
    %c0_i32_1 = arith.constant 0 : i32
    return %c0_i32, %c0_i32_0 : i32, i32
  }
  func.func @transform_4(%arg0: i32) -> (i32, i32) {
    %c0_i32 = arith.constant 0 : i32
    %c0_i32_0 = arith.constant 0 : i32
    %c0_i32_1 = arith.constant 0 : i32
    return %c0_i32, %c0_i32_0 : i32, i32
  }
  func.func @transform_5(%arg0: i32) -> (i32, i32) {
    %c0_i32 = arith.constant 0 : i32
    %c0_i32_0 = arith.constant 0 : i32
    %c0_i32_1 = arith.constant 0 : i32
    return %c0_i32, %c0_i32_0 : i32, i32
  }
}

module attributes {stable_mosaic.version = 11 : i64} {
  func.func @_conv_bn_lrelu_kernel(%arg0: i32, %arg1: memref<16x108xbf16, #tpu.memory_space<vmem>>, %arg2: memref<108x432xbf16, #tpu.memory_space<vmem>>, %arg3: memref<16x1xf32, #tpu.memory_space<vmem>>, %arg4: memref<16x1xf32, #tpu.memory_space<vmem>>, %arg5: memref<16x1xf32, #tpu.memory_space<vmem>>, %arg6: memref<16x432xf32, #tpu.memory_space<vmem>>) attributes {dimension_semantics = [#tpu.dimension_semantics<arbitrary>], iteration_bounds = array<i64: 1>, scalar_prefetch = 0 : i64, scratch_operands = 0 : i64, tpu.core_type = #tpu.core_type<tc>, window_params = [{pipeline_mode = #tpu.pipeline_mode<synchronous>, transform_indices = @transform_0, window_bounds = array<i64: 16, 108>}, {pipeline_mode = #tpu.pipeline_mode<synchronous>, transform_indices = @transform_1, window_bounds = array<i64: 108, 432>}, {pipeline_mode = #tpu.pipeline_mode<synchronous>, transform_indices = @transform_2, window_bounds = array<i64: 16, 1>}, {pipeline_mode = #tpu.pipeline_mode<synchronous>, transform_indices = @transform_3, window_bounds = array<i64: 16, 1>}, {pipeline_mode = #tpu.pipeline_mode<synchronous>, transform_indices = @transform_4, window_bounds = array<i64: 16, 1>}, {pipeline_mode = #tpu.pipeline_mode<synchronous>, transform_indices = @transform_5, window_bounds = array<i64: 16, 432>}]} {
    %c0 = arith.constant 0 : index
    %c0_0 = arith.constant 0 : index
    %0 = vector.load %arg1[%c0, %c0_0] : memref<16x108xbf16, #tpu.memory_space<vmem>>, vector<16x108xbf16>
    %c0_1 = arith.constant 0 : index
    %c0_2 = arith.constant 0 : index
    %1 = vector.load %arg2[%c0_1, %c0_2] : memref<108x432xbf16, #tpu.memory_space<vmem>>, vector<108x432xbf16>
    %cst = arith.constant dense<0.000000e+00> : vector<16x432xf32>
    %2 = tpu.matmul %0, %1, %cst {dimension_numbers = #tpu.dot_dimension_numbers<[1], [0], [0], [1], [0, 0, 1, 1], [], []>} : vector<16x108xbf16>, vector<108x432xbf16>, vector<16x432xf32> -> vector<16x432xf32>
    %c0_3 = arith.constant 0 : index
    %c0_4 = arith.constant 0 : index
    %3 = vector.load %arg3[%c0_3, %c0_4] : memref<16x1xf32, #tpu.memory_space<vmem>>, vector<16x1xf32>
    %4 = vector.broadcast %3 : vector<16x1xf32> to vector<16x432xf32>
    %5 = arith.addf %2, %4 : vector<16x432xf32>
    %cst_5 = arith.constant dense<0.000000e+00> : vector<16xf32>
    %6 = vector.multi_reduction <add>, %5, %cst_5 [1] : vector<16x432xf32> to vector<16xf32>
    %7 = vector.shape_cast %6 : vector<16xf32> to vector<16x1xf32>
    %8 = arith.mulf %5, %5 : vector<16x432xf32>
    %cst_6 = arith.constant dense<0.000000e+00> : vector<16xf32>
    %9 = vector.multi_reduction <add>, %8, %cst_6 [1] : vector<16x432xf32> to vector<16xf32>
    %10 = vector.shape_cast %9 : vector<16xf32> to vector<16x1xf32>
    %cst_7 = arith.constant 0.00231481483 : f32
    %11 = vector.broadcast %cst_7 : f32 to vector<16x1xf32>
    %12 = arith.mulf %7, %11 : vector<16x1xf32>
    %cst_8 = arith.constant 0.00231481483 : f32
    %13 = vector.broadcast %cst_8 : f32 to vector<16x1xf32>
    %14 = arith.mulf %10, %13 : vector<16x1xf32>
    %15 = arith.mulf %12, %12 : vector<16x1xf32>
    %16 = arith.subf %14, %15 : vector<16x1xf32>
    %cst_9 = arith.constant 0.000000e+00 : f32
    %17 = vector.broadcast %cst_9 : f32 to vector<16x1xf32>
    %18 = arith.maximumf %16, %17 : vector<16x1xf32>
    %c0_10 = arith.constant 0 : index
    %c0_11 = arith.constant 0 : index
    %19 = vector.load %arg4[%c0_10, %c0_11] : memref<16x1xf32, #tpu.memory_space<vmem>>, vector<16x1xf32>
    %cst_12 = arith.constant 9.99999974E-6 : f32
    %20 = vector.broadcast %cst_12 : f32 to vector<16x1xf32>
    %21 = arith.addf %18, %20 : vector<16x1xf32>
    %22 = math.rsqrt %21 : vector<16x1xf32>
    %23 = arith.mulf %19, %22 : vector<16x1xf32>
    %c0_13 = arith.constant 0 : index
    %c0_14 = arith.constant 0 : index
    %24 = vector.load %arg5[%c0_13, %c0_14] : memref<16x1xf32, #tpu.memory_space<vmem>>, vector<16x1xf32>
    %25 = arith.mulf %12, %23 : vector<16x1xf32>
    %26 = arith.subf %24, %25 : vector<16x1xf32>
    %27 = vector.broadcast %23 : vector<16x1xf32> to vector<16x432xf32>
    %28 = arith.mulf %5, %27 : vector<16x432xf32>
    %29 = vector.broadcast %26 : vector<16x1xf32> to vector<16x432xf32>
    %30 = arith.addf %28, %29 : vector<16x432xf32>
    %cst_15 = arith.constant 0.000000e+00 : f32
    %31 = vector.broadcast %cst_15 : f32 to vector<16x432xf32>
    %32 = arith.cmpf ogt, %30, %31 : vector<16x432xf32>
    %cst_16 = arith.constant 0.00999999977 : f32
    %33 = vector.broadcast %cst_16 : f32 to vector<16x432xf32>
    %34 = arith.mulf %33, %30 : vector<16x432xf32>
    %35 = arith.select %32, %30, %34 : vector<16x432xi1>, vector<16x432xf32>
    %c0_17 = arith.constant 0 : index
    %c0_18 = arith.constant 0 : index
    %36 = vector.load %arg6[%c0_17, %c0_18] : memref<16x432xf32, #tpu.memory_space<vmem>>, vector<16x432xf32>
    tpu.vector_store %arg6[%c0_17, %c0_18], %35 {strides = array<i32>} : memref<16x432xf32, #tpu.memory_space<vmem>>, vector<16x432xf32>,
    return
  }
  func.func @transform_0(%arg0: i32) -> (i32, i32) {
    %c0_i32 = arith.constant 0 : i32
    %c0_i32_0 = arith.constant 0 : i32
    %c0_i32_1 = arith.constant 0 : i32
    return %c0_i32, %c0_i32_0 : i32, i32
  }
  func.func @transform_1(%arg0: i32) -> (i32, i32) {
    %c0_i32 = arith.constant 0 : i32
    %c0_i32_0 = arith.constant 0 : i32
    %c0_i32_1 = arith.constant 0 : i32
    return %c0_i32, %c0_i32_0 : i32, i32
  }
  func.func @transform_2(%arg0: i32) -> (i32, i32) {
    %c0_i32 = arith.constant 0 : i32
    %c0_i32_0 = arith.constant 0 : i32
    %c0_i32_1 = arith.constant 0 : i32
    return %c0_i32, %c0_i32_0 : i32, i32
  }
  func.func @transform_3(%arg0: i32) -> (i32, i32) {
    %c0_i32 = arith.constant 0 : i32
    %c0_i32_0 = arith.constant 0 : i32
    %c0_i32_1 = arith.constant 0 : i32
    return %c0_i32, %c0_i32_0 : i32, i32
  }
  func.func @transform_4(%arg0: i32) -> (i32, i32) {
    %c0_i32 = arith.constant 0 : i32
    %c0_i32_0 = arith.constant 0 : i32
    %c0_i32_1 = arith.constant 0 : i32
    return %c0_i32, %c0_i32_0 : i32, i32
  }
  func.func @transform_5(%arg0: i32) -> (i32, i32) {
    %c0_i32 = arith.constant 0 : i32
    %c0_i32_0 = arith.constant 0 : i32
    %c0_i32_1 = arith.constant 0 : i32
    return %c0_i32, %c0_i32_0 : i32, i32
  }
}

module attributes {stable_mosaic.version = 11 : i64} {
  func.func @_conv_bn_lrelu_kernel(%arg0: i32, %arg1: memref<16x108xbf16, #tpu.memory_space<vmem>>, %arg2: memref<108x1024xbf16, #tpu.memory_space<vmem>>, %arg3: memref<16x1xf32, #tpu.memory_space<vmem>>, %arg4: memref<16x1xf32, #tpu.memory_space<vmem>>, %arg5: memref<16x1xf32, #tpu.memory_space<vmem>>, %arg6: memref<16x1024xf32, #tpu.memory_space<vmem>>) attributes {dimension_semantics = [#tpu.dimension_semantics<arbitrary>], iteration_bounds = array<i64: 1>, scalar_prefetch = 0 : i64, scratch_operands = 0 : i64, tpu.core_type = #tpu.core_type<tc>, window_params = [{pipeline_mode = #tpu.pipeline_mode<synchronous>, transform_indices = @transform_0, window_bounds = array<i64: 16, 108>}, {pipeline_mode = #tpu.pipeline_mode<synchronous>, transform_indices = @transform_1, window_bounds = array<i64: 108, 1024>}, {pipeline_mode = #tpu.pipeline_mode<synchronous>, transform_indices = @transform_2, window_bounds = array<i64: 16, 1>}, {pipeline_mode = #tpu.pipeline_mode<synchronous>, transform_indices = @transform_3, window_bounds = array<i64: 16, 1>}, {pipeline_mode = #tpu.pipeline_mode<synchronous>, transform_indices = @transform_4, window_bounds = array<i64: 16, 1>}, {pipeline_mode = #tpu.pipeline_mode<synchronous>, transform_indices = @transform_5, window_bounds = array<i64: 16, 1024>}]} {
    %c0 = arith.constant 0 : index
    %c0_0 = arith.constant 0 : index
    %0 = vector.load %arg1[%c0, %c0_0] : memref<16x108xbf16, #tpu.memory_space<vmem>>, vector<16x108xbf16>
    %c0_1 = arith.constant 0 : index
    %c0_2 = arith.constant 0 : index
    %1 = vector.load %arg2[%c0_1, %c0_2] : memref<108x1024xbf16, #tpu.memory_space<vmem>>, vector<108x1024xbf16>
    %cst = arith.constant dense<0.000000e+00> : vector<16x1024xf32>
    %2 = tpu.matmul %0, %1, %cst {dimension_numbers = #tpu.dot_dimension_numbers<[1], [0], [0], [1], [0, 0, 1, 1], [], []>} : vector<16x108xbf16>, vector<108x1024xbf16>, vector<16x1024xf32> -> vector<16x1024xf32>
    %c0_3 = arith.constant 0 : index
    %c0_4 = arith.constant 0 : index
    %3 = vector.load %arg3[%c0_3, %c0_4] : memref<16x1xf32, #tpu.memory_space<vmem>>, vector<16x1xf32>
    %4 = vector.broadcast %3 : vector<16x1xf32> to vector<16x1024xf32>
    %5 = arith.addf %2, %4 : vector<16x1024xf32>
    %cst_5 = arith.constant dense<0.000000e+00> : vector<16xf32>
    %6 = vector.multi_reduction <add>, %5, %cst_5 [1] : vector<16x1024xf32> to vector<16xf32>
    %7 = vector.shape_cast %6 : vector<16xf32> to vector<16x1xf32>
    %8 = arith.mulf %5, %5 : vector<16x1024xf32>
    %cst_6 = arith.constant dense<0.000000e+00> : vector<16xf32>
    %9 = vector.multi_reduction <add>, %8, %cst_6 [1] : vector<16x1024xf32> to vector<16xf32>
    %10 = vector.shape_cast %9 : vector<16xf32> to vector<16x1xf32>
    %cst_7 = arith.constant 9.765625E-4 : f32
    %11 = vector.broadcast %cst_7 : f32 to vector<16x1xf32>
    %12 = arith.mulf %7, %11 : vector<16x1xf32>
    %cst_8 = arith.constant 9.765625E-4 : f32
    %13 = vector.broadcast %cst_8 : f32 to vector<16x1xf32>
    %14 = arith.mulf %10, %13 : vector<16x1xf32>
    %15 = arith.mulf %12, %12 : vector<16x1xf32>
    %16 = arith.subf %14, %15 : vector<16x1xf32>
    %cst_9 = arith.constant 0.000000e+00 : f32
    %17 = vector.broadcast %cst_9 : f32 to vector<16x1xf32>
    %18 = arith.maximumf %16, %17 : vector<16x1xf32>
    %c0_10 = arith.constant 0 : index
    %c0_11 = arith.constant 0 : index
    %19 = vector.load %arg4[%c0_10, %c0_11] : memref<16x1xf32, #tpu.memory_space<vmem>>, vector<16x1xf32>
    %cst_12 = arith.constant 9.99999974E-6 : f32
    %20 = vector.broadcast %cst_12 : f32 to vector<16x1xf32>
    %21 = arith.addf %18, %20 : vector<16x1xf32>
    %22 = math.rsqrt %21 : vector<16x1xf32>
    %23 = arith.mulf %19, %22 : vector<16x1xf32>
    %c0_13 = arith.constant 0 : index
    %c0_14 = arith.constant 0 : index
    %24 = vector.load %arg5[%c0_13, %c0_14] : memref<16x1xf32, #tpu.memory_space<vmem>>, vector<16x1xf32>
    %25 = arith.mulf %12, %23 : vector<16x1xf32>
    %26 = arith.subf %24, %25 : vector<16x1xf32>
    %27 = vector.broadcast %23 : vector<16x1xf32> to vector<16x1024xf32>
    %28 = arith.mulf %5, %27 : vector<16x1024xf32>
    %29 = vector.broadcast %26 : vector<16x1xf32> to vector<16x1024xf32>
    %30 = arith.addf %28, %29 : vector<16x1024xf32>
    %cst_15 = arith.constant 0.000000e+00 : f32
    %31 = vector.broadcast %cst_15 : f32 to vector<16x1024xf32>
    %32 = arith.cmpf ogt, %30, %31 : vector<16x1024xf32>
    %cst_16 = arith.constant 0.00999999977 : f32
    %33 = vector.broadcast %cst_16 : f32 to vector<16x1024xf32>
    %34 = arith.mulf %33, %30 : vector<16x1024xf32>
    %35 = arith.select %32, %30, %34 : vector<16x1024xi1>, vector<16x1024xf32>
    %c0_17 = arith.constant 0 : index
    %c0_18 = arith.constant 0 : index
    %36 = vector.load %arg6[%c0_17, %c0_18] : memref<16x1024xf32, #tpu.memory_space<vmem>>, vector<16x1024xf32>
    tpu.vector_store %arg6[%c0_17, %c0_18], %35 {strides = array<i32>} : memref<16x1024xf32, #tpu.memory_space<vmem>>, vector<16x1024xf32>,
    return
  }
  func.func @transform_0(%arg0: i32) -> (i32, i32) {
    %c0_i32 = arith.constant 0 : i32
    %c0_i32_0 = arith.constant 0 : i32
    %c0_i32_1 = arith.constant 0 : i32
    return %c0_i32, %c0_i32_0 : i32, i32
  }
  func.func @transform_1(%arg0: i32) -> (i32, i32) {
    %c0_i32 = arith.constant 0 : i32
    %c0_i32_0 = arith.constant 0 : i32
    %c0_i32_1 = arith.constant 0 : i32
    return %c0_i32, %c0_i32_0 : i32, i32
  }
  func.func @transform_2(%arg0: i32) -> (i32, i32) {
    %c0_i32 = arith.constant 0 : i32
    %c0_i32_0 = arith.constant 0 : i32
    %c0_i32_1 = arith.constant 0 : i32
    return %c0_i32, %c0_i32_0 : i32, i32
  }
  func.func @transform_3(%arg0: i32) -> (i32, i32) {
    %c0_i32 = arith.constant 0 : i32
    %c0_i32_0 = arith.constant 0 : i32
    %c0_i32_1 = arith.constant 0 : i32
    return %c0_i32, %c0_i32_0 : i32, i32
  }
  func.func @transform_4(%arg0: i32) -> (i32, i32) {
    %c0_i32 = arith.constant 0 : i32
    %c0_i32_0 = arith.constant 0 : i32
    %c0_i32_1 = arith.constant 0 : i32
    return %c0_i32, %c0_i32_0 : i32, i32
  }
  func.func @transform_5(%arg0: i32) -> (i32, i32) {
    %c0_i32 = arith.constant 0 : i32
    %c0_i32_0 = arith.constant 0 : i32
    %c0_i32_1 = arith.constant 0 : i32
    return %c0_i32, %c0_i32_0 : i32, i32
  }
}

module attributes {stable_mosaic.version = 11 : i64} {
  func.func @kernel(%arg0: i32, %arg1: memref<16x32xbf16, #tpu.memory_space<vmem>>, %arg2: memref<16x1024xbf16, #tpu.memory_space<vmem>>, %arg3: memref<16x1024xbf16, #tpu.memory_space<vmem>>, %arg4: memref<16x1xf32, #tpu.memory_space<vmem>>, %arg5: memref<16x1024xf32, #tpu.memory_space<vmem>>) attributes {dimension_semantics = [#tpu.dimension_semantics<parallel>], iteration_bounds = array<i64: 1>, scalar_prefetch = 0 : i64, scratch_operands = 0 : i64, tpu.core_type = #tpu.core_type<tc>, window_params = [{pipeline_mode = #tpu.pipeline_mode<synchronous>, transform_indices = @transform_0, window_bounds = array<i64: 16, 32>}, {transform_indices = @transform_1, window_bounds = array<i64: 16, 1024>}, {transform_indices = @transform_2, window_bounds = array<i64: 16, 1024>}, {pipeline_mode = #tpu.pipeline_mode<synchronous>, transform_indices = @transform_3, window_bounds = array<i64: 16, 1>}, {transform_indices = @transform_4, window_bounds = array<i64: 16, 1024>}]} {
    %c0 = arith.constant 0 : index
    %c0_0 = arith.constant 0 : index
    %0 = vector.load %arg2[%c0, %c0_0] : memref<16x1024xbf16, #tpu.memory_space<vmem>>, vector<16x1024xbf16>
    %c0_1 = arith.constant 0 : index
    %c0_2 = arith.constant 0 : index
    %1 = vector.load %arg3[%c0_1, %c0_2] : memref<16x1024xbf16, #tpu.memory_space<vmem>>, vector<16x1024xbf16>
    %2 = tpu.concatenate %0, %1 in 0 : vector<16x1024xbf16>, vector<16x1024xbf16> -> vector<32x1024xbf16>
    %c0_3 = arith.constant 0 : index
    %c0_4 = arith.constant 0 : index
    %3 = vector.load %arg1[%c0_3, %c0_4] : memref<16x32xbf16, #tpu.memory_space<vmem>>, vector<16x32xbf16>
    %cst = arith.constant dense<0.000000e+00> : vector<16x1024xf32>
    %4 = tpu.matmul %3, %2, %cst {dimension_numbers = #tpu.dot_dimension_numbers<[1], [0], [0], [1], [0, 0, 1, 1], [], []>} : vector<16x32xbf16>, vector<32x1024xbf16>, vector<16x1024xf32> -> vector<16x1024xf32>
    %c0_5 = arith.constant 0 : index
    %c0_6 = arith.constant 0 : index
    %5 = vector.load %arg4[%c0_5, %c0_6] : memref<16x1xf32, #tpu.memory_space<vmem>>, vector<16x1xf32>
    %6 = vector.broadcast %5 : vector<16x1xf32> to vector<16x1024xf32>
    %7 = arith.addf %4, %6 : vector<16x1024xf32>
    %cst_7 = arith.constant 0.000000e+00 : f32
    %8 = vector.broadcast %cst_7 : f32 to vector<16x1024xf32>
    %9 = arith.cmpf ogt, %7, %8 : vector<16x1024xf32>
    %cst_8 = arith.constant 0.00999999977 : f32
    %10 = vector.broadcast %cst_8 : f32 to vector<16x1024xf32>
    %11 = arith.mulf %10, %7 : vector<16x1024xf32>
    %12 = arith.select %9, %7, %11 : vector<16x1024xi1>, vector<16x1024xf32>
    %c0_9 = arith.constant 0 : index
    %c0_10 = arith.constant 0 : index
    %13 = vector.load %arg5[%c0_9, %c0_10] : memref<16x1024xf32, #tpu.memory_space<vmem>>, vector<16x1024xf32>
    tpu.vector_store %arg5[%c0_9, %c0_10], %12 {strides = array<i32>} : memref<16x1024xf32, #tpu.memory_space<vmem>>, vector<16x1024xf32>,
    return
  }
  func.func @transform_0(%arg0: i32) -> (i32, i32) {
    %c0_i32 = arith.constant 0 : i32
    %c0_i32_0 = arith.constant 0 : i32
    %c0_i32_1 = arith.constant 0 : i32
    return %c0_i32, %c0_i32_0 : i32, i32
  }
  func.func @transform_1(%arg0: i32) -> (i32, i32) {
    %c0_i32 = arith.constant 0 : i32
    %c0_i32_0 = arith.constant 0 : i32
    return %c0_i32, %arg0 : i32, i32
  }
  func.func @transform_2(%arg0: i32) -> (i32, i32) {
    %c0_i32 = arith.constant 0 : i32
    %c0_i32_0 = arith.constant 0 : i32
    return %c0_i32, %arg0 : i32, i32
  }
  func.func @transform_3(%arg0: i32) -> (i32, i32) {
    %c0_i32 = arith.constant 0 : i32
    %c0_i32_0 = arith.constant 0 : i32
    %c0_i32_1 = arith.constant 0 : i32
    return %c0_i32, %c0_i32_0 : i32, i32
  }
  func.func @transform_4(%arg0: i32) -> (i32, i32) {
    %c0_i32 = arith.constant 0 : i32
    %c0_i32_0 = arith.constant 0 : i32
    return %c0_i32, %arg0 : i32, i32
  }
}

module attributes {stable_mosaic.version = 11 : i64} {
  func.func @kernel(%arg0: i32, %arg1: memref<16x48xbf16, #tpu.memory_space<vmem>>, %arg2: memref<16x4096xbf16, #tpu.memory_space<vmem>>, %arg3: memref<16x4096xbf16, #tpu.memory_space<vmem>>, %arg4: memref<16x4096xbf16, #tpu.memory_space<vmem>>, %arg5: memref<16x1xf32, #tpu.memory_space<vmem>>, %arg6: memref<16x4096xf32, #tpu.memory_space<vmem>>) attributes {dimension_semantics = [#tpu.dimension_semantics<parallel>], iteration_bounds = array<i64: 2>, scalar_prefetch = 0 : i64, scratch_operands = 0 : i64, tpu.core_type = #tpu.core_type<tc>, window_params = [{pipeline_mode = #tpu.pipeline_mode<synchronous>, transform_indices = @transform_0, window_bounds = array<i64: 16, 48>}, {transform_indices = @transform_1, window_bounds = array<i64: 16, 4096>}, {transform_indices = @transform_2, window_bounds = array<i64: 16, 4096>}, {transform_indices = @transform_3, window_bounds = array<i64: 16, 4096>}, {pipeline_mode = #tpu.pipeline_mode<synchronous>, transform_indices = @transform_4, window_bounds = array<i64: 16, 1>}, {transform_indices = @transform_5, window_bounds = array<i64: 16, 4096>}]} {
    %c0 = arith.constant 0 : index
    %c0_0 = arith.constant 0 : index
    %0 = vector.load %arg2[%c0, %c0_0] : memref<16x4096xbf16, #tpu.memory_space<vmem>>, vector<16x4096xbf16>
    %c0_1 = arith.constant 0 : index
    %c0_2 = arith.constant 0 : index
    %1 = vector.load %arg3[%c0_1, %c0_2] : memref<16x4096xbf16, #tpu.memory_space<vmem>>, vector<16x4096xbf16>
    %c0_3 = arith.constant 0 : index
    %c0_4 = arith.constant 0 : index
    %2 = vector.load %arg4[%c0_3, %c0_4] : memref<16x4096xbf16, #tpu.memory_space<vmem>>, vector<16x4096xbf16>
    %3 = tpu.concatenate %0, %1, %2 in 0 : vector<16x4096xbf16>, vector<16x4096xbf16>, vector<16x4096xbf16> -> vector<48x4096xbf16>
    %c0_5 = arith.constant 0 : index
    %c0_6 = arith.constant 0 : index
    %4 = vector.load %arg1[%c0_5, %c0_6] : memref<16x48xbf16, #tpu.memory_space<vmem>>, vector<16x48xbf16>
    %cst = arith.constant dense<0.000000e+00> : vector<16x4096xf32>
    %5 = tpu.matmul %4, %3, %cst {dimension_numbers = #tpu.dot_dimension_numbers<[1], [0], [0], [1], [0, 0, 1, 1], [], []>} : vector<16x48xbf16>, vector<48x4096xbf16>, vector<16x4096xf32> -> vector<16x4096xf32>
    %c0_7 = arith.constant 0 : index
    %c0_8 = arith.constant 0 : index
    %6 = vector.load %arg5[%c0_7, %c0_8] : memref<16x1xf32, #tpu.memory_space<vmem>>, vector<16x1xf32>
    %7 = vector.broadcast %6 : vector<16x1xf32> to vector<16x4096xf32>
    %8 = arith.addf %5, %7 : vector<16x4096xf32>
    %cst_9 = arith.constant 0.000000e+00 : f32
    %9 = vector.broadcast %cst_9 : f32 to vector<16x4096xf32>
    %10 = arith.cmpf ogt, %8, %9 : vector<16x4096xf32>
    %cst_10 = arith.constant 0.00999999977 : f32
    %11 = vector.broadcast %cst_10 : f32 to vector<16x4096xf32>
    %12 = arith.mulf %11, %8 : vector<16x4096xf32>
    %13 = arith.select %10, %8, %12 : vector<16x4096xi1>, vector<16x4096xf32>
    %c0_11 = arith.constant 0 : index
    %c0_12 = arith.constant 0 : index
    %14 = vector.load %arg6[%c0_11, %c0_12] : memref<16x4096xf32, #tpu.memory_space<vmem>>, vector<16x4096xf32>
    tpu.vector_store %arg6[%c0_11, %c0_12], %13 {strides = array<i32>} : memref<16x4096xf32, #tpu.memory_space<vmem>>, vector<16x4096xf32>,
    return
  }
  func.func @transform_0(%arg0: i32) -> (i32, i32) {
    %c0_i32 = arith.constant 0 : i32
    %c0_i32_0 = arith.constant 0 : i32
    %c0_i32_1 = arith.constant 0 : i32
    return %c0_i32, %c0_i32_0 : i32, i32
  }
  func.func @transform_1(%arg0: i32) -> (i32, i32) {
    %c0_i32 = arith.constant 0 : i32
    %c0_i32_0 = arith.constant 0 : i32
    return %c0_i32, %arg0 : i32, i32
  }
  func.func @transform_2(%arg0: i32) -> (i32, i32) {
    %c0_i32 = arith.constant 0 : i32
    %c0_i32_0 = arith.constant 0 : i32
    return %c0_i32, %arg0 : i32, i32
  }
  func.func @transform_3(%arg0: i32) -> (i32, i32) {
    %c0_i32 = arith.constant 0 : i32
    %c0_i32_0 = arith.constant 0 : i32
    return %c0_i32, %arg0 : i32, i32
  }
  func.func @transform_4(%arg0: i32) -> (i32, i32) {
    %c0_i32 = arith.constant 0 : i32
    %c0_i32_0 = arith.constant 0 : i32
    %c0_i32_1 = arith.constant 0 : i32
    return %c0_i32, %c0_i32_0 : i32, i32
  }
  func.func @transform_5(%arg0: i32) -> (i32, i32) {
    %c0_i32 = arith.constant 0 : i32
    %c0_i32_0 = arith.constant 0 : i32
    return %c0_i32, %arg0 : i32, i32
  }
}

</mosaic_0001>

<bundles_post_ra>
// kernel: mutil_stride_module_v2_1.5
= control target key start
LH: loop header
LB: loop body
LE: loop exit
PB: predicated region body
PF: predicated region fallthrough
CT: control target
= control target key end

     0   :  { %v11022_v3 = vmov 0   ;;  %vm2668_vm0 = vcmask 1045504   ;;  %vm2664_vm1 = vcmask 883712   ;;  %s11016_s1 = inlined_call_operand.vmem [shape: bf16[108,8192], index: 1, kind: input, shape index: {}]   ;;  %s11017_s0 = inlined_call_operand.vmem [shape: bf16[16,108], index: 0, kind: input, shape index: {}]   ;;  %s11018_s2 = inlined_call_operand.vmem [shape: f32[16,1], index: 2, kind: input, shape index: {}]   ;;  %s11019_s3 = inlined_call_operand.vmem [shape: f32[16,1], index: 3, kind: input, shape index: {}]   ;;  %s11020_s4 = inlined_call_operand.vmem [shape: f32[16,1], index: 4, kind: input, shape index: {}]   ;;  %s11021_s5 = inlined_call_operand.vmem [shape: f32[16,8192], index: 5, kind: output, shape index: {}]  }
   0x1   :  { %v23_v0 = vld [vmem:[%s11016_s1] sm:$0xff]  ;;  %v24_v2 = vld [vmem:[%s11016_s1 + $0x8] sm:$0xff]  ;;  %2893 = vmatprep.mubr.bf16.mxu0 %v11022_v3  ;;  %2936 = vmatprep.mubr.bf16.mxu1 %v11022_v3  ;;  %v25_v57 = vld [vmem:[%s11016_s1 + $0x10] sm:$0xff] }
   0x2   :  { %v55_v1 = vld [vmem:[%s11016_s1 + $0x100] sm:$0xff]  ;;  %v56_v5 = vld [vmem:[%s11016_s1 + $0x108] sm:$0xff]  ;;  %5955 = vset.pattern.permute.xlu0 %v11022_v3  ;;  %5956 = vset.pattern.permute.xlu1 %v11022_v3  ;;  %v57_v58 = vld [vmem:[%s11016_s1 + $0x110] sm:$0xff] }
   0x3   :  { %v5443_v4 = vcombine.high %v23_v0, %v55_v1  ;;  %v5442_v6 = vcombine.low %v23_v0, %v55_v1  ;;  %v87_v7 = vld [vmem:[%s11016_s1 + $0x200] sm:$0xff]  ;;  %v5445_v9 = vcombine.high %v24_v2, %v56_v5  ;;  %v5444_v10 = vcombine.low %v24_v2, %v56_v5  ;;  %v88_v12 = vld [vmem:[%s11016_s1 + $0x208] sm:$0xff]  ;;  %v26_v59 = vld [vmem:[%s11016_s1 + $0x18] sm:$0xff] }
   0x4   :  { %v119_v8 = vld [vmem:[%s11016_s1 + $0x300] sm:$0xff]  ;;  %v120_v13 = vld [vmem:[%s11016_s1 + $0x308] sm:$0xff]  ;;  %v58_v60 = vld [vmem:[%s11016_s1 + $0x118] sm:$0xff]  ;;  %v5447_v62 = vcombine.high %v25_v57, %v57_v58 }
   0x5   :  { %v5507_v11 = vcombine.high %v87_v7, %v119_v8  ;;  %v151_v14 = vld [vmem:[%s11016_s1 + $0x400] sm:$0xff]  ;;  %2861 = vmatprep.subr.bf16.mxu0 %v5443_v4  ;;  %v5509_v15 = vcombine.high %v88_v12, %v120_v13  ;;  %v152_v17 = vld [vmem:[%s11016_s1 + $0x408] sm:$0xff]  ;;  %2904 = vmatprep.subr.bf16.mxu1 %v5445_v9  ;;  %v5506_v19 = vcombine.low %v87_v7, %v119_v8  ;;  %v89_v1 = vld [vmem:[%s11016_s1 + $0x210] sm:$0xff] }
   0x6   :  { %v183_v16 = vld [vmem:[%s11016_s1 + $0x500] sm:$0xff]  ;;  %v184_v18 = vld [vmem:[%s11016_s1 + $0x508] sm:$0xff]  ;;  %2862 = vmatpush1.bf16.msra.mxu0 %v5442_v6  ;;  %2905 = vmatpush1.bf16.msra.mxu1 %v5444_v10  ;;  %v5508_v20 = vcombine.low %v88_v12, %v120_v13  ;;  %v5449_v0 = vcombine.high %v26_v59, %v58_v60  ;;  %v121_v2 = vld [vmem:[%s11016_s1 + $0x310] sm:$0xff]  ;;  %v5446_v7 = vcombine.low %v25_v57, %v57_v58 }
   0x7   :  { %2863 = vmatprep.subr.bf16.mxu0 %v5507_v11  ;;  %v5571_v21 = vcombine.high %v151_v14, %v183_v16  ;;  %2906 = vmatprep.subr.bf16.mxu1 %v5509_v15  ;;  %v5573_v22 = vcombine.high %v152_v17, %v184_v18  ;;  %v215_v23 = vld [vmem:[%s11016_s1 + $0x600] sm:$0xff]  ;;  %v216_v25 = vld [vmem:[%s11016_s1 + $0x608] sm:$0xff]  ;;  %v5570_v27 = vcombine.low %v151_v14, %v183_v16  ;;  %v90_v5 = vld [vmem:[%s11016_s1 + $0x218] sm:$0xff] }
   0x8   :  { %v247_v24 = vld [vmem:[%s11016_s1 + $0x700] sm:$0xff]  ;;  %v248_v26 = vld [vmem:[%s11016_s1 + $0x708] sm:$0xff]  ;;  %v5572_v28 = vcombine.low %v152_v17, %v184_v18  ;;  %v122_v6 = vld [vmem:[%s11016_s1 + $0x318] sm:$0xff]  ;;  %v5448_v8 = vcombine.low %v26_v59, %v58_v60  ;;  %v5511_v9 = vcombine.high %v89_v1, %v121_v2  ;;  %v5510_v15 = vcombine.low %v89_v1, %v121_v2 }
   0x9   :  { %v5635_v29 = vcombine.high %v215_v23, %v247_v24  ;;  %v5637_v30 = vcombine.high %v216_v25, %v248_v26  ;;  %v279_v31 = vld [vmem:[%s11016_s1 + $0x800] sm:$0xff]  ;;  %v280_v33 = vld [vmem:[%s11016_s1 + $0x808] sm:$0xff]  ;;  %v5634_v35 = vcombine.low %v215_v23, %v247_v24  ;;  %v5636_v36 = vcombine.low %v216_v25, %v248_v26  ;;  %v153_v11 = vld [vmem:[%s11016_s1 + $0x410] sm:$0xff] }
   0xa   :  { %2864 = vmatpush1.bf16.msra.mxu0 %v5506_v19  ;;  %2907 = vmatpush1.bf16.msra.mxu1 %v5508_v20  ;;  %v311_v32 = vld [vmem:[%s11016_s1 + $0x900] sm:$0xff]  ;;  %v312_v34 = vld [vmem:[%s11016_s1 + $0x908] sm:$0xff]  ;;  %v5513_v10 = vcombine.high %v90_v5, %v122_v6  ;;  %v185_v12 = vld [vmem:[%s11016_s1 + $0x510] sm:$0xff]  ;;  %v5512_v16 = vcombine.low %v90_v5, %v122_v6 }
   0xb   :  { %2865 = vmatprep.subr.bf16.mxu0 %v5571_v21  ;;  %2908 = vmatprep.subr.bf16.mxu1 %v5573_v22  ;;  %v5699_v37 = vcombine.high %v279_v31, %v311_v32  ;;  %v5701_v38 = vcombine.high %v280_v33, %v312_v34  ;;  %v343_v39 = vld [vmem:[%s11016_s1 + $0xa00] sm:$0xff]  ;;  %v344_v41 = vld [vmem:[%s11016_s1 + $0xa08] sm:$0xff]  ;;  %v5698_v43 = vcombine.low %v279_v31, %v311_v32  ;;  %v154_v13 = vld [vmem:[%s11016_s1 + $0x418] sm:$0xff] }
   0xc   :  { %v375_v40 = vld [vmem:[%s11016_s1 + $0xb00] sm:$0xff]  ;;  %v376_v42 = vld [vmem:[%s11016_s1 + $0xb08] sm:$0xff]  ;;  %v5700_v44 = vcombine.low %v280_v33, %v312_v34  ;;  %v186_v14 = vld [vmem:[%s11016_s1 + $0x518] sm:$0xff]  ;;  %v5575_v17 = vcombine.high %v153_v11, %v185_v12  ;;  %v5574_v23 = vcombine.low %v153_v11, %v185_v12 }
   0xd   :  { %v5763_v45 = vcombine.high %v343_v39, %v375_v40  ;;  %v5765_v46 = vcombine.high %v344_v41, %v376_v42  ;;  %v407_v47 = vld [vmem:[%s11016_s1 + $0xc00] sm:$0xff]  ;;  %v408_v49 = vld [vmem:[%s11016_s1 + $0xc08] sm:$0xff]  ;;  %v5762_v51 = vcombine.low %v343_v39, %v375_v40  ;;  %v5764_v52 = vcombine.low %v344_v41, %v376_v42  ;;  %v217_v19 = vld [vmem:[%s11016_s1 + $0x610] sm:$0xff] }
   0xe   :  { %2866 = vmatpush1.bf16.msra.mxu0 %v5570_v27  ;;  %2909 = vmatpush1.bf16.msra.mxu1 %v5572_v28  ;;  %v439_v48 = vld [vmem:[%s11016_s1 + $0xd00] sm:$0x33]  ;;  %v440_v50 = vld [vmem:[%s11016_s1 + $0xd08] sm:$0x33]  ;;  %v5577_v18 = vcombine.high %v154_v13, %v186_v14  ;;  %v249_v20 = vld [vmem:[%s11016_s1 + $0x710] sm:$0xff]  ;;  %v5576_v24 = vcombine.low %v154_v13, %v186_v14 }
   0xf   :  { %2867 = vmatprep.subr.bf16.mxu0 %v5635_v29  ;;  %2910 = vmatprep.subr.bf16.mxu1 %v5637_v30  ;;  %v5827_v53 = vcombine.high %v407_v47, %v439_v48  ;;  %v5826_v54 = vcombine.low %v407_v47, %v439_v48  ;;  %v5829_v55 = vcombine.high %v408_v49, %v440_v50  ;;  %v6108_v4 = vld [vmem:[%s11017_s0] sm:$0xff]   ;;  %v218_v21 = vld [vmem:[%s11016_s1 + $0x618] sm:$0xff]  ;;  %v281_v27 = vld [vmem:[%s11016_s1 + $0x810] sm:$0xff] }
  0x10   :  { %v5828_v56 = vcombine.low %v408_v49, %v440_v50  ;;  %v250_v22 = vld [vmem:[%s11016_s1 + $0x718] sm:$0xff]  ;;  %v5639_v25 = vcombine.high %v217_v19, %v249_v20  ;;  %v313_v28 = vld [vmem:[%s11016_s1 + $0x910] sm:$0xff]  ;;  %v471_v29 = vld [vmem:[%s11018_s2] sm:$0xff]  ;;  %v5638_v32 = vcombine.low %v217_v19, %v249_v20 }
  0x11   :  { %v2670_v61 = vsel %vm2668_vm0, %v5826_v54, 0  ;;  %v5641_v26 = vcombine.high %v218_v21, %v250_v22  ;;  %v282_v30 = vld [vmem:[%s11016_s1 + $0x818] sm:$0xff]  ;;  %475 = vperm.xlu0 %5955, %v471_v29   ;;  %v472_v33 = vld [vmem:[%s11018_s2 + $0x8] sm:$0xff]  ;;  %v5640_v34 = vcombine.low %v218_v21, %v250_v22  ;;  %v5702_v41 = vcombine.low %v281_v27, %v313_v28 }
  0x12   :  { %2868 = vmatpush1.bf16.msra.mxu0 %v5634_v35  ;;  %2911 = vmatpush1.bf16.msra.mxu1 %v5636_v36  ;;  %v2676_v63 = vsel %vm2668_vm0, %v5828_v56, 0  ;;  %v314_v31 = vld [vmem:[%s11016_s1 + $0x918] sm:$0xff]  ;;  %v5703_v35 = vcombine.high %v281_v27, %v313_v28  ;;  %v59_v56 = vld [vmem:[%s11016_s1 + $0x120] sm:$0xff]  ;;  %v28_v57 = vld [vmem:[%s11016_s1 + $0x28] sm:$0xff] }
  0x13   :  { %2869 = vmatprep.subr.bf16.mxu0 %v5699_v37  ;;  %2912 = vmatprep.subr.bf16.mxu1 %v5701_v38  ;;  %v5705_v36 = vcombine.high %v282_v30, %v314_v31  ;;  %v345_v37 = vld [vmem:[%s11016_s1 + $0xa10] sm:$0xff]  ;;  %v346_v39 = vld [vmem:[%s11016_s1 + $0xa18] sm:$0xff]  ;;  %v5704_v42 = vcombine.low %v282_v30, %v314_v31  ;;  %v60_v58 = vld [vmem:[%s11016_s1 + $0x128] sm:$0xff] }
  0x14   :  { %v377_v38 = vld [vmem:[%s11016_s1 + $0xb10] sm:$0xff]  ;;  %v378_v40 = vld [vmem:[%s11016_s1 + $0xb18] sm:$0xff]  ;;  %v92_v1 = vld [vmem:[%s11016_s1 + $0x228] sm:$0xff]  ;;  %v5452_v6 = vcombine.low %v28_v57, %v60_v58 }
  0x15   :  { %480 = vperm.xlu0 %5955, %v472_v33   ;;  %v410_v47 = vld [vmem:[%s11016_s1 + $0xc18] sm:$0xff]  ;;  %v5766_v49 = vcombine.low %v345_v37, %v377_v38  ;;  %v5768_v50 = vcombine.low %v346_v39, %v378_v40  ;;  %v124_v2 = vld [vmem:[%s11016_s1 + $0x328] sm:$0xff]  ;;  %v347_v33 = vld [vmem:[%s11016_s1 + $0xa20] sm:$0xff] }
  0x16   :  { %2870 = vmatpush1.bf16.msra.mxu0 %v5698_v43  ;;  %2913 = vmatpush1.bf16.msra.mxu1 %v5700_v44  ;;  %v5767_v43 = vcombine.high %v345_v37, %v377_v38  ;;  %v5769_v44 = vcombine.high %v346_v39, %v378_v40  ;;  %v442_v48 = vld [vmem:[%s11016_s1 + $0xd18] sm:$0x33]  ;;  %v156_v11 = vld [vmem:[%s11016_s1 + $0x428] sm:$0xff]  ;;  %v5516_v14 = vcombine.low %v92_v1, %v124_v2 }
  0x17   :  { %2871 = vmatprep.subr.bf16.mxu0 %v5763_v45  ;;  %2914 = vmatprep.subr.bf16.mxu1 %v5765_v46  ;;  %v409_v45 = vld [vmem:[%s11016_s1 + $0xc10] sm:$0xff]  ;;  %v5832_v54 = vcombine.low %v410_v47, %v442_v48  ;;  %v188_v12 = vld [vmem:[%s11016_s1 + $0x528] sm:$0xff] }
  0x18   :  { %v441_v46 = vld [vmem:[%s11016_s1 + $0xd10] sm:$0x33]  ;;  %v220_v19 = vld [vmem:[%s11016_s1 + $0x628] sm:$0xff]  ;;  %v5580_v22 = vcombine.low %v156_v11, %v188_v12 }
  0x19   :  { %v252_v20 = vld [vmem:[%s11016_s1 + $0x728] sm:$0xff] }
  0x1a   :  { %2872 = vmatpush1.bf16.msra.mxu0 %v5762_v51  ;;  %2915 = vmatpush1.bf16.msra.mxu1 %v5764_v52  ;;  %v5831_v51 = vcombine.high %v409_v45, %v441_v46  ;;  %v5830_v52 = vcombine.low %v409_v45, %v441_v46  ;;  %v284_v27 = vld [vmem:[%s11016_s1 + $0x828] sm:$0xff]  ;;  %v5644_v30 = vcombine.low %v220_v19, %v252_v20 }
  0x1b   :  { %5890 = vmatprep.subr.msk.bf16.mxu0 %vm2668_vm0, %v5827_v53  ;;  %5892 = vmatprep.subr.msk.bf16.mxu1 %vm2668_vm0, %v5829_v55  ;;  %v5833_v53 = vcombine.high %v410_v47, %v442_v48  ;;  %v27_v55 = vld [vmem:[%s11016_s1 + $0x20] sm:$0xff]  ;;  %v316_v28 = vld [vmem:[%s11016_s1 + $0x928] sm:$0xff] }
  0x1c   :  { %v2682_v59 = vsel %vm2668_vm0, %v5830_v52, 0  ;;  %v5451_v60 = vcombine.high %v27_v55, %v59_v56  ;;  %v5450_v5 = vcombine.low %v27_v55, %v59_v56  ;;  %v5708_v38 = vcombine.low %v284_v27, %v316_v28  ;;  %v61_v52 = vld [vmem:[%s11016_s1 + $0x130] sm:$0xff] }
  0x1e   :  { %2874 = vmatpush1.bf16.msra.mxu0 %v2670_v61  ;;  %2917 = vmatpush1.bf16.msra.mxu1 %v2676_v63  ;;  %v2688_v61 = vsel %vm2668_vm0, %v5832_v54, 0  ;;  %v91_v63 = vld [vmem:[%s11016_s1 + $0x220] sm:$0xff]  ;;  %v62_v54 = vld [vmem:[%s11016_s1 + $0x138] sm:$0xff] }
  0x1f   :  { %2947 = vmatprep.subr.bf16.mxu0 %v5447_v62  ;;  %2990 = vmatprep.subr.bf16.mxu1 %v5449_v0  ;;  %v5453_v62 = vcombine.high %v28_v57, %v60_v58  ;;  %v123_v0 = vld [vmem:[%s11016_s1 + $0x320] sm:$0xff] }
  0x20   :  { %v5514_v13 = vcombine.low %v91_v63, %v123_v0 }
  0x21   :  { %5891 = vmatmul.mubr.msk.bf16.vlgmr.msra.gmra.mrb[0].mxu0 %vm2664_vm1, %v6108_v4  ;;  %5893 = vmatmul.mubr.msk.bf16.vlgmr.msra.gmra.mrb[0].mxu1 %vm2664_vm1, %v6108_v4 }
  0x22   :  { %2948 = vmatpush1.bf16.msra.mxu0 %v5446_v7  ;;  %2991 = vmatpush1.bf16.msra.mxu1 %v5448_v8  ;;  %v5515_v7 = vcombine.high %v91_v63, %v123_v0  ;;  %v5517_v8 = vcombine.high %v92_v1, %v124_v2 }
  0x23   :  { %2949 = vmatprep.subr.bf16.mxu0 %v5511_v9  ;;  %2992 = vmatprep.subr.bf16.mxu1 %v5513_v10  ;;  %v155_v9 = vld [vmem:[%s11016_s1 + $0x420] sm:$0xff] }
  0x24   :  { %2979 = vmatprep.mubr.bf16.mxu0 %v11022_v3  ;;  %3022 = vmatprep.mubr.bf16.mxu1 %v11022_v3  ;;  %v187_v10 = vld [vmem:[%s11016_s1 + $0x520] sm:$0xff] }
  0x25   :  { %v5578_v21 = vcombine.low %v155_v9, %v187_v10 }
  0x26   :  { %2950 = vmatpush1.bf16.msra.mxu0 %v5510_v15  ;;  %2993 = vmatpush1.bf16.msra.mxu1 %v5512_v16  ;;  %v5579_v15 = vcombine.high %v155_v9, %v187_v10  ;;  %v5581_v16 = vcombine.high %v156_v11, %v188_v12 }
  0x27   :  { %2951 = vmatprep.subr.bf16.mxu0 %v5575_v17  ;;  %2994 = vmatprep.subr.bf16.mxu1 %v5577_v18  ;;  %v219_v17 = vld [vmem:[%s11016_s1 + $0x620] sm:$0xff] }
  0x28   :  { %v251_v18 = vld [vmem:[%s11016_s1 + $0x720] sm:$0xff] }
  0x29   :  { %v5642_v29 = vcombine.low %v219_v17, %v251_v18 }
  0x2a   :  { %2952 = vmatpush1.bf16.msra.mxu0 %v5574_v23  ;;  %2995 = vmatpush1.bf16.msra.mxu1 %v5576_v24  ;;  %v5643_v23 = vcombine.high %v219_v17, %v251_v18  ;;  %v5645_v24 = vcombine.high %v220_v19, %v252_v20 }
  0x2b   :  { %2953 = vmatprep.subr.bf16.mxu0 %v5639_v25  ;;  %2996 = vmatprep.subr.bf16.mxu1 %v5641_v26  ;;  %v283_v25 = vld [vmem:[%s11016_s1 + $0x820] sm:$0xff] }
  0x2c   :  { %v315_v26 = vld [vmem:[%s11016_s1 + $0x920] sm:$0xff] }
  0x2d   :  { %v5707_v31 = vcombine.high %v283_v25, %v315_v26  ;;  %v5706_v37 = vcombine.low %v283_v25, %v315_v26 }
  0x2e   :  { %2954 = vmatpush1.bf16.msra.mxu0 %v5638_v32  ;;  %2997 = vmatpush1.bf16.msra.mxu1 %v5640_v34  ;;  %v5709_v32 = vcombine.high %v284_v27, %v316_v28  ;;  %v379_v34 = vld [vmem:[%s11016_s1 + $0xb20] sm:$0xff] }
  0x2f   :  { %2955 = vmatprep.subr.bf16.mxu0 %v5703_v35  ;;  %2998 = vmatprep.subr.bf16.mxu1 %v5705_v36  ;;  %v348_v35 = vld [vmem:[%s11016_s1 + $0xa28] sm:$0xff]  ;;  %v5771_v39 = vcombine.high %v347_v33, %v379_v34  ;;  %v5770_v45 = vcombine.low %v347_v33, %v379_v34 }
  0x30   :  { %v380_v36 = vld [vmem:[%s11016_s1 + $0xb28] sm:$0xff] }
  0x31   :  { %v5773_v40 = vcombine.high %v348_v35, %v380_v36  ;;  %v5772_v46 = vcombine.low %v348_v35, %v380_v36 }
  0x32   :  { %2956 = vmatpush1.bf16.msra.mxu0 %v5702_v41  ;;  %2999 = vmatpush1.bf16.msra.mxu1 %v5704_v42  ;;  %v411_v41 = vld [vmem:[%s11016_s1 + $0xc20] sm:$0xff] }
  0x33   :  { %2957 = vmatprep.subr.bf16.mxu0 %v5767_v43  ;;  %3000 = vmatprep.subr.bf16.mxu1 %v5769_v44  ;;  %v443_v42 = vld [vmem:[%s11016_s1 + $0xd20] sm:$0x33]  ;;  %v412_v43 = vld [vmem:[%s11016_s1 + $0xc28] sm:$0xff] }
  0x34   :  { %v444_v44 = vld [vmem:[%s11016_s1 + $0xd28] sm:$0x33]  ;;  %v5835_v47 = vcombine.high %v411_v41, %v443_v42  ;;  %v5834_v48 = vcombine.low %v411_v41, %v443_v42 }
  0x36   :  { %2958 = vmatpush1.bf16.msra.mxu0 %v5766_v49  ;;  %3001 = vmatpush1.bf16.msra.mxu1 %v5768_v50  ;;  %v5837_v49 = vcombine.high %v412_v43, %v444_v44  ;;  %v5836_v50 = vcombine.low %v412_v43, %v444_v44  ;;  %v2694_v55 = vsel %vm2668_vm0, %v5834_v48, 0  ;;  %v63_v48 = vld [vmem:[%s11016_s1 + $0x140] sm:$0xff] }
  0x37   :  { %5894 = vmatprep.subr.msk.bf16.mxu0 %vm2668_vm0, %v5831_v51  ;;  %5896 = vmatprep.subr.msk.bf16.mxu1 %vm2668_vm0, %v5833_v53  ;;  %v29_v51 = vld [vmem:[%s11016_s1 + $0x30] sm:$0xff]  ;;  %v30_v53 = vld [vmem:[%s11016_s1 + $0x38] sm:$0xff] }
  0x38   :  { %v5455_v56 = vcombine.high %v29_v51, %v61_v52  ;;  %v2700_v57 = vsel %vm2668_vm0, %v5836_v50, 0  ;;  %v5457_v58 = vcombine.high %v30_v53, %v62_v54  ;;  %v5454_v63 = vcombine.low %v29_v51, %v61_v52  ;;  %v64_v50 = vld [vmem:[%s11016_s1 + $0x148] sm:$0xff] }
  0x39   :  { %v5456_v0 = vcombine.low %v30_v53, %v62_v54 }
  0x3a   :  { %2960 = vmatpush1.bf16.msra.mxu0 %v2682_v59  ;;  %3003 = vmatpush1.bf16.msra.mxu1 %v2688_v61  ;;  %v93_v59 = vld [vmem:[%s11016_s1 + $0x230] sm:$0xff]  ;;  %v94_v61 = vld [vmem:[%s11016_s1 + $0x238] sm:$0xff] }
  0x3b   :  { %3033 = vmatprep.subr.bf16.mxu0 %v5451_v60  ;;  %3076 = vmatprep.subr.bf16.mxu1 %v5453_v62  ;;  %v125_v60 = vld [vmem:[%s11016_s1 + $0x330] sm:$0xff]  ;;  %v126_v62 = vld [vmem:[%s11016_s1 + $0x338] sm:$0xff] }
  0x3c   :  { %v5519_v1 = vcombine.high %v93_v59, %v125_v60  ;;  %v5521_v2 = vcombine.high %v94_v61, %v126_v62  ;;  %v5518_v9 = vcombine.low %v93_v59, %v125_v60  ;;  %v5520_v10 = vcombine.low %v94_v61, %v126_v62 }
  0x3d   :  { %5895 = vmatmul.mubr.msk.bf16.vlgmr.msra.gmra.mrb[4].mxu0 %vm2664_vm1, %v6108_v4  ;;  %5897 = vmatmul.mubr.msk.bf16.vlgmr.msra.gmra.mrb[4].mxu1 %vm2664_vm1, %v6108_v4 }
  0x3e   :  { %3034 = vmatpush1.bf16.msra.mxu0 %v5450_v5  ;;  %3077 = vmatpush1.bf16.msra.mxu1 %v5452_v6  ;;  %v157_v5 = vld [vmem:[%s11016_s1 + $0x430] sm:$0xff] }
  0x3f   :  { %3035 = vmatprep.subr.bf16.mxu0 %v5515_v7  ;;  %3078 = vmatprep.subr.bf16.mxu1 %v5517_v8  ;;  %v189_v6 = vld [vmem:[%s11016_s1 + $0x530] sm:$0xff]  ;;  %v158_v7 = vld [vmem:[%s11016_s1 + $0x438] sm:$0xff] }
  0x40   :  { %3065 = vmatprep.mubr.bf16.mxu0 %v11022_v3  ;;  %3108 = vmatprep.mubr.bf16.mxu1 %v11022_v3  ;;  %v190_v8 = vld [vmem:[%s11016_s1 + $0x538] sm:$0xff]  ;;  %v5583_v11 = vcombine.high %v157_v5, %v189_v6  ;;  %v5582_v17 = vcombine.low %v157_v5, %v189_v6 }
  0x41   :  { %v5585_v12 = vcombine.high %v158_v7, %v190_v8  ;;  %v5584_v18 = vcombine.low %v158_v7, %v190_v8 }
  0x42   :  { %3036 = vmatpush1.bf16.msra.mxu0 %v5514_v13  ;;  %3079 = vmatpush1.bf16.msra.mxu1 %v5516_v14  ;;  %v221_v13 = vld [vmem:[%s11016_s1 + $0x630] sm:$0xff] }
  0x43   :  { %3037 = vmatprep.subr.bf16.mxu0 %v5579_v15  ;;  %3080 = vmatprep.subr.bf16.mxu1 %v5581_v16  ;;  %v253_v14 = vld [vmem:[%s11016_s1 + $0x730] sm:$0xff]  ;;  %v222_v15 = vld [vmem:[%s11016_s1 + $0x638] sm:$0xff] }
  0x44   :  { %v254_v16 = vld [vmem:[%s11016_s1 + $0x738] sm:$0xff]  ;;  %v5647_v19 = vcombine.high %v221_v13, %v253_v14  ;;  %v5646_v25 = vcombine.low %v221_v13, %v253_v14 }
  0x45   :  { %v5649_v20 = vcombine.high %v222_v15, %v254_v16  ;;  %v5648_v26 = vcombine.low %v222_v15, %v254_v16 }
  0x46   :  { %3038 = vmatpush1.bf16.msra.mxu0 %v5578_v21  ;;  %3081 = vmatpush1.bf16.msra.mxu1 %v5580_v22  ;;  %v285_v21 = vld [vmem:[%s11016_s1 + $0x830] sm:$0xff] }
  0x47   :  { %3039 = vmatprep.subr.bf16.mxu0 %v5643_v23  ;;  %3082 = vmatprep.subr.bf16.mxu1 %v5645_v24  ;;  %v317_v22 = vld [vmem:[%s11016_s1 + $0x930] sm:$0xff]  ;;  %v286_v23 = vld [vmem:[%s11016_s1 + $0x838] sm:$0xff] }
  0x48   :  { %v318_v24 = vld [vmem:[%s11016_s1 + $0x938] sm:$0xff]  ;;  %v5711_v27 = vcombine.high %v285_v21, %v317_v22  ;;  %v5710_v33 = vcombine.low %v285_v21, %v317_v22 }
  0x49   :  { %v5713_v28 = vcombine.high %v286_v23, %v318_v24  ;;  %v5712_v34 = vcombine.low %v286_v23, %v318_v24 }
  0x4a   :  { %3040 = vmatpush1.bf16.msra.mxu0 %v5642_v29  ;;  %3083 = vmatpush1.bf16.msra.mxu1 %v5644_v30  ;;  %v349_v29 = vld [vmem:[%s11016_s1 + $0xa30] sm:$0xff] }
  0x4b   :  { %3041 = vmatprep.subr.bf16.mxu0 %v5707_v31  ;;  %3084 = vmatprep.subr.bf16.mxu1 %v5709_v32  ;;  %v381_v30 = vld [vmem:[%s11016_s1 + $0xb30] sm:$0xff]  ;;  %v350_v31 = vld [vmem:[%s11016_s1 + $0xa38] sm:$0xff] }
  0x4c   :  { %v382_v32 = vld [vmem:[%s11016_s1 + $0xb38] sm:$0xff]  ;;  %v5775_v35 = vcombine.high %v349_v29, %v381_v30  ;;  %v5774_v41 = vcombine.low %v349_v29, %v381_v30 }
  0x4d   :  { %v5777_v36 = vcombine.high %v350_v31, %v382_v32  ;;  %v5776_v42 = vcombine.low %v350_v31, %v382_v32 }
  0x4e   :  { %3042 = vmatpush1.bf16.msra.mxu0 %v5706_v37  ;;  %3085 = vmatpush1.bf16.msra.mxu1 %v5708_v38  ;;  %v413_v37 = vld [vmem:[%s11016_s1 + $0xc30] sm:$0xff] }
  0x4f   :  { %3043 = vmatprep.subr.bf16.mxu0 %v5771_v39  ;;  %3086 = vmatprep.subr.bf16.mxu1 %v5773_v40  ;;  %v445_v38 = vld [vmem:[%s11016_s1 + $0xd30] sm:$0x33]  ;;  %v414_v39 = vld [vmem:[%s11016_s1 + $0xc38] sm:$0xff] }
  0x50   :  { %v446_v40 = vld [vmem:[%s11016_s1 + $0xd38] sm:$0x33]  ;;  %v5839_v43 = vcombine.high %v413_v37, %v445_v38  ;;  %v5838_v44 = vcombine.low %v413_v37, %v445_v38 }
  0x52   :  { %3044 = vmatpush1.bf16.msra.mxu0 %v5770_v45  ;;  %3087 = vmatpush1.bf16.msra.mxu1 %v5772_v46  ;;  %v5841_v45 = vcombine.high %v414_v39, %v446_v40  ;;  %v5840_v46 = vcombine.low %v414_v39, %v446_v40  ;;  %v2706_v51 = vsel %vm2668_vm0, %v5838_v44, 0  ;;  %v65_v44 = vld [vmem:[%s11016_s1 + $0x150] sm:$0xff] }
  0x53   :  { %5898 = vmatprep.subr.msk.bf16.mxu0 %vm2668_vm0, %v5835_v47  ;;  %5900 = vmatprep.subr.msk.bf16.mxu1 %vm2668_vm0, %v5837_v49  ;;  %v31_v47 = vld [vmem:[%s11016_s1 + $0x40] sm:$0xff]  ;;  %v32_v49 = vld [vmem:[%s11016_s1 + $0x48] sm:$0xff] }
  0x54   :  { %v5459_v52 = vcombine.high %v31_v47, %v63_v48  ;;  %v2712_v53 = vsel %vm2668_vm0, %v5840_v46, 0  ;;  %v5461_v54 = vcombine.high %v32_v49, %v64_v50  ;;  %v5458_v59 = vcombine.low %v31_v47, %v63_v48  ;;  %v66_v46 = vld [vmem:[%s11016_s1 + $0x158] sm:$0xff] }
  0x55   :  { %v5460_v60 = vcombine.low %v32_v49, %v64_v50 }
  0x56   :  { %3046 = vmatpush1.bf16.msra.mxu0 %v2694_v55  ;;  %3089 = vmatpush1.bf16.msra.mxu1 %v2700_v57  ;;  %v95_v55 = vld [vmem:[%s11016_s1 + $0x240] sm:$0xff]  ;;  %v96_v57 = vld [vmem:[%s11016_s1 + $0x248] sm:$0xff] }
  0x57   :  { %3119 = vmatprep.subr.bf16.mxu0 %v5455_v56  ;;  %3162 = vmatprep.subr.bf16.mxu1 %v5457_v58  ;;  %v127_v56 = vld [vmem:[%s11016_s1 + $0x340] sm:$0xff]  ;;  %v128_v58 = vld [vmem:[%s11016_s1 + $0x348] sm:$0xff] }
  0x58   :  { %v5523_v61 = vcombine.high %v95_v55, %v127_v56  ;;  %v5525_v62 = vcombine.high %v96_v57, %v128_v58  ;;  %v5522_v5 = vcombine.low %v95_v55, %v127_v56  ;;  %v5524_v6 = vcombine.low %v96_v57, %v128_v58 }
  0x59   :  { %5899 = vmatmul.mubr.msk.bf16.vlgmr.msra.gmra.mrb[8].mxu0 %vm2664_vm1, %v6108_v4  ;;  %5901 = vmatmul.mubr.msk.bf16.vlgmr.msra.gmra.mrb[8].mxu1 %vm2664_vm1, %v6108_v4 }
  0x5a   :  { %3120 = vmatpush1.bf16.msra.mxu0 %v5454_v63  ;;  %3163 = vmatpush1.bf16.msra.mxu1 %v5456_v0  ;;  %v159_v63 = vld [vmem:[%s11016_s1 + $0x440] sm:$0xff] }
  0x5b   :  { %3121 = vmatprep.subr.bf16.mxu0 %v5519_v1  ;;  %3164 = vmatprep.subr.bf16.mxu1 %v5521_v2  ;;  %v191_v0 = vld [vmem:[%s11016_s1 + $0x540] sm:$0xff]  ;;  %v160_v1 = vld [vmem:[%s11016_s1 + $0x448] sm:$0xff] }
  0x5c   :  { %3151 = vmatprep.mubr.bf16.mxu0 %v11022_v3  ;;  %3194 = vmatprep.mubr.bf16.mxu1 %v11022_v3  ;;  %v192_v2 = vld [vmem:[%s11016_s1 + $0x548] sm:$0xff]  ;;  %v5587_v7 = vcombine.high %v159_v63, %v191_v0  ;;  %v5586_v13 = vcombine.low %v159_v63, %v191_v0 }
  0x5d   :  { %v5589_v8 = vcombine.high %v160_v1, %v192_v2  ;;  %v5588_v14 = vcombine.low %v160_v1, %v192_v2 }
  0x5e   :  { %3122 = vmatpush1.bf16.msra.mxu0 %v5518_v9  ;;  %3165 = vmatpush1.bf16.msra.mxu1 %v5520_v10  ;;  %v223_v9 = vld [vmem:[%s11016_s1 + $0x640] sm:$0xff] }
  0x5f   :  { %3123 = vmatprep.subr.bf16.mxu0 %v5583_v11  ;;  %3166 = vmatprep.subr.bf16.mxu1 %v5585_v12  ;;  %v255_v10 = vld [vmem:[%s11016_s1 + $0x740] sm:$0xff]  ;;  %v224_v11 = vld [vmem:[%s11016_s1 + $0x648] sm:$0xff] }
  0x60   :  { %v256_v12 = vld [vmem:[%s11016_s1 + $0x748] sm:$0xff]  ;;  %v5651_v15 = vcombine.high %v223_v9, %v255_v10  ;;  %v5650_v21 = vcombine.low %v223_v9, %v255_v10 }
  0x61   :  { %v5653_v16 = vcombine.high %v224_v11, %v256_v12  ;;  %v5652_v22 = vcombine.low %v224_v11, %v256_v12 }
  0x62   :  { %3124 = vmatpush1.bf16.msra.mxu0 %v5582_v17  ;;  %3167 = vmatpush1.bf16.msra.mxu1 %v5584_v18  ;;  %v287_v17 = vld [vmem:[%s11016_s1 + $0x840] sm:$0xff] }
  0x63   :  { %3125 = vmatprep.subr.bf16.mxu0 %v5647_v19  ;;  %3168 = vmatprep.subr.bf16.mxu1 %v5649_v20  ;;  %v319_v18 = vld [vmem:[%s11016_s1 + $0x940] sm:$0xff]  ;;  %v288_v19 = vld [vmem:[%s11016_s1 + $0x848] sm:$0xff] }
  0x64   :  { %v320_v20 = vld [vmem:[%s11016_s1 + $0x948] sm:$0xff]  ;;  %v5715_v23 = vcombine.high %v287_v17, %v319_v18  ;;  %v5714_v29 = vcombine.low %v287_v17, %v319_v18 }
  0x65   :  { %v5717_v24 = vcombine.high %v288_v19, %v320_v20  ;;  %v5716_v30 = vcombine.low %v288_v19, %v320_v20 }
  0x66   :  { %3126 = vmatpush1.bf16.msra.mxu0 %v5646_v25  ;;  %3169 = vmatpush1.bf16.msra.mxu1 %v5648_v26  ;;  %v351_v25 = vld [vmem:[%s11016_s1 + $0xa40] sm:$0xff] }
  0x67   :  { %3127 = vmatprep.subr.bf16.mxu0 %v5711_v27  ;;  %3170 = vmatprep.subr.bf16.mxu1 %v5713_v28  ;;  %v383_v26 = vld [vmem:[%s11016_s1 + $0xb40] sm:$0xff]  ;;  %v352_v27 = vld [vmem:[%s11016_s1 + $0xa48] sm:$0xff] }
  0x68   :  { %v384_v28 = vld [vmem:[%s11016_s1 + $0xb48] sm:$0xff]  ;;  %v5779_v31 = vcombine.high %v351_v25, %v383_v26  ;;  %v5778_v37 = vcombine.low %v351_v25, %v383_v26 }
  0x69   :  { %v5781_v32 = vcombine.high %v352_v27, %v384_v28  ;;  %v5780_v38 = vcombine.low %v352_v27, %v384_v28 }
  0x6a   :  { %3128 = vmatpush1.bf16.msra.mxu0 %v5710_v33  ;;  %3171 = vmatpush1.bf16.msra.mxu1 %v5712_v34  ;;  %v415_v33 = vld [vmem:[%s11016_s1 + $0xc40] sm:$0xff] }
  0x6b   :  { %3129 = vmatprep.subr.bf16.mxu0 %v5775_v35  ;;  %3172 = vmatprep.subr.bf16.mxu1 %v5777_v36  ;;  %v447_v34 = vld [vmem:[%s11016_s1 + $0xd40] sm:$0x33]  ;;  %v416_v35 = vld [vmem:[%s11016_s1 + $0xc48] sm:$0xff] }
  0x6c   :  { %v448_v36 = vld [vmem:[%s11016_s1 + $0xd48] sm:$0x33]  ;;  %v5843_v39 = vcombine.high %v415_v33, %v447_v34  ;;  %v5842_v40 = vcombine.low %v415_v33, %v447_v34 }
  0x6e   :  { %3130 = vmatpush1.bf16.msra.mxu0 %v5774_v41  ;;  %3173 = vmatpush1.bf16.msra.mxu1 %v5776_v42  ;;  %v5845_v41 = vcombine.high %v416_v35, %v448_v36  ;;  %v5844_v42 = vcombine.low %v416_v35, %v448_v36  ;;  %v2718_v47 = vsel %vm2668_vm0, %v5842_v40, 0  ;;  %v67_v40 = vld [vmem:[%s11016_s1 + $0x160] sm:$0xff] }
  0x6f   :  { %5902 = vmatprep.subr.msk.bf16.mxu0 %vm2668_vm0, %v5839_v43  ;;  %5904 = vmatprep.subr.msk.bf16.mxu1 %vm2668_vm0, %v5841_v45  ;;  %v33_v43 = vld [vmem:[%s11016_s1 + $0x50] sm:$0xff]  ;;  %v34_v45 = vld [vmem:[%s11016_s1 + $0x58] sm:$0xff] }
  0x70   :  { %v5463_v48 = vcombine.high %v33_v43, %v65_v44  ;;  %v2724_v49 = vsel %vm2668_vm0, %v5844_v42, 0  ;;  %v5465_v50 = vcombine.high %v34_v45, %v66_v46  ;;  %v5462_v55 = vcombine.low %v33_v43, %v65_v44  ;;  %v68_v42 = vld [vmem:[%s11016_s1 + $0x168] sm:$0xff] }
  0x71   :  { %v5464_v56 = vcombine.low %v34_v45, %v66_v46 }
  0x72   :  { %3132 = vmatpush1.bf16.msra.mxu0 %v2706_v51  ;;  %3175 = vmatpush1.bf16.msra.mxu1 %v2712_v53  ;;  %v97_v51 = vld [vmem:[%s11016_s1 + $0x250] sm:$0xff]  ;;  %v98_v53 = vld [vmem:[%s11016_s1 + $0x258] sm:$0xff] }
  0x73   :  { %3205 = vmatprep.subr.bf16.mxu0 %v5459_v52  ;;  %3248 = vmatprep.subr.bf16.mxu1 %v5461_v54  ;;  %v129_v52 = vld [vmem:[%s11016_s1 + $0x350] sm:$0xff]  ;;  %v130_v54 = vld [vmem:[%s11016_s1 + $0x358] sm:$0xff] }
  0x74   :  { %v5527_v57 = vcombine.high %v97_v51, %v129_v52  ;;  %v5529_v58 = vcombine.high %v98_v53, %v130_v54  ;;  %v5526_v63 = vcombine.low %v97_v51, %v129_v52  ;;  %v5528_v0 = vcombine.low %v98_v53, %v130_v54 }
  0x75   :  { %5903 = vmatmul.mubr.msk.bf16.vlgmr.msra.gmra.mrb[12].mxu0 %vm2664_vm1, %v6108_v4  ;;  %5905 = vmatmul.mubr.msk.bf16.vlgmr.msra.gmra.mrb[12].mxu1 %vm2664_vm1, %v6108_v4 }
  0x76   :  { %3206 = vmatpush1.bf16.msra.mxu0 %v5458_v59  ;;  %3249 = vmatpush1.bf16.msra.mxu1 %v5460_v60  ;;  %v161_v59 = vld [vmem:[%s11016_s1 + $0x450] sm:$0xff] }
  0x77   :  { %3207 = vmatprep.subr.bf16.mxu0 %v5523_v61  ;;  %3250 = vmatprep.subr.bf16.mxu1 %v5525_v62  ;;  %v193_v60 = vld [vmem:[%s11016_s1 + $0x550] sm:$0xff]  ;;  %v162_v61 = vld [vmem:[%s11016_s1 + $0x458] sm:$0xff] }
  0x78   :  { %3237 = vmatprep.mubr.bf16.mxu0 %v11022_v3  ;;  %3280 = vmatprep.mubr.bf16.mxu1 %v11022_v3  ;;  %v194_v62 = vld [vmem:[%s11016_s1 + $0x558] sm:$0xff]  ;;  %v5591_v1 = vcombine.high %v161_v59, %v193_v60  ;;  %v5590_v9 = vcombine.low %v161_v59, %v193_v60 }
  0x79   :  { %v5593_v2 = vcombine.high %v162_v61, %v194_v62  ;;  %v5592_v10 = vcombine.low %v162_v61, %v194_v62 }
  0x7a   :  { %3208 = vmatpush1.bf16.msra.mxu0 %v5522_v5  ;;  %3251 = vmatpush1.bf16.msra.mxu1 %v5524_v6  ;;  %v225_v5 = vld [vmem:[%s11016_s1 + $0x650] sm:$0xff] }
  0x7b   :  { %3209 = vmatprep.subr.bf16.mxu0 %v5587_v7  ;;  %3252 = vmatprep.subr.bf16.mxu1 %v5589_v8  ;;  %v257_v6 = vld [vmem:[%s11016_s1 + $0x750] sm:$0xff]  ;;  %v226_v7 = vld [vmem:[%s11016_s1 + $0x658] sm:$0xff] }
  0x7c   :  { %v258_v8 = vld [vmem:[%s11016_s1 + $0x758] sm:$0xff]  ;;  %v5655_v11 = vcombine.high %v225_v5, %v257_v6  ;;  %v5654_v17 = vcombine.low %v225_v5, %v257_v6 }
  0x7d   :  { %v5657_v12 = vcombine.high %v226_v7, %v258_v8  ;;  %v5656_v18 = vcombine.low %v226_v7, %v258_v8  ;;  %v291_v8 = vld [vmem:[%s11016_s1 + $0x860] sm:$0xff] }
  0x7e   :  { %3210 = vmatpush1.bf16.msra.mxu0 %v5586_v13  ;;  %3253 = vmatpush1.bf16.msra.mxu1 %v5588_v14  ;;  %v289_v13 = vld [vmem:[%s11016_s1 + $0x850] sm:$0xff] }
  0x7f   :  { %3211 = vmatprep.subr.bf16.mxu0 %v5651_v15  ;;  %3254 = vmatprep.subr.bf16.mxu1 %v5653_v16  ;;  %v321_v14 = vld [vmem:[%s11016_s1 + $0x950] sm:$0xff]  ;;  %v290_v15 = vld [vmem:[%s11016_s1 + $0x858] sm:$0xff] }
  0x80   :  { %v322_v16 = vld [vmem:[%s11016_s1 + $0x958] sm:$0xff]  ;;  %v5719_v19 = vcombine.high %v289_v13, %v321_v14  ;;  %v5718_v25 = vcombine.low %v289_v13, %v321_v14 }
  0x81   :  { %v5721_v20 = vcombine.high %v290_v15, %v322_v16  ;;  %v5720_v26 = vcombine.low %v290_v15, %v322_v16  ;;  %v355_v16 = vld [vmem:[%s11016_s1 + $0xa60] sm:$0xff] }
  0x82   :  { %3212 = vmatpush1.bf16.msra.mxu0 %v5650_v21  ;;  %3255 = vmatpush1.bf16.msra.mxu1 %v5652_v22  ;;  %v353_v21 = vld [vmem:[%s11016_s1 + $0xa50] sm:$0xff] }
  0x83   :  { %3213 = vmatprep.subr.bf16.mxu0 %v5715_v23  ;;  %3256 = vmatprep.subr.bf16.mxu1 %v5717_v24  ;;  %v385_v22 = vld [vmem:[%s11016_s1 + $0xb50] sm:$0xff]  ;;  %v354_v23 = vld [vmem:[%s11016_s1 + $0xa58] sm:$0xff] }
  0x84   :  { %v386_v24 = vld [vmem:[%s11016_s1 + $0xb58] sm:$0xff]  ;;  %v5783_v27 = vcombine.high %v353_v21, %v385_v22  ;;  %v5782_v33 = vcombine.low %v353_v21, %v385_v22 }
  0x85   :  { %v5785_v28 = vcombine.high %v354_v23, %v386_v24  ;;  %v5784_v34 = vcombine.low %v354_v23, %v386_v24  ;;  %v419_v24 = vld [vmem:[%s11016_s1 + $0xc60] sm:$0xff] }
  0x86   :  { %3214 = vmatpush1.bf16.msra.mxu0 %v5714_v29  ;;  %3257 = vmatpush1.bf16.msra.mxu1 %v5716_v30  ;;  %v417_v29 = vld [vmem:[%s11016_s1 + $0xc50] sm:$0xff] }
  0x87   :  { %3215 = vmatprep.subr.bf16.mxu0 %v5779_v31  ;;  %3258 = vmatprep.subr.bf16.mxu1 %v5781_v32  ;;  %v449_v30 = vld [vmem:[%s11016_s1 + $0xd50] sm:$0x33]  ;;  %v418_v31 = vld [vmem:[%s11016_s1 + $0xc58] sm:$0xff] }
  0x88   :  { %v450_v32 = vld [vmem:[%s11016_s1 + $0xd58] sm:$0x33]  ;;  %v5847_v35 = vcombine.high %v417_v29, %v449_v30  ;;  %v5846_v36 = vcombine.low %v417_v29, %v449_v30 }
  0x8a   :  { %3216 = vmatpush1.bf16.msra.mxu0 %v5778_v37  ;;  %3259 = vmatpush1.bf16.msra.mxu1 %v5780_v38  ;;  %v5849_v37 = vcombine.high %v418_v31, %v450_v32  ;;  %v5848_v38 = vcombine.low %v418_v31, %v450_v32  ;;  %v2730_v43 = vsel %vm2668_vm0, %v5846_v36, 0  ;;  %v38_v36 = vld [vmem:[%s11016_s1 + $0x78] sm:$0xff] }
  0x8b   :  { %5906 = vmatprep.subr.msk.bf16.mxu0 %vm2668_vm0, %v5843_v39  ;;  %5908 = vmatprep.subr.msk.bf16.mxu1 %vm2668_vm0, %v5845_v41  ;;  %v35_v39 = vld [vmem:[%s11016_s1 + $0x60] sm:$0xff]  ;;  %v36_v41 = vld [vmem:[%s11016_s1 + $0x68] sm:$0xff] }
  0x8c   :  { %v5467_v44 = vcombine.high %v35_v39, %v67_v40  ;;  %v2736_v45 = vsel %vm2668_vm0, %v5848_v38, 0  ;;  %v5469_v46 = vcombine.high %v36_v41, %v68_v42  ;;  %v5466_v51 = vcombine.low %v35_v39, %v67_v40 }
  0x8d   :  { %v5468_v52 = vcombine.low %v36_v41, %v68_v42  ;;  %v101_v42 = vld [vmem:[%s11016_s1 + $0x270] sm:$0xff] }
  0x8e   :  { %3218 = vmatpush1.bf16.msra.mxu0 %v2718_v47  ;;  %3261 = vmatpush1.bf16.msra.mxu1 %v2724_v49  ;;  %v99_v47 = vld [vmem:[%s11016_s1 + $0x260] sm:$0xff]  ;;  %v100_v49 = vld [vmem:[%s11016_s1 + $0x268] sm:$0xff] }
  0x8f   :  { %3291 = vmatprep.subr.bf16.mxu0 %v5463_v48  ;;  %3334 = vmatprep.subr.bf16.mxu1 %v5465_v50  ;;  %v131_v48 = vld [vmem:[%s11016_s1 + $0x360] sm:$0xff]  ;;  %v132_v50 = vld [vmem:[%s11016_s1 + $0x368] sm:$0xff] }
  0x90   :  { %v5531_v53 = vcombine.high %v99_v47, %v131_v48  ;;  %v5533_v54 = vcombine.high %v100_v49, %v132_v50  ;;  %v5530_v59 = vcombine.low %v99_v47, %v131_v48  ;;  %v5532_v60 = vcombine.low %v100_v49, %v132_v50  ;;  %v165_v50 = vld [vmem:[%s11016_s1 + $0x470] sm:$0xff] }
  0x91   :  { %5907 = vmatmul.mubr.msk.bf16.vlgmr.msra.gmra.mrb[16].mxu0 %vm2664_vm1, %v6108_v4  ;;  %5909 = vmatmul.mubr.msk.bf16.vlgmr.msra.gmra.mrb[16].mxu1 %vm2664_vm1, %v6108_v4 }
  0x92   :  { %3292 = vmatpush1.bf16.msra.mxu0 %v5462_v55  ;;  %3335 = vmatpush1.bf16.msra.mxu1 %v5464_v56  ;;  %v163_v55 = vld [vmem:[%s11016_s1 + $0x460] sm:$0xff] }
  0x93   :  { %3293 = vmatprep.subr.bf16.mxu0 %v5527_v57  ;;  %3336 = vmatprep.subr.bf16.mxu1 %v5529_v58  ;;  %v195_v56 = vld [vmem:[%s11016_s1 + $0x560] sm:$0xff]  ;;  %v164_v57 = vld [vmem:[%s11016_s1 + $0x468] sm:$0xff] }
  0x94   :  { %3323 = vmatprep.mubr.bf16.mxu0 %v11022_v3  ;;  %3366 = vmatprep.mubr.bf16.mxu1 %v11022_v3  ;;  %v196_v58 = vld [vmem:[%s11016_s1 + $0x568] sm:$0xff]  ;;  %v5595_v61 = vcombine.high %v163_v55, %v195_v56 }
  0x95   :  { %v5597_v62 = vcombine.high %v164_v57, %v196_v58  ;;  %v5596_v5 = vcombine.low %v164_v57, %v196_v58 }
  0x96   :  { %3294 = vmatpush1.bf16.msra.mxu0 %v5526_v63  ;;  %3337 = vmatpush1.bf16.msra.mxu1 %v5528_v0  ;;  %v227_v63 = vld [vmem:[%s11016_s1 + $0x660] sm:$0xff] }
  0x97   :  { %3295 = vmatprep.subr.bf16.mxu0 %v5591_v1  ;;  %3338 = vmatprep.subr.bf16.mxu1 %v5593_v2  ;;  %v259_v0 = vld [vmem:[%s11016_s1 + $0x760] sm:$0xff]  ;;  %v260_v1 = vld [vmem:[%s11016_s1 + $0x768] sm:$0xff]  ;;  %v5594_v2 = vcombine.low %v163_v55, %v195_v56 }
  0x98   :  { %v5659_v6 = vcombine.high %v227_v63, %v259_v0 }
  0x9a   :  { %3296 = vmatpush1.bf16.msra.mxu0 %v5590_v9  ;;  %3339 = vmatpush1.bf16.msra.mxu1 %v5592_v10  ;;  %v323_v9 = vld [vmem:[%s11016_s1 + $0x960] sm:$0xff]  ;;  %v292_v10 = vld [vmem:[%s11016_s1 + $0x868] sm:$0xff] }
  0x9b   :  { %3297 = vmatprep.subr.bf16.mxu0 %v5655_v11  ;;  %3340 = vmatprep.subr.bf16.mxu1 %v5657_v12  ;;  %v324_v11 = vld [vmem:[%s11016_s1 + $0x968] sm:$0xff]  ;;  %v5658_v12 = vcombine.low %v227_v63, %v259_v0  ;;  %v5723_v14 = vcombine.high %v291_v8, %v323_v9 }
  0x9c   :  { %v5725_v15 = vcombine.high %v292_v10, %v324_v11  ;;  %v5724_v21 = vcombine.low %v292_v10, %v324_v11 }
  0x9e   :  { %3298 = vmatpush1.bf16.msra.mxu0 %v5654_v17  ;;  %3341 = vmatpush1.bf16.msra.mxu1 %v5656_v18  ;;  %v387_v17 = vld [vmem:[%s11016_s1 + $0xb60] sm:$0xff]  ;;  %v356_v18 = vld [vmem:[%s11016_s1 + $0xa68] sm:$0xff] }
  0x9f   :  { %3299 = vmatprep.subr.bf16.mxu0 %v5719_v19  ;;  %3342 = vmatprep.subr.bf16.mxu1 %v5721_v20  ;;  %v388_v19 = vld [vmem:[%s11016_s1 + $0xb68] sm:$0xff]  ;;  %v5722_v20 = vcombine.low %v291_v8, %v323_v9  ;;  %v5787_v22 = vcombine.high %v355_v16, %v387_v17 }
  0xa0   :  { %v5789_v23 = vcombine.high %v356_v18, %v388_v19  ;;  %v5788_v29 = vcombine.low %v356_v18, %v388_v19 }
  0xa2   :  { %3300 = vmatpush1.bf16.msra.mxu0 %v5718_v25  ;;  %3343 = vmatpush1.bf16.msra.mxu1 %v5720_v26  ;;  %v451_v25 = vld [vmem:[%s11016_s1 + $0xd60] sm:$0x33]  ;;  %v420_v26 = vld [vmem:[%s11016_s1 + $0xc68] sm:$0xff] }
  0xa3   :  { %3301 = vmatprep.subr.bf16.mxu0 %v5783_v27  ;;  %3344 = vmatprep.subr.bf16.mxu1 %v5785_v28  ;;  %v452_v27 = vld [vmem:[%s11016_s1 + $0xd68] sm:$0x33]  ;;  %v5786_v28 = vcombine.low %v355_v16, %v387_v17  ;;  %v5851_v30 = vcombine.high %v419_v24, %v451_v25  ;;  %v5850_v31 = vcombine.low %v419_v24, %v451_v25 }
  0xa4   :  { %v5853_v32 = vcombine.high %v420_v26, %v452_v27 }
  0xa5   :  { %v2742_v38 = vsel %vm2668_vm0, %v5850_v31, 0  ;;  %v71_v31 = vld [vmem:[%s11016_s1 + $0x180] sm:$0xff] }
  0xa6   :  { %3302 = vmatpush1.bf16.msra.mxu0 %v5782_v33  ;;  %3345 = vmatpush1.bf16.msra.mxu1 %v5784_v34  ;;  %v5852_v33 = vcombine.low %v420_v26, %v452_v27  ;;  %v37_v34 = vld [vmem:[%s11016_s1 + $0x70] sm:$0xff] }
  0xa7   :  { %5910 = vmatprep.subr.msk.bf16.mxu0 %vm2668_vm0, %v5847_v35  ;;  %5912 = vmatprep.subr.msk.bf16.mxu1 %vm2668_vm0, %v5849_v37  ;;  %v69_v35 = vld [vmem:[%s11016_s1 + $0x170] sm:$0xff]  ;;  %v70_v37 = vld [vmem:[%s11016_s1 + $0x178] sm:$0xff] }
  0xa8   :  { %v5471_v39 = vcombine.high %v37_v34, %v69_v35  ;;  %v2748_v40 = vsel %vm2668_vm0, %v5852_v33, 0  ;;  %v5473_v41 = vcombine.high %v38_v36, %v70_v37  ;;  %v5472_v47 = vcombine.low %v38_v36, %v70_v37  ;;  %v72_v33 = vld [vmem:[%s11016_s1 + $0x188] sm:$0xff] }
  0xaa   :  { %3304 = vmatpush1.bf16.msra.mxu0 %v2730_v43  ;;  %3347 = vmatpush1.bf16.msra.mxu1 %v2736_v45  ;;  %v133_v43 = vld [vmem:[%s11016_s1 + $0x370] sm:$0xff]  ;;  %v134_v45 = vld [vmem:[%s11016_s1 + $0x378] sm:$0xff] }
  0xab   :  { %3377 = vmatprep.subr.bf16.mxu0 %v5467_v44  ;;  %3420 = vmatprep.subr.bf16.mxu1 %v5469_v46  ;;  %v102_v44 = vld [vmem:[%s11016_s1 + $0x278] sm:$0xff]  ;;  %v5470_v46 = vcombine.low %v37_v34, %v69_v35  ;;  %v5535_v48 = vcombine.high %v101_v42, %v133_v43  ;;  %v5534_v55 = vcombine.low %v101_v42, %v133_v43 }
  0xac   :  { %v5537_v49 = vcombine.high %v102_v44, %v134_v45  ;;  %v5536_v56 = vcombine.low %v102_v44, %v134_v45 }
  0xad   :  { %5911 = vmatmul.mubr.msk.bf16.vlgmr.msra.gmra.mrb[20].mxu0 %vm2664_vm1, %v6108_v4  ;;  %5913 = vmatmul.mubr.msk.bf16.vlgmr.msra.gmra.mrb[20].mxu1 %vm2664_vm1, %v6108_v4  ;;  %v228_v4 = vld [vmem:[%s11016_s1 + $0x668] sm:$0xff] }
  0xae   :  { %3378 = vmatpush1.bf16.msra.mxu0 %v5466_v51  ;;  %3421 = vmatpush1.bf16.msra.mxu1 %v5468_v52  ;;  %v5661_v7 = vcombine.high %v228_v4, %v260_v1  ;;  %v5660_v13 = vcombine.low %v228_v4, %v260_v1  ;;  %v197_v51 = vld [vmem:[%s11016_s1 + $0x570] sm:$0xff]  ;;  %v6695_v52 = vld [vmem:[%s11017_s0] sm:$0xff]  }
  0xaf   :  { %3379 = vmatprep.subr.bf16.mxu0 %v5531_v53  ;;  %3422 = vmatprep.subr.bf16.mxu1 %v5533_v54  ;;  %v166_v53 = vld [vmem:[%s11016_s1 + $0x478] sm:$0xff]  ;;  %v5599_v57 = vcombine.high %v165_v50, %v197_v51  ;;  %v5598_v63 = vcombine.low %v165_v50, %v197_v51 }
  0xb0   :  { %3409 = vmatprep.mubr.bf16.mxu0 %v11022_v3  ;;  %3452 = vmatprep.mubr.bf16.mxu1 %v11022_v3  ;;  %v198_v54 = vld [vmem:[%s11016_s1 + $0x578] sm:$0xff] }
  0xb1   :  { %v5601_v58 = vcombine.high %v166_v53, %v198_v54  ;;  %v5600_v0 = vcombine.low %v166_v53, %v198_v54 }
  0xb2   :  { %3380 = vmatpush1.bf16.msra.mxu0 %v5530_v59  ;;  %3423 = vmatpush1.bf16.msra.mxu1 %v5532_v60  ;;  %v229_v59 = vld [vmem:[%s11016_s1 + $0x670] sm:$0xff] }
  0xb3   :  { %3381 = vmatprep.subr.bf16.mxu0 %v5595_v61  ;;  %3424 = vmatprep.subr.bf16.mxu1 %v5597_v62  ;;  %v261_v60 = vld [vmem:[%s11016_s1 + $0x770] sm:$0xff]  ;;  %v230_v61 = vld [vmem:[%s11016_s1 + $0x678] sm:$0xff] }
  0xb4   :  { %v262_v62 = vld [vmem:[%s11016_s1 + $0x778] sm:$0xff]  ;;  %v5663_v4 = vcombine.high %v229_v59, %v261_v60  ;;  %v5662_v8 = vcombine.low %v229_v59, %v261_v60 }
  0xb5   :  { %v5665_v1 = vcombine.high %v230_v61, %v262_v62  ;;  %v5664_v9 = vcombine.low %v230_v61, %v262_v62 }
  0xb6   :  { %3382 = vmatpush1.bf16.msra.mxu0 %v5594_v2  ;;  %3425 = vmatpush1.bf16.msra.mxu1 %v5596_v5  ;;  %v293_v2 = vld [vmem:[%s11016_s1 + $0x870] sm:$0xff] }
  0xb7   :  { %3383 = vmatprep.subr.bf16.mxu0 %v5659_v6  ;;  %3426 = vmatprep.subr.bf16.mxu1 %v5661_v7  ;;  %v325_v5 = vld [vmem:[%s11016_s1 + $0x970] sm:$0xff]  ;;  %v294_v6 = vld [vmem:[%s11016_s1 + $0x878] sm:$0xff] }
  0xb8   :  { %v326_v7 = vld [vmem:[%s11016_s1 + $0x978] sm:$0xff]  ;;  %v5727_v10 = vcombine.high %v293_v2, %v325_v5  ;;  %v5726_v16 = vcombine.low %v293_v2, %v325_v5 }
  0xb9   :  { %v5729_v11 = vcombine.high %v294_v6, %v326_v7  ;;  %v5728_v17 = vcombine.low %v294_v6, %v326_v7 }
  0xba   :  { %3384 = vmatpush1.bf16.msra.mxu0 %v5658_v12  ;;  %3427 = vmatpush1.bf16.msra.mxu1 %v5660_v13  ;;  %v357_v12 = vld [vmem:[%s11016_s1 + $0xa70] sm:$0xff] }
  0xbb   :  { %3385 = vmatprep.subr.bf16.mxu0 %v5723_v14  ;;  %3428 = vmatprep.subr.bf16.mxu1 %v5725_v15  ;;  %v389_v13 = vld [vmem:[%s11016_s1 + $0xb70] sm:$0xff]  ;;  %v358_v14 = vld [vmem:[%s11016_s1 + $0xa78] sm:$0xff] }
  0xbc   :  { %v390_v15 = vld [vmem:[%s11016_s1 + $0xb78] sm:$0xff]  ;;  %v5791_v18 = vcombine.high %v357_v12, %v389_v13  ;;  %v5790_v24 = vcombine.low %v357_v12, %v389_v13 }
  0xbd   :  { %v5793_v19 = vcombine.high %v358_v14, %v390_v15  ;;  %v5792_v25 = vcombine.low %v358_v14, %v390_v15 }
  0xbe   :  { %3386 = vmatpush1.bf16.msra.mxu0 %v5722_v20  ;;  %3429 = vmatpush1.bf16.msra.mxu1 %v5724_v21  ;;  %v421_v20 = vld [vmem:[%s11016_s1 + $0xc70] sm:$0xff] }
  0xbf   :  { %3387 = vmatprep.subr.bf16.mxu0 %v5787_v22  ;;  %3430 = vmatprep.subr.bf16.mxu1 %v5789_v23  ;;  %v453_v21 = vld [vmem:[%s11016_s1 + $0xd70] sm:$0x33]  ;;  %v422_v22 = vld [vmem:[%s11016_s1 + $0xc78] sm:$0xff] }
  0xc0   :  { %v454_v23 = vld [vmem:[%s11016_s1 + $0xd78] sm:$0x33]  ;;  %v5855_v26 = vcombine.high %v421_v20, %v453_v21  ;;  %v5854_v27 = vcombine.low %v421_v20, %v453_v21  ;;  %v424_v21 = vld [vmem:[%s11016_s1 + $0xc88] sm:$0xff] }
  0xc2   :  { %3388 = vmatpush1.bf16.msra.mxu0 %v5786_v28  ;;  %3431 = vmatpush1.bf16.msra.mxu1 %v5788_v29  ;;  %v5857_v28 = vcombine.high %v422_v22, %v454_v23  ;;  %v5856_v29 = vcombine.low %v422_v22, %v454_v23  ;;  %v2754_v34 = vsel %vm2668_vm0, %v5854_v27, 0  ;;  %v456_v22 = vld [vmem:[%s11016_s1 + $0xd88] sm:$0x33] }
  0xc3   :  { %5914 = vmatprep.subr.msk.bf16.mxu0 %vm2668_vm0, %v5851_v30  ;;  %5916 = vmatprep.subr.msk.bf16.mxu1 %vm2668_vm0, %v5853_v32  ;;  %v39_v30 = vld [vmem:[%s11016_s1 + $0x80] sm:$0xff]  ;;  %v40_v32 = vld [vmem:[%s11016_s1 + $0x88] sm:$0xff] }
  0xc4   :  { %v5475_v35 = vcombine.high %v39_v30, %v71_v31  ;;  %v2760_v36 = vsel %vm2668_vm0, %v5856_v29, 0  ;;  %v5477_v37 = vcombine.high %v40_v32, %v72_v33  ;;  %v5474_v42 = vcombine.low %v39_v30, %v71_v31 }
  0xc5   :  { %v5476_v43 = vcombine.low %v40_v32, %v72_v33  ;;  %v5861_v32 = vcombine.high %v424_v21, %v456_v22  ;;  %v5860_v33 = vcombine.low %v424_v21, %v456_v22 }
  0xc6   :  { %3390 = vmatpush1.bf16.msra.mxu0 %v2742_v38  ;;  %3433 = vmatpush1.bf16.msra.mxu1 %v2748_v40  ;;  %v103_v38 = vld [vmem:[%s11016_s1 + $0x280] sm:$0xff]  ;;  %v104_v40 = vld [vmem:[%s11016_s1 + $0x288] sm:$0xff] }
  0xc7   :  { %3463 = vmatprep.subr.bf16.mxu0 %v5471_v39  ;;  %3506 = vmatprep.subr.bf16.mxu1 %v5473_v41  ;;  %v135_v39 = vld [vmem:[%s11016_s1 + $0x380] sm:$0xff]  ;;  %v136_v41 = vld [vmem:[%s11016_s1 + $0x388] sm:$0xff] }
  0xc8   :  { %v5539_v44 = vcombine.high %v103_v38, %v135_v39  ;;  %v5541_v45 = vcombine.high %v104_v40, %v136_v41  ;;  %v5538_v50 = vcombine.low %v103_v38, %v135_v39  ;;  %v5540_v51 = vcombine.low %v104_v40, %v136_v41 }
  0xc9   :  { %5915 = vmatmul.mubr.msk.bf16.vlgmr.msra.gmra.mrb[24].mxu0 %vm2664_vm1, %v6695_v52  ;;  %5917 = vmatmul.mubr.msk.bf16.vlgmr.msra.gmra.mrb[24].mxu1 %vm2664_vm1, %v6695_v52  ;;  %v2772_v40 = vsel %vm2668_vm0, %v5860_v33, 0  ;;  %v426_v33 = vld [vmem:[%s11016_s1 + $0xc98] sm:$0xff] }
  0xca   :  { %3464 = vmatpush1.bf16.msra.mxu0 %v5470_v46  ;;  %3507 = vmatpush1.bf16.msra.mxu1 %v5472_v47  ;;  %v167_v46 = vld [vmem:[%s11016_s1 + $0x480] sm:$0xff] }
  0xcb   :  { %3465 = vmatprep.subr.bf16.mxu0 %v5535_v48  ;;  %3508 = vmatprep.subr.bf16.mxu1 %v5537_v49  ;;  %v199_v47 = vld [vmem:[%s11016_s1 + $0x580] sm:$0xff]  ;;  %v168_v48 = vld [vmem:[%s11016_s1 + $0x488] sm:$0xff] }
  0xcc   :  { %3495 = vmatprep.mubr.bf16.mxu0 %v11022_v3  ;;  %3538 = vmatprep.mubr.bf16.mxu1 %v11022_v3  ;;  %v200_v49 = vld [vmem:[%s11016_s1 + $0x588] sm:$0xff]  ;;  %v5603_v53 = vcombine.high %v167_v46, %v199_v47  ;;  %v5602_v59 = vcombine.low %v167_v46, %v199_v47 }
  0xcd   :  { %v5605_v54 = vcombine.high %v168_v48, %v200_v49  ;;  %v5604_v60 = vcombine.low %v168_v48, %v200_v49 }
  0xce   :  { %3466 = vmatpush1.bf16.msra.mxu0 %v5534_v55  ;;  %3509 = vmatpush1.bf16.msra.mxu1 %v5536_v56  ;;  %v231_v55 = vld [vmem:[%s11016_s1 + $0x680] sm:$0xff] }
  0xcf   :  { %3467 = vmatprep.subr.bf16.mxu0 %v5599_v57  ;;  %3510 = vmatprep.subr.bf16.mxu1 %v5601_v58  ;;  %v263_v56 = vld [vmem:[%s11016_s1 + $0x780] sm:$0xff]  ;;  %v232_v57 = vld [vmem:[%s11016_s1 + $0x688] sm:$0xff] }
  0xd0   :  { %v264_v58 = vld [vmem:[%s11016_s1 + $0x788] sm:$0xff]  ;;  %v5667_v61 = vcombine.high %v231_v55, %v263_v56  ;;  %v5666_v2 = vcombine.low %v231_v55, %v263_v56 }
  0xd1   :  { %v5669_v62 = vcombine.high %v232_v57, %v264_v58  ;;  %v5668_v5 = vcombine.low %v232_v57, %v264_v58 }
  0xd2   :  { %3468 = vmatpush1.bf16.msra.mxu0 %v5598_v63  ;;  %3511 = vmatpush1.bf16.msra.mxu1 %v5600_v0  ;;  %v295_v63 = vld [vmem:[%s11016_s1 + $0x880] sm:$0xff] }
  0xd3   :  { %3469 = vmatprep.subr.bf16.mxu0 %v5663_v4  ;;  %3512 = vmatprep.subr.bf16.mxu1 %v5665_v1  ;;  %v327_v0 = vld [vmem:[%s11016_s1 + $0x980] sm:$0xff]  ;;  %v296_v4 = vld [vmem:[%s11016_s1 + $0x888] sm:$0xff] }
  0xd4   :  { %v328_v1 = vld [vmem:[%s11016_s1 + $0x988] sm:$0xff]  ;;  %v5731_v6 = vcombine.high %v295_v63, %v327_v0  ;;  %v5730_v12 = vcombine.low %v295_v63, %v327_v0 }
  0xd5   :  { %v5733_v7 = vcombine.high %v296_v4, %v328_v1  ;;  %v5732_v13 = vcombine.low %v296_v4, %v328_v1 }
  0xd6   :  { %3470 = vmatpush1.bf16.msra.mxu0 %v5662_v8  ;;  %3513 = vmatpush1.bf16.msra.mxu1 %v5664_v9  ;;  %v359_v8 = vld [vmem:[%s11016_s1 + $0xa80] sm:$0xff] }
  0xd7   :  { %3471 = vmatprep.subr.bf16.mxu0 %v5727_v10  ;;  %3514 = vmatprep.subr.bf16.mxu1 %v5729_v11  ;;  %v391_v9 = vld [vmem:[%s11016_s1 + $0xb80] sm:$0xff]  ;;  %v360_v10 = vld [vmem:[%s11016_s1 + $0xa88] sm:$0xff] }
  0xd8   :  { %v392_v11 = vld [vmem:[%s11016_s1 + $0xb88] sm:$0xff]  ;;  %v5795_v14 = vcombine.high %v359_v8, %v391_v9 }
  0xda   :  { %3472 = vmatpush1.bf16.msra.mxu0 %v5726_v16  ;;  %3515 = vmatpush1.bf16.msra.mxu1 %v5728_v17  ;;  %v5797_v16 = vcombine.high %v360_v10, %v392_v11  ;;  %v423_v17 = vld [vmem:[%s11016_s1 + $0xc80] sm:$0xff] }
  0xdb   :  { %3473 = vmatprep.subr.bf16.mxu0 %v5791_v18  ;;  %3516 = vmatprep.subr.bf16.mxu1 %v5793_v19  ;;  %v455_v18 = vld [vmem:[%s11016_s1 + $0xd80] sm:$0x33] }
  0xdc   :  { %v5859_v29 = vcombine.high %v423_v17, %v455_v18  ;;  %v5858_v30 = vcombine.low %v423_v17, %v455_v18  ;;  %v394_v17 = vld [vmem:[%s11016_s1 + $0xb98] sm:$0xff] }
  0xde   :  { %3474 = vmatpush1.bf16.msra.mxu0 %v5790_v24  ;;  %3517 = vmatpush1.bf16.msra.mxu1 %v5792_v25  ;;  %v5794_v25 = vcombine.low %v359_v8, %v391_v9  ;;  %v2766_v38 = vsel %vm2668_vm0, %v5858_v30, 0 }
  0xdf   :  { %5918 = vmatprep.subr.msk.bf16.mxu0 %vm2668_vm0, %v5855_v26  ;;  %5920 = vmatprep.subr.msk.bf16.mxu1 %vm2668_vm0, %v5857_v28  ;;  %v5796_v28 = vcombine.low %v360_v10, %v392_v11 }
  0xe2   :  { %3476 = vmatpush1.bf16.msra.mxu0 %v2754_v34  ;;  %3519 = vmatpush1.bf16.msra.mxu1 %v2760_v36  ;;  %v41_v34 = vld [vmem:[%s11016_s1 + $0x90] sm:$0xff]  ;;  %v42_v36 = vld [vmem:[%s11016_s1 + $0x98] sm:$0xff] }
  0xe3   :  { %3549 = vmatprep.subr.bf16.mxu0 %v5475_v35  ;;  %3592 = vmatprep.subr.bf16.mxu1 %v5477_v37  ;;  %v73_v35 = vld [vmem:[%s11016_s1 + $0x190] sm:$0xff]  ;;  %v74_v37 = vld [vmem:[%s11016_s1 + $0x198] sm:$0xff] }
  0xe4   :  { %v5479_v39 = vcombine.high %v41_v34, %v73_v35  ;;  %v5481_v41 = vcombine.high %v42_v36, %v74_v37  ;;  %v5478_v46 = vcombine.low %v41_v34, %v73_v35  ;;  %v5480_v47 = vcombine.low %v42_v36, %v74_v37  ;;  %v458_v34 = vld [vmem:[%s11016_s1 + $0xd98] sm:$0x33] }
  0xe5   :  { %5919 = vmatmul.mubr.msk.bf16.vlgmr.msra.gmra.mrb[28].mxu0 %vm2664_vm1, %v6695_v52  ;;  %5921 = vmatmul.mubr.msk.bf16.vlgmr.msra.gmra.mrb[28].mxu1 %vm2664_vm1, %v6695_v52 }
  0xe6   :  { %3550 = vmatpush1.bf16.msra.mxu0 %v5474_v42  ;;  %3593 = vmatpush1.bf16.msra.mxu1 %v5476_v43  ;;  %v105_v42 = vld [vmem:[%s11016_s1 + $0x290] sm:$0xff] }
  0xe7   :  { %3551 = vmatprep.subr.bf16.mxu0 %v5539_v44  ;;  %3594 = vmatprep.subr.bf16.mxu1 %v5541_v45  ;;  %v137_v43 = vld [vmem:[%s11016_s1 + $0x390] sm:$0xff]  ;;  %v106_v44 = vld [vmem:[%s11016_s1 + $0x298] sm:$0xff] }
  0xe8   :  { %3581 = vmatprep.mubr.bf16.mxu0 %v11022_v3  ;;  %3624 = vmatprep.mubr.bf16.mxu1 %v11022_v3  ;;  %v138_v45 = vld [vmem:[%s11016_s1 + $0x398] sm:$0xff]  ;;  %v5543_v48 = vcombine.high %v105_v42, %v137_v43  ;;  %v5542_v55 = vcombine.low %v105_v42, %v137_v43 }
  0xe9   :  { %v5545_v49 = vcombine.high %v106_v44, %v138_v45  ;;  %v5544_v56 = vcombine.low %v106_v44, %v138_v45  ;;  %v5865_v44 = vcombine.high %v426_v33, %v458_v34  ;;  %v5864_v45 = vcombine.low %v426_v33, %v458_v34 }
  0xea   :  { %3552 = vmatpush1.bf16.msra.mxu0 %v5538_v50  ;;  %3595 = vmatpush1.bf16.msra.mxu1 %v5540_v51  ;;  %v169_v50 = vld [vmem:[%s11016_s1 + $0x490] sm:$0xff] }
  0xeb   :  { %3553 = vmatprep.subr.bf16.mxu0 %v5603_v53  ;;  %3596 = vmatprep.subr.bf16.mxu1 %v5605_v54  ;;  %v201_v51 = vld [vmem:[%s11016_s1 + $0x590] sm:$0xff]  ;;  %v170_v53 = vld [vmem:[%s11016_s1 + $0x498] sm:$0xff] }
  0xec   :  { %v202_v54 = vld [vmem:[%s11016_s1 + $0x598] sm:$0xff]  ;;  %v5607_v57 = vcombine.high %v169_v50, %v201_v51  ;;  %v5606_v63 = vcombine.low %v169_v50, %v201_v51 }
  0xed   :  { %v5609_v58 = vcombine.high %v170_v53, %v202_v54  ;;  %v5608_v0 = vcombine.low %v170_v53, %v202_v54  ;;  %v2784_v53 = vsel %vm2668_vm0, %v5864_v45, 0 }
  0xee   :  { %3554 = vmatpush1.bf16.msra.mxu0 %v5602_v59  ;;  %3597 = vmatpush1.bf16.msra.mxu1 %v5604_v60  ;;  %v233_v59 = vld [vmem:[%s11016_s1 + $0x690] sm:$0xff] }
  0xef   :  { %3555 = vmatprep.subr.bf16.mxu0 %v5667_v61  ;;  %3598 = vmatprep.subr.bf16.mxu1 %v5669_v62  ;;  %v265_v60 = vld [vmem:[%s11016_s1 + $0x790] sm:$0xff]  ;;  %v234_v61 = vld [vmem:[%s11016_s1 + $0x698] sm:$0xff] }
  0xf0   :  { %v266_v62 = vld [vmem:[%s11016_s1 + $0x798] sm:$0xff]  ;;  %v5671_v4 = vcombine.high %v233_v59, %v265_v60  ;;  %v5670_v8 = vcombine.low %v233_v59, %v265_v60 }
  0xf1   :  { %v5673_v1 = vcombine.high %v234_v61, %v266_v62  ;;  %v5672_v9 = vcombine.low %v234_v61, %v266_v62 }
  0xf2   :  { %3556 = vmatpush1.bf16.msra.mxu0 %v5666_v2  ;;  %3599 = vmatpush1.bf16.msra.mxu1 %v5668_v5  ;;  %v297_v2 = vld [vmem:[%s11016_s1 + $0x890] sm:$0xff] }
  0xf3   :  { %3557 = vmatprep.subr.bf16.mxu0 %v5731_v6  ;;  %3600 = vmatprep.subr.bf16.mxu1 %v5733_v7  ;;  %v329_v5 = vld [vmem:[%s11016_s1 + $0x990] sm:$0xff]  ;;  %v298_v6 = vld [vmem:[%s11016_s1 + $0x898] sm:$0xff] }
  0xf4   :  { %v6839_v15 = vpop.f32.mrb[0].mxu0  ;;  %v6849_v20 = vpop.f32.mrb[0].mxu1  ;;  %v330_v7 = vld [vmem:[%s11016_s1 + $0x998] sm:$0xff]  ;;  %v5735_v10 = vcombine.high %v297_v2, %v329_v5 }
  0xf5   :  { %v6847_v19 = vpop.f32.mrb[1].mxu0  ;;  %v6859_v24 = vpop.f32.mrb[1].mxu1  ;;  %v5737_v11 = vcombine.high %v298_v6, %v330_v7  ;;  %v5736_v18 = vcombine.low %v298_v6, %v330_v7 }
  0xf6   :  { %v6857_v23 = vpop.f32.mrb[2].mxu0  ;;  %3558 = vmatpush1.bf16.msra.mxu0 %v5730_v12  ;;  %3601 = vmatpush1.bf16.msra.mxu1 %v5732_v13  ;;  %v6863_v27 = vpop.f32.mrb[2].mxu1  ;;  %v361_v12 = vld [vmem:[%s11016_s1 + $0xa90] sm:$0xff] }
  0xf7   :  { %v6861_v26 = vpop.f32.mrb[3].mxu0  ;;  %3559 = vmatprep.subr.bf16.mxu0 %v5795_v14  ;;  %v6865_v31 = vpop.f32.mrb[3].mxu1  ;;  %3602 = vmatprep.subr.bf16.mxu1 %v5797_v16  ;;  %v393_v13 = vld [vmem:[%s11016_s1 + $0xb90] sm:$0xff]  ;;  %v5734_v14 = vcombine.low %v297_v2, %v329_v5  ;;  %v362_v16 = vld [vmem:[%s11016_s1 + $0xa98] sm:$0xff] }
  0xf8   :  { %v5799_v22 = vcombine.high %v361_v12, %v393_v13  ;;  %v5798_v37 = vcombine.low %v361_v12, %v393_v13 }
  0xfa   :  { %3560 = vmatpush1.bf16.msra.mxu0 %v5794_v25  ;;  %3603 = vmatpush1.bf16.msra.mxu1 %v5796_v28  ;;  %v425_v25 = vld [vmem:[%s11016_s1 + $0xc90] sm:$0xff] }
  0xfb   :  { %5922 = vmatprep.subr.msk.bf16.mxu0 %vm2668_vm0, %v5859_v29  ;;  %5924 = vmatprep.subr.msk.bf16.mxu1 %vm2668_vm0, %v5861_v32  ;;  %v457_v28 = vld [vmem:[%s11016_s1 + $0xd90] sm:$0x33]  ;;  %v5801_v32 = vcombine.high %v362_v16, %v394_v17 }
  0xfc   :  { %v5863_v43 = vcombine.high %v425_v25, %v457_v28 }
  0xfe   :  { %3562 = vmatpush1.bf16.msra.mxu0 %v2766_v38  ;;  %3605 = vmatpush1.bf16.msra.mxu1 %v2772_v40  ;;  %v5800_v40 = vcombine.low %v362_v16, %v394_v17  ;;  %v299_v17 = vld [vmem:[%s11016_s1 + $0x8a0] sm:$0xff] }
  0xff   :  { %3635 = vmatprep.subr.bf16.mxu0 %v5479_v39  ;;  %3678 = vmatprep.subr.bf16.mxu1 %v5481_v41  ;;  %v5862_v41 = vcombine.low %v425_v25, %v457_v28  ;;  %v332_v25 = vld [vmem:[%s11016_s1 + $0x9a8] sm:$0xff] }
 0x101   :  { %5923 = vmatmul.mubr.msk.bf16.vlgmr.msra.gmra.mrb[32].mxu0 %vm2664_vm1, %v6695_v52  ;;  %5925 = vmatmul.mubr.msk.bf16.vlgmr.msra.gmra.mrb[32].mxu1 %vm2664_vm1, %v6695_v52  ;;  %v2778_v50 = vsel %vm2668_vm0, %v5862_v41, 0 }
 0x102   :  { %3636 = vmatpush1.bf16.msra.mxu0 %v5478_v46  ;;  %3679 = vmatpush1.bf16.msra.mxu1 %v5480_v47  ;;  %v43_v46 = vld [vmem:[%s11016_s1 + $0xa0] sm:$0xff] }
 0x103   :  { %3637 = vmatprep.subr.bf16.mxu0 %v5543_v48  ;;  %3680 = vmatprep.subr.bf16.mxu1 %v5545_v49  ;;  %v75_v47 = vld [vmem:[%s11016_s1 + $0x1a0] sm:$0xff]  ;;  %v44_v48 = vld [vmem:[%s11016_s1 + $0xa8] sm:$0xff] }
 0x104   :  { %3667 = vmatprep.mubr.bf16.mxu0 %v11022_v3  ;;  %3710 = vmatprep.mubr.bf16.mxu1 %v11022_v3  ;;  %v76_v49 = vld [vmem:[%s11016_s1 + $0x1a8] sm:$0xff]  ;;  %v5483_v51 = vcombine.high %v43_v46, %v75_v47  ;;  %v5482_v59 = vcombine.low %v43_v46, %v75_v47 }
 0x105   :  { %v5485_v54 = vcombine.high %v44_v48, %v76_v49  ;;  %v5484_v60 = vcombine.low %v44_v48, %v76_v49  ;;  %v427_v48 = vld [vmem:[%s11016_s1 + $0xca0] sm:$0xff] }
 0x106   :  { %3638 = vmatpush1.bf16.msra.mxu0 %v5542_v55  ;;  %3681 = vmatpush1.bf16.msra.mxu1 %v5544_v56  ;;  %v107_v55 = vld [vmem:[%s11016_s1 + $0x2a0] sm:$0xff] }
 0x107   :  { %3639 = vmatprep.subr.bf16.mxu0 %v5607_v57  ;;  %3682 = vmatprep.subr.bf16.mxu1 %v5609_v58  ;;  %v139_v56 = vld [vmem:[%s11016_s1 + $0x3a0] sm:$0xff]  ;;  %v108_v57 = vld [vmem:[%s11016_s1 + $0x2a8] sm:$0xff] }
 0x108   :  { %v140_v58 = vld [vmem:[%s11016_s1 + $0x3a8] sm:$0xff]  ;;  %v5547_v61 = vcombine.high %v107_v55, %v139_v56  ;;  %v5546_v2 = vcombine.low %v107_v55, %v139_v56  ;;  %v459_v49 = vld [vmem:[%s11016_s1 + $0xda0] sm:$0x33] }
 0x109   :  { %v5549_v62 = vcombine.high %v108_v57, %v140_v58  ;;  %v5548_v5 = vcombine.low %v108_v57, %v140_v58  ;;  %v460_v55 = vld [vmem:[%s11016_s1 + $0xda8] sm:$0x33] }
 0x10a   :  { %3640 = vmatpush1.bf16.msra.mxu0 %v5606_v63  ;;  %3683 = vmatpush1.bf16.msra.mxu1 %v5608_v0  ;;  %v171_v63 = vld [vmem:[%s11016_s1 + $0x4a0] sm:$0xff] }
 0x10b   :  { %3641 = vmatprep.subr.bf16.mxu0 %v5671_v4  ;;  %3684 = vmatprep.subr.bf16.mxu1 %v5673_v1  ;;  %v203_v0 = vld [vmem:[%s11016_s1 + $0x5a0] sm:$0xff]  ;;  %v172_v4 = vld [vmem:[%s11016_s1 + $0x4a8] sm:$0xff] }
 0x10c   :  { %v204_v1 = vld [vmem:[%s11016_s1 + $0x5a8] sm:$0xff]  ;;  %v5611_v6 = vcombine.high %v171_v63, %v203_v0  ;;  %v5610_v12 = vcombine.low %v171_v63, %v203_v0  ;;  %v5867_v0 = vcombine.high %v427_v48, %v459_v49 }
 0x10d   :  { %v5613_v7 = vcombine.high %v172_v4, %v204_v1  ;;  %v5612_v13 = vcombine.low %v172_v4, %v204_v1 }
 0x10e   :  { %3642 = vmatpush1.bf16.msra.mxu0 %v5670_v8  ;;  %3685 = vmatpush1.bf16.msra.mxu1 %v5672_v9  ;;  %v235_v8 = vld [vmem:[%s11016_s1 + $0x6a0] sm:$0xff] }
 0x10f   :  { %3643 = vmatprep.subr.bf16.mxu0 %v5735_v10  ;;  %3686 = vmatprep.subr.bf16.mxu1 %v5737_v11  ;;  %v267_v9 = vld [vmem:[%s11016_s1 + $0x7a0] sm:$0xff]  ;;  %v236_v10 = vld [vmem:[%s11016_s1 + $0x6a8] sm:$0xff] }
 0x110   :  { %v6949_v21 = vpop.f32.mrb[4].mxu0  ;;  %v6959_v30 = vpop.f32.mrb[4].mxu1  ;;  %v268_v11 = vld [vmem:[%s11016_s1 + $0x7a8] sm:$0xff]  ;;  %v5674_v28 = vcombine.low %v235_v8, %v267_v9 }
 0x111   :  { %v6957_v29 = vpop.f32.mrb[5].mxu0  ;;  %v6969_v36 = vpop.f32.mrb[5].mxu1  ;;  %v5677_v16 = vcombine.high %v236_v10, %v268_v11 }
 0x112   :  { %v6967_v35 = vpop.f32.mrb[6].mxu0  ;;  %3644 = vmatpush1.bf16.msra.mxu0 %v5734_v14  ;;  %3687 = vmatpush1.bf16.msra.mxu1 %v5736_v18  ;;  %v6973_v39 = vpop.f32.mrb[6].mxu1  ;;  %v5675_v14 = vcombine.high %v235_v8, %v267_v9  ;;  %v331_v18 = vld [vmem:[%s11016_s1 + $0x9a0] sm:$0xff] }
 0x113   :  { %v6971_v38 = vpop.f32.mrb[7].mxu0  ;;  %v6975_v42 = vpop.f32.mrb[7].mxu1  ;;  %3645 = vmatprep.subr.bf16.mxu0 %v5799_v22  ;;  %3688 = vmatprep.subr.bf16.mxu1 %v5801_v32  ;;  %v300_v22 = vld [vmem:[%s11016_s1 + $0x8a8] sm:$0xff]  ;;  %v5676_v32 = vcombine.low %v236_v10, %v268_v11  ;;  %v5739_v33 = vcombine.high %v299_v17, %v331_v18  ;;  %v5738_v41 = vcombine.low %v299_v17, %v331_v18 }
 0x114   :  { %v5741_v34 = vcombine.high %v300_v22, %v332_v25  ;;  %v5740_v45 = vcombine.low %v300_v22, %v332_v25 }
 0x116   :  { %3646 = vmatpush1.bf16.msra.mxu0 %v5798_v37  ;;  %3689 = vmatpush1.bf16.msra.mxu1 %v5800_v40  ;;  %v363_v37 = vld [vmem:[%s11016_s1 + $0xaa0] sm:$0xff] }
 0x117   :  { %5926 = vmatprep.subr.msk.bf16.mxu0 %vm2668_vm0, %v5863_v43  ;;  %5928 = vmatprep.subr.msk.bf16.mxu1 %vm2668_vm0, %v5865_v44  ;;  %v395_v40 = vld [vmem:[%s11016_s1 + $0xba0] sm:$0xff]  ;;  %v364_v43 = vld [vmem:[%s11016_s1 + $0xaa8] sm:$0xff] }
 0x118   :  { %v396_v44 = vld [vmem:[%s11016_s1 + $0xba8] sm:$0xff]  ;;  %v5803_v47 = vcombine.high %v363_v37, %v395_v40  ;;  %v5802_v58 = vcombine.low %v363_v37, %v395_v40 }
 0x11a   :  { %3648 = vmatpush1.bf16.msra.mxu0 %v2778_v50  ;;  %3691 = vmatpush1.bf16.msra.mxu1 %v2784_v53  ;;  %v5805_v53 = vcombine.high %v364_v43, %v396_v44 }
 0x11b   :  { %3721 = vmatprep.subr.bf16.mxu0 %v5483_v51  ;;  %3764 = vmatprep.subr.bf16.mxu1 %v5485_v54  ;;  %v428_v54 = vld [vmem:[%s11016_s1 + $0xca8] sm:$0xff] }
 0x11c   :  { %v5869_v4 = vcombine.high %v428_v54, %v460_v55  ;;  %v5868_v1 = vcombine.low %v428_v54, %v460_v55 }
 0x11d   :  { %5927 = vmatmul.mubr.msk.bf16.vlgmr.msra.gmra.mrb[36].mxu0 %vm2664_vm1, %v6695_v52  ;;  %5929 = vmatmul.mubr.msk.bf16.vlgmr.msra.gmra.mrb[36].mxu1 %vm2664_vm1, %v6695_v52 }
 0x11e   :  { %3722 = vmatpush1.bf16.msra.mxu0 %v5482_v59  ;;  %3765 = vmatpush1.bf16.msra.mxu1 %v5484_v60  ;;  %v2796_v10 = vsel %vm2668_vm0, %v5868_v1, 0 }
 0x11f   :  { %3723 = vmatprep.subr.bf16.mxu0 %v5547_v61  ;;  %3766 = vmatprep.subr.bf16.mxu1 %v5549_v62  ;;  %v5804_v61 = vcombine.low %v364_v43, %v396_v44  ;;  %v5866_v62 = vcombine.low %v427_v48, %v459_v49  ;;  %v237_v44 = vld [vmem:[%s11016_s1 + $0x6b0] sm:$0xff]  ;;  %v270_v48 = vld [vmem:[%s11016_s1 + $0x7b8] sm:$0xff] }
 0x120   :  { %3753 = vmatprep.mubr.bf16.mxu0 %v11022_v3  ;;  %3796 = vmatprep.mubr.bf16.mxu1 %v11022_v3 }
 0x121   :  { %v2790_v8 = vsel %vm2668_vm0, %v5866_v62, 0  ;;  %v302_v62 = vld [vmem:[%s11016_s1 + $0x8b8] sm:$0xff] }
 0x122   :  { %3724 = vmatpush1.bf16.msra.mxu0 %v5546_v2  ;;  %3767 = vmatpush1.bf16.msra.mxu1 %v5548_v5  ;;  %v45_v2 = vld [vmem:[%s11016_s1 + $0xb0] sm:$0xff] }
 0x123   :  { %3725 = vmatprep.subr.bf16.mxu0 %v5611_v6  ;;  %3768 = vmatprep.subr.bf16.mxu1 %v5613_v7  ;;  %v77_v5 = vld [vmem:[%s11016_s1 + $0x1b0] sm:$0xff]  ;;  %v46_v6 = vld [vmem:[%s11016_s1 + $0xb8] sm:$0xff] }
 0x124   :  { %v78_v7 = vld [vmem:[%s11016_s1 + $0x1b8] sm:$0xff]  ;;  %v5487_v9 = vcombine.high %v45_v2, %v77_v5  ;;  %v5486_v17 = vcombine.low %v45_v2, %v77_v5 }
 0x125   :  { %v5489_v11 = vcombine.high %v46_v6, %v78_v7  ;;  %v5488_v18 = vcombine.low %v46_v6, %v78_v7  ;;  %v365_v6 = vld [vmem:[%s11016_s1 + $0xab0] sm:$0xff] }
 0x126   :  { %3726 = vmatpush1.bf16.msra.mxu0 %v5610_v12  ;;  %3769 = vmatpush1.bf16.msra.mxu1 %v5612_v13  ;;  %v109_v12 = vld [vmem:[%s11016_s1 + $0x2b0] sm:$0xff] }
 0x127   :  { %3727 = vmatprep.subr.bf16.mxu0 %v5675_v14  ;;  %3770 = vmatprep.subr.bf16.mxu1 %v5677_v16  ;;  %v141_v13 = vld [vmem:[%s11016_s1 + $0x3b0] sm:$0xff]  ;;  %v110_v14 = vld [vmem:[%s11016_s1 + $0x2b8] sm:$0xff] }
 0x128   :  { %v142_v16 = vld [vmem:[%s11016_s1 + $0x3b8] sm:$0xff]  ;;  %v5551_v22 = vcombine.high %v109_v12, %v141_v13  ;;  %v5550_v37 = vcombine.low %v109_v12, %v141_v13  ;;  %v397_v7 = vld [vmem:[%s11016_s1 + $0xbb0] sm:$0xff] }
 0x129   :  { %v5553_v25 = vcombine.high %v110_v14, %v142_v16  ;;  %v5552_v40 = vcombine.low %v110_v14, %v142_v16  ;;  %v5807_v13 = vcombine.high %v365_v6, %v397_v7  ;;  %v429_v14 = vld [vmem:[%s11016_s1 + $0xcb0] sm:$0xff] }
 0x12a   :  { %3728 = vmatpush1.bf16.msra.mxu0 %v5674_v28  ;;  %3771 = vmatpush1.bf16.msra.mxu1 %v5676_v32  ;;  %v173_v28 = vld [vmem:[%s11016_s1 + $0x4b0] sm:$0xff] }
 0x12b   :  { %3729 = vmatprep.subr.bf16.mxu0 %v5739_v33  ;;  %3772 = vmatprep.subr.bf16.mxu1 %v5741_v34  ;;  %v205_v32 = vld [vmem:[%s11016_s1 + $0x5b0] sm:$0xff]  ;;  %v174_v33 = vld [vmem:[%s11016_s1 + $0x4b8] sm:$0xff] }
 0x12c   :  { %v7059_v46 = vpop.f32.mrb[8].mxu0  ;;  %v7069_v51 = vpop.f32.mrb[8].mxu1  ;;  %v206_v34 = vld [vmem:[%s11016_s1 + $0x5b8] sm:$0xff]  ;;  %v5614_v49 = vcombine.low %v173_v28, %v205_v32  ;;  %v461_v16 = vld [vmem:[%s11016_s1 + $0xdb0] sm:$0x33] }
 0x12d   :  { %v7067_v50 = vpop.f32.mrb[9].mxu0  ;;  %v7079_v57 = vpop.f32.mrb[9].mxu1  ;;  %v5617_v43 = vcombine.high %v174_v33, %v206_v34 }
 0x12e   :  { %v7077_v56 = vpop.f32.mrb[10].mxu0  ;;  %3730 = vmatpush1.bf16.msra.mxu0 %v5738_v41  ;;  %3773 = vmatpush1.bf16.msra.mxu1 %v5740_v45  ;;  %v7083_v60 = vpop.f32.mrb[10].mxu1  ;;  %v5615_v41 = vcombine.high %v173_v28, %v205_v32  ;;  %v269_v45 = vld [vmem:[%s11016_s1 + $0x7b0] sm:$0xff]  ;;  %v462_v28 = vld [vmem:[%s11016_s1 + $0xdb8] sm:$0x33] }
 0x12f   :  { %v7081_v59 = vpop.f32.mrb[11].mxu0  ;;  %v7085_v63 = vpop.f32.mrb[11].mxu1  ;;  %3731 = vmatprep.subr.bf16.mxu0 %v5803_v47  ;;  %3774 = vmatprep.subr.bf16.mxu1 %v5805_v53  ;;  %v238_v47 = vld [vmem:[%s11016_s1 + $0x6b8] sm:$0xff]  ;;  %v5616_v53 = vcombine.low %v174_v33, %v206_v34  ;;  %v5679_v54 = vcombine.high %v237_v44, %v269_v45  ;;  %v5806_v34 = vcombine.low %v365_v6, %v397_v7 }
 0x130   :  { %v5681_v55 = vcombine.high %v238_v47, %v270_v48  ;;  %v5680_v1 = vcombine.low %v238_v47, %v270_v48 }
 0x132   :  { %3732 = vmatpush1.bf16.msra.mxu0 %v5802_v58  ;;  %3775 = vmatpush1.bf16.msra.mxu1 %v5804_v61  ;;  %v301_v58 = vld [vmem:[%s11016_s1 + $0x8b0] sm:$0xff] }
 0x133   :  { %5930 = vmatprep.subr.msk.bf16.mxu0 %vm2668_vm0, %v5867_v0  ;;  %5932 = vmatprep.subr.msk.bf16.mxu1 %vm2668_vm0, %v5869_v4  ;;  %v333_v61 = vld [vmem:[%s11016_s1 + $0x9b0] sm:$0xff]  ;;  %v334_v0 = vld [vmem:[%s11016_s1 + $0x9b8] sm:$0xff]  ;;  %v5678_v4 = vcombine.low %v237_v44, %v269_v45  ;;  %v5871_v45 = vcombine.high %v429_v14, %v461_v16 }
 0x134   :  { %v5743_v2 = vcombine.high %v301_v58, %v333_v61  ;;  %v5745_v5 = vcombine.high %v302_v62, %v334_v0 }
 0x136   :  { %3734 = vmatpush1.bf16.msra.mxu0 %v2790_v8  ;;  %3777 = vmatpush1.bf16.msra.mxu1 %v2796_v10  ;;  %v5742_v8 = vcombine.low %v301_v58, %v333_v61  ;;  %v398_v10 = vld [vmem:[%s11016_s1 + $0xbb8] sm:$0xff] }
 0x137   :  { %3807 = vmatprep.subr.bf16.mxu0 %v5487_v9  ;;  %3850 = vmatprep.subr.bf16.mxu1 %v5489_v11  ;;  %v366_v9 = vld [vmem:[%s11016_s1 + $0xab8] sm:$0xff]  ;;  %v5744_v11 = vcombine.low %v302_v62, %v334_v0 }
 0x139   :  { %5931 = vmatmul.mubr.msk.bf16.vlgmr.msra.gmra.mrb[40].mxu0 %vm2664_vm1, %v6695_v52  ;;  %5933 = vmatmul.mubr.msk.bf16.vlgmr.msra.gmra.mrb[40].mxu1 %vm2664_vm1, %v6695_v52 }
 0x13a   :  { %3808 = vmatpush1.bf16.msra.mxu0 %v5486_v17  ;;  %3851 = vmatpush1.bf16.msra.mxu1 %v5488_v18 }
 0x13b   :  { %3809 = vmatprep.subr.bf16.mxu0 %v5551_v22  ;;  %3852 = vmatprep.subr.bf16.mxu1 %v5553_v25  ;;  %v5809_v22 = vcombine.high %v366_v9, %v398_v10  ;;  %v430_v25 = vld [vmem:[%s11016_s1 + $0xcb8] sm:$0xff] }
 0x13c   :  { %3839 = vmatprep.mubr.bf16.mxu0 %v11022_v3  ;;  %3882 = vmatprep.mubr.bf16.mxu1 %v11022_v3  ;;  %v5873_v47 = vcombine.high %v430_v25, %v462_v28  ;;  %v5872_v48 = vcombine.low %v430_v25, %v462_v28 }
 0x13e   :  { %3810 = vmatpush1.bf16.msra.mxu0 %v5550_v37  ;;  %3853 = vmatpush1.bf16.msra.mxu1 %v5552_v40  ;;  %v2808_v62 = vsel %vm2668_vm0, %v5872_v48, 0 }
 0x13f   :  { %3811 = vmatprep.subr.bf16.mxu0 %v5615_v41  ;;  %3854 = vmatprep.subr.bf16.mxu1 %v5617_v43  ;;  %v5808_v41 = vcombine.low %v366_v9, %v398_v10  ;;  %v5870_v43 = vcombine.low %v429_v14, %v461_v16  ;;  %v175_v10 = vld [vmem:[%s11016_s1 + $0x4c0] sm:$0xff]  ;;  %v208_v14 = vld [vmem:[%s11016_s1 + $0x5c8] sm:$0xff] }
 0x141   :  { %v2802_v58 = vsel %vm2668_vm0, %v5870_v43, 0  ;;  %v272_v43 = vld [vmem:[%s11016_s1 + $0x7c8] sm:$0xff] }
 0x142   :  { %3812 = vmatpush1.bf16.msra.mxu0 %v5614_v49  ;;  %3855 = vmatpush1.bf16.msra.mxu1 %v5616_v53  ;;  %v47_v49 = vld [vmem:[%s11016_s1 + $0xc0] sm:$0xff] }
 0x143   :  { %3813 = vmatprep.subr.bf16.mxu0 %v5679_v54  ;;  %3856 = vmatprep.subr.bf16.mxu1 %v5681_v55  ;;  %v79_v53 = vld [vmem:[%s11016_s1 + $0x1c0] sm:$0xff]  ;;  %v48_v54 = vld [vmem:[%s11016_s1 + $0xc8] sm:$0xff] }
 0x144   :  { %v80_v55 = vld [vmem:[%s11016_s1 + $0x1c8] sm:$0xff]  ;;  %v5491_v61 = vcombine.high %v47_v49, %v79_v53  ;;  %v5490_v6 = vcombine.low %v47_v49, %v79_v53  ;;  %v303_v53 = vld [vmem:[%s11016_s1 + $0x8c0] sm:$0xff] }
 0x145   :  { %v5493_v0 = vcombine.high %v48_v54, %v80_v55  ;;  %v5492_v7 = vcombine.low %v48_v54, %v80_v55  ;;  %v335_v54 = vld [vmem:[%s11016_s1 + $0x9c0] sm:$0xff]  ;;  %v304_v55 = vld [vmem:[%s11016_s1 + $0x8c8] sm:$0xff] }
 0x146   :  { %3814 = vmatpush1.bf16.msra.mxu0 %v5678_v4  ;;  %3857 = vmatpush1.bf16.msra.mxu1 %v5680_v1  ;;  %v111_v4 = vld [vmem:[%s11016_s1 + $0x2c0] sm:$0xff] }
 0x147   :  { %3815 = vmatprep.subr.bf16.mxu0 %v5743_v2  ;;  %3858 = vmatprep.subr.bf16.mxu1 %v5745_v5  ;;  %v143_v1 = vld [vmem:[%s11016_s1 + $0x3c0] sm:$0xff]  ;;  %v112_v2 = vld [vmem:[%s11016_s1 + $0x2c8] sm:$0xff] }
 0x148   :  { %v7169_v12 = vpop.f32.mrb[12].mxu0  ;;  %v7179_v18 = vpop.f32.mrb[12].mxu1  ;;  %v144_v5 = vld [vmem:[%s11016_s1 + $0x3c8] sm:$0xff]  ;;  %v5554_v16 = vcombine.low %v111_v4, %v143_v1 }
 0x149   :  { %v7177_v17 = vpop.f32.mrb[13].mxu0  ;;  %v7189_v33 = vpop.f32.mrb[13].mxu1  ;;  %v5557_v9 = vcombine.high %v112_v2, %v144_v5 }
 0x14a   :  { %v7187_v32 = vpop.f32.mrb[14].mxu0  ;;  %3816 = vmatpush1.bf16.msra.mxu0 %v5742_v8  ;;  %3859 = vmatpush1.bf16.msra.mxu1 %v5744_v11  ;;  %v7193_v40 = vpop.f32.mrb[14].mxu1  ;;  %v5555_v8 = vcombine.high %v111_v4, %v143_v1  ;;  %v207_v11 = vld [vmem:[%s11016_s1 + $0x5c0] sm:$0xff] }
 0x14b   :  { %v7191_v37 = vpop.f32.mrb[15].mxu0  ;;  %v7195_v44 = vpop.f32.mrb[15].mxu1  ;;  %3817 = vmatprep.subr.bf16.mxu0 %v5807_v13  ;;  %3860 = vmatprep.subr.bf16.mxu1 %v5809_v22  ;;  %v176_v13 = vld [vmem:[%s11016_s1 + $0x4c8] sm:$0xff]  ;;  %v5556_v22 = vcombine.low %v112_v2, %v144_v5  ;;  %v5619_v25 = vcombine.high %v175_v10, %v207_v11  ;;  %v367_v1 = vld [vmem:[%s11016_s1 + $0xac0] sm:$0xff]  ;;  %v5746_v5 = vcombine.low %v303_v53, %v335_v54 }
 0x14c   :  { %v5621_v28 = vcombine.high %v176_v13, %v208_v14  ;;  %v399_v2 = vld [vmem:[%s11016_s1 + $0xbc0] sm:$0xff] }
 0x14e   :  { %3818 = vmatpush1.bf16.msra.mxu0 %v5806_v34  ;;  %3861 = vmatpush1.bf16.msra.mxu1 %v5808_v41  ;;  %v239_v34 = vld [vmem:[%s11016_s1 + $0x6c0] sm:$0xff] }
 0x14f   :  { %5934 = vmatprep.subr.msk.bf16.mxu0 %vm2668_vm0, %v5871_v45  ;;  %5936 = vmatprep.subr.msk.bf16.mxu1 %vm2668_vm0, %v5873_v47  ;;  %v271_v41 = vld [vmem:[%s11016_s1 + $0x7c0] sm:$0xff]  ;;  %v5618_v45 = vcombine.low %v175_v10, %v207_v11  ;;  %v5620_v47 = vcombine.low %v176_v13, %v208_v14  ;;  %v5811_v10 = vcombine.high %v367_v1, %v399_v2 }
 0x150   :  { %v5683_v48 = vcombine.high %v239_v34, %v271_v41  ;;  %v431_v11 = vld [vmem:[%s11016_s1 + $0xcc0] sm:$0xff] }
 0x151   :  { %v463_v13 = vld [vmem:[%s11016_s1 + $0xdc0] sm:$0x33] }
 0x152   :  { %3820 = vmatpush1.bf16.msra.mxu0 %v2802_v58  ;;  %3863 = vmatpush1.bf16.msra.mxu1 %v2808_v62  ;;  %v336_v58 = vld [vmem:[%s11016_s1 + $0x9c8] sm:$0xff] }
 0x153   :  { %3893 = vmatprep.subr.bf16.mxu0 %v5491_v61  ;;  %3936 = vmatprep.subr.bf16.mxu1 %v5493_v0  ;;  %v5682_v61 = vcombine.low %v239_v34, %v271_v41  ;;  %v5747_v0 = vcombine.high %v303_v53, %v335_v54  ;;  %v5749_v4 = vcombine.high %v304_v55, %v336_v58 }
 0x154   :  { %v5875_v53 = vcombine.high %v431_v11, %v463_v13 }
 0x155   :  { %5935 = vmatmul.mubr.msk.bf16.vlgmr.msra.gmra.mrb[44].mxu0 %vm2664_vm1, %v6695_v52  ;;  %5937 = vmatmul.mubr.msk.bf16.vlgmr.msra.gmra.mrb[44].mxu1 %vm2664_vm1, %v6695_v52  ;;  %v240_v52 = vld [vmem:[%s11016_s1 + $0x6c8] sm:$0xff] }
 0x156   :  { %3894 = vmatpush1.bf16.msra.mxu0 %v5490_v6  ;;  %3937 = vmatpush1.bf16.msra.mxu1 %v5492_v7  ;;  %v5685_v49 = vcombine.high %v240_v52, %v272_v43  ;;  %v5684_v62 = vcombine.low %v240_v52, %v272_v43  ;;  %v368_v6 = vld [vmem:[%s11016_s1 + $0xac8] sm:$0xff]  ;;  %v5810_v52 = vcombine.low %v367_v1, %v399_v2 }
 0x157   :  { %3895 = vmatprep.subr.bf16.mxu0 %v5555_v8  ;;  %3938 = vmatprep.subr.bf16.mxu1 %v5557_v9  ;;  %v400_v7 = vld [vmem:[%s11016_s1 + $0xbc8] sm:$0xff]  ;;  %v5748_v8 = vcombine.low %v304_v55, %v336_v58  ;;  %v49_v58 = vld [vmem:[%s11016_s1 + $0xd0] sm:$0xff] }
 0x158   :  { %3925 = vmatprep.mubr.bf16.mxu0 %v11022_v3  ;;  %3968 = vmatprep.mubr.bf16.mxu1 %v11022_v3 }
 0x15a   :  { %3896 = vmatpush1.bf16.msra.mxu0 %v5554_v16  ;;  %3939 = vmatpush1.bf16.msra.mxu1 %v5556_v22  ;;  %v5813_v22 = vcombine.high %v368_v6, %v400_v7 }
 0x15b   :  { %3897 = vmatprep.subr.bf16.mxu0 %v5619_v25  ;;  %3940 = vmatprep.subr.bf16.mxu1 %v5621_v28  ;;  %v432_v25 = vld [vmem:[%s11016_s1 + $0xcc8] sm:$0xff] }
 0x15c   :  { %v464_v28 = vld [vmem:[%s11016_s1 + $0xdc8] sm:$0x33] }
 0x15d   :  { %v5877_v54 = vcombine.high %v432_v25, %v464_v28  ;;  %v5876_v55 = vcombine.low %v432_v25, %v464_v28  ;;  %v177_v28 = vld [vmem:[%s11016_s1 + $0x4d0] sm:$0xff] }
 0x15e   :  { %3898 = vmatpush1.bf16.msra.mxu0 %v5618_v45  ;;  %3941 = vmatpush1.bf16.msra.mxu1 %v5620_v47  ;;  %v5812_v47 = vcombine.low %v368_v6, %v400_v7  ;;  %v113_v6 = vld [vmem:[%s11016_s1 + $0x2d0] sm:$0xff] }
 0x15f   :  { %3899 = vmatprep.subr.bf16.mxu0 %v5683_v48  ;;  %3942 = vmatprep.subr.bf16.mxu1 %v5685_v49  ;;  %v5874_v48 = vcombine.low %v431_v11, %v463_v13  ;;  %v2820_v2 = vsel %vm2668_vm0, %v5876_v55, 0  ;;  %v145_v7 = vld [vmem:[%s11016_s1 + $0x3d0] sm:$0xff] }
 0x162   :  { %3900 = vmatpush1.bf16.msra.mxu0 %v5682_v61  ;;  %3943 = vmatpush1.bf16.msra.mxu1 %v5684_v62  ;;  %v81_v61 = vld [vmem:[%s11016_s1 + $0x1d0] sm:$0xff]  ;;  %v50_v62 = vld [vmem:[%s11016_s1 + $0xd8] sm:$0xff] }
 0x163   :  { %3901 = vmatprep.subr.bf16.mxu0 %v5747_v0  ;;  %3944 = vmatprep.subr.bf16.mxu1 %v5749_v4  ;;  %v82_v0 = vld [vmem:[%s11016_s1 + $0x1d8] sm:$0xff]  ;;  %v2814_v4 = vsel %vm2668_vm0, %v5874_v48, 0  ;;  %v5495_v1 = vcombine.high %v49_v58, %v81_v61  ;;  %v5494_v11 = vcombine.low %v49_v58, %v81_v61 }
 0x164   :  { %v7279_v9 = vpop.f32.mrb[16].mxu0  ;;  %v7289_v16 = vpop.f32.mrb[16].mxu1  ;;  %v5496_v13 = vcombine.low %v50_v62, %v82_v0  ;;  %v178_v48 = vld [vmem:[%s11016_s1 + $0x4d8] sm:$0xff] }
 0x165   :  { %v7287_v14 = vpop.f32.mrb[17].mxu0  ;;  %v7299_v41 = vpop.f32.mrb[17].mxu1 }
 0x166   :  { %v7297_v34 = vpop.f32.mrb[18].mxu0  ;;  %3902 = vmatpush1.bf16.msra.mxu0 %v5746_v5  ;;  %3945 = vmatpush1.bf16.msra.mxu1 %v5748_v8  ;;  %v7303_v45 = vpop.f32.mrb[18].mxu1  ;;  %v5497_v5 = vcombine.high %v50_v62, %v82_v0  ;;  %v114_v8 = vld [vmem:[%s11016_s1 + $0x2d8] sm:$0xff]  ;;  %v241_v62 = vld [vmem:[%s11016_s1 + $0x6d0] sm:$0xff] }
 0x167   :  { %v7301_v43 = vpop.f32.mrb[19].mxu0  ;;  %v7305_v49 = vpop.f32.mrb[19].mxu1  ;;  %3903 = vmatprep.subr.bf16.mxu0 %v5811_v10  ;;  %3946 = vmatprep.subr.bf16.mxu1 %v5813_v22  ;;  %v146_v10 = vld [vmem:[%s11016_s1 + $0x3d8] sm:$0xff]  ;;  %v5559_v22 = vcombine.high %v113_v6, %v145_v7  ;;  %v273_v0 = vld [vmem:[%s11016_s1 + $0x7d0] sm:$0xff] }
 0x168   :  { %11167 = vst [vmem:[#allocation2_spill] sm:$0xff] %v7305_v49  ;;  %v5561_v25 = vcombine.high %v114_v8, %v146_v10  ;;  %v5560_v55 = vcombine.low %v114_v8, %v146_v10  ;;  %v305_v8 = vld [vmem:[%s11016_s1 + $0x8d0] sm:$0xff] }
 0x169   :  { %v337_v10 = vld [vmem:[%s11016_s1 + $0x9d0] sm:$0xff] }
 0x16a   :  { %3904 = vmatpush1.bf16.msra.mxu0 %v5810_v52  ;;  %3947 = vmatpush1.bf16.msra.mxu1 %v5812_v47  ;;  %v209_v52 = vld [vmem:[%s11016_s1 + $0x5d0] sm:$0xff]  ;;  %v7344_v47 = vld [vmem:[%s11017_s0] sm:$0xff]  }
 0x16b   :  { %5938 = vmatprep.subr.msk.bf16.mxu0 %vm2668_vm0, %v5875_v53  ;;  %5940 = vmatprep.subr.msk.bf16.mxu1 %vm2668_vm0, %v5877_v54  ;;  %v210_v53 = vld [vmem:[%s11016_s1 + $0x5d8] sm:$0xff]  ;;  %v5558_v54 = vcombine.low %v113_v6, %v145_v7  ;;  %v5623_v58 = vcombine.high %v177_v28, %v209_v52  ;;  %v5687_v6 = vcombine.high %v241_v62, %v273_v0 }
 0x16c   :  { %v5625_v61 = vcombine.high %v178_v48, %v210_v53 }
 0x16e   :  { %3906 = vmatpush1.bf16.msra.mxu0 %v2814_v4  ;;  %3949 = vmatpush1.bf16.msra.mxu1 %v2820_v2  ;;  %v242_v4 = vld [vmem:[%s11016_s1 + $0x6d8] sm:$0xff]  ;;  %v5622_v2 = vcombine.low %v177_v28, %v209_v52  ;;  %v5751_v28 = vcombine.high %v305_v8, %v337_v10 }
 0x16f   :  { %3979 = vmatprep.subr.bf16.mxu0 %v5495_v1  ;;  %4022 = vmatprep.subr.bf16.mxu1 %v5497_v5  ;;  %v274_v1 = vld [vmem:[%s11016_s1 + $0x7d8] sm:$0xff]  ;;  %v5624_v5 = vcombine.low %v178_v48, %v210_v53  ;;  %v369_v48 = vld [vmem:[%s11016_s1 + $0xad0] sm:$0xff] }
 0x170   :  { %v5689_v7 = vcombine.high %v242_v4, %v274_v1  ;;  %v401_v53 = vld [vmem:[%s11016_s1 + $0xbd0] sm:$0xff] }
 0x171   :  { %5939 = vmatmul.mubr.msk.bf16.vlgmr.msra.gmra.mrb[48].mxu0 %vm2664_vm1, %v7344_v47  ;;  %5941 = vmatmul.mubr.msk.bf16.vlgmr.msra.gmra.mrb[48].mxu1 %vm2664_vm1, %v7344_v47 }
 0x172   :  { %3980 = vmatpush1.bf16.msra.mxu0 %v5494_v11  ;;  %4023 = vmatpush1.bf16.msra.mxu1 %v5496_v13  ;;  %v306_v11 = vld [vmem:[%s11016_s1 + $0x8d8] sm:$0xff] }
 0x173   :  { %3981 = vmatprep.subr.bf16.mxu0 %v5559_v22  ;;  %4024 = vmatprep.subr.bf16.mxu1 %v5561_v25  ;;  %v338_v13 = vld [vmem:[%s11016_s1 + $0x9d8] sm:$0xff]  ;;  %v5686_v22 = vcombine.low %v241_v62, %v273_v0  ;;  %v5688_v25 = vcombine.low %v242_v4, %v274_v1  ;;  %v5815_v0 = vcombine.high %v369_v48, %v401_v53  ;;  %v433_v4 = vld [vmem:[%s11016_s1 + $0xcd0] sm:$0xff] }
 0x174   :  { %4011 = vmatprep.mubr.bf16.mxu0 %v11022_v3  ;;  %4054 = vmatprep.mubr.bf16.mxu1 %v11022_v3  ;;  %v5753_v52 = vcombine.high %v306_v11, %v338_v13  ;;  %v465_v1 = vld [vmem:[%s11016_s1 + $0xdd0] sm:$0x33] }
 0x176   :  { %3982 = vmatpush1.bf16.msra.mxu0 %v5558_v54  ;;  %4025 = vmatpush1.bf16.msra.mxu1 %v5560_v55  ;;  %v5750_v54 = vcombine.low %v305_v8, %v337_v10  ;;  %v370_v55 = vld [vmem:[%s11016_s1 + $0xad8] sm:$0xff] }
 0x177   :  { %3983 = vmatprep.subr.bf16.mxu0 %v5623_v58  ;;  %4026 = vmatprep.subr.bf16.mxu1 %v5625_v61  ;;  %v402_v58 = vld [vmem:[%s11016_s1 + $0xbd8] sm:$0xff]  ;;  %v5752_v61 = vcombine.low %v306_v11, %v338_v13  ;;  %v5814_v13 = vcombine.low %v369_v48, %v401_v53  ;;  %v83_v48 = vld [vmem:[%s11016_s1 + $0x1e0] sm:$0xff]  ;;  %v52_v53 = vld [vmem:[%s11016_s1 + $0xe8] sm:$0xff] }
 0x178   :  { %v466_v8 = vld [vmem:[%s11016_s1 + $0xdd8] sm:$0x33] }
 0x17a   :  { %3984 = vmatpush1.bf16.msra.mxu0 %v5622_v2  ;;  %4027 = vmatpush1.bf16.msra.mxu1 %v5624_v5 }
 0x17b   :  { %3985 = vmatprep.subr.bf16.mxu0 %v5687_v6  ;;  %4028 = vmatprep.subr.bf16.mxu1 %v5689_v7  ;;  %v5817_v6 = vcombine.high %v370_v55, %v402_v58  ;;  %v434_v7 = vld [vmem:[%s11016_s1 + $0xcd8] sm:$0xff] }
 0x17c   :  { %v5880_v49 = vcombine.low %v434_v7, %v466_v8 }
 0x17e   :  { %3986 = vmatpush1.bf16.msra.mxu0 %v5686_v22  ;;  %4029 = vmatpush1.bf16.msra.mxu1 %v5688_v25 }
 0x17f   :  { %3987 = vmatprep.subr.bf16.mxu0 %v5751_v28  ;;  %4030 = vmatprep.subr.bf16.mxu1 %v5753_v52  ;;  %v5816_v28 = vcombine.low %v370_v55, %v402_v58  ;;  %v5878_v52 = vcombine.low %v433_v4, %v465_v1  ;;  %v84_v55 = vld [vmem:[%s11016_s1 + $0x1e8] sm:$0xff] }
 0x180   :  { %v7394_v62 = vpop.f32.mrb[20].mxu0  ;;  %v7404_v5 = vpop.f32.mrb[20].mxu1 }
 0x181   :  { %11168 = vst [vmem:[#allocation3_spill] sm:$0xff] %v7394_v62  ;;  %v7402_v2 = vpop.f32.mrb[21].mxu0  ;;  %11170 = vst [vmem:[#allocation5_spill] sm:$0xff] %v7404_v5  ;;  %v7414_v11 = vpop.f32.mrb[21].mxu1  ;;  %v5879_v5 = vcombine.high %v433_v4, %v465_v1  ;;  %v2826_v58 = vsel %vm2668_vm0, %v5878_v52, 0  ;;  %v5501_v4 = vcombine.high %v52_v53, %v84_v55  ;;  %v115_v1 = vld [vmem:[%s11016_s1 + $0x2e0] sm:$0xff] }
 0x182   :  { %11169 = vst [vmem:[#allocation4_spill] sm:$0xff] %v7402_v2  ;;  %v7412_v10 = vpop.f32.mrb[22].mxu0  ;;  %3988 = vmatpush1.bf16.msra.mxu0 %v5750_v54  ;;  %11172 = vst [vmem:[#allocation7_spill] sm:$0xff] %v7414_v11  ;;  %4031 = vmatpush1.bf16.msra.mxu1 %v5752_v61  ;;  %v7418_v25 = vpop.f32.mrb[22].mxu1  ;;  %v5881_v2 = vcombine.high %v434_v7, %v466_v8  ;;  %v51_v54 = vld [vmem:[%s11016_s1 + $0xe0] sm:$0xff]  ;;  %v116_v7 = vld [vmem:[%s11016_s1 + $0x2e8] sm:$0xff] }
 0x183   :  { %11171 = vst [vmem:[#allocation6_spill] sm:$0xff] %v7412_v10  ;;  %v7416_v22 = vpop.f32.mrb[23].mxu0  ;;  %11174 = vst [vmem:[#allocation9_spill] sm:$0xff] %v7418_v25  ;;  %v7420_v3 = vpop.f32.mrb[23].mxu1  ;;  %3989 = vmatprep.subr.bf16.mxu0 %v5815_v0  ;;  %4032 = vmatprep.subr.bf16.mxu1 %v5817_v6  ;;  %v5499_v61 = vcombine.high %v51_v54, %v83_v48  ;;  %v2832_v0 = vsel %vm2668_vm0, %v5880_v49, 0  ;;  %v147_v6 = vld [vmem:[%s11016_s1 + $0x3e0] sm:$0xff]  ;;  %v5500_v49 = vcombine.low %v52_v53, %v84_v55 }
 0x184   :  { %11173 = vst [vmem:[#allocation8_spill] sm:$0xff] %v7416_v22  ;;  %11175 = vst [vmem:[#allocation10_spill] sm:$0xff] %v7420_v3  ;;  %v5563_v8 = vcombine.high %v115_v1, %v147_v6  ;;  %v211_v52 = vld [vmem:[%s11016_s1 + $0x5e0] sm:$0xff]  ;;  %v5562_v53 = vcombine.low %v115_v1, %v147_v6  ;;  %v11176_v3 = vmov 0   ;;  %v244_v1 = vld [vmem:[%s11016_s1 + $0x6e8] sm:$0xff] }
 0x185   :  { %v276_v6 = vld [vmem:[%s11016_s1 + $0x7e8] sm:$0xff] }
 0x186   :  { %3990 = vmatpush1.bf16.msra.mxu0 %v5814_v13  ;;  %4033 = vmatpush1.bf16.msra.mxu1 %v5816_v28  ;;  %v179_v28 = vld [vmem:[%s11016_s1 + $0x4e0] sm:$0xff]  ;;  %v308_v11 = vld [vmem:[%s11016_s1 + $0x8e8] sm:$0xff] }
 0x187   :  { %5942 = vmatprep.subr.msk.bf16.mxu0 %vm2668_vm0, %v5879_v5  ;;  %5944 = vmatprep.subr.msk.bf16.mxu1 %vm2668_vm0, %v5881_v2  ;;  %v148_v5 = vld [vmem:[%s11016_s1 + $0x3e8] sm:$0xff]  ;;  %v5498_v2 = vcombine.low %v51_v54, %v83_v48 }
 0x188   :  { %v5565_v13 = vcombine.high %v116_v7, %v148_v5  ;;  %v180_v54 = vld [vmem:[%s11016_s1 + $0x4e8] sm:$0xff]  ;;  %v5564_v55 = vcombine.low %v116_v7, %v148_v5  ;;  %v5626_v7 = vcombine.low %v179_v28, %v211_v52 }
 0x189   :  { %v212_v48 = vld [vmem:[%s11016_s1 + $0x5e8] sm:$0xff] }
 0x18a   :  { %3992 = vmatpush1.bf16.msra.mxu0 %v2826_v58  ;;  %4035 = vmatpush1.bf16.msra.mxu1 %v2832_v0  ;;  %v5627_v58 = vcombine.high %v179_v28, %v211_v52  ;;  %v243_v0 = vld [vmem:[%s11016_s1 + $0x6e0] sm:$0xff]  ;;  %v5628_v5 = vcombine.low %v180_v54, %v212_v48  ;;  %v340_v28 = vld [vmem:[%s11016_s1 + $0x9e8] sm:$0xff] }
 0x18b   :  { %4065 = vmatprep.subr.bf16.mxu0 %v5499_v61  ;;  %4108 = vmatprep.subr.bf16.mxu1 %v5501_v4  ;;  %v5629_v61 = vcombine.high %v180_v54, %v212_v48  ;;  %v275_v4 = vld [vmem:[%s11016_s1 + $0x7e0] sm:$0xff]  ;;  %v5692_v54 = vcombine.low %v244_v1, %v276_v6 }
 0x18c   :  { %v5690_v52 = vcombine.low %v243_v0, %v275_v4 }
 0x18d   :  { %5943 = vmatmul.mubr.msk.bf16.vlgmr.msra.gmra.mrb[52].mxu0 %vm2664_vm1, %v7344_v47  ;;  %5945 = vmatmul.mubr.msk.bf16.vlgmr.msra.gmra.mrb[52].mxu1 %vm2664_vm1, %v7344_v47 }
 0x18e   :  { %4066 = vmatpush1.bf16.msra.mxu0 %v5498_v2  ;;  %4109 = vmatpush1.bf16.msra.mxu1 %v5500_v49  ;;  %v5691_v2 = vcombine.high %v243_v0, %v275_v4  ;;  %v5693_v49 = vcombine.high %v244_v1, %v276_v6  ;;  %v372_v0 = vld [vmem:[%s11016_s1 + $0xae8] sm:$0xff]  ;;  %v5756_v1 = vcombine.low %v308_v11, %v340_v28 }
 0x18f   :  { %4067 = vmatprep.subr.bf16.mxu0 %v5563_v8  ;;  %4110 = vmatprep.subr.bf16.mxu1 %v5565_v13  ;;  %v307_v8 = vld [vmem:[%s11016_s1 + $0x8e0] sm:$0xff]  ;;  %v404_v4 = vld [vmem:[%s11016_s1 + $0xbe8] sm:$0xff] }
 0x190   :  { %4097 = vmatprep.mubr.bf16.mxu0 %v11176_v3  ;;  %4140 = vmatprep.mubr.bf16.mxu1 %v11176_v3  ;;  %v339_v13 = vld [vmem:[%s11016_s1 + $0x9e0] sm:$0xff] }
 0x191   :  { %v5755_v48 = vcombine.high %v307_v8, %v339_v13 }
 0x192   :  { %4068 = vmatpush1.bf16.msra.mxu0 %v5562_v53  ;;  %4111 = vmatpush1.bf16.msra.mxu1 %v5564_v55  ;;  %v5757_v53 = vcombine.high %v308_v11, %v340_v28  ;;  %v371_v55 = vld [vmem:[%s11016_s1 + $0xae0] sm:$0xff]  ;;  %v436_v11 = vld [vmem:[%s11016_s1 + $0xce8] sm:$0xff] }
 0x193   :  { %4069 = vmatprep.subr.bf16.mxu0 %v5627_v58  ;;  %4112 = vmatprep.subr.bf16.mxu1 %v5629_v61  ;;  %v403_v58 = vld [vmem:[%s11016_s1 + $0xbe0] sm:$0xff]  ;;  %v5754_v61 = vcombine.low %v307_v8, %v339_v13  ;;  %v5821_v13 = vcombine.high %v372_v0, %v404_v4  ;;  %v468_v28 = vld [vmem:[%s11016_s1 + $0xde8] sm:$0x33] }
 0x194   :  { %v5885_v10 = vcombine.high %v436_v11, %v468_v28  ;;  %v5884_v62 = vcombine.low %v436_v11, %v468_v28  ;;  %v181_v28 = vld [vmem:[%s11016_s1 + $0x4f0] sm:$0xff] }
 0x196   :  { %4070 = vmatpush1.bf16.msra.mxu0 %v5626_v7  ;;  %4113 = vmatpush1.bf16.msra.mxu1 %v5628_v5  ;;  %v5819_v7 = vcombine.high %v371_v55, %v403_v58  ;;  %v435_v5 = vld [vmem:[%s11016_s1 + $0xce0] sm:$0xff] }
 0x197   :  { %4071 = vmatprep.subr.bf16.mxu0 %v5691_v2  ;;  %4114 = vmatprep.subr.bf16.mxu1 %v5693_v49  ;;  %v467_v2 = vld [vmem:[%s11016_s1 + $0xde0] sm:$0x33] }
 0x198   :  { %v5883_v22 = vcombine.high %v435_v5, %v467_v2 }
 0x19a   :  { %4072 = vmatpush1.bf16.msra.mxu0 %v5690_v52  ;;  %4115 = vmatpush1.bf16.msra.mxu1 %v5692_v54 }
 0x19b   :  { %4073 = vmatprep.subr.bf16.mxu0 %v5755_v48  ;;  %4116 = vmatprep.subr.bf16.mxu1 %v5757_v53  ;;  %v5818_v48 = vcombine.low %v371_v55, %v403_v58  ;;  %v85_v55 = vld [vmem:[%s11016_s1 + $0x1f0] sm:$0xff]  ;;  %v54_v58 = vld [vmem:[%s11016_s1 + $0xf8] sm:$0xff] }
 0x19c   :  { %v7504_v6 = vpop.f32.mrb[24].mxu0  ;;  %v7514_v8 = vpop.f32.mrb[24].mxu1 }
 0x19d   :  { %11177 = vst [vmem:[#allocation11_spill] sm:$0xff] %v7504_v6  ;;  %v7512_v49 = vpop.f32.mrb[25].mxu0  ;;  %11179 = vst [vmem:[#allocation13_spill] sm:$0xff] %v7514_v8  ;;  %v7524_v54 = vpop.f32.mrb[25].mxu1  ;;  %v5820_v8 = vcombine.low %v372_v0, %v404_v4  ;;  %v5882_v6 = vcombine.low %v435_v5, %v467_v2  ;;  %v86_v0 = vld [vmem:[%s11016_s1 + $0x1f8] sm:$0xff]  ;;  %v117_v2 = vld [vmem:[%s11016_s1 + $0x2f0] sm:$0xff] }
 0x19e   :  { %11178 = vst [vmem:[#allocation12_spill] sm:$0xff] %v7512_v49  ;;  %v7522_v52 = vpop.f32.mrb[26].mxu0  ;;  %4074 = vmatpush1.bf16.msra.mxu0 %v5754_v61  ;;  %11181 = vst [vmem:[#allocation15_spill] sm:$0xff] %v7524_v54  ;;  %4117 = vmatpush1.bf16.msra.mxu1 %v5756_v1  ;;  %v7528_v49 = vpop.f32.mrb[26].mxu1  ;;  %v53_v61 = vld [vmem:[%s11016_s1 + $0xf0] sm:$0xff]  ;;  %v5505_v5 = vcombine.high %v54_v58, %v86_v0 }
 0x19f   :  { %11180 = vst [vmem:[#allocation14_spill] sm:$0xff] %v7522_v52  ;;  %v7526_v53 = vpop.f32.mrb[27].mxu0  ;;  %11183 = vst [vmem:[#allocation17_spill] sm:$0xff] %v7528_v49  ;;  %v7530_v25 = vpop.f32.mrb[27].mxu1  ;;  %4075 = vmatprep.subr.bf16.mxu0 %v5819_v7  ;;  %4118 = vmatprep.subr.bf16.mxu1 %v5821_v13  ;;  %v2838_v4 = vsel %vm2668_vm0, %v5882_v6, 0  ;;  %v5503_v1 = vcombine.high %v53_v61, %v85_v55  ;;  %v2844_v7 = vsel %vm2668_vm0, %v5884_v62, 0 }
 0x1a0   :  { %11182 = vst [vmem:[#allocation16_spill] sm:$0xff] %v7526_v53  ;;  %11184 = vst [vmem:[#allocation18_spill] sm:$0xff] %v7530_v25  ;;  %v149_v13 = vld [vmem:[%s11016_s1 + $0x3f0] sm:$0xff]  ;;  %v118_v6 = vld [vmem:[%s11016_s1 + $0x2f8] sm:$0xff]  ;;  %v5504_v62 = vcombine.low %v54_v58, %v86_v0  ;;  %v7642_v52 = vpop.permute.xlu0 %475 }
 0x1a1   :  { %v5566_v58 = vcombine.low %v117_v2, %v149_v13 }
 0x1a2   :  { %4076 = vmatpush1.bf16.msra.mxu0 %v5818_v48  ;;  %4119 = vmatpush1.bf16.msra.mxu1 %v5820_v8  ;;  %v5567_v8 = vcombine.high %v117_v2, %v149_v13  ;;  %v213_v48 = vld [vmem:[%s11016_s1 + $0x5f0] sm:$0xff]  ;;  %v246_v2 = vld [vmem:[%s11016_s1 + $0x6f8] sm:$0xff] }
 0x1a3   :  { %5946 = vmatprep.subr.msk.bf16.mxu0 %vm2668_vm0, %v5883_v22  ;;  %5948 = vmatprep.subr.msk.bf16.mxu1 %vm2668_vm0, %v5885_v10  ;;  %v150_v22 = vld [vmem:[%s11016_s1 + $0x3f8] sm:$0xff]  ;;  %v5502_v10 = vcombine.low %v53_v61, %v85_v55 }
 0x1a4   :  { %v5569_v11 = vcombine.high %v118_v6, %v150_v22  ;;  %v182_v61 = vld [vmem:[%s11016_s1 + $0x4f8] sm:$0xff]  ;;  %v5568_v0 = vcombine.low %v118_v6, %v150_v22  ;;  %v5630_v6 = vcombine.low %v181_v28, %v213_v48 }
 0x1a5   :  { %v214_v55 = vld [vmem:[%s11016_s1 + $0x5f8] sm:$0xff] }
 0x1a6   :  { %4078 = vmatpush1.bf16.msra.mxu0 %v2838_v4  ;;  %4121 = vmatpush1.bf16.msra.mxu1 %v2844_v7  ;;  %v5631_v4 = vcombine.high %v181_v28, %v213_v48  ;;  %v245_v7 = vld [vmem:[%s11016_s1 + $0x6f0] sm:$0xff]  ;;  %v278_v13 = vld [vmem:[%s11016_s1 + $0x7f8] sm:$0xff]  ;;  %v5632_v22 = vcombine.low %v182_v61, %v214_v55 }
 0x1a7   :  { %4151 = vmatprep.subr.bf16.mxu0 %v5503_v1  ;;  %4194 = vmatprep.subr.bf16.mxu1 %v5505_v5  ;;  %v5633_v1 = vcombine.high %v182_v61, %v214_v55  ;;  %v277_v5 = vld [vmem:[%s11016_s1 + $0x7f0] sm:$0xff]  ;;  %v342_v28 = vld [vmem:[%s11016_s1 + $0x9f8] sm:$0xff]  ;;  %v5696_v61 = vcombine.low %v246_v2, %v278_v13 }
 0x1a8   :  { %v5694_v48 = vcombine.low %v245_v7, %v277_v5 }
 0x1a9   :  { %5947 = vmatmul.mubr.msk.bf16.vlgmr.msra.gmra.mrb[56].mxu0 %vm2664_vm1, %v7344_v47  ;;  %5949 = vmatmul.mubr.msk.bf16.vlgmr.msra.gmra.mrb[56].mxu1 %vm2664_vm1, %v7344_v47 }
 0x1aa   :  { %4152 = vmatpush1.bf16.msra.mxu0 %v5502_v10  ;;  %4195 = vmatpush1.bf16.msra.mxu1 %v5504_v62  ;;  %v5695_v10 = vcombine.high %v245_v7, %v277_v5  ;;  %v5697_v62 = vcombine.high %v246_v2, %v278_v13  ;;  %v374_v7 = vld [vmem:[%s11016_s1 + $0xaf8] sm:$0xff] }
 0x1ab   :  { %4153 = vmatprep.subr.bf16.mxu0 %v5567_v8  ;;  %4196 = vmatprep.subr.bf16.mxu1 %v5569_v11  ;;  %v309_v8 = vld [vmem:[%s11016_s1 + $0x8f0] sm:$0xff]  ;;  %v406_v5 = vld [vmem:[%s11016_s1 + $0xbf8] sm:$0xff] }
 0x1ac   :  { %4183 = vmatprep.mubr.bf16.mxu0 %v11176_v3  ;;  %4226 = vmatprep.mubr.bf16.mxu1 %v11176_v3  ;;  %v341_v11 = vld [vmem:[%s11016_s1 + $0x9f0] sm:$0xff]  ;;  %v310_v3 = vld [vmem:[%s11016_s1 + $0x8f8] sm:$0xff] }
 0x1ad   :  { %v5759_v55 = vcombine.high %v309_v8, %v341_v11  ;;  %v5760_v2 = vcombine.low %v310_v3, %v342_v28 }
 0x1ae   :  { %4154 = vmatpush1.bf16.msra.mxu0 %v5566_v58  ;;  %4197 = vmatpush1.bf16.msra.mxu1 %v5568_v0  ;;  %v5761_v58 = vcombine.high %v310_v3, %v342_v28  ;;  %v373_v0 = vld [vmem:[%s11016_s1 + $0xaf0] sm:$0xff]  ;;  %v438_v3 = vld [vmem:[%s11016_s1 + $0xcf8] sm:$0xff] }
 0x1af   :  { %4155 = vmatprep.subr.bf16.mxu0 %v5631_v4  ;;  %4198 = vmatprep.subr.bf16.mxu1 %v5633_v1  ;;  %v405_v4 = vld [vmem:[%s11016_s1 + $0xbf0] sm:$0xff]  ;;  %v5758_v1 = vcombine.low %v309_v8, %v341_v11  ;;  %v5825_v11 = vcombine.high %v374_v7, %v406_v5  ;;  %v470_v28 = vld [vmem:[%s11016_s1 + $0xdf8] sm:$0x33] }
 0x1b0   :  { %v5889_v49 = vcombine.high %v438_v3, %v470_v28  ;;  %v5888_v53 = vcombine.low %v438_v3, %v470_v28 }
 0x1b2   :  { %4156 = vmatpush1.bf16.msra.mxu0 %v5630_v6  ;;  %4199 = vmatpush1.bf16.msra.mxu1 %v5632_v22  ;;  %v5823_v6 = vcombine.high %v373_v0, %v405_v4  ;;  %v437_v22 = vld [vmem:[%s11016_s1 + $0xcf0] sm:$0xff] }
 0x1b3   :  { %4157 = vmatprep.subr.bf16.mxu0 %v5695_v10  ;;  %4200 = vmatprep.subr.bf16.mxu1 %v5697_v62  ;;  %v469_v10 = vld [vmem:[%s11016_s1 + $0xdf0] sm:$0x33] }
 0x1b4   :  { %v5886_v25 = vcombine.low %v437_v22, %v469_v10  ;;  %v5887_v54 = vcombine.high %v437_v22, %v469_v10  ;;  %v7694_v22 = vadd.f32 %v6859_v24, %v7642_v52 }
 0x1b6   :  { %4158 = vmatpush1.bf16.msra.mxu0 %v5694_v48  ;;  %4201 = vmatpush1.bf16.msra.mxu1 %v5696_v61  ;;  %11191 = vst [vmem:[#allocation25_spill] sm:$0xff] %v7694_v22 }
 0x1b7   :  { %4159 = vmatprep.subr.bf16.mxu0 %v5759_v55  ;;  %4202 = vmatprep.subr.bf16.mxu1 %v5761_v58  ;;  %v5822_v55 = vcombine.low %v373_v0, %v405_v4  ;;  %v2850_v0 = vsel %vm2668_vm0, %v5886_v25, 0  ;;  %v2856_v4 = vsel %vm2668_vm0, %v5888_v53, 0  ;;  %v7658_v25 = vadd.f32 %v6847_v19, %v7642_v52 }
 0x1b8   :  { %v7614_v13 = vpop.f32.mrb[28].mxu0  ;;  %v7624_v8 = vpop.f32.mrb[28].mxu1  ;;  %v7676_v19 = vadd.f32 %v6849_v20, %v7642_v52 }
 0x1b9   :  { %11185 = vst [vmem:[#allocation19_spill] sm:$0xff] %v7614_v13  ;;  %v7622_v62 = vpop.f32.mrb[29].mxu0  ;;  %11187 = vst [vmem:[#allocation21_spill] sm:$0xff] %v7624_v8  ;;  %v7634_v61 = vpop.f32.mrb[29].mxu1  ;;  %v5824_v8 = vcombine.low %v374_v7, %v406_v5  ;;  %v7654_v7 = vadd.f32 %v6839_v15, %v7642_v52  ;;  %v4368_v15 = vmul.f32 %v7658_v25, %v7658_v25 }
 0x1ba   :  { %11186 = vst [vmem:[#allocation20_spill] sm:$0xff] %v7622_v62  ;;  %v7632_v48 = vpop.f32.mrb[30].mxu0  ;;  %4160 = vmatpush1.bf16.msra.mxu0 %v5758_v1  ;;  %4203 = vmatpush1.bf16.msra.mxu1 %v5760_v2  ;;  %v7638_v62 = vpop.f32.mrb[30].mxu1 }
 0x1bb   :  { %v7636_v58 = vpop.f32.mrb[31].mxu0  ;;  %v7640_v13 = vpop.f32.mrb[31].mxu1  ;;  %4161 = vmatprep.subr.bf16.mxu0 %v5823_v6  ;;  %4204 = vmatprep.subr.bf16.mxu1 %v5825_v11  ;;  %v4367_v53 = vmul.f32 %v7654_v7, %v7654_v7  ;;  %v4237_v5 = vadd.f32 %v7658_v25, %v7654_v7  ;;  %v4369_v6 = vmul.f32 %v7676_v19, %v7676_v19 }
 0x1bc   :  { %v7648_v1 = vpop.permute.xlu0 %480 }
 0x1bd   :  { %v4495_v2 = vadd.f32 %v4368_v15, %v4367_v53  ;;  %v4238_v11 = vadd.f32 %v4237_v5, %v7676_v19  ;;  %v7705_v3 = vadd.f32 %v6865_v31, %v7648_v1  ;;  %v7709_v28 = vadd.f32 %v6967_v35, %v7648_v1 }
 0x1be   :  { %4162 = vmatpush1.bf16.msra.mxu0 %v5822_v55  ;;  %4205 = vmatpush1.bf16.msra.mxu1 %v5824_v8  ;;  %v4370_v55 = vmul.f32 %v7694_v22, %v7694_v22  ;;  %v7718_v53 = vadd.f32 %v6957_v29, %v7642_v52 }
 0x1bf   :  { %5950 = vmatprep.subr.msk.bf16.mxu0 %vm2668_vm0, %v5887_v54  ;;  %5952 = vmatprep.subr.msk.bf16.mxu1 %vm2668_vm0, %v5889_v49  ;;  %v7664_v49 = vadd.f32 %v6857_v23, %v7648_v1  ;;  %v7668_v54 = vadd.f32 %v6861_v26, %v7648_v1  ;;  %v7684_v26 = vadd.f32 %v6863_v27, %v7648_v1 }
 0x1c0   :  { %v7700_v27 = vadd.f32 %v6949_v21, %v7642_v52  ;;  %11192 = vst [vmem:[#allocation26_spill] sm:$0xff] %v7705_v3  ;;  %11193 = vst [vmem:[#allocation27_spill] sm:$0xff] %v7709_v28  ;;  %v4496_v24 = vadd.f32 %v4495_v2, %v4369_v6  ;;  %v4239_v15 = vadd.f32 %v4238_v11, %v7694_v22 }
 0x1c1   :  { %11188 = vst [vmem:[#allocation22_spill] sm:$0xff] %v7664_v49  ;;  %11189 = vst [vmem:[#allocation23_spill] sm:$0xff] %v7668_v54  ;;  %v4432_v23 = vmul.f32 %v7668_v54, %v7668_v54  ;;  %v4302_v20 = vadd.f32 %v7668_v54, %v7664_v49  ;;  %v4433_v8 = vmul.f32 %v7684_v26, %v7684_v26 }
 0x1c2   :  { %4164 = vmatpush1.bf16.msra.mxu0 %v2850_v0  ;;  %4207 = vmatpush1.bf16.msra.mxu1 %v2856_v4  ;;  %11190 = vst [vmem:[#allocation24_spill] sm:$0xff] %v7684_v26  ;;  %v4371_v21 = vmul.f32 %v7700_v27, %v7700_v27  ;;  %v4434_v35 = vmul.f32 %v7705_v3, %v7705_v3 }
 0x1c3   :  { %v4303_v0 = vadd.f32 %v4302_v20, %v7684_v26  ;;  %v4497_v29 = vadd.f32 %v4496_v24, %v4370_v55  ;;  %v4240_v11 = vadd.f32 %v4239_v15, %v7700_v27  ;;  %v7750_v24 = vadd.f32 %v6959_v30, %v7642_v52 }
 0x1c4   :  { %v7758_v15 = vadd.f32 %v6973_v39, %v7648_v1  ;;  %v7766_v30 = vadd.f32 %v6969_v36, %v7642_v52  ;;  %v7772_v39 = vadd.f32 %v7059_v46, %v7642_v52 }
 0x1c5   :  { %5951 = vmatmul.mubr.msk.bf16.vlgmr.msra.gmra.mrb[60].mxu0 %vm2664_vm1, %v7344_v47  ;;  %5953 = vmatmul.mubr.msk.bf16.vlgmr.msra.gmra.mrb[60].mxu1 %vm2664_vm1, %v7344_v47  ;;  %v4431_v47 = vmul.f32 %v7664_v49, %v7664_v49  ;;  %v4304_v6 = vadd.f32 %v4303_v0, %v7705_v3  ;;  %v4372_v49 = vmul.f32 %v7718_v53, %v7718_v53 }
 0x1c6   :  { %11195 = vst [vmem:[#allocation29_spill] sm:$0xff] %v7758_v15  ;;  %v4375_v46 = vmul.f32 %v7772_v39, %v7772_v39 }
 0x1c7   :  { %v4560_v10 = vadd.f32 %v4432_v23, %v4431_v47  ;;  %v4435_v47 = vmul.f32 %v7709_v28, %v7709_v28  ;;  %v7729_v23 = vadd.f32 %v6971_v38, %v7648_v1  ;;  %v4498_v38 = vadd.f32 %v4497_v29, %v4371_v21 }
 0x1c8   :  { %v4305_v22 = vadd.f32 %v4304_v6, %v7709_v28  ;;  %v4241_v21 = vadd.f32 %v4240_v11, %v7718_v53  ;;  %v4373_v29 = vmul.f32 %v7750_v24, %v7750_v24  ;;  %v7808_v28 = vadd.f32 %v7069_v51, %v7642_v52 }
 0x1c9   :  { %v4561_v4 = vadd.f32 %v4560_v10, %v4433_v8  ;;  %11194 = vst [vmem:[#allocation28_spill] sm:$0xff] %v7729_v23  ;;  %v7822_v51 = vadd.f32 %v7079_v57, %v7642_v52 }
 0x1ca   :  { %v4306_v6 = vadd.f32 %v4305_v22, %v7729_v23  ;;  %v4242_v11 = vadd.f32 %v4241_v21, %v7750_v24  ;;  %v7781_v22 = vadd.f32 %v7077_v56, %v7648_v1  ;;  %v7790_v21 = vadd.f32 %v7067_v50, %v7642_v52  ;;  %11200 = vst [vmem:[#allocation34_spill] sm:$0xff] %v7808_v28 }
 0x1cb   :  { %v4562_v8 = vadd.f32 %v4561_v4, %v4434_v35  ;;  %v4436_v4 = vmul.f32 %v7729_v23, %v7729_v23  ;;  %v4499_v35 = vadd.f32 %v4498_v38, %v4372_v49  ;;  %v7777_v49 = vadd.f32 %v6975_v42, %v7648_v1  ;;  %11202 = vst [vmem:[#allocation36_spill] sm:$0xff] %v7822_v51 }
 0x1cc   :  { %11197 = vst [vmem:[#allocation31_spill] sm:$0xff] %v7781_v22  ;;  %v4374_v38 = vmul.f32 %v7766_v30, %v7766_v30  ;;  %11198 = vst [vmem:[#allocation32_spill] sm:$0xff] %v7790_v21  ;;  %v4243_v42 = vadd.f32 %v4242_v11, %v7766_v30  ;;  %v4376_v11 = vmul.f32 %v7790_v21, %v7790_v21 }
 0x1cd   :  { %v4563_v0 = vadd.f32 %v4562_v8, %v4435_v47  ;;  %v4437_v8 = vmul.f32 %v7758_v15, %v7758_v15  ;;  %11196 = vst [vmem:[#allocation30_spill] sm:$0xff] %v7777_v49  ;;  %v4500_v36 = vadd.f32 %v4499_v35, %v4373_v29  ;;  %v4438_v56 = vmul.f32 %v7777_v49, %v7777_v49 }
 0x1ce   :  { %v4439_v35 = vmul.f32 %v7781_v22, %v7781_v22  ;;  %v7799_v29 = vadd.f32 %v7081_v59, %v7648_v1 }
 0x1cf   :  { %v4564_v47 = vadd.f32 %v4563_v0, %v4436_v4  ;;  %v4307_v0 = vadd.f32 %v4306_v6, %v7758_v15  ;;  %v4501_v6 = vadd.f32 %v4500_v36, %v4374_v38  ;;  %v4244_v15 = vadd.f32 %v4243_v42, %v7772_v39 }
 0x1d0   :  { %11199 = vst [vmem:[#allocation33_spill] sm:$0xff] %v7799_v29  ;;  %v4440_v59 = vmul.f32 %v7799_v29, %v7799_v29  ;;  %v7814_v36 = vadd.f32 %v7083_v60, %v7648_v1  ;;  %v7828_v60 = vadd.f32 %v7169_v12, %v7642_v52 }
 0x1d1   :  { %v4565_v4 = vadd.f32 %v4564_v47, %v4437_v8  ;;  %v4308_v47 = vadd.f32 %v4307_v0, %v7777_v49  ;;  %v4502_v50 = vadd.f32 %v4501_v6, %v4375_v46  ;;  %v4245_v38 = vadd.f32 %v4244_v15, %v7790_v21 }
 0x1d2   :  { %11201 = vst [vmem:[#allocation35_spill] sm:$0xff] %v7814_v36  ;;  %11203 = vst [vmem:[#allocation37_spill] sm:$0xff] %v7828_v60  ;;  %v4379_v12 = vmul.f32 %v7828_v60, %v7828_v60 }
 0x1d3   :  { %v4566_v8 = vadd.f32 %v4565_v4, %v4438_v56  ;;  %v4309_v23 = vadd.f32 %v4308_v47, %v7781_v22  ;;  %v4503_v0 = vadd.f32 %v4502_v50, %v4376_v11  ;;  %v4377_v4 = vmul.f32 %v7808_v28, %v7808_v28 }
 0x1d4   :  { %v7720_v31 = vpop.f32.mrb[32].mxu0  ;;  %v7733_v2 = vpop.f32.mrb[32].mxu1  ;;  %v4441_v56 = vmul.f32 %v7814_v36, %v7814_v36  ;;  %v4246_v15 = vadd.f32 %v4245_v38, %v7808_v28 }
 0x1d5   :  { %v7731_v5 = vpop.f32.mrb[33].mxu0  ;;  %v7738_v10 = vpop.f32.mrb[33].mxu1  ;;  %v4567_v3 = vadd.f32 %v4566_v8, %v4439_v35  ;;  %v4310_v46 = vadd.f32 %v4309_v23, %v7799_v29  ;;  %v7833_v35 = vadd.f32 %v7085_v63, %v7648_v1  ;;  %v7837_v23 = vadd.f32 %v7187_v32, %v7648_v1 }
 0x1d6   :  { %v7736_v20 = vpop.f32.mrb[34].mxu0  ;;  %v7743_v54 = vpop.f32.mrb[34].mxu1  ;;  %v4504_v57 = vadd.f32 %v4503_v0, %v4377_v4  ;;  %v7846_v8 = vadd.f32 %v7177_v17, %v7642_v52  ;;  %v4247_v50 = vadd.f32 %v4246_v15, %v7822_v51 }
 0x1d7   :  { %v7741_v26 = vpop.f32.mrb[35].mxu0  ;;  %v7752_v55 = vpop.f32.mrb[35].mxu1  ;;  %v4568_v42 = vadd.f32 %v4567_v3, %v4440_v59  ;;  %11204 = vst [vmem:[#allocation38_spill] sm:$0xff] %v7833_v35  ;;  %11205 = vst [vmem:[#allocation39_spill] sm:$0xff] %v7837_v23  ;;  %v4378_v3 = vmul.f32 %v7822_v51, %v7822_v51  ;;  %v4311_v6 = vadd.f32 %v4310_v46, %v7814_v36 }
 0x1d8   :  { %11206 = vst [vmem:[#allocation40_spill] sm:$0xff] %v7846_v8  ;;  %v4442_v32 = vmul.f32 %v7833_v35, %v7833_v35  ;;  %v4443_v11 = vmul.f32 %v7837_v23, %v7837_v23  ;;  %v7857_v59 = vadd.f32 %v7191_v37, %v7648_v1  ;;  %v4248_v15 = vadd.f32 %v4247_v50, %v7828_v60  ;;  %v11245_v60 = vld [vmem:[#allocation13_spill] sm:$0xff] }
 0x1d9   :  { %v4569_v47 = vadd.f32 %v4568_v42, %v4441_v56  ;;  %v4505_v17 = vadd.f32 %v4504_v57, %v4378_v3  ;;  %v4312_v4 = vadd.f32 %v4311_v6, %v7833_v35  ;;  %v4380_v22 = vmul.f32 %v7846_v8, %v7846_v8 }
 0x1da   :  { %11207 = vst [vmem:[#allocation41_spill] sm:$0xff] %v7857_v59  ;;  %v7878_v57 = vadd.f32 %v7179_v18, %v7642_v52  ;;  %v7886_v50 = vadd.f32 %v7193_v40, %v7648_v1  ;;  %v7894_v18 = vadd.f32 %v7189_v33, %v7642_v52  ;;  %v7900_v40 = vadd.f32 %v7279_v9, %v7642_v52 }
 0x1db   :  { %v4570_v56 = vadd.f32 %v4569_v47, %v4442_v32  ;;  %v4506_v37 = vadd.f32 %v4505_v17, %v4379_v12  ;;  %v4313_v49 = vadd.f32 %v4312_v4, %v7837_v23  ;;  %v4444_v47 = vmul.f32 %v7857_v59, %v7857_v59 }
 0x1dc   :  { %11208 = vst [vmem:[#allocation42_spill] sm:$0xff] %v7878_v57  ;;  %11209 = vst [vmem:[#allocation43_spill] sm:$0xff] %v7886_v50  ;;  %v4249_v12 = vadd.f32 %v4248_v15, %v7846_v8  ;;  %v4381_v17 = vmul.f32 %v7878_v57, %v7878_v57  ;;  %v4383_v9 = vmul.f32 %v7900_v40, %v7900_v40 }
 0x1dd   :  { %v4571_v6 = vadd.f32 %v4570_v56, %v4443_v11  ;;  %v4507_v32 = vadd.f32 %v4506_v37, %v4380_v22  ;;  %v4314_v4 = vadd.f32 %v4313_v49, %v7857_v59  ;;  %11210 = vst [vmem:[#allocation44_spill] sm:$0xff] %v7894_v18  ;;  %v4445_v56 = vmul.f32 %v7886_v50, %v7886_v50 }
 0x1de   :  { %11211 = vst [vmem:[#allocation45_spill] sm:$0xff] %v7900_v40  ;;  %v4250_v15 = vadd.f32 %v4249_v12, %v7878_v57  ;;  %v7905_v22 = vadd.f32 %v7195_v44, %v7648_v1  ;;  %v7909_v49 = vadd.f32 %v7297_v34, %v7648_v1  ;;  %v4382_v37 = vmul.f32 %v7894_v18, %v7894_v18  ;;  %v11235_v57 = vld [vmem:[#allocation11_spill] sm:$0xff] }
 0x1df   :  { %v4572_v11 = vadd.f32 %v4571_v6, %v4444_v47  ;;  %v4508_v33 = vadd.f32 %v4507_v32, %v4381_v17  ;;  %v4315_v6 = vadd.f32 %v4314_v4, %v7886_v50  ;;  %v7918_v12 = vadd.f32 %v7287_v14, %v7642_v52 }
 0x1e0   :  { %11212 = vst [vmem:[#allocation46_spill] sm:$0xff] %v7905_v22  ;;  %11213 = vst [vmem:[#allocation47_spill] sm:$0xff] %v7909_v49  ;;  %v4251_v44 = vadd.f32 %v4250_v15, %v7894_v18  ;;  %v4446_v34 = vmul.f32 %v7905_v22, %v7905_v22  ;;  %v4447_v32 = vmul.f32 %v7909_v49, %v7909_v49 }
 0x1e1   :  { %v4573_v47 = vadd.f32 %v4572_v11, %v4445_v56  ;;  %11214 = vst [vmem:[#allocation48_spill] sm:$0xff] %v7918_v12  ;;  %v7927_v17 = vadd.f32 %v7301_v43, %v7648_v1  ;;  %v4509_v4 = vadd.f32 %v4508_v33, %v4382_v37  ;;  %v4316_v11 = vadd.f32 %v4315_v6, %v7905_v22 }
 0x1e2   :  { %v4252_v50 = vadd.f32 %v4251_v44, %v7900_v40  ;;  %v4384_v15 = vmul.f32 %v7918_v12, %v7918_v12  ;;  %v7936_v23 = vadd.f32 %v7289_v16, %v7642_v52  ;;  %v7942_v33 = vadd.f32 %v7303_v45, %v7648_v1 }
 0x1e3   :  { %11215 = vst [vmem:[#allocation49_spill] sm:$0xff] %v7927_v17  ;;  %v4574_v56 = vadd.f32 %v4573_v47, %v4446_v34  ;;  %v4510_v14 = vadd.f32 %v4509_v4, %v4383_v9  ;;  %v4317_v59 = vadd.f32 %v4316_v11, %v7909_v49  ;;  %v4448_v43 = vmul.f32 %v7927_v17, %v7927_v17  ;;  %v11221_v4 = vld [vmem:[#allocation2_spill] sm:$0xff] }
 0x1e4   :  { %11216 = vst [vmem:[#allocation50_spill] sm:$0xff] %v7936_v23  ;;  %11217 = vst [vmem:[#allocation51_spill] sm:$0xff] %v7942_v33  ;;  %v4253_v37 = vadd.f32 %v4252_v50, %v7918_v12  ;;  %v4385_v47 = vmul.f32 %v7936_v23, %v7936_v23  ;;  %v7950_v16 = vadd.f32 %v7299_v41, %v7642_v52 }
 0x1e5   :  { %v4575_v35 = vadd.f32 %v4574_v56, %v4447_v32  ;;  %v4511_v6 = vadd.f32 %v4510_v14, %v4384_v15  ;;  %v4318_v9 = vadd.f32 %v4317_v59, %v7927_v17  ;;  %v4449_v34 = vmul.f32 %v7942_v33, %v7942_v33  ;;  %v11219_v32 = vld [vmem:[#allocation3_spill] sm:$0xff]  ;;  %v11223_v59 = vld [vmem:[#allocation6_spill] sm:$0xff] }
 0x1e6   :  { %11218 = vst [vmem:[#allocation52_spill] sm:$0xff] %v7950_v16  ;;  %v7956_v45 = vadd.f32 %v11219_v32, %v7642_v52  ;;  %v4254_v50 = vadd.f32 %v4253_v37, %v7936_v23  ;;  %v7961_v11 = vadd.f32 %v11221_v4, %v7648_v1  ;;  %v7965_v56 = vadd.f32 %v11223_v59, %v7648_v1  ;;  %v11225_v37 = vld [vmem:[#allocation4_spill] sm:$0xff] }
 0x1e7   :  { %v4576_v44 = vadd.f32 %v4575_v35, %v4448_v43  ;;  %v4512_v41 = vadd.f32 %v4511_v6, %v4385_v47  ;;  %v4386_v35 = vmul.f32 %v7950_v16, %v7950_v16  ;;  %v4319_v14 = vadd.f32 %v4318_v9, %v7942_v33  ;;  %v11227_v9 = vld [vmem:[#allocation8_spill] sm:$0xff] }
 0x1e8   :  { %11220 = vst [vmem:[#allocation3_spill] sm:$0xff] %v7956_v45  ;;  %11222 = vst [vmem:[#allocation2_spill] sm:$0xff] %v7961_v11  ;;  %v4387_v43 = vmul.f32 %v7956_v45, %v7956_v45  ;;  %v7974_v32 = vadd.f32 %v11225_v37, %v7642_v52  ;;  %v4255_v17 = vadd.f32 %v4254_v50, %v7950_v16 }
 0x1e9   :  { %11224 = vst [vmem:[#allocation6_spill] sm:$0xff] %v7965_v56  ;;  %v4577_v15 = vadd.f32 %v4576_v44, %v4449_v34  ;;  %v4450_v6 = vmul.f32 %v7961_v11, %v7961_v11  ;;  %v4451_v47 = vmul.f32 %v7965_v56, %v7965_v56  ;;  %v7985_v44 = vadd.f32 %v11227_v9, %v7648_v1 }
 0x1ea   :  { %11226 = vst [vmem:[#allocation4_spill] sm:$0xff] %v7974_v32  ;;  %v4513_v37 = vadd.f32 %v4512_v41, %v4386_v35  ;;  %v4320_v33 = vadd.f32 %v4319_v14, %v7961_v11  ;;  %v4256_v16 = vadd.f32 %v4255_v17, %v7956_v45  ;;  %v4388_v40 = vmul.f32 %v7974_v32, %v7974_v32  ;;  %v11229_v41 = vld [vmem:[#allocation5_spill] sm:$0xff] }
 0x1eb   :  { %11228 = vst [vmem:[#allocation8_spill] sm:$0xff] %v7985_v44  ;;  %v4578_v22 = vadd.f32 %v4577_v15, %v4450_v6  ;;  %v8006_v35 = vadd.f32 %v11229_v41, %v7642_v52  ;;  %v4452_v17 = vmul.f32 %v7985_v44, %v7985_v44  ;;  %v11231_v15 = vld [vmem:[#allocation9_spill] sm:$0xff]  ;;  %v11233_v41 = vld [vmem:[#allocation7_spill] sm:$0xff]  ;;  %v8064_v51 = vadd.f32 %v11245_v60, %v7642_v52 }
 0x1ec   :  { %v4514_v9 = vadd.f32 %v4513_v37, %v4387_v43  ;;  %v4321_v18 = vadd.f32 %v4320_v33, %v7965_v56  ;;  %v8014_v6 = vadd.f32 %v11231_v15, %v7648_v1  ;;  %v4257_v43 = vadd.f32 %v4256_v16, %v7974_v32 }
 0x1ed   :  { %11230 = vst [vmem:[#allocation5_spill] sm:$0xff] %v8006_v35  ;;  %v4579_v11 = vadd.f32 %v4578_v22, %v4451_v47  ;;  %v4389_v33 = vmul.f32 %v8006_v35, %v8006_v35  ;;  %v8022_v45 = vadd.f32 %v11233_v41, %v7642_v52  ;;  %v8028_v15 = vadd.f32 %v11235_v57, %v7642_v52 }
 0x1ee   :  { %11232 = vst [vmem:[#allocation9_spill] sm:$0xff] %v8014_v6  ;;  %v4515_v37 = vadd.f32 %v4514_v9, %v4388_v40  ;;  %v4322_v56 = vadd.f32 %v4321_v18, %v7985_v44  ;;  %v4453_v47 = vmul.f32 %v8014_v6, %v8014_v6  ;;  %v4258_v16 = vadd.f32 %v4257_v43, %v8006_v35  ;;  %v11237_v40 = vld [vmem:[#allocation10_spill] sm:$0xff]  ;;  %v11241_v43 = vld [vmem:[#allocation12_spill] sm:$0xff] }
 0x1ef   :  { %11234 = vst [vmem:[#allocation7_spill] sm:$0xff] %v8022_v45  ;;  %v4580_v22 = vadd.f32 %v4579_v11, %v4452_v17  ;;  %11236 = vst [vmem:[#allocation11_spill] sm:$0xff] %v8028_v15  ;;  %v8033_v9 = vadd.f32 %v11237_v40, %v7648_v1  ;;  %v11239_v18 = vld [vmem:[#allocation14_spill] sm:$0xff]  ;;  %v4390_v11 = vmul.f32 %v8022_v45, %v8022_v45 }
 0x1f0   :  { %v7848_v63 = vpop.f32.mrb[36].mxu0  ;;  %v7861_v0 = vpop.f32.mrb[36].mxu1  ;;  %v8037_v44 = vadd.f32 %v11239_v18, %v7648_v1  ;;  %v4516_v41 = vadd.f32 %v4515_v37, %v4389_v33  ;;  %v4323_v17 = vadd.f32 %v4322_v56, %v8014_v6  ;;  %v4391_v57 = vmul.f32 %v8028_v15, %v8028_v15  ;;  %v11243_v33 = vld [vmem:[#allocation16_spill] sm:$0xff]  ;;  %11246 = vst [vmem:[#allocation13_spill] sm:$0xff] %v8064_v51 }
 0x1f1   :  { %v7859_v38 = vpop.f32.mrb[37].mxu0  ;;  %v7866_v42 = vpop.f32.mrb[37].mxu1  ;;  %11238 = vst [vmem:[#allocation10_spill] sm:$0xff] %v8033_v9  ;;  %v4581_v32 = vadd.f32 %v4580_v22, %v4453_v47  ;;  %v8046_v35 = vadd.f32 %v11241_v43, %v7642_v52  ;;  %v4259_v40 = vadd.f32 %v4258_v16, %v8022_v45  ;;  %v4454_v18 = vmul.f32 %v8033_v9, %v8033_v9 }
 0x1f2   :  { %v7864_v46 = vpop.f32.mrb[38].mxu0  ;;  %v7871_v29 = vpop.f32.mrb[38].mxu1  ;;  %11240 = vst [vmem:[#allocation14_spill] sm:$0xff] %v8037_v44  ;;  %v4455_v37 = vmul.f32 %v8037_v44, %v8037_v44  ;;  %v8055_v8 = vadd.f32 %v11243_v33, %v7648_v1  ;;  %v4517_v56 = vadd.f32 %v4516_v41, %v4390_v11  ;;  %v4324_v22 = vadd.f32 %v4323_v17, %v8033_v9  ;;  %v11247_v41 = vld [vmem:[#allocation17_spill] sm:$0xff] }
 0x1f3   :  { %v7869_v36 = vpop.f32.mrb[39].mxu0  ;;  %v7880_v3 = vpop.f32.mrb[39].mxu1  ;;  %11242 = vst [vmem:[#allocation12_spill] sm:$0xff] %v8046_v35  ;;  %v4582_v47 = vadd.f32 %v4581_v32, %v4454_v18  ;;  %v4260_v6 = vadd.f32 %v4259_v40, %v8028_v15  ;;  %v4392_v16 = vmul.f32 %v8046_v35, %v8046_v35  ;;  %v8070_v11 = vadd.f32 %v11247_v41, %v7648_v1  ;;  %v11249_v18 = vld [vmem:[#allocation15_spill] sm:$0xff] }
 0x1f4   :  { %11244 = vst [vmem:[#allocation16_spill] sm:$0xff] %v8055_v8  ;;  %v4518_v43 = vadd.f32 %v4517_v56, %v4391_v57  ;;  %v4325_v45 = vadd.f32 %v4324_v22, %v8037_v44  ;;  %v4456_v33 = vmul.f32 %v8055_v8, %v8055_v8  ;;  %v4393_v57 = vmul.f32 %v8064_v51, %v8064_v51  ;;  %v11251_v22 = vld [vmem:[#allocation19_spill] sm:$0xff] }
 0x1f5   :  { %v4583_v28 = vadd.f32 %v4582_v47, %v4455_v37  ;;  %11248 = vst [vmem:[#allocation17_spill] sm:$0xff] %v8070_v11  ;;  %v4261_v32 = vadd.f32 %v4260_v6, %v8046_v35  ;;  %v8078_v60 = vadd.f32 %v11249_v18, %v7642_v52  ;;  %v4457_v56 = vmul.f32 %v8070_v11, %v8070_v11 }
 0x1f6   :  { %v4519_v17 = vadd.f32 %v4518_v43, %v4392_v16  ;;  %v4326_v40 = vadd.f32 %v4325_v45, %v8055_v8  ;;  %v8084_v47 = vadd.f32 %v11251_v22, %v7642_v52  ;;  %v11252_v43 = vld [vmem:[#allocation18_spill] sm:$0xff]  ;;  %v8093_v45 = vadd.f32 %v7632_v48, %v7648_v1 }
 0x1f7   :  { %11250 = vst [vmem:[#allocation15_spill] sm:$0xff] %v8078_v60  ;;  %v4584_v37 = vadd.f32 %v4583_v28, %v4456_v33  ;;  %v4262_v6 = vadd.f32 %v4261_v32, %v8064_v51  ;;  %v8089_v16 = vadd.f32 %v11252_v43, %v7648_v1  ;;  %v4394_v28 = vmul.f32 %v8078_v60, %v8078_v60  ;;  %v11255_v32 = vld [vmem:[#allocation20_spill] sm:$0xff] }
 0x1f8   :  { %11254 = vst [vmem:[#allocation18_spill] sm:$0xff] %v8093_v45  ;;  %v4520_v41 = vadd.f32 %v4519_v17, %v4393_v57  ;;  %v4327_v33 = vadd.f32 %v4326_v40, %v8070_v11  ;;  %v4395_v22 = vmul.f32 %v8084_v47, %v8084_v47  ;;  %v8102_v8 = vadd.f32 %v11255_v32, %v7642_v52 }
 0x1f9   :  { %11253 = vst [vmem:[#allocation19_spill] sm:$0xff] %v8089_v16  ;;  %v4585_v18 = vadd.f32 %v4584_v37, %v4457_v56  ;;  %v4263_v44 = vadd.f32 %v4262_v6, %v8078_v60  ;;  %v4458_v48 = vmul.f32 %v8089_v16, %v8089_v16  ;;  %v4459_v17 = vmul.f32 %v8093_v45, %v8093_v45 }
 0x1fa   :  { %v8113_v57 = vadd.f32 %v7636_v58, %v7648_v1  ;;  %v4521_v56 = vadd.f32 %v4520_v41, %v4394_v28  ;;  %v4328_v32 = vadd.f32 %v4327_v33, %v8089_v16  ;;  %v4396_v15 = vmul.f32 %v8102_v8, %v8102_v8  ;;  %v11257_v41 = vld [vmem:[#allocation21_spill] sm:$0xff] }
 0x1fb   :  { %v4586_v9 = vadd.f32 %v4585_v18, %v4458_v48  ;;  %v4264_v60 = vadd.f32 %v4263_v44, %v8084_v47  ;;  %v8134_v28 = vadd.f32 %v11257_v41, %v7642_v52  ;;  %v8142_v18 = vadd.f32 %v7638_v62, %v7648_v1 }
 0x1fc   :  { %11256 = vst [vmem:[#allocation20_spill] sm:$0xff] %v8113_v57  ;;  %v4522_v58 = vadd.f32 %v4521_v56, %v4395_v22  ;;  %v4329_v21 = vadd.f32 %v4328_v32, %v8093_v45  ;;  %v4460_v44 = vmul.f32 %v8113_v57, %v8113_v57  ;;  %v8150_v41 = vadd.f32 %v7634_v61, %v7642_v52 }
 0x1fd   :  { %v4587_v16 = vadd.f32 %v4586_v9, %v4459_v17  ;;  %11258 = vst [vmem:[#allocation21_spill] sm:$0xff] %v8142_v18  ;;  %v4265_v22 = vadd.f32 %v4264_v60, %v8102_v8  ;;  %v4397_v56 = vmul.f32 %v8134_v28, %v8134_v28  ;;  %v4461_v17 = vmul.f32 %v8142_v18, %v8142_v18 }
 0x1fe   :  { %v4523_v48 = vadd.f32 %v4522_v58, %v4396_v15  ;;  %v4330_v32 = vadd.f32 %v4329_v21, %v8113_v57  ;;  %11259 = vst [vmem:[#allocation53_spill] sm:$0xff] %v8150_v41  ;;  %v8156_v62 = vadd.f32 %v7720_v31, %v7642_v52  ;;  %v8161_v15 = vadd.f32 %v7640_v13, %v7648_v1 }
 0x1ff   :  { %v4588_v9 = vadd.f32 %v4587_v16, %v4460_v44  ;;  %v4266_v60 = vadd.f32 %v4265_v22, %v8134_v28  ;;  %v8165_v21 = vadd.f32 %v7736_v20, %v7648_v1  ;;  %v4398_v16 = vmul.f32 %v8150_v41, %v8150_v41 }
 0x200   :  { %11260 = vst [vmem:[#allocation54_spill] sm:$0xff] %v8161_v15  ;;  %v4524_v61 = vadd.f32 %v4523_v48, %v4397_v56  ;;  %v4331_v58 = vadd.f32 %v4330_v32, %v8142_v18  ;;  %v4399_v31 = vmul.f32 %v8156_v62, %v8156_v62  ;;  %v8174_v22 = vadd.f32 %v7731_v5, %v7642_v52 }
 0x201   :  { %11261 = vst [vmem:[#allocation55_spill] sm:$0xff] %v8165_v21  ;;  %v4589_v44 = vadd.f32 %v4588_v9, %v4461_v17  ;;  %v4267_v13 = vadd.f32 %v4266_v60, %v8150_v41  ;;  %v4462_v20 = vmul.f32 %v8161_v15, %v8161_v15  ;;  %v4463_v48 = vmul.f32 %v8165_v21, %v8165_v21 }
 0x202   :  { %v8183_v56 = vadd.f32 %v7741_v26, %v7648_v1  ;;  %v4525_v32 = vadd.f32 %v4524_v61, %v4398_v16  ;;  %v4332_v9 = vadd.f32 %v4331_v58, %v8161_v15  ;;  %v4400_v60 = vmul.f32 %v8174_v22, %v8174_v22 }
 0x203   :  { %v4590_v17 = vadd.f32 %v4589_v44, %v4462_v20  ;;  %v4268_v18 = vadd.f32 %v4267_v13, %v8156_v62  ;;  %v8192_v45 = vadd.f32 %v7733_v2, %v7642_v52  ;;  %v8198_v61 = vadd.f32 %v7743_v54, %v7648_v1 }
 0x204   :  { %11262 = vst [vmem:[#allocation56_spill] sm:$0xff] %v8183_v56  ;;  %v4526_v5 = vadd.f32 %v4525_v32, %v4399_v31  ;;  %v4333_v57 = vadd.f32 %v4332_v9, %v8165_v21  ;;  %v4464_v26 = vmul.f32 %v8183_v56, %v8183_v56  ;;  %v8206_v2 = vadd.f32 %v7738_v10, %v7642_v52 }
 0x205   :  { %v4591_v41 = vadd.f32 %v4590_v17, %v4463_v48  ;;  %11263 = vst [vmem:[#allocation57_spill] sm:$0xff] %v8198_v61  ;;  %v4269_v16 = vadd.f32 %v4268_v18, %v8174_v22  ;;  %v4401_v44 = vmul.f32 %v8192_v45, %v8192_v45  ;;  %v4465_v20 = vmul.f32 %v8198_v61, %v8198_v61 }
 0x206   :  { %v4527_v58 = vadd.f32 %v4526_v5, %v4400_v60  ;;  %v4334_v31 = vadd.f32 %v4333_v57, %v8183_v56  ;;  %v8212_v54 = vadd.f32 %v7848_v63, %v7642_v52  ;;  %v8217_v48 = vadd.f32 %v7752_v55, %v7648_v1 }
 0x207   :  { %v4592_v13 = vadd.f32 %v4591_v41, %v4464_v26  ;;  %v4270_v18 = vadd.f32 %v4269_v16, %v8192_v45  ;;  %v8221_v57 = vadd.f32 %v7864_v46, %v7648_v1  ;;  %v4402_v41 = vmul.f32 %v8206_v2, %v8206_v2 }
 0x208   :  { %11264 = vst [vmem:[#allocation58_spill] sm:$0xff] %v8217_v48  ;;  %v4528_v10 = vadd.f32 %v4527_v58, %v4401_v44  ;;  %v4335_v32 = vadd.f32 %v4334_v31, %v8198_v61  ;;  %v4403_v63 = vmul.f32 %v8212_v54, %v8212_v54  ;;  %v8230_v17 = vadd.f32 %v7859_v38, %v7642_v52 }
 0x209   :  { %11265 = vst [vmem:[#allocation59_spill] sm:$0xff] %v8221_v57  ;;  %v4593_v9 = vadd.f32 %v4592_v13, %v4465_v20  ;;  %v4271_v5 = vadd.f32 %v4270_v18, %v8206_v2  ;;  %v4466_v46 = vmul.f32 %v8217_v48, %v8217_v48  ;;  %v4467_v60 = vmul.f32 %v8221_v57, %v8221_v57 }
 0x20a   :  { %v8241_v26 = vadd.f32 %v7869_v36, %v7648_v1  ;;  %v4529_v38 = vadd.f32 %v4528_v10, %v4402_v41  ;;  %v4336_v44 = vadd.f32 %v4335_v32, %v8217_v48  ;;  %v4404_v21 = vmul.f32 %v8230_v17, %v8230_v17 }
 0x20b   :  { %v4594_v20 = vadd.f32 %v4593_v9, %v4466_v46  ;;  %v4272_v18 = vadd.f32 %v4271_v5, %v8212_v54  ;;  %v8262_v10 = vadd.f32 %v7861_v0, %v7642_v52  ;;  %v8270_v5 = vadd.f32 %v7871_v29, %v7648_v1 }
 0x20c   :  { %v7976_v4 = vpop.f32.mrb[40].mxu0  ;;  %v7989_v59 = vpop.f32.mrb[40].mxu1  ;;  %11266 = vst [vmem:[#allocation60_spill] sm:$0xff] %v8241_v26  ;;  %v4530_v36 = vadd.f32 %v4529_v38, %v4403_v63  ;;  %v4337_v15 = vadd.f32 %v4336_v44, %v8221_v57  ;;  %v4468_v9 = vmul.f32 %v8241_v26, %v8241_v26  ;;  %v8278_v0 = vadd.f32 %v7866_v42, %v7642_v52 }
 0x20d   :  { %v7987_v34 = vpop.f32.mrb[41].mxu0  ;;  %v7994_v50 = vpop.f32.mrb[41].mxu1  ;;  %v4595_v32 = vadd.f32 %v4594_v20, %v4467_v60  ;;  %11267 = vst [vmem:[#allocation61_spill] sm:$0xff] %v8270_v5  ;;  %v4273_v63 = vadd.f32 %v4272_v18, %v8230_v17  ;;  %v4405_v38 = vmul.f32 %v8262_v10, %v8262_v10  ;;  %v4469_v20 = vmul.f32 %v8270_v5, %v8270_v5 }
 0x20e   :  { %v7992_v49 = vpop.f32.mrb[42].mxu0  ;;  %v7999_v12 = vpop.f32.mrb[42].mxu1  ;;  %v4531_v46 = vadd.f32 %v4530_v36, %v4404_v21  ;;  %v4338_v44 = vadd.f32 %v4337_v15, %v8241_v26  ;;  %v8284_v29 = vadd.f32 %v7976_v4, %v7642_v52  ;;  %v8289_v21 = vadd.f32 %v7880_v3, %v7648_v1 }
 0x20f   :  { %v7997_v23 = vpop.f32.mrb[43].mxu0  ;;  %v8008_v14 = vpop.f32.mrb[43].mxu1  ;;  %v4596_v60 = vadd.f32 %v4595_v32, %v4468_v9  ;;  %v4274_v18 = vadd.f32 %v4273_v63, %v8262_v10  ;;  %v4406_v15 = vmul.f32 %v8278_v0, %v8278_v0  ;;  %v8296_v32 = vadd.f32 %v7992_v49, %v7648_v1 }
 0x210   :  { %11268 = vst [vmem:[#allocation62_spill] sm:$0xff] %v8289_v21  ;;  %v4532_v36 = vadd.f32 %v4531_v46, %v4405_v38  ;;  %v4339_v42 = vadd.f32 %v4338_v44, %v8270_v5  ;;  %v4407_v4 = vmul.f32 %v8284_v29, %v8284_v29  ;;  %v8302_v63 = vadd.f32 %v7987_v34, %v7642_v52 }
 0x211   :  { %11269 = vst [vmem:[#allocation63_spill] sm:$0xff] %v8296_v32  ;;  %v4597_v9 = vadd.f32 %v4596_v60, %v4469_v20  ;;  %v4275_v3 = vadd.f32 %v4274_v18, %v8278_v0  ;;  %v4470_v46 = vmul.f32 %v8289_v21, %v8289_v21  ;;  %v4471_v49 = vmul.f32 %v8296_v32, %v8296_v32 }
 0x212   :  { %v4533_v38 = vadd.f32 %v4532_v36, %v4406_v15  ;;  %v4340_v44 = vadd.f32 %v4339_v42, %v8289_v21  ;;  %v8312_v60 = vadd.f32 %v7997_v23, %v7648_v1  ;;  %v4408_v18 = vmul.f32 %v8302_v63, %v8302_v63 }
 0x213   :  { %v4598_v20 = vadd.f32 %v4597_v9, %v4470_v46  ;;  %v4276_v5 = vadd.f32 %v4275_v3, %v8284_v29  ;;  %v8320_v36 = vadd.f32 %v7989_v59, %v7642_v52  ;;  %v8326_v23 = vadd.f32 %v7999_v12, %v7648_v1 }
 0x214   :  { %11270 = vst [vmem:[#allocation64_spill] sm:$0xff] %v8312_v60  ;;  %v4534_v34 = vadd.f32 %v4533_v38, %v4407_v4  ;;  %v4341_v26 = vadd.f32 %v4340_v44, %v8296_v32  ;;  %v4472_v42 = vmul.f32 %v8312_v60, %v8312_v60  ;;  %v8334_v59 = vadd.f32 %v7994_v50, %v7642_v52 }
 0x215   :  { %v4599_v15 = vadd.f32 %v4598_v20, %v4471_v49  ;;  %11271 = vst [vmem:[#allocation65_spill] sm:$0xff] %v8326_v23  ;;  %v4277_v9 = vadd.f32 %v4276_v5, %v8302_v63  ;;  %v4409_v3 = vmul.f32 %v8320_v36, %v8320_v36  ;;  %v4473_v44 = vmul.f32 %v8326_v23, %v8326_v23 }
 0x216   :  { %v4535_v4 = vadd.f32 %v4534_v34, %v4408_v18  ;;  %v4342_v46 = vadd.f32 %v4341_v26, %v8312_v60  ;;  %v8345_v49 = vadd.f32 %v8008_v14, %v7648_v1  ;;  %v4410_v26 = vmul.f32 %v8334_v59, %v8334_v59 }
 0x217   :  { %v4600_v38 = vadd.f32 %v4599_v15, %v4472_v42  ;;  %v4278_v5 = vadd.f32 %v4277_v9, %v8320_v36 }
 0x218   :  { %11273 = vst [vmem:[#allocation67_spill] sm:$0xff] %v8345_v49  ;;  %v4536_v20 = vadd.f32 %v4535_v4, %v4409_v3  ;;  %v4343_v50 = vadd.f32 %v4342_v46, %v8326_v23  ;;  %v4474_v9 = vmul.f32 %v8345_v49, %v8345_v49 }
 0x219   :  { %v4601_v18 = vadd.f32 %v4600_v38, %v4473_v44  ;;  %v4279_v42 = vadd.f32 %v4278_v5, %v8334_v59 }
 0x21a   :  { %v4344_v46 = vadd.f32 %v4343_v50, %v8345_v49 }
 0x21b   :  { %v4602_v21 = vadd.f32 %v4601_v18, %v4474_v9 }
 0x228   :  { %v8104_v43 = vpop.f32.mrb[44].mxu0  ;;  %v8115_v40 = vpop.f32.mrb[44].mxu1 }
 0x229   :  { %v8117_v37 = vpop.f32.mrb[45].mxu0  ;;  %v8120_v11 = vpop.f32.mrb[45].mxu1  ;;  %v8340_v12 = vadd.f32 %v8104_v43, %v7642_v52 }
 0x22a   :  { %v8122_v6 = vpop.f32.mrb[46].mxu0  ;;  %v8125_v51 = vpop.f32.mrb[46].mxu1  ;;  %v8358_v15 = vadd.f32 %v8117_v37, %v7642_v52 }
 0x22b   :  { %v8127_v35 = vpop.f32.mrb[47].mxu0  ;;  %v8136_v33 = vpop.f32.mrb[47].mxu1  ;;  %11272 = vst [vmem:[#allocation66_spill] sm:$0xff] %v8340_v12  ;;  %v8352_v34 = vadd.f32 %v8122_v6, %v7648_v1  ;;  %v4411_v43 = vmul.f32 %v8340_v12, %v8340_v12  ;;  %v4537_v6 = vadd.f32 %v4536_v20, %v4410_v26  ;;  %v4280_v23 = vadd.f32 %v4279_v42, %v8340_v12 }
 0x22c   :  { %v8372_v37 = vadd.f32 %v8127_v35, %v7648_v1  ;;  %v4412_v26 = vmul.f32 %v8358_v15, %v8358_v15  ;;  %v8388_v35 = vadd.f32 %v8115_v40, %v7642_v52  ;;  %v8395_v18 = vadd.f32 %v8125_v51, %v7648_v1 }
 0x22d   :  { %11274 = vst [vmem:[#allocation68_spill] sm:$0xff] %v8352_v34  ;;  %v4475_v38 = vmul.f32 %v8352_v34, %v8352_v34  ;;  %v4538_v20 = vadd.f32 %v4537_v6, %v4411_v43  ;;  %v4345_v50 = vadd.f32 %v4344_v46, %v8352_v34  ;;  %v4281_v48 = vadd.f32 %v4280_v23, %v8358_v15 }
 0x22e   :  { %11275 = vst [vmem:[#allocation69_spill] sm:$0xff] %v8372_v37  ;;  %v4476_v42 = vmul.f32 %v8372_v37, %v8372_v37  ;;  %11276 = vst [vmem:[#allocation70_spill] sm:$0xff] %v8395_v18  ;;  %v4413_v9 = vmul.f32 %v8388_v35, %v8388_v35  ;;  %v8402_v40 = vadd.f32 %v8120_v11, %v7642_v52 }
 0x22f   :  { %v4603_v57 = vadd.f32 %v4602_v21, %v4475_v38  ;;  %v4539_v12 = vadd.f32 %v4538_v20, %v4412_v26  ;;  %v4346_v43 = vadd.f32 %v4345_v50, %v8372_v37  ;;  %v4282_v23 = vadd.f32 %v4281_v48, %v8388_v35 }
 0x230   :  { %v8411_v51 = vadd.f32 %v8136_v33, %v7648_v1  ;;  %v4477_v38 = vmul.f32 %v8395_v18, %v8395_v18 }
 0x231   :  { %v4604_v21 = vadd.f32 %v4603_v57, %v4476_v42  ;;  %v4540_v46 = vadd.f32 %v4539_v12, %v4413_v9  ;;  %v4347_v20 = vadd.f32 %v4346_v43, %v8395_v18  ;;  %v4414_v57 = vmul.f32 %v8402_v40, %v8402_v40 }
 0x232   :  { %11277 = vst [vmem:[#allocation71_spill] sm:$0xff] %v8411_v51  ;;  %v4283_v12 = vadd.f32 %v4282_v23, %v8402_v40  ;;  %v4478_v26 = vmul.f32 %v8411_v51, %v8411_v51 }
 0x233   :  { %v4541_v50 = vadd.f32 %v4540_v46, %v4414_v57 }
 0x244   :  { %v8232_v55 = vpop.f32.mrb[48].mxu0  ;;  %v8243_v16 = vpop.f32.mrb[48].mxu1 }
 0x245   :  { %v8245_v58 = vpop.f32.mrb[49].mxu0  ;;  %v8248_v31 = vpop.f32.mrb[49].mxu1  ;;  %v8406_v6 = vadd.f32 %v8232_v55, %v7642_v52  ;;  %v4605_v55 = vadd.f32 %v4604_v21, %v4477_v38  ;;  %v8444_v46 = vadd.f32 %v8243_v16, %v7642_v52 }
 0x246   :  { %v8250_v13 = vpop.f32.mrb[50].mxu0  ;;  %v8253_v61 = vpop.f32.mrb[50].mxu1  ;;  %v8426_v33 = vadd.f32 %v8245_v58, %v7642_v52  ;;  %v8458_v16 = vadd.f32 %v8248_v31, %v7642_v52 }
 0x247   :  { %v8255_v56 = vpop.f32.mrb[51].mxu0  ;;  %v8264_v41 = vpop.f32.mrb[51].mxu1  ;;  %v8418_v11 = vadd.f32 %v8250_v13, %v7648_v1  ;;  %v4415_v48 = vmul.f32 %v8406_v6, %v8406_v6  ;;  %v4348_v13 = vadd.f32 %v4347_v20, %v8411_v51  ;;  %v4284_v9 = vadd.f32 %v4283_v12, %v8406_v6 }
 0x248   :  { %v8436_v43 = vadd.f32 %v8255_v56, %v7648_v1  ;;  %v4606_v21 = vadd.f32 %v4605_v55, %v4478_v26  ;;  %v4416_v23 = vmul.f32 %v8426_v33, %v8426_v33  ;;  %v8451_v55 = vadd.f32 %v8253_v61, %v7648_v1 }
 0x249   :  { %11278 = vst [vmem:[#allocation72_spill] sm:$0xff] %v8418_v11  ;;  %v4479_v42 = vmul.f32 %v8418_v11, %v8418_v11  ;;  %v4542_v58 = vadd.f32 %v4541_v50, %v4415_v48  ;;  %v4349_v38 = vadd.f32 %v4348_v13, %v8418_v11  ;;  %v4285_v56 = vadd.f32 %v4284_v9, %v8426_v33 }
 0x24a   :  { %11279 = vst [vmem:[#allocation73_spill] sm:$0xff] %v8436_v43  ;;  %v4480_v57 = vmul.f32 %v8436_v43, %v8436_v43  ;;  %11280 = vst [vmem:[#allocation74_spill] sm:$0xff] %v8451_v55  ;;  %v4417_v12 = vmul.f32 %v8444_v46, %v8444_v46  ;;  %v4481_v9 = vmul.f32 %v8451_v55, %v8451_v55 }
 0x24b   :  { %v4607_v20 = vadd.f32 %v4606_v21, %v4479_v42  ;;  %v4543_v51 = vadd.f32 %v4542_v58, %v4416_v23  ;;  %v4350_v48 = vadd.f32 %v4349_v38, %v8436_v43  ;;  %v4286_v13 = vadd.f32 %v4285_v56, %v8444_v46 }
 0x24c   :  { %v8466_v42 = vadd.f32 %v8264_v41, %v7648_v1  ;;  %v4418_v31 = vmul.f32 %v8458_v16, %v8458_v16 }
 0x24d   :  { %v4608_v26 = vadd.f32 %v4607_v20, %v4480_v57  ;;  %v4544_v61 = vadd.f32 %v4543_v51, %v4417_v12  ;;  %v4351_v21 = vadd.f32 %v4350_v48, %v8451_v55  ;;  %v4287_v38 = vadd.f32 %v4286_v13, %v8458_v16 }
 0x24e   :  { %11281 = vst [vmem:[#allocation75_spill] sm:$0xff] %v8466_v42  ;;  %v4482_v20 = vmul.f32 %v8466_v42, %v8466_v42 }
 0x24f   :  { %v4545_v56 = vadd.f32 %v4544_v61, %v4418_v31  ;;  %v4352_v48 = vadd.f32 %v4351_v21, %v8466_v42 }
 0x260   :  { %v4013_v14 = vpop.f32.mrb[52].mxu0  ;;  %v8363_v4 = vpop.f32.mrb[52].mxu1 }
 0x261   :  { %v8365_v3 = vpop.f32.mrb[53].mxu0  ;;  %v8374_v44 = vpop.f32.mrb[53].mxu1  ;;  %v8461_v50 = vadd.f32 %v4013_v14, %v7642_v52  ;;  %v4609_v14 = vadd.f32 %v4608_v26, %v4481_v9  ;;  %v8498_v42 = vadd.f32 %v8363_v4, %v7642_v52 }
 0x262   :  { %v4017_v5 = vpop.f32.mrb[54].mxu0  ;;  %v8377_v60 = vpop.f32.mrb[54].mxu1  ;;  %v8480_v41 = vadd.f32 %v8365_v3, %v7642_v52  ;;  %v8512_v4 = vadd.f32 %v8374_v44, %v7642_v52 }
 0x263   :  { %v8379_v32 = vpop.f32.mrb[55].mxu0  ;;  %v8384_v49 = vpop.f32.mrb[55].mxu1  ;;  %v8472_v58 = vadd.f32 %v4017_v5, %v7648_v1  ;;  %v4419_v23 = vmul.f32 %v8461_v50, %v8461_v50  ;;  %v4288_v55 = vadd.f32 %v4287_v38, %v8461_v50  ;;  %v4610_v11 = vadd.f32 %v4609_v14, %v4482_v20 }
 0x264   :  { %v8490_v26 = vadd.f32 %v8379_v32, %v7648_v1  ;;  %v4420_v61 = vmul.f32 %v8480_v41, %v8480_v41  ;;  %v8505_v14 = vadd.f32 %v8377_v60, %v7648_v1  ;;  %v4421_v20 = vmul.f32 %v8498_v42, %v8498_v42 }
 0x265   :  { %11282 = vst [vmem:[#allocation76_spill] sm:$0xff] %v8472_v58  ;;  %v4483_v12 = vmul.f32 %v8472_v58, %v8472_v58  ;;  %v4546_v18 = vadd.f32 %v4545_v56, %v4419_v23  ;;  %v4353_v21 = vadd.f32 %v4352_v48, %v8472_v58  ;;  %v4289_v38 = vadd.f32 %v4288_v55, %v8480_v41 }
 0x266   :  { %11283 = vst [vmem:[#allocation77_spill] sm:$0xff] %v8490_v26  ;;  %v4484_v37 = vmul.f32 %v8490_v26, %v8490_v26  ;;  %11284 = vst [vmem:[#allocation78_spill] sm:$0xff] %v8505_v14  ;;  %v4485_v48 = vmul.f32 %v8505_v14, %v8505_v14 }
 0x267   :  { %v4611_v32 = vadd.f32 %v4610_v11, %v4483_v12  ;;  %v4547_v34 = vadd.f32 %v4546_v18, %v4420_v61  ;;  %v4354_v23 = vadd.f32 %v4353_v21, %v8490_v26  ;;  %v4290_v55 = vadd.f32 %v4289_v38, %v8498_v42 }
 0x268   :  { %v8520_v18 = vadd.f32 %v8384_v49, %v7648_v1 }
 0x269   :  { %v4612_v11 = vadd.f32 %v4611_v32, %v4484_v37  ;;  %v4548_v60 = vadd.f32 %v4547_v34, %v4421_v20  ;;  %v4355_v12 = vadd.f32 %v4354_v23, %v8505_v14  ;;  %v4422_v37 = vmul.f32 %v8512_v4, %v8512_v4 }
 0x26a   :  { %11285 = vst [vmem:[#allocation79_spill] sm:$0xff] %v8520_v18  ;;  %v4291_v49 = vadd.f32 %v4290_v55, %v8512_v4  ;;  %v4486_v34 = vmul.f32 %v8520_v18, %v8520_v18 }
 0x26b   :  { %v4613_v44 = vadd.f32 %v4612_v11, %v4485_v48  ;;  %v4549_v32 = vadd.f32 %v4548_v60, %v4422_v37  ;;  %v4356_v38 = vadd.f32 %v4355_v12, %v8520_v18 }
 0x26d   :  { %v4614_v11 = vadd.f32 %v4613_v44, %v4486_v34 }
 0x27c   :  { %v4099_v51 = vpop.f32.mrb[56].mxu0  ;;  %v4142_v57 = vpop.f32.mrb[56].mxu1 }
 0x27d   :  { %v4101_v5 = vpop.f32.mrb[57].mxu0  ;;  %v4144_v3 = vpop.f32.mrb[57].mxu1  ;;  %v8515_v56 = vadd.f32 %v4099_v51, %v7642_v52  ;;  %v8549_v14 = vadd.f32 %v4142_v57, %v7642_v52 }
 0x27e   :  { %v4103_v9 = vpop.f32.mrb[58].mxu0  ;;  %v4146_v13 = vpop.f32.mrb[58].mxu1  ;;  %v8533_v21 = vadd.f32 %v4101_v5, %v7642_v52 }
 0x27f   :  { %v4105_v43 = vpop.f32.mrb[59].mxu0  ;;  %v4148_v31 = vpop.f32.mrb[59].mxu1  ;;  %v8526_v61 = vadd.f32 %v4103_v9, %v7648_v1  ;;  %v4423_v51 = vmul.f32 %v8515_v56, %v8515_v56  ;;  %v4292_v20 = vadd.f32 %v4291_v49, %v8515_v56  ;;  %v8555_v18 = vadd.f32 %v4146_v13, %v7648_v1 }
 0x280   :  { %v8542_v23 = vadd.f32 %v4105_v43, %v7648_v1  ;;  %v4424_v5 = vmul.f32 %v8533_v21, %v8533_v21  ;;  %v8561_v49 = vadd.f32 %v4144_v3, %v7642_v52 }
 0x281   :  { %11286 = vst [vmem:[#allocation80_spill] sm:$0xff] %v8526_v61  ;;  %v4487_v9 = vmul.f32 %v8526_v61, %v8526_v61  ;;  %v4550_v48 = vadd.f32 %v4549_v32, %v4423_v51  ;;  %v4357_v55 = vadd.f32 %v4356_v38, %v8526_v61  ;;  %v4293_v37 = vadd.f32 %v4292_v20, %v8533_v21 }
 0x282   :  { %11287 = vst [vmem:[#allocation81_spill] sm:$0xff] %v8542_v23  ;;  %v4488_v12 = vmul.f32 %v8542_v23, %v8542_v23  ;;  %11288 = vst [vmem:[#allocation82_spill] sm:$0xff] %v8555_v18  ;;  %v4425_v51 = vmul.f32 %v8549_v14, %v8549_v14  ;;  %v4489_v38 = vmul.f32 %v8555_v18, %v8555_v18 }
 0x283   :  { %v4615_v60 = vadd.f32 %v4614_v11, %v4487_v9  ;;  %v4551_v43 = vadd.f32 %v4550_v48, %v4424_v5  ;;  %v4358_v44 = vadd.f32 %v4357_v55, %v8542_v23  ;;  %v4294_v34 = vadd.f32 %v4293_v37, %v8549_v14 }
 0x284   :  { %v8567_v9 = vadd.f32 %v4148_v31, %v7648_v1  ;;  %v4426_v20 = vmul.f32 %v8561_v49, %v8561_v49 }
 0x285   :  { %v4616_v57 = vadd.f32 %v4615_v60, %v4488_v12  ;;  %v4552_v32 = vadd.f32 %v4551_v43, %v4425_v51  ;;  %v4359_v13 = vadd.f32 %v4358_v44, %v8555_v18  ;;  %v4295_v3 = vadd.f32 %v4294_v34, %v8561_v49 }
 0x286   :  { %11289 = vst [vmem:[#allocation83_spill] sm:$0xff] %v8567_v9  ;;  %v4490_v31 = vmul.f32 %v8567_v9, %v8567_v9 }
 0x287   :  { %v4617_v11 = vadd.f32 %v4616_v57, %v4489_v38  ;;  %v4553_v12 = vadd.f32 %v4552_v32, %v4426_v20  ;;  %v4360_v37 = vadd.f32 %v4359_v13, %v8567_v9 }
 0x298   :  { %v4185_v48 = vpop.f32.mrb[60].mxu0  ;;  %v4228_v55 = vpop.f32.mrb[60].mxu1 }
 0x299   :  { %v8574_v5 = vadd.f32 %v4185_v48, %v7642_v52  ;;  %v4187_v60 = vpop.f32.mrb[61].mxu0  ;;  %v4230_v44 = vpop.f32.mrb[61].mxu1  ;;  %v8586_v38 = vadd.f32 %v4228_v55, %v7642_v52  ;;  %v4618_v48 = vadd.f32 %v4617_v11, %v4490_v31 }
 0x29a   :  { %v8580_v43 = vadd.f32 %v4187_v60, %v7642_v52  ;;  %v4189_v51 = vpop.f32.mrb[62].mxu0  ;;  %v4232_v13 = vpop.f32.mrb[62].mxu1  ;;  %v8597_v23 = vadd.f32 %v4230_v44, %v7642_v52 }
 0x29b   :  { %v4296_v57 = vadd.f32 %v4295_v3, %v8574_v5  ;;  %v4427_v34 = vmul.f32 %v8574_v5, %v8574_v5  ;;  %v8589_v32 = vadd.f32 %v4189_v51, %v7648_v1  ;;  %v4191_v20 = vpop.f32.mrb[63].mxu0  ;;  %v4234_v18 = vpop.f32.mrb[63].mxu1  ;;  %v4429_v31 = vmul.f32 %v8586_v38, %v8586_v38 }
 0x29c   :  { %11290 = vst [vmem:[#allocation84_spill] sm:$0xff] %v8580_v43  ;;  %v4428_v60 = vmul.f32 %v8580_v43, %v8580_v43  ;;  %v8594_v9 = vadd.f32 %v4191_v20, %v7648_v1  ;;  %v8609_v52 = vadd.f32 %v4232_v13, %v7648_v1  ;;  %v4430_v44 = vmul.f32 %v8597_v23, %v8597_v23 }
 0x29d   :  { %11291 = vst [vmem:[#allocation85_spill] sm:$0xff] %v8589_v32  ;;  %v4554_v3 = vadd.f32 %v4553_v12, %v4427_v34  ;;  %v4361_v55 = vadd.f32 %v4360_v37, %v8589_v32  ;;  %v4491_v51 = vmul.f32 %v8589_v32, %v8589_v32  ;;  %v4297_v11 = vadd.f32 %v4296_v57, %v8580_v43 }
 0x29e   :  { %11292 = vst [vmem:[#allocation86_spill] sm:$0xff] %v8594_v9  ;;  %v4492_v61 = vmul.f32 %v8594_v9, %v8594_v9  ;;  %11293 = vst [vmem:[#allocation87_spill] sm:$0xff] %v8609_v52 }
 0x29f   :  { %v4619_v20 = vadd.f32 %v4618_v48, %v4491_v51  ;;  %v4362_v26 = vadd.f32 %v4361_v55, %v8594_v9  ;;  %v4555_v12 = vadd.f32 %v4554_v3, %v4428_v60  ;;  %v4298_v37 = vadd.f32 %v4297_v11, %v8586_v38  ;;  %v11314_v9 = vld [vmem:[#allocation11_spill] sm:$0xff] }
 0x2a0   :  { %v4493_v48 = vmul.f32 %v8609_v52, %v8609_v52  ;;  %v8619_v60 = vadd.f32 %v4234_v18, %v7648_v1 }
 0x2a1   :  { %v4556_v34 = vadd.f32 %v4555_v12, %v4429_v31  ;;  %v4299_v32 = vadd.f32 %v4298_v37, %v8597_v23  ;;  %v4363_v57 = vadd.f32 %v4362_v26, %v8609_v52  ;;  %v4620_v58 = vadd.f32 %v4619_v20, %v4492_v61  ;;  %v11313_v52 = vld [vmem:[#allocation7_spill] sm:$0xff] }
 0x2a2   :  { %11294 = vst [vmem:[#allocation88_spill] sm:$0xff] %v8619_v60  ;;  %v4494_v55 = vmul.f32 %v8619_v60, %v8619_v60 }
 0x2a3   :  { %v4557_v43 = vadd.f32 %v4556_v34, %v4430_v44  ;;  %4300 = vadd.xlane.f32.xlu1 %v4299_v32  ;;  %v4364_v13 = vadd.f32 %v4363_v57, %v8619_v60  ;;  %v4621_v3 = vadd.f32 %v4620_v58, %v4493_v48  ;;  %v11312_v60 = vld [vmem:[#allocation5_spill] sm:$0xff] }
 0x2a5   :  { %4558 = vadd.xlane.f32.xlu0 %v4557_v43  ;;  %v4622_v51 = vadd.f32 %v4621_v3, %v4494_v55 }
 0x2a7   :  { %4365 = vadd.xlane.f32.xlu1 %v4364_v13  ;;  %v4635_v13 = vld [vmem:[%s11019_s3] sm:$0xff] }
 0x2ab   :  { %4623 = vadd.xlane.f32.xlu1 %v4622_v51  ;;  %v4636_v51 = vld [vmem:[%s11019_s3 + $0x8] sm:$0xff] }
 0x330   :  { %v4301_v26 = vpop.xlane.xlu1 %4300 }
 0x331   :  { %v4625_v61 = vmul.f32 0.00012207031, %v4301_v26 }
 0x332   :  { %v4559_v11 = vpop.xlane.xlu0 %4558 }
 0x333   :  { %v4627_v31 = vmul.f32 0.00012207031, %v4559_v11  ;;  %v4629_v20 = vmul.f32 %v4625_v61, %v4625_v61 }
 0x334   :  { %v4366_v12 = vpop.xlane.xlu1 %4365 }
 0x335   :  { %v4631_v37 = vsub.f32 %v4627_v31, %v4629_v20  ;;  %v4626_v1 = vmul.f32 0.00012207031, %v4366_v12  ;;  %v4643_v20 = vld [vmem:[%s11020_s4] sm:$0xff] }
 0x337   :  { %v4633_v18 = vmax.f32 %v4631_v37, 0.0  ;;  %v4630_v44 = vmul.f32 %v4626_v1, %v4626_v1 }
 0x338   :  { %v4624_v32 = vpop.xlane.xlu1 %4623 }
 0x339   :  { %v4637_v43 = vadd.f32 1e-05, %v4633_v18  ;;  %v4628_v34 = vmul.f32 0.00012207031, %v4624_v32  ;;  %v4644_v18 = vld [vmem:[%s11020_s4 + $0x8] sm:$0xff] }
 0x33b   :  { %5958 = vrsqrt.f32 %v4637_v43  ;;  %v4632_v58 = vsub.f32 %v4628_v34, %v4630_v44  ;;  %v11295_v34 = vld [vmem:[#allocation25_spill] sm:$0xff] }
 0x33d   :  { %v4634_v57 = vmax.f32 %v4632_v58, 0.0 }
 0x33f   :  { %v4638_v48 = vadd.f32 1e-05, %v4634_v57 }
 0x341   :  { %5960 = vrsqrt.f32 %v4638_v48 }
 0x345   :  { %v5959_v3 = vpop.eup %5958 }
 0x346   :  { %v4641_v55 = vmul.f32 %v5959_v3, %v4635_v13  ;;  %v11296_v13 = vld [vmem:[#allocation32_spill] sm:$0xff]  ;;  %v11297_v3 = vld [vmem:[#allocation34_spill] sm:$0xff] }
 0x348   :  { %4651 = vperm.xlu1 %5956, %v4641_v55   ;;  %v4645_v31 = vmul.f32 %v4641_v55, %v4625_v61  ;;  %v11298_v55 = vld [vmem:[#allocation36_spill] sm:$0xff] }
 0x34a   :  { %v4647_v12 = vsub.f32 %v4643_v20, %v4645_v31  ;;  %v11302_v20 = vld [vmem:[#allocation44_spill] sm:$0xff] }
 0x34b   :  { %v5961_v26 = vpop.eup %5960 }
 0x34c   :  { %v4642_v11 = vmul.f32 %v5961_v26, %v4636_v51  ;;  %v11299_v51 = vld [vmem:[#allocation37_spill] sm:$0xff]  ;;  %v11300_v26 = vld [vmem:[#allocation40_spill] sm:$0xff] }
 0x34e   :  { %4656 = vperm.xlu1 %5956, %v4642_v11   ;;  %v4646_v37 = vmul.f32 %v4642_v11, %v4626_v1  ;;  %v11301_v11 = vld [vmem:[#allocation42_spill] sm:$0xff] }
 0x350   :  { %v4648_v32 = vsub.f32 %v4644_v18, %v4646_v37  ;;  %v11303_v37 = vld [vmem:[#allocation45_spill] sm:$0xff] }
 0x352   :  { %4789 = vperm.xlu1 %5956, %v4647_v12  }
 0x356   :  { %4794 = vperm.xlu1 %5956, %v4648_v32   ;;  %v11304_v32 = vld [vmem:[#allocation48_spill] sm:$0xff] }
 0x3c7   :  { %v8636_v43 = vpop.permute.xlu1 %4651 }
 0x3c8   :  { %v8640_v44 = vmul.f32 %v8636_v43, %v7654_v7  ;;  %v8644_v61 = vmul.f32 %v8636_v43, %v7658_v25  ;;  %v8648_v1 = vmul.f32 %v8636_v43, %v7676_v19  ;;  %v8652_v58 = vmul.f32 %v8636_v43, %v11295_v34 }
 0x3c9   :  { %v8656_v57 = vmul.f32 %v8636_v43, %v7700_v27  ;;  %v8660_v7 = vmul.f32 %v8636_v43, %v7718_v53  ;;  %v8664_v25 = vmul.f32 %v8636_v43, %v7750_v24  ;;  %v8668_v19 = vmul.f32 %v8636_v43, %v7766_v30 }
 0x3ca   :  { %v8672_v48 = vmul.f32 %v8636_v43, %v7772_v39  ;;  %v8676_v27 = vmul.f32 %v8636_v43, %v11296_v13  ;;  %v8680_v53 = vmul.f32 %v8636_v43, %v11297_v3  ;;  %v8684_v24 = vmul.f32 %v8636_v43, %v11298_v55  ;;  %v11305_v13 = vld [vmem:[#allocation50_spill] sm:$0xff]  ;;  %v11306_v55 = vld [vmem:[#allocation52_spill] sm:$0xff] }
 0x3cb   :  { %v8688_v30 = vmul.f32 %v8636_v43, %v11299_v51  ;;  %v8692_v39 = vmul.f32 %v8636_v43, %v11300_v26  ;;  %v8696_v31 = vmul.f32 %v8636_v43, %v11301_v11  ;;  %v8700_v12 = vmul.f32 %v8636_v43, %v11302_v20  ;;  %v11308_v26 = vld [vmem:[#allocation3_spill] sm:$0xff]  ;;  %v11310_v20 = vld [vmem:[#allocation4_spill] sm:$0xff] }
 0x3cc   :  { %v8704_v18 = vmul.f32 %v8636_v43, %v11303_v37  ;;  %v8708_v34 = vmul.f32 %v8636_v43, %v11304_v32  ;;  %v8712_v3 = vmul.f32 %v8636_v43, %v11305_v13  ;;  %v8716_v51 = vmul.f32 %v8636_v43, %v11306_v55 }
 0x3cd   :  { %v8720_v11 = vmul.f32 %v8636_v43, %v11308_v26  ;;  %v8724_v37 = vmul.f32 %v8636_v43, %v11310_v20  ;;  %v8728_v32 = vmul.f32 %v8636_v43, %v11312_v60  ;;  %v8732_v13 = vmul.f32 %v8636_v43, %v11313_v52 }
 0x3ce   :  { %11307 = vst [vmem:[#allocation25_spill] sm:$0xff] %v8716_v51  ;;  %v8736_v55 = vmul.f32 %v8636_v43, %v11314_v9  ;;  %v11315_v51 = vld [vmem:[#allocation12_spill] sm:$0xff]  ;;  %v8752_v52 = vmul.f32 %v8636_v43, %v8084_v47  ;;  %v8756_v9 = vmul.f32 %v8636_v43, %v8102_v8  ;;  %v8774_v47 = vmul.f32 %v8636_v43, %v8174_v22 }
 0x3cf   :  { %11309 = vst [vmem:[#allocation32_spill] sm:$0xff] %v8720_v11  ;;  %11311 = vst [vmem:[#allocation34_spill] sm:$0xff] %v8724_v37  ;;  %v8740_v26 = vmul.f32 %v8636_v43, %v11315_v51  ;;  %v11317_v11 = vld [vmem:[#allocation13_spill] sm:$0xff]  ;;  %v11319_v37 = vld [vmem:[#allocation15_spill] sm:$0xff]  ;;  %v8760_v51 = vmul.f32 %v8636_v43, %v8134_v28  ;;  %v8778_v8 = vmul.f32 %v8636_v43, %v8192_v45 }
 0x3d0   :  { %v8744_v20 = vmul.f32 %v8636_v43, %v11317_v11  ;;  %v8748_v60 = vmul.f32 %v8636_v43, %v11319_v37  ;;  %v11321_v11 = vld [vmem:[#allocation53_spill] sm:$0xff]  ;;  %v8770_v37 = vmul.f32 %v8636_v43, %v8156_v62  ;;  %v8782_v28 = vmul.f32 %v8636_v43, %v8206_v2 }
 0x3d1   :  { %11316 = vst [vmem:[#allocation36_spill] sm:$0xff] %v8740_v26  ;;  %v8762_v26 = vpop.permute.xlu1 %4656  ;;  %v8790_v62 = vmul.f32 %v8636_v43, %v8230_v17  ;;  %v8794_v22 = vmul.f32 %v8636_v43, %v8262_v10  ;;  %v8798_v45 = vmul.f32 %v8636_v43, %v8278_v0  ;;  %v8802_v2 = vmul.f32 %v8636_v43, %v8284_v29 }
 0x3d2   :  { %11318 = vst [vmem:[#allocation37_spill] sm:$0xff] %v8744_v20  ;;  %11320 = vst [vmem:[#allocation40_spill] sm:$0xff] %v8762_v26  ;;  %v8766_v20 = vmul.f32 %v8636_v43, %v11321_v11  ;;  %v8786_v11 = vmul.f32 %v8636_v43, %v8212_v54  ;;  %v8806_v54 = vmul.f32 %v8636_v43, %v8302_v63  ;;  %v11322_v26 = vld [vmem:[#allocation66_spill] sm:$0xff] }
 0x3d3   :  { %v8810_v17 = vmul.f32 %v8636_v43, %v8320_v36  ;;  %v8814_v10 = vmul.f32 %v8636_v43, %v8334_v59  ;;  %v8818_v0 = vmul.f32 %v8636_v43, %v11322_v26  ;;  %v8822_v29 = vmul.f32 %v8636_v43, %v8358_v15 }
 0x3d4   :  { %v8826_v63 = vmul.f32 %v8636_v43, %v8388_v35  ;;  %v8830_v36 = vmul.f32 %v8636_v43, %v8402_v40  ;;  %v8834_v59 = vmul.f32 %v8636_v43, %v8406_v6  ;;  %v8838_v26 = vmul.f32 %v8636_v43, %v8426_v33 }
 0x3d5   :  { %v8842_v15 = vmul.f32 %v8636_v43, %v8444_v46  ;;  %v8846_v35 = vmul.f32 %v8636_v43, %v8458_v16  ;;  %v8850_v40 = vmul.f32 %v8636_v43, %v8461_v50  ;;  %v8854_v6 = vmul.f32 %v8636_v43, %v8480_v41 }
 0x3d6   :  { %11323 = vst [vmem:[#allocation42_spill] sm:$0xff] %v8838_v26  ;;  %v8858_v33 = vmul.f32 %v8636_v43, %v8498_v42  ;;  %v8860_v26 = vpop.permute.xlu1 %4789  ;;  %v8864_v46 = vmul.f32 %v8636_v43, %v8512_v4  ;;  %v8868_v16 = vmul.f32 %v8636_v43, %v8515_v56  ;;  %v8872_v50 = vmul.f32 %v8636_v43, %v8533_v21 }
 0x3d7   :  { %v8876_v41 = vmul.f32 %v8636_v43, %v8549_v14  ;;  %v8880_v42 = vmul.f32 %v8636_v43, %v8561_v49  ;;  %v8884_v4 = vmul.f32 %v8636_v43, %v8574_v5  ;;  %v8892_v21 = vmul.f32 %v8636_v43, %v8586_v38 }
 0x3d8   :  { %11324 = vst [vmem:[#allocation44_spill] sm:$0xff] %v8864_v46  ;;  %v11325_v46 = vld [vmem:[#allocation84_spill] sm:$0xff]  ;;  %v8896_v14 = vmul.f32 %v8636_v43, %v8597_v23  ;;  %v8900_v49 = vadd.f32 %v8860_v26, %v8640_v44  ;;  %v8904_v5 = vadd.f32 %v8860_v26, %v8644_v61  ;;  %v8912_v38 = vadd.f32 %v8860_v26, %v8652_v58 }
 0x3d9   :  { %v8888_v56 = vmul.f32 %v8636_v43, %v11325_v46  ;;  %v8908_v46 = vadd.f32 %v8860_v26, %v8648_v1  ;;  %v8916_v23 = vadd.f32 %v8860_v26, %v8656_v57  ;;  %v8920_v43 = vadd.f32 %v8860_v26, %v8660_v7 }
 0x3da   :  { %v8924_v44 = vadd.f32 %v8860_v26, %v8664_v25  ;;  %v8928_v61 = vadd.f32 %v8860_v26, %v8668_v19  ;;  %v8932_v1 = vadd.f32 %v8860_v26, %v8672_v48  ;;  %v8936_v58 = vadd.f32 %v8860_v26, %v8676_v27 }
 0x3db   :  { %v8940_v57 = vadd.f32 %v8860_v26, %v8680_v53  ;;  %v8944_v7 = vadd.f32 %v8860_v26, %v8684_v24  ;;  %v8948_v25 = vadd.f32 %v8860_v26, %v8688_v30  ;;  %v8952_v19 = vadd.f32 %v8860_v26, %v8692_v39  ;;  %v11328_v39 = vld [vmem:[#allocation25_spill] sm:$0xff] }
 0x3dc   :  { %v8956_v48 = vadd.f32 %v8860_v26, %v8696_v31  ;;  %v8960_v27 = vadd.f32 %v8860_v26, %v8700_v12  ;;  %v8964_v53 = vadd.f32 %v8860_v26, %v8704_v18  ;;  %v8968_v24 = vadd.f32 %v8860_v26, %v8708_v34 }
 0x3dd   :  { %v8972_v30 = vadd.f32 %v8860_v26, %v8712_v3  ;;  %v8976_v31 = vadd.f32 %v8860_v26, %v11328_v39  ;;  %v8988_v34 = vadd.f32 %v8860_v26, %v8728_v32  ;;  %v8992_v3 = vadd.f32 %v8860_v26, %v8732_v13 }
 0x3de   :  { %11326 = vst [vmem:[#allocation45_spill] sm:$0xff] %v8956_v48  ;;  %11327 = vst [vmem:[#allocation48_spill] sm:$0xff] %v8960_v27  ;;  %v11330_v48 = vld [vmem:[#allocation32_spill] sm:$0xff]  ;;  %v11332_v27 = vld [vmem:[#allocation34_spill] sm:$0xff]  ;;  %v8996_v39 = vadd.f32 %v8860_v26, %v8736_v55  ;;  %v9008_v32 = vadd.f32 %v8860_v26, %v8748_v60  ;;  %v9012_v13 = vadd.f32 %v8860_v26, %v8752_v52  ;;  %vm4925_vm2 = vcmp.gt.f32.partialorder %v8900_v49, 0.0 }
 0x3df   :  { %11329 = vst [vmem:[#allocation50_spill] sm:$0xff] %v8976_v31  ;;  %v8980_v12 = vadd.f32 %v8860_v26, %v11330_v48  ;;  %v8984_v18 = vadd.f32 %v8860_v26, %v11332_v27  ;;  %v11333_v31 = vld [vmem:[#allocation36_spill] sm:$0xff]  ;;  %v9016_v55 = vadd.f32 %v8860_v26, %v8756_v9  ;;  %v9028_v60 = vadd.f32 %v8860_v26, %v8770_v37 }
 0x3e0   :  { %v9000_v48 = vadd.f32 %v8860_v26, %v11333_v31  ;;  %v9020_v31 = vadd.f32 %v8860_v26, %v8760_v51  ;;  %v9032_v52 = vadd.f32 %v8860_v26, %v8774_v47  ;;  %v9036_v9 = vadd.f32 %v8860_v26, %v8778_v8 }
 0x3e1   :  { %11331 = vst [vmem:[#allocation52_spill] sm:$0xff] %v8980_v12  ;;  %v11334_v12 = vld [vmem:[#allocation37_spill] sm:$0xff]  ;;  %v9040_v51 = vadd.f32 %v8860_v26, %v8782_v28  ;;  %v9048_v37 = vadd.f32 %v8860_v26, %v8790_v62  ;;  %v9052_v47 = vadd.f32 %v8860_v26, %v8794_v22  ;;  %v9056_v8 = vadd.f32 %v8860_v26, %v8798_v45 }
 0x3e2   :  { %v9004_v27 = vadd.f32 %v8860_v26, %v11334_v12  ;;  %v9024_v12 = vadd.f32 %v8860_v26, %v8766_v20  ;;  %v9044_v20 = vadd.f32 %v8860_v26, %v8786_v11  ;;  %v9060_v28 = vadd.f32 %v8860_v26, %v8802_v2 }
 0x3e3   :  { %v9064_v11 = vadd.f32 %v8860_v26, %v8806_v54  ;;  %v9068_v62 = vadd.f32 %v8860_v26, %v8810_v17  ;;  %v9072_v22 = vadd.f32 %v8860_v26, %v8814_v10  ;;  %v9076_v45 = vadd.f32 %v8860_v26, %v8818_v0 }
 0x3e4   :  { %v9080_v2 = vadd.f32 %v8860_v26, %v8822_v29  ;;  %v9084_v54 = vadd.f32 %v8860_v26, %v8826_v63  ;;  %v9088_v17 = vadd.f32 %v8860_v26, %v8830_v36  ;;  %v9092_v10 = vadd.f32 %v8860_v26, %v8834_v59 }
 0x3e5   :  { %11335 = vst [vmem:[#allocation3_spill] sm:$0xff] %v9072_v22  ;;  %v11338_v22 = vld [vmem:[#allocation42_spill] sm:$0xff]  ;;  %v9100_v29 = vadd.f32 %v8860_v26, %v8842_v15  ;;  %v9104_v63 = vadd.f32 %v8860_v26, %v8846_v35  ;;  %v9108_v36 = vadd.f32 %v8860_v26, %v8850_v40  ;;  %v9112_v59 = vadd.f32 %v8860_v26, %v8854_v6 }
 0x3e6   :  { %11336 = vst [vmem:[#allocation4_spill] sm:$0xff] %v9080_v2  ;;  %11337 = vst [vmem:[#allocation5_spill] sm:$0xff] %v9092_v10  ;;  %v9096_v0 = vadd.f32 %v8860_v26, %v11338_v22  ;;  %v9116_v22 = vadd.f32 %v8860_v26, %v8858_v33  ;;  %v9124_v35 = vadd.f32 %v8860_v26, %v8868_v16  ;;  %vm4926_vm3 = vcmp.gt.f32.partialorder %v8904_v5, 0.0 }
 0x3e7   :  { %11340 = vst [vmem:[#allocation11_spill] sm:$0xff] %v9104_v63  ;;  %11341 = vst [vmem:[#allocation12_spill] sm:$0xff] %v9108_v36  ;;  %v9128_v40 = vadd.f32 %v8860_v26, %v8872_v50  ;;  %v9132_v6 = vadd.f32 %v8860_v26, %v8876_v41  ;;  %v9136_v33 = vadd.f32 %v8860_v26, %v8880_v42  ;;  %vm4927_vm4 = vcmp.gt.f32.partialorder %v8908_v46, 0.0 }
 0x3e8   :  { %11339 = vst [vmem:[#allocation7_spill] sm:$0xff] %v9096_v0  ;;  %11342 = vst [vmem:[#allocation13_spill] sm:$0xff] %v9112_v59  ;;  %v11344_v0 = vld [vmem:[#allocation44_spill] sm:$0xff]  ;;  %v9144_v16 = vadd.f32 %v8860_v26, %v8888_v56  ;;  %vm4928_vm5 = vcmp.gt.f32.partialorder %v8912_v38, 0.0  ;;  %vm4929_vm6 = vcmp.gt.f32.partialorder %v8916_v23, 0.0  ;;  %vm4930_vm7 = vcmp.gt.f32.partialorder %v8920_v43, 0.0 }
 0x3e9   :  { %11343 = vst [vmem:[#allocation15_spill] sm:$0xff] %v9116_v22  ;;  %v9120_v15 = vadd.f32 %v8860_v26, %v11344_v0  ;;  %11346 = vst [vmem:[#allocation66_spill] sm:$0xff] %v9124_v35  ;;  %v9140_v0 = vadd.f32 %v8860_v26, %v8884_v4  ;;  %vm4931_vm8 = vcmp.gt.f32.partialorder %v8924_v44, 0.0  ;;  %vm4932_vm9 = vcmp.gt.f32.partialorder %v8928_v61, 0.0 }
 0x3ea   :  { %11347 = vst [vmem:[#allocation84_spill] sm:$0xff] %v9128_v40  ;;  %11348 = vst [vmem:[#allocation25_spill] sm:$0xff] %v9132_v6  ;;  %vm4933_vm10 = vcmp.gt.f32.partialorder %v8932_v1, 0.0  ;;  %v9157_v50 = vadd.f32 %v8860_v26, %v8892_v21  ;;  %vm4934_vm11 = vcmp.gt.f32.partialorder %v8936_v58, 0.0  ;;  %v5053_v41 = vmul.f32 0.01, %v8900_v49 }
 0x3eb   :  { %11345 = vst [vmem:[#allocation53_spill] sm:$0xff] %v9120_v15  ;;  %11349 = vst [vmem:[#allocation32_spill] sm:$0xff] %v9136_v33  ;;  %v5054_v42 = vmul.f32 0.01, %v8904_v5  ;;  %v5055_v4 = vmul.f32 0.01, %v8908_v46  ;;  %v9165_v56 = vadd.f32 %v8860_v26, %v8896_v14 }
 0x3ec   :  { %11350 = vst [vmem:[#allocation34_spill] sm:$0xff] %v9140_v0  ;;  %11351 = vst [vmem:[#allocation36_spill] sm:$0xff] %v9144_v16  ;;  %vm4935_vm12 = vcmp.gt.f32.partialorder %v8940_v57, 0.0  ;;  %v5056_v16 = vmul.f32 0.01, %v8912_v38  ;;  %vm4936_vm13 = vcmp.gt.f32.partialorder %v8944_v7, 0.0  ;;  %v5181_v26 = vsel %vm4925_vm2, %v8900_v49, %v5053_v41 }
 0x3ed   :  { %11352 = vst [vmem:[#allocation37_spill] sm:$0xff] %v9157_v50  ;;  %11353 = vst [vmem:[#allocation42_spill] sm:$0xff] %v9165_v56  ;;  %v5057_v0 = vmul.f32 0.01, %v8916_v23  ;;  %v5058_v21 = vmul.f32 0.01, %v8920_v43  ;;  %v5182_v35 = vsel %vm4926_vm3, %v8904_v5, %v5054_v42  ;;  %v5183_v59 = vsel %vm4927_vm4, %v8908_v46, %v5055_v4 }
 0x3ee   :  { %v5059_v50 = vmul.f32 0.01, %v8924_v44  ;;  %v5060_v33 = vmul.f32 0.01, %v8928_v61  ;;  %v5061_v6 = vmul.f32 0.01, %v8932_v1  ;;  %5309 = vst [vmem:[%s11021_s5] sm:$0xff] %v5181_v26  ;;  %v5184_v63 = vsel %vm4928_vm5, %v8912_v38, %v5056_v16 }
 0x3ef   :  { %vm4937_vm14 = vcmp.gt.f32.partialorder %v8948_v25, 0.0  ;;  %v5062_v14 = vmul.f32 0.01, %v8936_v58  ;;  %v9181_v56 = vmul.f32 0.01, %v8940_v57  ;;  %vm4938_vm15 = vcmp.gt.f32.partialorder %v8952_v19, 0.0 }
 0x3f0   :  { %v9184_v40 = vmul.f32 0.01, %v8944_v7  ;;  %v9194_v49 = vmul.f32 0.01, %v8948_v25  ;;  %v9197_v41 = vmul.f32 0.01, %v8952_v19 }
 0x3f1   :  { %v11354_v15 = vld [vmem:[#allocation45_spill] sm:$0xff]  ;;  %5310 = vst [vmem:[%s11021_s5 + $0x8] sm:$0xff] %v5182_v35  ;;  %v11355_v5 = vld [vmem:[#allocation48_spill] sm:$0xff]  ;;  %v9213_v26 = vmul.f32 0.01, %v8964_v53  ;;  %5311 = vst [vmem:[%s11021_s5 + $0x10] sm:$0xff] %v5183_v59 }
 0x3f2   :  { %v9200_v22 = vmul.f32 0.01, %v11354_v15  ;;  %vm4939_vm0 = vcmp.gt.f32.partialorder %v11354_v15, 0.0  ;;  %v9210_v42 = vmul.f32 0.01, %v11355_v5  ;;  %vm4940_vm1 = vcmp.gt.f32.partialorder %v11355_v5, 0.0 }
 0x3f3   :  { %11357 = vst [vmem:[#allocation45_spill] sm:$0xff] %v9213_v26  ;;  %v9216_v36 = vmul.f32 0.01, %v8968_v24  ;;  %v9226_v46 = vmul.f32 0.01, %v8972_v30  ;;  %v11359_v35 = vld [vmem:[#allocation50_spill] sm:$0xff] }
 0x3f4   :  { %11356 = vst [vmem:[#allocation44_spill] sm:$0xff] %v9210_v42  ;;  %v9229_v4 = vmul.f32 0.01, %v11359_v35  ;;  %v11360_v26 = vld [vmem:[#allocation52_spill] sm:$0xff]  ;;  %5312 = vst [vmem:[%s11021_s5 + $0x18] sm:$0xff] %v5184_v63  ;;  %vm4941_vm2 = vcmp.gt.f32.partialorder %v8964_v53, 0.0 }
 0x3f5   :  { %11358 = vst [vmem:[#allocation48_spill] sm:$0xff] %v9216_v36  ;;  %v9232_v42 = vmul.f32 0.01, %v11360_v26  ;;  %v5185_v36 = vsel %vm4929_vm6, %v8916_v23, %v5057_v0  ;;  %v9242_v38 = vmul.f32 0.01, %v8984_v18  ;;  %vm4942_vm3 = vcmp.gt.f32.partialorder %v8968_v24, 0.0 }
 0x3f6   :  { %v9245_v59 = vmul.f32 0.01, %v8988_v34  ;;  %v9248_v16 = vmul.f32 0.01, %v8992_v3  ;;  %5313 = vst [vmem:[%s11021_s5 + $0x20] sm:$0xff] %v5185_v36  ;;  %vm4943_vm4 = vcmp.gt.f32.partialorder %v8972_v30, 0.0 }
 0x3f7   :  { %11361 = vst [vmem:[#allocation50_spill] sm:$0xff] %v9232_v42  ;;  %v5186_v42 = vsel %vm4930_vm7, %v8920_v43, %v5058_v21  ;;  %v9258_v23 = vmul.f32 0.01, %v8996_v39  ;;  %v9261_v63 = vmul.f32 0.01, %v9000_v48  ;;  %vm4944_vm5 = vcmp.gt.f32.partialorder %v11359_v35, 0.0 }
 0x3f8   :  { %11362 = vst [vmem:[#allocation52_spill] sm:$0xff] %v9248_v16  ;;  %v9264_v0 = vmul.f32 0.01, %v9004_v27  ;;  %v5187_v16 = vsel %vm4931_vm8, %v8924_v44, %v5059_v50  ;;  %5314 = vst [vmem:[%s11021_s5 + $0x28] sm:$0xff] %v5186_v42  ;;  %v9274_v43 = vmul.f32 0.01, %v9008_v32 }
 0x3f9   :  { %v9277_v36 = vmul.f32 0.01, %v9012_v13  ;;  %v9280_v21 = vmul.f32 0.01, %v9016_v55  ;;  %5315 = vst [vmem:[%s11021_s5 + $0x30] sm:$0xff] %v5187_v16  ;;  %vm4947_vm8 = vcmp.gt.f32.partialorder %v8988_v34, 0.0 }
 0x3fa   :  { %11363 = vst [vmem:[#allocation89_spill] sm:$0xff] %v9264_v0  ;;  %v5188_v0 = vsel %vm4932_vm9, %v8928_v61, %v5060_v33  ;;  %v9292_v44 = vmul.f32 0.01, %v9020_v31  ;;  %v9295_v50 = vmul.f32 0.01, %v9024_v12  ;;  %v5189_v61 = vsel %vm4933_vm10, %v8932_v1, %v5061_v6 }
 0x3fb   :  { %v9298_v42 = vmul.f32 0.01, %v9028_v60  ;;  %5316 = vst [vmem:[%s11021_s5 + $0x38] sm:$0xff] %v5188_v0  ;;  %v9311_v33 = vmul.f32 0.01, %v9032_v52  ;;  %v5190_v6 = vsel %vm4934_vm11, %v8936_v58, %v5062_v14  ;;  %5317 = vst [vmem:[%s11021_s5 + $0x40] sm:$0xff] %v5189_v61  ;;  %v5191_v14 = vsel %vm4935_vm12, %v8940_v57, %v9181_v56 }
 0x3fc   :  { %v9314_v16 = vmul.f32 0.01, %v9036_v9  ;;  %v9317_v1 = vmul.f32 0.01, %v9040_v51  ;;  %vm4951_vm10 = vcmp.gt.f32.partialorder %v9004_v27, 0.0  ;;  %5318 = vst [vmem:[%s11021_s5 + $0x48] sm:$0xff] %v5190_v6  ;;  %v5192_v56 = vsel %vm4936_vm13, %v8944_v7, %v9184_v40 }
 0x3fd   :  { %v9330_v0 = vmul.f32 0.01, %v9044_v20  ;;  %v9336_v58 = vmul.f32 0.01, %v9052_v47  ;;  %vm4955_vm11 = vcmp.gt.f32.partialorder %v9020_v31, 0.0  ;;  %5319 = vst [vmem:[%s11021_s5 + $0x50] sm:$0xff] %v5191_v14  ;;  %v5193_v40 = vsel %vm4937_vm14, %v8948_v25, %v9194_v49 }
 0x3fe   :  { %11364 = vst [vmem:[#allocation90_spill] sm:$0xff] %v9317_v1  ;;  %v9333_v1 = vmul.f32 0.01, %v9048_v37  ;;  %v9350_v61 = vmul.f32 0.01, %v9056_v8  ;;  %vm4959_vm12 = vcmp.gt.f32.partialorder %v9036_v9, 0.0  ;;  %v5194_v49 = vsel %vm4938_vm15, %v8952_v19, %v9197_v41 }
 0x3ff   :  { %11365 = vst [vmem:[#allocation91_spill] sm:$0xff] %v9336_v58  ;;  %v9353_v58 = vmul.f32 0.01, %v9060_v28  ;;  %v9356_v57 = vmul.f32 0.01, %v9064_v11  ;;  %5320 = vst [vmem:[%s11021_s5 + $0x58] sm:$0xff] %v5192_v56  ;;  %v5195_v41 = vsel %vm4939_vm0, %v11354_v15, %v9200_v22 }
 0x400   :  { %v9370_v6 = vmul.f32 0.01, %v9068_v62  ;;  %v9376_v7 = vmul.f32 0.01, %v9076_v45  ;;  %vm4963_vm13 = vcmp.gt.f32.partialorder %v9052_v47, 0.0  ;;  %5321 = vst [vmem:[%s11021_s5 + $0x60] sm:$0xff] %v5193_v40 }
 0x401   :  { %11366 = vst [vmem:[#allocation92_spill] sm:$0xff] %v9353_v58  ;;  %11367 = vst [vmem:[#allocation93_spill] sm:$0xff] %v9356_v57  ;;  %v11368_v57 = vld [vmem:[#allocation3_spill] sm:$0xff]  ;;  %v9390_v14 = vmul.f32 0.01, %v9080_v2  ;;  %vm4967_vm14 = vcmp.gt.f32.partialorder %v9068_v62, 0.0 }
 0x402   :  { %v9373_v58 = vmul.f32 0.01, %v11368_v57  ;;  %11369 = vst [vmem:[#allocation3_spill] sm:$0xff] %v9376_v7  ;;  %v9393_v7 = vmul.f32 0.01, %v9084_v54  ;;  %5322 = vst [vmem:[%s11021_s5 + $0x68] sm:$0xff] %v5194_v49 }
 0x403   :  { %v9396_v25 = vmul.f32 0.01, %v9088_v17  ;;  %v9410_v56 = vmul.f32 0.01, %v9092_v10  ;;  %v9416_v19 = vmul.f32 0.01, %v9100_v29 }
 0x404   :  { %11370 = vst [vmem:[#allocation94_spill] sm:$0xff] %v9393_v7  ;;  %vm4971_vm15 = vcmp.gt.f32.partialorder %v9084_v54, 0.0  ;;  %v11376_v40 = vld [vmem:[#allocation11_spill] sm:$0xff]  ;;  %v11380_v2 = vld [vmem:[#allocation13_spill] sm:$0xff]  ;;  %v11382_v15 = vld [vmem:[#allocation44_spill] sm:$0xff]  ;;  %vm4975_vm0 = vcmp.gt.f32.partialorder %v9100_v29, 0.0 }
 0x405   :  { %11371 = vst [vmem:[#allocation95_spill] sm:$0xff] %v9396_v25  ;;  %11372 = vst [vmem:[#allocation96_spill] sm:$0xff] %v9410_v56  ;;  %v11373_v25 = vld [vmem:[#allocation7_spill] sm:$0xff]  ;;  %v9436_v22 = vmul.f32 0.01, %v11380_v2  ;;  %v5196_v49 = vsel %vm4940_vm1, %v11355_v5, %v11382_v15  ;;  %v11387_v10 = vld [vmem:[#allocation66_spill] sm:$0xff] }
 0x406   :  { %v9413_v7 = vmul.f32 0.01, %v11373_v25  ;;  %11375 = vst [vmem:[#allocation98_spill] sm:$0xff] %v9416_v19  ;;  %v11378_v19 = vld [vmem:[#allocation12_spill] sm:$0xff]  ;;  %5323 = vst [vmem:[%s11021_s5 + $0x70] sm:$0xff] %v5195_v41  ;;  %v11389_v15 = vld [vmem:[#allocation45_spill] sm:$0xff] }
 0x407   :  { %v9433_v56 = vmul.f32 0.01, %v11378_v19  ;;  %11381 = vst [vmem:[#allocation100_spill] sm:$0xff] %v9436_v22  ;;  %v11385_v22 = vld [vmem:[#allocation53_spill] sm:$0xff]  ;;  %v9456_v5 = vmul.f32 0.01, %v11387_v10  ;;  %v5197_v41 = vsel %vm4941_vm2, %v8964_v53, %v11389_v15 }
 0x408   :  { %11374 = vst [vmem:[#allocation97_spill] sm:$0xff] %v9413_v7  ;;  %v9430_v7 = vmul.f32 0.01, %v11376_v40  ;;  %v9453_v25 = vmul.f32 0.01, %v11385_v22  ;;  %5324 = vst [vmem:[%s11021_s5 + $0x78] sm:$0xff] %v5196_v49 }
 0x409   :  { %11379 = vst [vmem:[#allocation99_spill] sm:$0xff] %v9433_v56  ;;  %v11383_v56 = vld [vmem:[#allocation15_spill] sm:$0xff]  ;;  %11388 = vst [vmem:[#allocation53_spill] sm:$0xff] %v9456_v5  ;;  %v11392_v5 = vld [vmem:[#allocation25_spill] sm:$0xff]  ;;  %vm11404_vm7 = vcmp.gt.f32.partialorder %v8984_v18, 0.0 }
 0x40a   :  { %11377 = vst [vmem:[#allocation11_spill] sm:$0xff] %v9430_v7  ;;  %v9450_v7 = vmul.f32 0.01, %v11383_v56  ;;  %11386 = vst [vmem:[#allocation15_spill] sm:$0xff] %v9453_v25  ;;  %vm4979_vm1 = vcmp.gt.f32.partialorder %v11383_v56, 0.0  ;;  %v11394_v19 = vld [vmem:[#allocation32_spill] sm:$0xff] }
 0x40b   :  { %v9473_v2 = vmul.f32 0.01, %v11392_v5  ;;  %v9476_v53 = vmul.f32 0.01, %v11394_v19  ;;  %v11396_v15 = vld [vmem:[#allocation48_spill] sm:$0xff]  ;;  %5325 = vst [vmem:[%s11021_s5 + $0x80] sm:$0xff] %v5197_v41  ;;  %v5199_v41 = vsel %vm4943_vm4, %v8972_v30, %v9226_v46  ;;  %v5202_v46 = vsel %vm11404_vm7, %v8984_v18, %v9242_v38 }
 0x40c   :  { %11384 = vst [vmem:[#allocation44_spill] sm:$0xff] %v9450_v7  ;;  %v11390_v7 = vld [vmem:[#allocation84_spill] sm:$0xff]  ;;  %v5198_v49 = vsel %vm4942_vm3, %v8968_v24, %v11396_v15  ;;  %vm4983_vm2 = vcmp.gt.f32.partialorder %v11392_v5, 0.0  ;;  %vm4984_vm6 = vcmp.gt.f32.partialorder %v11394_v19, 0.0  ;;  %v11399_v10 = vld [vmem:[#allocation37_spill] sm:$0xff]  ;;  %v11401_v15 = vld [vmem:[#allocation42_spill] sm:$0xff] }
 0x40d   :  { %v9470_v25 = vmul.f32 0.01, %v11390_v7  ;;  %11393 = vst [vmem:[#allocation25_spill] sm:$0xff] %v9473_v2  ;;  %11395 = vst [vmem:[#allocation32_spill] sm:$0xff] %v9476_v53  ;;  %v11397_v7 = vld [vmem:[#allocation34_spill] sm:$0xff]  ;;  %vm4987_vm3 = vcmp.gt.f32.partialorder %v11399_v10, 0.0 }
 0x40e   :  { %v9490_v2 = vmul.f32 0.01, %v11397_v7  ;;  %v9496_v24 = vmul.f32 0.01, %v11399_v10  ;;  %5326 = vst [vmem:[%s11021_s5 + $0x88] sm:$0xff] %v5198_v49  ;;  %vm4988_vm9 = vcmp.gt.f32.partialorder %v11401_v15, 0.0  ;;  %v5203_v49 = vsel %vm4947_vm8, %v8988_v34, %v9245_v59 }
 0x40f   :  { %11391 = vst [vmem:[#allocation45_spill] sm:$0xff] %v9470_v25  ;;  %v11398_v25 = vld [vmem:[#allocation36_spill] sm:$0xff]  ;;  %v9508_v7 = vmul.f32 0.01, %v11401_v15  ;;  %vm11403_vm4 = vcmp.gt.f32.partialorder %v11360_v26, 0.0  ;;  %5327 = vst [vmem:[%s11021_s5 + $0x90] sm:$0xff] %v5199_v41 }
 0x410   :  { %v9493_v53 = vmul.f32 0.01, %v11398_v25  ;;  %11400 = vst [vmem:[#allocation48_spill] sm:$0xff] %v9496_v24  ;;  %v5200_v24 = vsel %vm4944_vm5, %v11359_v35, %v9229_v4  ;;  %v11402_v25 = vld [vmem:[#allocation50_spill] sm:$0xff]  ;;  %v11405_v35 = vld [vmem:[#allocation52_spill] sm:$0xff]  ;;  %vm11406_vm5 = vcmp.gt.f32.partialorder %v8992_v3, 0.0 }
 0x411   :  { %v5201_v30 = vsel %vm11403_vm4, %v11360_v26, %v11402_v25  ;;  %v5204_v4 = vsel %vm11406_vm5, %v8992_v3, %v11405_v35  ;;  %vm11407_vm4 = vcmp.gt.f32.partialorder %v8996_v39, 0.0  ;;  %vm11408_vm7 = vcmp.gt.f32.partialorder %v9000_v48, 0.0  ;;  %5328 = vst [vmem:[%s11021_s5 + $0x98] sm:$0xff] %v5200_v24  ;;  %5330 = vst [vmem:[%s11021_s5 + $0xa8] sm:$0xff] %v5202_v46  ;;  %v11409_v34 = vld [vmem:[#allocation89_spill] sm:$0xff]  ;;  %v11446_v24 = vld [vmem:[#allocation100_spill] sm:$0xff] }
 0x412   :  { %v5205_v26 = vsel %vm11407_vm4, %v8996_v39, %v9258_v23  ;;  %v5206_v18 = vsel %vm11408_vm7, %v9000_v48, %v9261_v63  ;;  %5329 = vst [vmem:[%s11021_s5 + $0xa0] sm:$0xff] %v5201_v30  ;;  %v5207_v3 = vsel %vm4951_vm10, %v9004_v27, %v11409_v34  ;;  %vm11410_vm8 = vcmp.gt.f32.partialorder %v9008_v32, 0.0  ;;  %5331 = vst [vmem:[%s11021_s5 + $0xb0] sm:$0xff] %v5203_v49  ;;  %v11424_v63 = vld [vmem:[#allocation93_spill] sm:$0xff]  ;;  %v11450_v46 = vld [vmem:[#allocation15_spill] sm:$0xff] }
 0x413   :  { %v5208_v39 = vsel %vm11410_vm8, %v9008_v32, %v9274_v43  ;;  %vm11411_vm5 = vcmp.gt.f32.partialorder %v9012_v13, 0.0  ;;  %vm11412_vm4 = vcmp.gt.f32.partialorder %v9016_v55, 0.0  ;;  %5332 = vst [vmem:[%s11021_s5 + $0xb8] sm:$0xff] %v5204_v4  ;;  %5333 = vst [vmem:[%s11021_s5 + $0xc0] sm:$0xff] %v5205_v26  ;;  %v5211_v27 = vsel %vm4955_vm11, %v9020_v31, %v9292_v44  ;;  %v11432_v44 = vld [vmem:[#allocation95_spill] sm:$0xff]  ;;  %v11447_v41 = vld [vmem:[#allocation13_spill] sm:$0xff] }
 0x414   :  { %v5209_v48 = vsel %vm11411_vm5, %v9012_v13, %v9277_v36  ;;  %v5210_v38 = vsel %vm11412_vm4, %v9016_v55, %v9280_v21  ;;  %5334 = vst [vmem:[%s11021_s5 + $0xc8] sm:$0xff] %v5206_v18  ;;  %vm11413_vm10 = vcmp.gt.f32.partialorder %v9024_v12, 0.0  ;;  %vm11414_vm7 = vcmp.gt.f32.partialorder %v9028_v60, 0.0  ;;  %5335 = vst [vmem:[%s11021_s5 + $0xd0] sm:$0xff] %v5207_v3  ;;  %v11429_v36 = vld [vmem:[#allocation4_spill] sm:$0xff]  ;;  %v11452_v35 = vld [vmem:[#allocation53_spill] sm:$0xff] }
 0x415   :  { %v5212_v32 = vsel %vm11413_vm10, %v9024_v12, %v9295_v50  ;;  %v5213_v13 = vsel %vm11414_vm7, %v9028_v60, %v9298_v42  ;;  %vm11415_vm8 = vcmp.gt.f32.partialorder %v9032_v52, 0.0  ;;  %5336 = vst [vmem:[%s11021_s5 + $0xd8] sm:$0xff] %v5208_v39  ;;  %5337 = vst [vmem:[%s11021_s5 + $0xe0] sm:$0xff] %v5209_v48  ;;  %v5215_v31 = vsel %vm4959_vm12, %v9036_v9, %v9314_v16  ;;  %v11416_v12 = vld [vmem:[#allocation90_spill] sm:$0xff]  ;;  %v11420_v9 = vld [vmem:[#allocation91_spill] sm:$0xff] }
 0x416   :  { %v5214_v55 = vsel %vm11415_vm8, %v9032_v52, %v9311_v33  ;;  %5338 = vst [vmem:[%s11021_s5 + $0xe8] sm:$0xff] %v5210_v38  ;;  %vm11417_vm11 = vcmp.gt.f32.partialorder %v9040_v51, 0.0  ;;  %vm11418_vm5 = vcmp.gt.f32.partialorder %v9044_v20, 0.0  ;;  %vm11419_vm4 = vcmp.gt.f32.partialorder %v9048_v37, 0.0  ;;  %5339 = vst [vmem:[%s11021_s5 + $0xf0] sm:$0xff] %v5211_v27  ;;  %v11434_v42 = vld [vmem:[#allocation96_spill] sm:$0xff] }
 0x417   :  { %v5216_v60 = vsel %vm11417_vm11, %v9040_v51, %v11416_v12  ;;  %v5217_v52 = vsel %vm11418_vm5, %v9044_v20, %v9330_v0  ;;  %v5218_v59 = vsel %vm11419_vm4, %v9048_v37, %v9333_v1  ;;  %5340 = vst [vmem:[%s11021_s5 + $0xf8] sm:$0xff] %v5212_v32  ;;  %5341 = vst [vmem:[%s11021_s5 + $0x100] sm:$0xff] %v5213_v13  ;;  %vm11421_vm12 = vcmp.gt.f32.partialorder %v9056_v8, 0.0  ;;  %v11422_v37 = vld [vmem:[#allocation92_spill] sm:$0xff]  ;;  %v11435_v33 = vld [vmem:[#allocation5_spill] sm:$0xff] }
 0x418   :  { %5342 = vst [vmem:[%s11021_s5 + $0x108] sm:$0xff] %v5214_v55  ;;  %v5219_v51 = vsel %vm4963_vm13, %v9052_v47, %v11420_v9  ;;  %v5220_v20 = vsel %vm11421_vm12, %v9056_v8, %v9350_v61  ;;  %vm11423_vm10 = vcmp.gt.f32.partialorder %v9060_v28, 0.0  ;;  %vm11425_vm7 = vcmp.gt.f32.partialorder %v9064_v11, 0.0  ;;  %5343 = vst [vmem:[%s11021_s5 + $0x110] sm:$0xff] %v5215_v31  ;;  %v11437_v1 = vld [vmem:[#allocation97_spill] sm:$0xff]  ;;  %v11438_v0 = vld [vmem:[#allocation7_spill] sm:$0xff] }
 0x419   :  { %v5221_v23 = vsel %vm11423_vm10, %v9060_v28, %v11422_v37  ;;  %v5222_v43 = vsel %vm11425_vm7, %v9064_v11, %v11424_v63  ;;  %5344 = vst [vmem:[%s11021_s5 + $0x118] sm:$0xff] %v5216_v60  ;;  %5345 = vst [vmem:[%s11021_s5 + $0x120] sm:$0xff] %v5217_v52  ;;  %v5223_v47 = vsel %vm4967_vm14, %v9068_v62, %v9370_v6  ;;  %vm11426_vm13 = vcmp.gt.f32.partialorder %v11368_v57, 0.0  ;;  %v11427_v28 = vld [vmem:[#allocation3_spill] sm:$0xff]  ;;  %v11431_v62 = vld [vmem:[#allocation94_spill] sm:$0xff] }
 0x41a   :  { %5346 = vst [vmem:[%s11021_s5 + $0x128] sm:$0xff] %v5218_v59  ;;  %v5224_v8 = vsel %vm11426_vm13, %v11368_v57, %v9373_v58  ;;  %vm11428_vm8 = vcmp.gt.f32.partialorder %v9076_v45, 0.0  ;;  %vm11430_vm11 = vcmp.gt.f32.partialorder %v11429_v36, 0.0  ;;  %5347 = vst [vmem:[%s11021_s5 + $0x130] sm:$0xff] %v5219_v51  ;;  %vm11433_vm14 = vcmp.gt.f32.partialorder %v9088_v17, 0.0  ;;  %v11441_v61 = vld [vmem:[#allocation11_spill] sm:$0xff] }
 0x41b   :  { %v5225_v11 = vsel %vm11428_vm8, %v9076_v45, %v11427_v28  ;;  %v5226_v21 = vsel %vm11430_vm11, %v11429_v36, %v9390_v14  ;;  %5348 = vst [vmem:[%s11021_s5 + $0x138] sm:$0xff] %v5220_v20  ;;  %5349 = vst [vmem:[%s11021_s5 + $0x140] sm:$0xff] %v5221_v23  ;;  %v5227_v45 = vsel %vm4971_vm15, %v9084_v54, %v11431_v62  ;;  %vm11436_vm5 = vcmp.gt.f32.partialorder %v11435_v33, 0.0  ;;  %v11440_v54 = vld [vmem:[#allocation98_spill] sm:$0xff]  ;;  %v11443_v6 = vld [vmem:[#allocation99_spill] sm:$0xff] }
 0x41c   :  { %5350 = vst [vmem:[%s11021_s5 + $0x148] sm:$0xff] %v5222_v43  ;;  %v5228_v50 = vsel %vm11433_vm14, %v9088_v17, %v11432_v44  ;;  %v5229_v16 = vsel %vm11436_vm5, %v11435_v33, %v11434_v42  ;;  %vm11439_vm4 = vcmp.gt.f32.partialorder %v11438_v0, 0.0  ;;  %5351 = vst [vmem:[%s11021_s5 + $0x150] sm:$0xff] %v5223_v47  ;;  %v5231_v17 = vsel %vm4975_vm0, %v9100_v29, %v11440_v54  ;;  %v11444_v14 = vld [vmem:[#allocation12_spill] sm:$0xff]  ;;  %v11453_v4 = vld [vmem:[#allocation66_spill] sm:$0xff] }
 0x41d   :  { %v5230_v58 = vsel %vm11439_vm4, %v11438_v0, %v11437_v1  ;;  %5352 = vst [vmem:[%s11021_s5 + $0x158] sm:$0xff] %v5224_v8  ;;  %5353 = vst [vmem:[%s11021_s5 + $0x160] sm:$0xff] %v5225_v11  ;;  %vm11442_vm15 = vcmp.gt.f32.partialorder %v11376_v40, 0.0  ;;  %vm11445_vm12 = vcmp.gt.f32.partialorder %v11444_v14, 0.0  ;;  %vm11448_vm10 = vcmp.gt.f32.partialorder %v11447_v41, 0.0  ;;  %v11449_v29 = vld [vmem:[#allocation44_spill] sm:$0xff] }
 0x41e   :  { %5354 = vst [vmem:[%s11021_s5 + $0x168] sm:$0xff] %v5226_v21  ;;  %v5232_v57 = vsel %vm11442_vm15, %v11376_v40, %v11441_v61  ;;  %v5233_v25 = vsel %vm11445_vm12, %v11444_v14, %v11443_v6  ;;  %v5234_v30 = vsel %vm11448_vm10, %v11447_v41, %v11446_v24  ;;  %5355 = vst [vmem:[%s11021_s5 + $0x170] sm:$0xff] %v5227_v45  ;;  %vm11451_vm0 = vcmp.gt.f32.partialorder %v11385_v22, 0.0  ;;  %v11455_v18 = vld [vmem:[#allocation45_spill] sm:$0xff]  ;;  %v11456_v34 = vld [vmem:[#allocation84_spill] sm:$0xff] }
 0x41f   :  { %5356 = vst [vmem:[%s11021_s5 + $0x178] sm:$0xff] %v5228_v50  ;;  %5357 = vst [vmem:[%s11021_s5 + $0x180] sm:$0xff] %v5229_v16  ;;  %v5235_v40 = vsel %vm4979_vm1, %v11383_v56, %v11449_v29  ;;  %v5236_v49 = vsel %vm11451_vm0, %v11385_v22, %v11450_v46  ;;  %vm11454_vm7 = vcmp.gt.f32.partialorder %v11453_v4, 0.0  ;;  %vm11457_vm13 = vcmp.gt.f32.partialorder %v11456_v34, 0.0  ;;  %v11458_v56 = vld [vmem:[#allocation25_spill] sm:$0xff]  ;;  %v11459_v39 = vld [vmem:[#allocation32_spill] sm:$0xff] }
 0x420   :  { %5358 = vst [vmem:[%s11021_s5 + $0x188] sm:$0xff] %v5230_v58  ;;  %v5237_v26 = vsel %vm11454_vm7, %v11453_v4, %v11452_v35  ;;  %v5238_v3 = vsel %vm11457_vm13, %v11456_v34, %v11455_v18  ;;  %5359 = vst [vmem:[%s11021_s5 + $0x190] sm:$0xff] %v5231_v17  ;;  %v5239_v22 = vsel %vm4983_vm2, %v11392_v5, %v11458_v56  ;;  %v11460_v38 = vld [vmem:[#allocation34_spill] sm:$0xff]  ;;  %v11462_v32 = vld [vmem:[#allocation36_spill] sm:$0xff] }
 0x421   :  { %5360 = vst [vmem:[%s11021_s5 + $0x198] sm:$0xff] %v5232_v57  ;;  %5361 = vst [vmem:[%s11021_s5 + $0x1a0] sm:$0xff] %v5233_v25  ;;  %v5240_v48 = vsel %vm4984_vm6, %v11394_v19, %v11459_v39  ;;  %vm11461_vm1 = vcmp.gt.f32.partialorder %v11460_v38, 0.0  ;;  %vm11463_vm8 = vcmp.gt.f32.partialorder %v11462_v32, 0.0  ;;  %v5244_v5 = vsel %vm4988_vm9, %v11401_v15, %v9508_v7  ;;  %v11466_v7 = vld [vmem:[#allocation40_spill] sm:$0xff]  ;;  %v11467_v15 = vld [vmem:[#allocation23_spill] sm:$0xff] }
 0x422   :  { %5362 = vst [vmem:[%s11021_s5 + $0x1a8] sm:$0xff] %v5234_v30  ;;  %v5241_v27 = vsel %vm11461_vm1, %v11460_v38, %v9490_v2  ;;  %v5242_v13 = vsel %vm11463_vm8, %v11462_v32, %v9493_v53  ;;  %5363 = vst [vmem:[%s11021_s5 + $0x1b0] sm:$0xff] %v5235_v40  ;;  %v11464_v2 = vld [vmem:[#allocation48_spill] sm:$0xff]  ;;  %v9834_v55 = vmul.f32 %v11466_v7, %v11467_v15  ;;  %v11469_v60 = vld [vmem:[#allocation26_spill] sm:$0xff] }
 0x423   :  { %5364 = vst [vmem:[%s11021_s5 + $0x1b8] sm:$0xff] %v5236_v49  ;;  %5365 = vst [vmem:[%s11021_s5 + $0x1c0] sm:$0xff] %v5237_v26  ;;  %v5243_v19 = vsel %vm4987_vm3, %v11399_v10, %v11464_v2  ;;  %v11465_v10 = vld [vmem:[#allocation22_spill] sm:$0xff]  ;;  %v11468_v31 = vld [vmem:[#allocation24_spill] sm:$0xff]  ;;  %v9842_v52 = vmul.f32 %v11466_v7, %v11469_v60 }
 0x424   :  { %5366 = vst [vmem:[%s11021_s5 + $0x1c8] sm:$0xff] %v5238_v3  ;;  %5367 = vst [vmem:[%s11021_s5 + $0x1d0] sm:$0xff] %v5239_v22  ;;  %v9830_v53 = vmul.f32 %v11466_v7, %v11465_v10  ;;  %v9838_v12 = vmul.f32 %v11466_v7, %v11468_v31  ;;  %v11470_v59 = vld [vmem:[#allocation27_spill] sm:$0xff]  ;;  %v11471_v51 = vld [vmem:[#allocation28_spill] sm:$0xff] }
 0x425   :  { %5368 = vst [vmem:[%s11021_s5 + $0x1d8] sm:$0xff] %v5240_v48  ;;  %5369 = vst [vmem:[%s11021_s5 + $0x1e0] sm:$0xff] %v5241_v27  ;;  %v9846_v9 = vmul.f32 %v11466_v7, %v11470_v59  ;;  %v9850_v20 = vmul.f32 %v11466_v7, %v11471_v51  ;;  %v11472_v37 = vld [vmem:[#allocation29_spill] sm:$0xff]  ;;  %v11473_v63 = vld [vmem:[#allocation30_spill] sm:$0xff] }
 0x426   :  { %5370 = vst [vmem:[%s11021_s5 + $0x1e8] sm:$0xff] %v5242_v13  ;;  %5371 = vst [vmem:[%s11021_s5 + $0x1f0] sm:$0xff] %v5243_v19  ;;  %v9854_v23 = vmul.f32 %v11466_v7, %v11472_v37  ;;  %v9858_v43 = vmul.f32 %v11466_v7, %v11473_v63  ;;  %v11474_v47 = vld [vmem:[#allocation31_spill] sm:$0xff]  ;;  %v11475_v28 = vld [vmem:[#allocation33_spill] sm:$0xff] }
 0x427   :  { %5372 = vst [vmem:[%s11021_s5 + $0x1f8] sm:$0xff] %v5244_v5  ;;  %v9862_v8 = vmul.f32 %v11466_v7, %v11474_v47  ;;  %v9866_v11 = vmul.f32 %v11466_v7, %v11475_v28  ;;  %v11476_v36 = vld [vmem:[#allocation35_spill] sm:$0xff]  ;;  %v11477_v62 = vld [vmem:[#allocation38_spill] sm:$0xff]  ;;  %v11479_v42 = vld [vmem:[#allocation41_spill] sm:$0xff] }
 0x428   :  { %v9870_v21 = vmul.f32 %v11466_v7, %v11476_v36  ;;  %v9874_v45 = vmul.f32 %v11466_v7, %v11477_v62  ;;  %v11478_v44 = vld [vmem:[#allocation39_spill] sm:$0xff]  ;;  %v9882_v33 = vmul.f32 %v11466_v7, %v11479_v42  ;;  %v11481_v0 = vld [vmem:[#allocation46_spill] sm:$0xff]  ;;  %v11483_v61 = vld [vmem:[#allocation49_spill] sm:$0xff] }
 0x429   :  { %v9878_v50 = vmul.f32 %v11466_v7, %v11478_v44  ;;  %v11480_v16 = vld [vmem:[#allocation43_spill] sm:$0xff]  ;;  %v9890_v58 = vmul.f32 %v11466_v7, %v11481_v0  ;;  %v9898_v57 = vmul.f32 %v11466_v7, %v11483_v61  ;;  %v11485_v25 = vld [vmem:[#allocation2_spill] sm:$0xff]  ;;  %v11487_v29 = vld [vmem:[#allocation8_spill] sm:$0xff] }
 0x42a   :  { %v9886_v1 = vmul.f32 %v11466_v7, %v11480_v16  ;;  %v11482_v54 = vld [vmem:[#allocation47_spill] sm:$0xff]  ;;  %v9906_v24 = vmul.f32 %v11466_v7, %v11485_v25  ;;  %v11486_v41 = vld [vmem:[#allocation6_spill] sm:$0xff]  ;;  %v9914_v40 = vmul.f32 %v11466_v7, %v11487_v29  ;;  %v11488_v46 = vld [vmem:[#allocation9_spill] sm:$0xff] }
 0x42b   :  { %v9894_v17 = vmul.f32 %v11466_v7, %v11482_v54  ;;  %v11484_v6 = vld [vmem:[#allocation51_spill] sm:$0xff]  ;;  %v9910_v30 = vmul.f32 %v11466_v7, %v11486_v41  ;;  %v9918_v49 = vmul.f32 %v11466_v7, %v11488_v46  ;;  %v11489_v35 = vld [vmem:[#allocation10_spill] sm:$0xff]  ;;  %v11491_v34 = vld [vmem:[#allocation16_spill] sm:$0xff] }
 0x42c   :  { %v9902_v14 = vmul.f32 %v11466_v7, %v11484_v6  ;;  %v9922_v4 = vmul.f32 %v11466_v7, %v11489_v35  ;;  %v11490_v26 = vld [vmem:[#allocation14_spill] sm:$0xff]  ;;  %v9930_v3 = vmul.f32 %v11466_v7, %v11491_v34  ;;  %v11492_v56 = vld [vmem:[#allocation17_spill] sm:$0xff]  ;;  %v11493_v39 = vld [vmem:[#allocation19_spill] sm:$0xff] }
 0x42d   :  { %v9926_v18 = vmul.f32 %v11466_v7, %v11490_v26  ;;  %v9934_v22 = vmul.f32 %v11466_v7, %v11492_v56  ;;  %v9938_v48 = vmul.f32 %v11466_v7, %v11493_v39  ;;  %v11494_v38 = vld [vmem:[#allocation18_spill] sm:$0xff]  ;;  %v11495_v32 = vld [vmem:[#allocation20_spill] sm:$0xff]  ;;  %v11496_v2 = vld [vmem:[#allocation21_spill] sm:$0xff] }
 0x42e   :  { %v9942_v27 = vmul.f32 %v11466_v7, %v11494_v38  ;;  %v9946_v13 = vmul.f32 %v11466_v7, %v11495_v32  ;;  %v9950_v19 = vmul.f32 %v11466_v7, %v11496_v2  ;;  %v11497_v5 = vld [vmem:[#allocation54_spill] sm:$0xff]  ;;  %v11498_v15 = vld [vmem:[#allocation55_spill] sm:$0xff]  ;;  %v11499_v60 = vld [vmem:[#allocation56_spill] sm:$0xff] }
 0x42f   :  { %v9954_v10 = vmul.f32 %v11466_v7, %v11497_v5  ;;  %v9958_v31 = vmul.f32 %v11466_v7, %v11498_v15  ;;  %v9962_v59 = vmul.f32 %v11466_v7, %v11499_v60  ;;  %v11500_v51 = vld [vmem:[#allocation57_spill] sm:$0xff]  ;;  %v11501_v63 = vld [vmem:[#allocation58_spill] sm:$0xff]  ;;  %v11502_v28 = vld [vmem:[#allocation59_spill] sm:$0xff] }
 0x430   :  { %v9966_v37 = vmul.f32 %v11466_v7, %v11500_v51  ;;  %v9970_v47 = vmul.f32 %v11466_v7, %v11501_v63  ;;  %v9974_v36 = vmul.f32 %v11466_v7, %v11502_v28  ;;  %v11503_v62 = vld [vmem:[#allocation60_spill] sm:$0xff]  ;;  %v11504_v42 = vld [vmem:[#allocation61_spill] sm:$0xff]  ;;  %v11505_v0 = vld [vmem:[#allocation62_spill] sm:$0xff] }
 0x431   :  { %v9978_v44 = vmul.f32 %v11466_v7, %v11503_v62  ;;  %v9982_v16 = vmul.f32 %v11466_v7, %v11504_v42  ;;  %v9986_v54 = vmul.f32 %v11466_v7, %v11505_v0  ;;  %v11506_v61 = vld [vmem:[#allocation63_spill] sm:$0xff]  ;;  %v11507_v25 = vld [vmem:[#allocation64_spill] sm:$0xff]  ;;  %v11508_v29 = vld [vmem:[#allocation65_spill] sm:$0xff] }
 0x432   :  { %v9990_v6 = vmul.f32 %v11466_v7, %v11506_v61  ;;  %v9994_v41 = vmul.f32 %v11466_v7, %v11507_v25  ;;  %v9998_v46 = vmul.f32 %v11466_v7, %v11508_v29  ;;  %v11509_v35 = vld [vmem:[#allocation67_spill] sm:$0xff]  ;;  %v11510_v34 = vld [vmem:[#allocation68_spill] sm:$0xff]  ;;  %v11511_v39 = vld [vmem:[#allocation69_spill] sm:$0xff] }
 0x433   :  { %v10002_v26 = vmul.f32 %v11466_v7, %v11509_v35  ;;  %v10006_v56 = vmul.f32 %v11466_v7, %v11510_v34  ;;  %v10010_v38 = vmul.f32 %v11466_v7, %v11511_v39  ;;  %v11512_v32 = vld [vmem:[#allocation70_spill] sm:$0xff]  ;;  %v11513_v5 = vld [vmem:[#allocation71_spill] sm:$0xff]  ;;  %v11514_v60 = vld [vmem:[#allocation72_spill] sm:$0xff] }
 0x434   :  { %v10014_v2 = vmul.f32 %v11466_v7, %v11512_v32  ;;  %v10018_v15 = vmul.f32 %v11466_v7, %v11513_v5  ;;  %v10022_v51 = vmul.f32 %v11466_v7, %v11514_v60  ;;  %v11515_v63 = vld [vmem:[#allocation73_spill] sm:$0xff]  ;;  %v11516_v62 = vld [vmem:[#allocation74_spill] sm:$0xff]  ;;  %v11517_v0 = vld [vmem:[#allocation75_spill] sm:$0xff]  ;;  %v10048_v5 = vpop.permute.xlu1 %4794 }
 0x435   :  { %v10026_v28 = vmul.f32 %v11466_v7, %v11515_v63  ;;  %v10030_v42 = vmul.f32 %v11466_v7, %v11516_v62  ;;  %v10034_v61 = vmul.f32 %v11466_v7, %v11517_v0  ;;  %v11519_v25 = vld [vmem:[#allocation76_spill] sm:$0xff]  ;;  %v11521_v35 = vld [vmem:[#allocation77_spill] sm:$0xff]  ;;  %v11523_v39 = vld [vmem:[#allocation78_spill] sm:$0xff] }
 0x436   :  { %v10038_v29 = vmul.f32 %v11466_v7, %v11519_v25  ;;  %v10042_v34 = vmul.f32 %v11466_v7, %v11521_v35  ;;  %v10046_v32 = vmul.f32 %v11466_v7, %v11523_v39  ;;  %v11525_v60 = vld [vmem:[#allocation79_spill] sm:$0xff]  ;;  %v11527_v62 = vld [vmem:[#allocation80_spill] sm:$0xff]  ;;  %v11529_v25 = vld [vmem:[#allocation81_spill] sm:$0xff] }
 0x437   :  { %11518 = vst [vmem:[#allocation37_spill] sm:$0xff] %v10034_v61  ;;  %v10052_v63 = vmul.f32 %v11466_v7, %v11525_v60  ;;  %v10056_v0 = vmul.f32 %v11466_v7, %v11527_v62  ;;  %v11531_v35 = vld [vmem:[#allocation82_spill] sm:$0xff]  ;;  %v11532_v39 = vld [vmem:[#allocation83_spill] sm:$0xff]  ;;  %v11533_v61 = vld [vmem:[#allocation85_spill] sm:$0xff] }
 0x438   :  { %11520 = vst [vmem:[#allocation42_spill] sm:$0xff] %v10038_v29  ;;  %11522 = vst [vmem:[#allocation50_spill] sm:$0xff] %v10042_v34  ;;  %v10060_v29 = vmul.f32 %v11466_v7, %v11529_v25  ;;  %v10064_v34 = vmul.f32 %v11466_v7, %v11531_v35  ;;  %v10072_v60 = vmul.f32 %v11466_v7, %v11533_v61 }
 0x439   :  { %11524 = vst [vmem:[#allocation52_spill] sm:$0xff] %v10046_v32  ;;  %11526 = vst [vmem:[#allocation89_spill] sm:$0xff] %v10052_v63  ;;  %v10068_v32 = vmul.f32 %v11466_v7, %v11532_v39  ;;  %v11534_v63 = vld [vmem:[#allocation86_spill] sm:$0xff]  ;;  %v10088_v39 = vadd.f32 %v10048_v5, %v9830_v53  ;;  %v10092_v61 = vadd.f32 %v10048_v5, %v9834_v55 }
 0x43a   :  { %11528 = vst [vmem:[#allocation90_spill] sm:$0xff] %v10056_v0  ;;  %11530 = vst [vmem:[#allocation91_spill] sm:$0xff] %v10060_v29  ;;  %v10076_v62 = vmul.f32 %v11466_v7, %v11534_v63  ;;  %v11535_v0 = vld [vmem:[#allocation87_spill] sm:$0xff]  ;;  %v11536_v29 = vld [vmem:[#allocation88_spill] sm:$0xff]  ;;  %v10096_v63 = vadd.f32 %v10048_v5, %v9838_v12  ;;  %v10108_v53 = vadd.f32 %v10048_v5, %v9850_v20 }
 0x43b   :  { %v10080_v25 = vmul.f32 %v11466_v7, %v11535_v0  ;;  %v10084_v35 = vmul.f32 %v11466_v7, %v11536_v29  ;;  %v10100_v0 = vadd.f32 %v10048_v5, %v9842_v52  ;;  %v10104_v7 = vadd.f32 %v10048_v5, %v9846_v9 }
 0x43c   :  { %v10112_v55 = vadd.f32 %v10048_v5, %v9854_v23  ;;  %v10116_v12 = vadd.f32 %v10048_v5, %v9858_v43  ;;  %v10120_v52 = vadd.f32 %v10048_v5, %v9862_v8  ;;  %v10124_v9 = vadd.f32 %v10048_v5, %v9866_v11 }
 0x43d   :  { %v10128_v20 = vadd.f32 %v10048_v5, %v9870_v21  ;;  %v10132_v23 = vadd.f32 %v10048_v5, %v9874_v45  ;;  %v10136_v43 = vadd.f32 %v10048_v5, %v9878_v50  ;;  %v10140_v8 = vadd.f32 %v10048_v5, %v9882_v33 }
 0x43e   :  { %v10144_v11 = vadd.f32 %v10048_v5, %v9886_v1  ;;  %v10148_v21 = vadd.f32 %v10048_v5, %v9890_v58  ;;  %v10152_v45 = vadd.f32 %v10048_v5, %v9894_v17  ;;  %v10156_v50 = vadd.f32 %v10048_v5, %v9898_v57  ;;  %v11543_v29 = vld [vmem:[#allocation37_spill] sm:$0xff] }
 0x43f   :  { %v10160_v33 = vadd.f32 %v10048_v5, %v9902_v14  ;;  %v10164_v1 = vadd.f32 %v10048_v5, %v9906_v24  ;;  %v10168_v58 = vadd.f32 %v10048_v5, %v9910_v30  ;;  %v10172_v17 = vadd.f32 %v10048_v5, %v9914_v40 }
 0x440   :  { %v10176_v57 = vadd.f32 %v10048_v5, %v9918_v49  ;;  %v10180_v14 = vadd.f32 %v10048_v5, %v9922_v4  ;;  %v10184_v24 = vadd.f32 %v10048_v5, %v9926_v18  ;;  %v10188_v30 = vadd.f32 %v10048_v5, %v9930_v3 }
 0x441   :  { %v10192_v40 = vadd.f32 %v10048_v5, %v9934_v22  ;;  %v10196_v49 = vadd.f32 %v10048_v5, %v9938_v48  ;;  %v10200_v4 = vadd.f32 %v10048_v5, %v9942_v27  ;;  %v10204_v18 = vadd.f32 %v10048_v5, %v9946_v13 }
 0x442   :  { %v10208_v3 = vadd.f32 %v10048_v5, %v9950_v19  ;;  %v10212_v22 = vadd.f32 %v10048_v5, %v9954_v10  ;;  %v10216_v48 = vadd.f32 %v10048_v5, %v9958_v31  ;;  %v10220_v27 = vadd.f32 %v10048_v5, %v9962_v59 }
 0x443   :  { %v10224_v13 = vadd.f32 %v10048_v5, %v9966_v37  ;;  %v10228_v19 = vadd.f32 %v10048_v5, %v9970_v47  ;;  %v10232_v10 = vadd.f32 %v10048_v5, %v9974_v36  ;;  %v10236_v31 = vadd.f32 %v10048_v5, %v9978_v44 }
 0x444   :  { %v10240_v59 = vadd.f32 %v10048_v5, %v9982_v16  ;;  %v10244_v37 = vadd.f32 %v10048_v5, %v9986_v54  ;;  %v10248_v47 = vadd.f32 %v10048_v5, %v9990_v6  ;;  %v10252_v36 = vadd.f32 %v10048_v5, %v9994_v41 }
 0x445   :  { %v10256_v44 = vadd.f32 %v10048_v5, %v9998_v46  ;;  %v10260_v16 = vadd.f32 %v10048_v5, %v10002_v26  ;;  %v10264_v54 = vadd.f32 %v10048_v5, %v10006_v56  ;;  %v10268_v6 = vadd.f32 %v10048_v5, %v10010_v38 }
 0x446   :  { %11537 = vst [vmem:[#allocation92_spill] sm:$0xff] %v10252_v36  ;;  %v10272_v41 = vadd.f32 %v10048_v5, %v10014_v2  ;;  %v10276_v46 = vadd.f32 %v10048_v5, %v10018_v15  ;;  %v10280_v26 = vadd.f32 %v10048_v5, %v10022_v51  ;;  %v10284_v56 = vadd.f32 %v10048_v5, %v10026_v28 }
 0x447   :  { %v10288_v38 = vadd.f32 %v10048_v5, %v10030_v42  ;;  %v10292_v2 = vadd.f32 %v10048_v5, %v11543_v29  ;;  %vm4989_vm6 = vcmp.gt.f32.partialorder %v10088_v39, 0.0  ;;  %vm4990_vm9 = vcmp.gt.f32.partialorder %v10092_v61, 0.0 }
 0x448   :  { %11538 = vst [vmem:[#allocation93_spill] sm:$0xff] %v10272_v41  ;;  %11539 = vst [vmem:[#allocation3_spill] sm:$0xff] %v10276_v46  ;;  %v11545_v41 = vld [vmem:[#allocation42_spill] sm:$0xff]  ;;  %vm4991_vm2 = vcmp.gt.f32.partialorder %v10096_v63, 0.0  ;;  %vm4992_vm3 = vcmp.gt.f32.partialorder %v10100_v0, 0.0  ;;  %vm4993_vm11 = vcmp.gt.f32.partialorder %v10104_v7, 0.0 }
 0x449   :  { %11540 = vst [vmem:[#allocation4_spill] sm:$0xff] %v10280_v26  ;;  %11541 = vst [vmem:[#allocation94_spill] sm:$0xff] %v10284_v56  ;;  %v10296_v15 = vadd.f32 %v10048_v5, %v11545_v41  ;;  %v11546_v46 = vld [vmem:[#allocation50_spill] sm:$0xff]  ;;  %v11548_v26 = vld [vmem:[#allocation52_spill] sm:$0xff]  ;;  %vm4994_vm14 = vcmp.gt.f32.partialorder %v10108_v53, 0.0  ;;  %vm4995_vm5 = vcmp.gt.f32.partialorder %v10112_v55, 0.0 }
 0x44a   :  { %11542 = vst [vmem:[#allocation95_spill] sm:$0xff] %v10288_v38  ;;  %11544 = vst [vmem:[#allocation96_spill] sm:$0xff] %v10292_v2  ;;  %v10300_v51 = vadd.f32 %v10048_v5, %v11546_v46  ;;  %v10304_v28 = vadd.f32 %v10048_v5, %v11548_v26  ;;  %v11550_v56 = vld [vmem:[#allocation89_spill] sm:$0xff]  ;;  %v11552_v38 = vld [vmem:[#allocation90_spill] sm:$0xff]  ;;  %v10320_v46 = vadd.f32 %v10048_v5, %v10064_v34  ;;  %vm4996_vm4 = vcmp.gt.f32.partialorder %v10116_v12, 0.0 }
 0x44b   :  { %v10308_v42 = vadd.f32 %v10048_v5, %v11550_v56  ;;  %v10312_v29 = vadd.f32 %v10048_v5, %v11552_v38  ;;  %v11554_v2 = vld [vmem:[#allocation91_spill] sm:$0xff]  ;;  %v10324_v26 = vadd.f32 %v10048_v5, %v10068_v32  ;;  %v10328_v56 = vadd.f32 %v10048_v5, %v10072_v60 }
 0x44c   :  { %11547 = vst [vmem:[#allocation5_spill] sm:$0xff] %v10300_v51  ;;  %11549 = vst [vmem:[#allocation97_spill] sm:$0xff] %v10304_v28  ;;  %v10316_v41 = vadd.f32 %v10048_v5, %v11554_v2  ;;  %v10332_v38 = vadd.f32 %v10048_v5, %v10076_v62  ;;  %vm4997_vm15 = vcmp.gt.f32.partialorder %v10120_v52, 0.0  ;;  %v10345_v34 = vadd.f32 %v10048_v5, %v10080_v25 }
 0x44d   :  { %11551 = vst [vmem:[#allocation7_spill] sm:$0xff] %v10308_v42  ;;  %11553 = vst [vmem:[#allocation98_spill] sm:$0xff] %v10312_v29  ;;  %vm4998_vm12 = vcmp.gt.f32.partialorder %v10124_v9, 0.0  ;;  %v5117_v32 = vmul.f32 0.01, %v10088_v39  ;;  %v10353_v2 = vadd.f32 %v10048_v5, %v10084_v35  ;;  %vm4999_vm10 = vcmp.gt.f32.partialorder %v10128_v20, 0.0 }
 0x44e   :  { %11555 = vst [vmem:[#allocation11_spill] sm:$0xff] %v10316_v41  ;;  %11556 = vst [vmem:[#allocation99_spill] sm:$0xff] %v10320_v46  ;;  %v5118_v60 = vmul.f32 0.01, %v10092_v61  ;;  %v5119_v62 = vmul.f32 0.01, %v10096_v63 }
 0x44f   :  { %11557 = vst [vmem:[#allocation12_spill] sm:$0xff] %v10324_v26  ;;  %11558 = vst [vmem:[#allocation100_spill] sm:$0xff] %v10328_v56  ;;  %v5121_v56 = vmul.f32 0.01, %v10104_v7  ;;  %v5122_v25 = vmul.f32 0.01, %v10108_v53  ;;  %v5245_v5 = vsel %vm4989_vm6, %v10088_v39, %v5117_v32 }
 0x450   :  { %11559 = vst [vmem:[#allocation13_spill] sm:$0xff] %v10332_v38  ;;  %11560 = vst [vmem:[#allocation44_spill] sm:$0xff] %v10345_v34  ;;  %v5120_v38 = vmul.f32 0.01, %v10100_v0  ;;  %vm5000_vm0 = vcmp.gt.f32.partialorder %v10132_v23, 0.0  ;;  %vm5001_vm7 = vcmp.gt.f32.partialorder %v10136_v43, 0.0  ;;  %v5246_v29 = vsel %vm4990_vm9, %v10092_v61, %v5118_v60 }
 0x451   :  { %11561 = vst [vmem:[#allocation15_spill] sm:$0xff] %v10353_v2  ;;  %v5123_v34 = vmul.f32 0.01, %v10112_v55  ;;  %v5124_v26 = vmul.f32 0.01, %v10116_v12  ;;  %5373 = vst [vmem:[%s11021_s5 + $0x200] sm:$0xff] %v5245_v5  ;;  %v5247_v28 = vsel %vm4991_vm2, %v10096_v63, %v5119_v62 }
 0x452   :  { %v5125_v46 = vmul.f32 0.01, %v10120_v52  ;;  %v5126_v35 = vmul.f32 0.01, %v10124_v9  ;;  %v10369_v2 = vmul.f32 0.01, %v10128_v20  ;;  %v5248_v51 = vsel %vm4992_vm3, %v10100_v0, %v5120_v38 }
 0x453   :  { %v10372_v41 = vmul.f32 0.01, %v10132_v23  ;;  %vm5002_vm13 = vcmp.gt.f32.partialorder %v10140_v8, 0.0  ;;  %v10382_v39 = vmul.f32 0.01, %v10136_v43  ;;  %5374 = vst [vmem:[%s11021_s5 + $0x208] sm:$0xff] %v5246_v29 }
 0x454   :  { %v10385_v32 = vmul.f32 0.01, %v10140_v8  ;;  %v10388_v42 = vmul.f32 0.01, %v10144_v11  ;;  %vm5003_vm1 = vcmp.gt.f32.partialorder %v10144_v11, 0.0  ;;  %5375 = vst [vmem:[%s11021_s5 + $0x210] sm:$0xff] %v5247_v28 }
 0x455   :  { %v10398_v61 = vmul.f32 0.01, %v10148_v21  ;;  %v10401_v60 = vmul.f32 0.01, %v10152_v45  ;;  %v10404_v5 = vmul.f32 0.01, %v10156_v50 }
 0x456   :  { %vm5004_vm8 = vcmp.gt.f32.partialorder %v10148_v21, 0.0  ;;  %v10414_v63 = vmul.f32 0.01, %v10160_v33  ;;  %v10417_v29 = vmul.f32 0.01, %v10164_v1  ;;  %5376 = vst [vmem:[%s11021_s5 + $0x218] sm:$0xff] %v5248_v51 }
 0x457   :  { %11562 = vst [vmem:[#allocation53_spill] sm:$0xff] %v10404_v5  ;;  %v10420_v62 = vmul.f32 0.01, %v10168_v58  ;;  %v5249_v5 = vsel %vm4993_vm11, %v10104_v7, %v5121_v56  ;;  %vm5005_vm6 = vcmp.gt.f32.partialorder %v10152_v45, 0.0  ;;  %v10430_v0 = vmul.f32 0.01, %v10172_v17 }
 0x458   :  { %v10433_v28 = vmul.f32 0.01, %v10176_v57  ;;  %v10436_v38 = vmul.f32 0.01, %v10180_v14  ;;  %5377 = vst [vmem:[%s11021_s5 + $0x220] sm:$0xff] %v5249_v5  ;;  %vm5006_vm9 = vcmp.gt.f32.partialorder %v10156_v50, 0.0 }
 0x459   :  { %11563 = vst [vmem:[#allocation66_spill] sm:$0xff] %v10420_v62  ;;  %v5250_v62 = vsel %vm4994_vm14, %v10108_v53, %v5122_v25  ;;  %v10446_v7 = vmul.f32 0.01, %v10184_v24  ;;  %v10449_v51 = vmul.f32 0.01, %v10188_v30  ;;  %vm5007_vm2 = vcmp.gt.f32.partialorder %v10160_v33, 0.0 }
 0x45a   :  { %11564 = vst [vmem:[#allocation45_spill] sm:$0xff] %v10436_v38  ;;  %v10452_v56 = vmul.f32 0.01, %v10192_v40  ;;  %v5251_v38 = vsel %vm4995_vm5, %v10112_v55, %v5123_v34  ;;  %5378 = vst [vmem:[%s11021_s5 + $0x228] sm:$0xff] %v5250_v62  ;;  %v10462_v53 = vmul.f32 0.01, %v10196_v49 }
 0x45b   :  { %v10465_v25 = vmul.f32 0.01, %v10200_v4  ;;  %v10468_v5 = vmul.f32 0.01, %v10204_v18  ;;  %5379 = vst [vmem:[%s11021_s5 + $0x230] sm:$0xff] %v5251_v38  ;;  %vm5008_vm3 = vcmp.gt.f32.partialorder %v10164_v1, 0.0 }
 0x45c   :  { %11565 = vst [vmem:[#allocation84_spill] sm:$0xff] %v10452_v56  ;;  %v5252_v56 = vsel %vm4996_vm4, %v10116_v12, %v5124_v26  ;;  %v10480_v55 = vmul.f32 0.01, %v10208_v3  ;;  %v10483_v34 = vmul.f32 0.01, %v10212_v22  ;;  %v5253_v12 = vsel %vm4997_vm15, %v10120_v52, %v5125_v46 }
 0x45d   :  { %v10486_v62 = vmul.f32 0.01, %v10216_v48  ;;  %5380 = vst [vmem:[%s11021_s5 + $0x238] sm:$0xff] %v5252_v56  ;;  %vm5011_vm5 = vcmp.gt.f32.partialorder %v10176_v57, 0.0  ;;  %v10499_v26 = vmul.f32 0.01, %v10220_v27  ;;  %v5254_v46 = vsel %vm4998_vm12, %v10124_v9, %v5126_v35 }
 0x45e   :  { %v10502_v38 = vmul.f32 0.01, %v10224_v13  ;;  %v10505_v52 = vmul.f32 0.01, %v10228_v19  ;;  %5381 = vst [vmem:[%s11021_s5 + $0x240] sm:$0xff] %v5253_v12  ;;  %vm5015_vm15 = vcmp.gt.f32.partialorder %v10192_v40, 0.0  ;;  %v5255_v35 = vsel %vm4999_vm10, %v10128_v20, %v10369_v2 }
 0x45f   :  { %v10518_v56 = vmul.f32 0.01, %v10232_v10  ;;  %v10524_v9 = vmul.f32 0.01, %v10240_v59  ;;  %5382 = vst [vmem:[%s11021_s5 + $0x248] sm:$0xff] %v5254_v46  ;;  %vm5019_vm12 = vcmp.gt.f32.partialorder %v10208_v3, 0.0  ;;  %v5256_v2 = vsel %vm5000_vm0, %v10132_v23, %v10372_v41 }
 0x460   :  { %11566 = vst [vmem:[#allocation25_spill] sm:$0xff] %v10505_v52  ;;  %v10521_v52 = vmul.f32 0.01, %v10236_v31  ;;  %v10538_v12 = vmul.f32 0.01, %v10244_v37  ;;  %5383 = vst [vmem:[%s11021_s5 + $0x250] sm:$0xff] %v5255_v35  ;;  %v5257_v41 = vsel %vm5001_vm7, %v10136_v43, %v10382_v39  ;;  %v5258_v39 = vsel %vm5002_vm13, %v10140_v8, %v10385_v32 }
 0x461   :  { %11567 = vst [vmem:[#allocation32_spill] sm:$0xff] %v10524_v9  ;;  %v10541_v9 = vmul.f32 0.01, %v10248_v47  ;;  %v10544_v20 = vmul.f32 0.01, %v10252_v36  ;;  %vm5023_vm10 = vcmp.gt.f32.partialorder %v10224_v13, 0.0  ;;  %v5259_v32 = vsel %vm5003_vm1, %v10144_v11, %v10388_v42 }
 0x462   :  { %v10558_v46 = vmul.f32 0.01, %v10256_v44  ;;  %v10564_v23 = vmul.f32 0.01, %v10264_v54  ;;  %5384 = vst [vmem:[%s11021_s5 + $0x258] sm:$0xff] %v5256_v2  ;;  %vm5027_vm0 = vcmp.gt.f32.partialorder %v10240_v59, 0.0  ;;  %v5260_v42 = vsel %vm5004_vm8, %v10148_v21, %v10398_v61 }
 0x463   :  { %11568 = vst [vmem:[#allocation34_spill] sm:$0xff] %v10544_v20  ;;  %v10561_v20 = vmul.f32 0.01, %v10260_v16  ;;  %v10578_v35 = vmul.f32 0.01, %v10268_v6  ;;  %5385 = vst [vmem:[%s11021_s5 + $0x260] sm:$0xff] %v5257_v41  ;;  %v5261_v61 = vsel %vm5005_vm6, %v10152_v45, %v10401_v60 }
 0x464   :  { %11569 = vst [vmem:[#allocation36_spill] sm:$0xff] %v10558_v46  ;;  %11571 = vst [vmem:[#allocation22_spill] sm:$0xff] %v10564_v23  ;;  %v11573_v23 = vld [vmem:[#allocation93_spill] sm:$0xff]  ;;  %v11575_v46 = vld [vmem:[#allocation3_spill] sm:$0xff]  ;;  %vm5031_vm7 = vcmp.gt.f32.partialorder %v10256_v44, 0.0  ;;  %vm11608_vm14 = vcmp.gt.f32.partialorder %v10172_v17, 0.0 }
 0x465   :  { %11570 = vst [vmem:[#allocation48_spill] sm:$0xff] %v10561_v20  ;;  %11572 = vst [vmem:[#allocation40_spill] sm:$0xff] %v10578_v35  ;;  %v10581_v20 = vmul.f32 0.01, %v11573_v23  ;;  %v10584_v43 = vmul.f32 0.01, %v11575_v46 }
 0x466   :  { %v11577_v2 = vld [vmem:[#allocation4_spill] sm:$0xff]  ;;  %v11581_v36 = vld [vmem:[#allocation95_spill] sm:$0xff]  ;;  %5386 = vst [vmem:[%s11021_s5 + $0x268] sm:$0xff] %v5258_v39  ;;  %vm5035_vm13 = vcmp.gt.f32.partialorder %v11573_v23, 0.0  ;;  %5387 = vst [vmem:[%s11021_s5 + $0x270] sm:$0xff] %v5259_v32 }
 0x467   :  { %11574 = vst [vmem:[#allocation23_spill] sm:$0xff] %v10581_v20  ;;  %11576 = vst [vmem:[#allocation24_spill] sm:$0xff] %v10584_v43  ;;  %v10598_v20 = vmul.f32 0.01, %v11577_v2  ;;  %v11579_v43 = vld [vmem:[#allocation94_spill] sm:$0xff]  ;;  %v11583_v41 = vld [vmem:[#allocation96_spill] sm:$0xff] }
 0x468   :  { %v10601_v35 = vmul.f32 0.01, %v11579_v43  ;;  %v10604_v8 = vmul.f32 0.01, %v11581_v36  ;;  %vm5039_vm1 = vcmp.gt.f32.partialorder %v11581_v36, 0.0  ;;  %v11588_v39 = vld [vmem:[#allocation97_spill] sm:$0xff] }
 0x469   :  { %11578 = vst [vmem:[#allocation26_spill] sm:$0xff] %v10598_v20  ;;  %v11586_v20 = vld [vmem:[#allocation5_spill] sm:$0xff]  ;;  %v11592_v43 = vld [vmem:[#allocation98_spill] sm:$0xff]  ;;  %5388 = vst [vmem:[%s11021_s5 + $0x278] sm:$0xff] %v5260_v42  ;;  %vm5043_vm8 = vcmp.gt.f32.partialorder %v11588_v39, 0.0 }
 0x46a   :  { %11580 = vst [vmem:[#allocation27_spill] sm:$0xff] %v10601_v35  ;;  %11582 = vst [vmem:[#allocation28_spill] sm:$0xff] %v10604_v8  ;;  %v10618_v35 = vmul.f32 0.01, %v11583_v41  ;;  %v10621_v8 = vmul.f32 0.01, %v10296_v15 }
 0x46b   :  { %v10624_v11 = vmul.f32 0.01, %v11586_v20  ;;  %v10644_v21 = vmul.f32 0.01, %v11592_v43  ;;  %v11594_v32 = vld [vmem:[#allocation11_spill] sm:$0xff]  ;;  %v11598_v20 = vld [vmem:[#allocation12_spill] sm:$0xff] }
 0x46c   :  { %11584 = vst [vmem:[#allocation29_spill] sm:$0xff] %v10618_v35  ;;  %11585 = vst [vmem:[#allocation30_spill] sm:$0xff] %v10621_v8  ;;  %v10638_v8 = vmul.f32 0.01, %v11588_v39  ;;  %v10664_v45 = vmul.f32 0.01, %v11598_v20 }
 0x46d   :  { %11587 = vst [vmem:[#allocation31_spill] sm:$0xff] %v10624_v11  ;;  %v11590_v11 = vld [vmem:[#allocation7_spill] sm:$0xff]  ;;  %11593 = vst [vmem:[#allocation38_spill] sm:$0xff] %v10644_v21  ;;  %v11600_v60 = vld [vmem:[#allocation53_spill] sm:$0xff]  ;;  %vm5048_vm11 = vcmp.gt.f32.partialorder %v11598_v20, 0.0 }
 0x46e   :  { %11589 = vst [vmem:[#allocation33_spill] sm:$0xff] %v10638_v8  ;;  %v10641_v35 = vmul.f32 0.01, %v11590_v11  ;;  %v11596_v21 = vld [vmem:[#allocation99_spill] sm:$0xff]  ;;  %11599 = vst [vmem:[#allocation43_spill] sm:$0xff] %v10664_v45  ;;  %v5262_v42 = vsel %vm5006_vm9, %v10156_v50, %v11600_v60  ;;  %v11603_v43 = vld [vmem:[#allocation44_spill] sm:$0xff] }
 0x46f   :  { %v10661_v8 = vmul.f32 0.01, %v11596_v21  ;;  %5389 = vst [vmem:[%s11021_s5 + $0x280] sm:$0xff] %v5261_v61  ;;  %vm5047_vm6 = vcmp.gt.f32.partialorder %v11596_v21, 0.0  ;;  %v10684_v50 = vmul.f32 0.01, %v11603_v43  ;;  %v5263_v61 = vsel %vm5007_vm2, %v10160_v33, %v10414_v63 }
 0x470   :  { %11591 = vst [vmem:[#allocation35_spill] sm:$0xff] %v10641_v35  ;;  %v10658_v35 = vmul.f32 0.01, %v11594_v32  ;;  %v11601_v32 = vld [vmem:[#allocation100_spill] sm:$0xff]  ;;  %5390 = vst [vmem:[%s11021_s5 + $0x288] sm:$0xff] %v5262_v42  ;;  %vm5051_vm9 = vcmp.gt.f32.partialorder %v11603_v43, 0.0  ;;  %v5266_v63 = vsel %vm11608_vm14, %v10172_v17, %v10430_v0  ;;  %v5267_v42 = vsel %vm5011_vm5, %v10176_v57, %v10433_v28 }
 0x471   :  { %11597 = vst [vmem:[#allocation41_spill] sm:$0xff] %v10661_v8  ;;  %v10678_v8 = vmul.f32 0.01, %v11601_v32  ;;  %11604 = vst [vmem:[#allocation46_spill] sm:$0xff] %v10684_v50  ;;  %v11605_v60 = vld [vmem:[#allocation15_spill] sm:$0xff]  ;;  %v5264_v50 = vsel %vm5008_vm3, %v10164_v1, %v10417_v29  ;;  %vm11607_vm2 = vcmp.gt.f32.partialorder %v10168_v58, 0.0 }
 0x472   :  { %11595 = vst [vmem:[#allocation39_spill] sm:$0xff] %v10658_v35  ;;  %v11602_v35 = vld [vmem:[#allocation13_spill] sm:$0xff]  ;;  %vm5052_vm4 = vcmp.gt.f32.partialorder %v11605_v60, 0.0  ;;  %v10696_v32 = vmul.f32 0.01, %v11605_v60  ;;  %5391 = vst [vmem:[%s11021_s5 + $0x290] sm:$0xff] %v5263_v61 }
 0x473   :  { %v10681_v45 = vmul.f32 0.01, %v11602_v35  ;;  %v11606_v35 = vld [vmem:[#allocation66_spill] sm:$0xff]  ;;  %v11609_v1 = vld [vmem:[#allocation45_spill] sm:$0xff]  ;;  %vm11610_vm3 = vcmp.gt.f32.partialorder %v10180_v14, 0.0  ;;  %vm11612_vm14 = vcmp.gt.f32.partialorder %v10188_v30, 0.0 }
 0x474   :  { %v5265_v33 = vsel %vm11607_vm2, %v10168_v58, %v11606_v35  ;;  %v5268_v29 = vsel %vm11610_vm3, %v10180_v14, %v11609_v1  ;;  %vm11611_vm2 = vcmp.gt.f32.partialorder %v10184_v24, 0.0  ;;  %v5270_v17 = vsel %vm11612_vm14, %v10188_v30, %v10449_v51  ;;  %5392 = vst [vmem:[%s11021_s5 + $0x298] sm:$0xff] %v5264_v50  ;;  %5394 = vst [vmem:[%s11021_s5 + $0x2a8] sm:$0xff] %v5266_v63  ;;  %v11613_v57 = vld [vmem:[#allocation84_spill] sm:$0xff]  ;;  %v11650_v61 = vld [vmem:[#allocation31_spill] sm:$0xff] }
 0x475   :  { %v5269_v58 = vsel %vm11611_vm2, %v10184_v24, %v10446_v7  ;;  %5393 = vst [vmem:[%s11021_s5 + $0x2a0] sm:$0xff] %v5265_v33  ;;  %v5271_v14 = vsel %vm5015_vm15, %v10192_v40, %v11613_v57  ;;  %vm11614_vm5 = vcmp.gt.f32.partialorder %v10196_v49, 0.0  ;;  %vm11615_vm3 = vcmp.gt.f32.partialorder %v10200_v4, 0.0  ;;  %5395 = vst [vmem:[%s11021_s5 + $0x2b0] sm:$0xff] %v5267_v42  ;;  %v11627_v7 = vld [vmem:[#allocation34_spill] sm:$0xff]  ;;  %v11628_v51 = vld [vmem:[#allocation92_spill] sm:$0xff] }
 0x476   :  { %v5272_v24 = vsel %vm11614_vm5, %v10196_v49, %v10462_v53  ;;  %v5273_v30 = vsel %vm11615_vm3, %v10200_v4, %v10465_v25  ;;  %vm11616_vm2 = vcmp.gt.f32.partialorder %v10204_v18, 0.0  ;;  %5396 = vst [vmem:[%s11021_s5 + $0x2b8] sm:$0xff] %v5268_v29  ;;  %5397 = vst [vmem:[%s11021_s5 + $0x2c0] sm:$0xff] %v5269_v58  ;;  %v5275_v40 = vsel %vm5019_vm12, %v10208_v3, %v10480_v55  ;;  %v11651_v33 = vld [vmem:[#allocation5_spill] sm:$0xff]  ;;  %v11656_v1 = vld [vmem:[#allocation38_spill] sm:$0xff] }
 0x477   :  { %v5274_v0 = vsel %vm11616_vm2, %v10204_v18, %v10468_v5  ;;  %5398 = vst [vmem:[%s11021_s5 + $0x2c8] sm:$0xff] %v5270_v17  ;;  %vm11617_vm15 = vcmp.gt.f32.partialorder %v10212_v22, 0.0  ;;  %vm11618_vm14 = vcmp.gt.f32.partialorder %v10216_v48, 0.0  ;;  %vm11619_vm5 = vcmp.gt.f32.partialorder %v10220_v27, 0.0  ;;  %5399 = vst [vmem:[%s11021_s5 + $0x2d0] sm:$0xff] %v5271_v14  ;;  %v11633_v5 = vld [vmem:[#allocation22_spill] sm:$0xff] }
 0x478   :  { %v5276_v49 = vsel %vm11617_vm15, %v10212_v22, %v10483_v34  ;;  %v5277_v4 = vsel %vm11618_vm14, %v10216_v48, %v10486_v62  ;;  %v5278_v18 = vsel %vm11619_vm5, %v10220_v27, %v10499_v26  ;;  %5400 = vst [vmem:[%s11021_s5 + $0x2d8] sm:$0xff] %v5272_v24  ;;  %5401 = vst [vmem:[%s11021_s5 + $0x2e0] sm:$0xff] %v5273_v30  ;;  %v11620_v22 = vld [vmem:[#allocation25_spill] sm:$0xff]  ;;  %vm11621_vm12 = vcmp.gt.f32.partialorder %v10228_v19, 0.0  ;;  %v11635_v34 = vld [vmem:[#allocation40_spill] sm:$0xff] }
 0x479   :  { %5402 = vst [vmem:[%s11021_s5 + $0x2e8] sm:$0xff] %v5274_v0  ;;  %v5279_v3 = vsel %vm5023_vm10, %v10224_v13, %v10502_v38  ;;  %v5280_v48 = vsel %vm11621_vm12, %v10228_v19, %v11620_v22  ;;  %vm11622_vm3 = vcmp.gt.f32.partialorder %v10232_v10, 0.0  ;;  %vm11623_vm2 = vcmp.gt.f32.partialorder %v10236_v31, 0.0  ;;  %5403 = vst [vmem:[%s11021_s5 + $0x2f0] sm:$0xff] %v5275_v40  ;;  %v11624_v13 = vld [vmem:[#allocation32_spill] sm:$0xff]  ;;  %v11640_v26 = vld [vmem:[#allocation26_spill] sm:$0xff] }
 0x47a   :  { %v5281_v27 = vsel %vm11622_vm3, %v10232_v10, %v10518_v56  ;;  %v5282_v28 = vsel %vm11623_vm2, %v10236_v31, %v10521_v52  ;;  %5404 = vst [vmem:[%s11021_s5 + $0x2f8] sm:$0xff] %v5276_v49  ;;  %5405 = vst [vmem:[%s11021_s5 + $0x300] sm:$0xff] %v5277_v4  ;;  %v5283_v19 = vsel %vm5027_vm0, %v10240_v59, %v11624_v13  ;;  %vm11625_vm10 = vcmp.gt.f32.partialorder %v10244_v37, 0.0  ;;  %v11630_v59 = vld [vmem:[#allocation36_spill] sm:$0xff]  ;;  %v11642_v52 = vld [vmem:[#allocation27_spill] sm:$0xff] }
 0x47b   :  { %5406 = vst [vmem:[%s11021_s5 + $0x308] sm:$0xff] %v5278_v18  ;;  %v5284_v10 = vsel %vm11625_vm10, %v10244_v37, %v10538_v12  ;;  %vm11626_vm15 = vcmp.gt.f32.partialorder %v10248_v47, 0.0  ;;  %vm11629_vm14 = vcmp.gt.f32.partialorder %v11628_v51, 0.0  ;;  %5407 = vst [vmem:[%s11021_s5 + $0x310] sm:$0xff] %v5279_v3  ;;  %v5287_v37 = vsel %vm5031_vm7, %v10256_v44, %v11630_v59  ;;  %v11637_v44 = vld [vmem:[#allocation23_spill] sm:$0xff]  ;;  %v11643_v56 = vld [vmem:[#allocation94_spill] sm:$0xff] }
 0x47c   :  { %v5285_v31 = vsel %vm11626_vm15, %v10248_v47, %v10541_v9  ;;  %v5286_v53 = vsel %vm11629_vm14, %v11628_v51, %v11627_v7  ;;  %5408 = vst [vmem:[%s11021_s5 + $0x318] sm:$0xff] %v5280_v48  ;;  %5409 = vst [vmem:[%s11021_s5 + $0x320] sm:$0xff] %v5281_v27  ;;  %v11631_v47 = vld [vmem:[#allocation48_spill] sm:$0xff]  ;;  %vm11632_vm0 = vcmp.gt.f32.partialorder %v10260_v16, 0.0  ;;  %vm11634_vm5 = vcmp.gt.f32.partialorder %v10264_v54, 0.0  ;;  %v11657_v29 = vld [vmem:[#allocation98_spill] sm:$0xff] }
 0x47d   :  { %5410 = vst [vmem:[%s11021_s5 + $0x328] sm:$0xff] %v5282_v28  ;;  %v5288_v25 = vsel %vm11632_vm0, %v10260_v16, %v11631_v47  ;;  %v5289_v55 = vsel %vm11634_vm5, %v10264_v54, %v11633_v5  ;;  %vm11636_vm12 = vcmp.gt.f32.partialorder %v10268_v6, 0.0  ;;  %5411 = vst [vmem:[%s11021_s5 + $0x330] sm:$0xff] %v5283_v19  ;;  %v5291_v16 = vsel %vm5035_vm13, %v11573_v23, %v11637_v44  ;;  %v11638_v54 = vld [vmem:[#allocation24_spill] sm:$0xff]  ;;  %v11646_v23 = vld [vmem:[#allocation29_spill] sm:$0xff] }
 0x47e   :  { %v5290_v62 = vsel %vm11636_vm12, %v10268_v6, %v11635_v34  ;;  %5412 = vst [vmem:[%s11021_s5 + $0x338] sm:$0xff] %v5284_v10  ;;  %5413 = vst [vmem:[%s11021_s5 + $0x340] sm:$0xff] %v5285_v31  ;;  %vm11639_vm7 = vcmp.gt.f32.partialorder %v11575_v46, 0.0  ;;  %vm11641_vm3 = vcmp.gt.f32.partialorder %v11577_v2, 0.0  ;;  %vm11644_vm2 = vcmp.gt.f32.partialorder %v11643_v56, 0.0  ;;  %v11645_v12 = vld [vmem:[#allocation28_spill] sm:$0xff] }
 0x47f   :  { %5414 = vst [vmem:[%s11021_s5 + $0x348] sm:$0xff] %v5286_v53  ;;  %v5292_v6 = vsel %vm11639_vm7, %v11575_v46, %v11638_v54  ;;  %v5293_v38 = vsel %vm11641_vm3, %v11577_v2, %v11640_v26  ;;  %v5294_v9 = vsel %vm11644_vm2, %v11643_v56, %v11642_v52  ;;  %5415 = vst [vmem:[%s11021_s5 + $0x350] sm:$0xff] %v5287_v37  ;;  %vm11647_vm13 = vcmp.gt.f32.partialorder %v11583_v41, 0.0  ;;  %v11648_v2 = vld [vmem:[#allocation30_spill] sm:$0xff]  ;;  %v11659_v17 = vld [vmem:[#allocation39_spill] sm:$0xff] }
 0x480   :  { %5416 = vst [vmem:[%s11021_s5 + $0x358] sm:$0xff] %v5288_v25  ;;  %5417 = vst [vmem:[%s11021_s5 + $0x360] sm:$0xff] %v5289_v55  ;;  %v5295_v46 = vsel %vm5039_vm1, %v11581_v36, %v11645_v12  ;;  %v5296_v35 = vsel %vm11647_vm13, %v11583_v41, %v11646_v23  ;;  %vm11649_vm10 = vcmp.gt.f32.partialorder %v10296_v15, 0.0  ;;  %vm11652_vm15 = vcmp.gt.f32.partialorder %v11651_v33, 0.0  ;;  %v11653_v36 = vld [vmem:[#allocation33_spill] sm:$0xff]  ;;  %v11654_v41 = vld [vmem:[#allocation35_spill] sm:$0xff] }
 0x481   :  { %5418 = vst [vmem:[%s11021_s5 + $0x368] sm:$0xff] %v5290_v62  ;;  %v5297_v50 = vsel %vm11649_vm10, %v10296_v15, %v11648_v2  ;;  %v5298_v63 = vsel %vm11652_vm15, %v11651_v33, %v11650_v61  ;;  %5419 = vst [vmem:[%s11021_s5 + $0x370] sm:$0xff] %v5291_v16  ;;  %v5299_v15 = vsel %vm5043_vm8, %v11588_v39, %v11653_v36  ;;  %vm11655_vm1 = vcmp.gt.f32.partialorder %v11590_v11, 0.0  ;;  %v11660_v57 = vld [vmem:[#allocation11_spill] sm:$0xff]  ;;  %v11664_v0 = vld [vmem:[#allocation100_spill] sm:$0xff] }
 0x482   :  { %5420 = vst [vmem:[%s11021_s5 + $0x378] sm:$0xff] %v5292_v6  ;;  %5421 = vst [vmem:[%s11021_s5 + $0x380] sm:$0xff] %v5293_v38  ;;  %v5300_v42 = vsel %vm11655_vm1, %v11590_v11, %v11654_v41  ;;  %vm11658_vm14 = vcmp.gt.f32.partialorder %v11657_v29, 0.0  ;;  %vm11661_vm0 = vcmp.gt.f32.partialorder %v11660_v57, 0.0  ;;  %v11662_v11 = vld [vmem:[#allocation41_spill] sm:$0xff]  ;;  %v11663_v24 = vld [vmem:[#allocation43_spill] sm:$0xff] }
 0x483   :  { %5422 = vst [vmem:[%s11021_s5 + $0x388] sm:$0xff] %v5294_v9  ;;  %v5301_v58 = vsel %vm11658_vm14, %v11657_v29, %v11656_v1  ;;  %v5302_v14 = vsel %vm11661_vm0, %v11660_v57, %v11659_v17  ;;  %5423 = vst [vmem:[%s11021_s5 + $0x390] sm:$0xff] %v5295_v46  ;;  %v5303_v39 = vsel %vm5047_vm6, %v11596_v21, %v11662_v11  ;;  %vm11665_vm8 = vcmp.gt.f32.partialorder %v11664_v0, 0.0  ;;  %v11666_v49 = vld [vmem:[#allocation13_spill] sm:$0xff] }
 0x484   :  { %5424 = vst [vmem:[%s11021_s5 + $0x398] sm:$0xff] %v5296_v35  ;;  %5425 = vst [vmem:[%s11021_s5 + $0x3a0] sm:$0xff] %v5297_v50  ;;  %v5304_v30 = vsel %vm5048_vm11, %v11598_v20, %v11663_v24  ;;  %v5305_v40 = vsel %vm11665_vm8, %v11664_v0, %v10678_v8  ;;  %vm11667_vm5 = vcmp.gt.f32.partialorder %v11666_v49, 0.0  ;;  %v11668_v20 = vld [vmem:[#allocation46_spill] sm:$0xff]  ;;  %v5308_v21 = vsel %vm5052_vm4, %v11605_v60, %v10696_v32 }
 0x485   :  { %5426 = vst [vmem:[%s11021_s5 + $0x3a8] sm:$0xff] %v5298_v63  ;;  %v5306_v4 = vsel %vm11667_vm5, %v11666_v49, %v10681_v45  ;;  %5427 = vst [vmem:[%s11021_s5 + $0x3b0] sm:$0xff] %v5299_v15  ;;  %v5307_v8 = vsel %vm5051_vm9, %v11603_v43, %v11668_v20 }
 0x486   :  { %5428 = vst [vmem:[%s11021_s5 + $0x3b8] sm:$0xff] %v5300_v42  ;;  %5429 = vst [vmem:[%s11021_s5 + $0x3c0] sm:$0xff] %v5301_v58 }
 0x487   :  { %5430 = vst [vmem:[%s11021_s5 + $0x3c8] sm:$0xff] %v5302_v14  ;;  %5431 = vst [vmem:[%s11021_s5 + $0x3d0] sm:$0xff] %v5303_v39 }
 0x488   :  { %5432 = vst [vmem:[%s11021_s5 + $0x3d8] sm:$0xff] %v5304_v30  ;;  %5433 = vst [vmem:[%s11021_s5 + $0x3e0] sm:$0xff] %v5305_v40 }
 0x489   :  { %5434 = vst [vmem:[%s11021_s5 + $0x3e8] sm:$0xff] %v5306_v4  ;;  %5435 = vst [vmem:[%s11021_s5 + $0x3f0] sm:$0xff] %v5307_v8 }
 0x48a   :  { %5436 = vst [vmem:[%s11021_s5 + $0x3f8] sm:$0xff] %v5308_v21 }

// kernel: mutil_stride_module_v2_1.7
= control target key start
LH: loop header
LB: loop body
LE: loop exit
PB: predicated region body
PF: predicated region fallthrough
CT: control target
= control target key end

     0   :  { %v519_v1 = vmov 0   ;;  %vm208_vm0 = vcmask 1045504   ;;  %vm204_vm1 = vcmask 883712   ;;  %vm309_vm2 = vcmask 392192   ;;  %s733_s1 = inlined_call_operand.vmem [shape: bf16[108,432], index: 1, kind: input, shape index: {}]   ;;  %s734_s2 = inlined_call_operand.vmem [shape: f32[16,1], index: 2, kind: input, shape index: {}]   ;;  %s735_s0 = inlined_call_operand.vmem [shape: bf16[16,108], index: 0, kind: input, shape index: {}]   ;;  %s736_s3 = inlined_call_operand.vmem [shape: f32[16,1], index: 3, kind: input, shape index: {}]   ;;  %s737_s4 = inlined_call_operand.vmem [shape: f32[16,1], index: 4, kind: input, shape index: {}]   ;;  %s738_s5 = inlined_call_operand.vmem [shape: f32[16,432], index: 5, kind: output, shape index: {}]  }
   0x1   :  { %v472_v0 = vld [vmem:[%s733_s1 + $0x4] ss:$16 sps:$4 sm:$0xff]   ;;  %253 = vmatprep.mubr.bf16.mxu0 %v519_v1  ;;  %296 = vmatprep.mubr.bf16.mxu1 %v519_v1  ;;  %v474_v2 = vld [vmem:[%s733_s1 + $0xc] ss:$16 sps:$4 sm:$0xff]   ;;  %v476_v3 = vld [vmem:[%s733_s1] ss:$16 sps:$4 sm:$0xff]  }
   0x2   :  { %470 = vset.pattern.permute.xlu0 %v519_v1  ;;  %471 = vset.pattern.permute.xlu1 %v519_v1  ;;  %v477_v4 = vld [vmem:[%s733_s1 + $0x8] ss:$16 sps:$4 sm:$0xff]   ;;  %v478_v5 = vld [vmem:[%s733_s1 + $0x24] ss:$16 sps:$4 sm:$0xff]   ;;  %v480_v6 = vld [vmem:[%s733_s1 + $0x2c] ss:$16 sps:$4 sm:$0xff]  }
   0x3   :  { %221 = vmatprep.subr.bf16.mxu0 %v472_v0  ;;  %264 = vmatprep.subr.bf16.mxu1 %v474_v2  ;;  %v482_v7 = vld [vmem:[%s733_s1 + $0x20] ss:$16 sps:$4 sm:$0xff]   ;;  %v483_v8 = vld [vmem:[%s733_s1 + $0x28] ss:$16 sps:$4 sm:$0xff]   ;;  %v484_v9 = vld [vmem:[%s733_s1 + $0x44] ss:$16 sps:$4 sm:$0xff]  }
   0x4   :  { %222 = vmatpush1.bf16.msra.mxu0 %v476_v3  ;;  %265 = vmatpush1.bf16.msra.mxu1 %v477_v4  ;;  %v486_v10 = vld [vmem:[%s733_s1 + $0x4c] ss:$16 sps:$4 sm:$0xff]   ;;  %v488_v11 = vld [vmem:[%s733_s1 + $0x40] ss:$16 sps:$4 sm:$0xff]   ;;  %v489_v12 = vld [vmem:[%s733_s1 + $0x48] ss:$16 sps:$4 sm:$0xff]  }
   0x5   :  { %223 = vmatprep.subr.bf16.mxu0 %v478_v5  ;;  %266 = vmatprep.subr.bf16.mxu1 %v480_v6  ;;  %v490_v13 = vld [vmem:[%s733_s1 + $0x64] ss:$16 sps:$4 sm:$0xff]   ;;  %v492_v14 = vld [vmem:[%s733_s1 + $0x6c] ss:$16 sps:$4 sm:$0xff]   ;;  %v494_v15 = vld [vmem:[%s733_s1 + $0x60] ss:$16 sps:$4 sm:$0xff]  }
   0x6   :  { %v495_v16 = vld [vmem:[%s733_s1 + $0x68] ss:$16 sps:$4 sm:$0xff]   ;;  %v496_v17 = vld [vmem:[%s733_s1 + $0x84] ss:$16 sps:$4 sm:$0xff]   ;;  %v498_v18 = vld [vmem:[%s733_s1 + $0x8c] ss:$16 sps:$4 sm:$0xff]  }
   0x7   :  { %v500_v19 = vld [vmem:[%s733_s1 + $0x80] ss:$16 sps:$4 sm:$0xff]   ;;  %v501_v20 = vld [vmem:[%s733_s1 + $0x88] ss:$16 sps:$4 sm:$0xff]   ;;  %v502_v21 = vld [vmem:[%s733_s1 + $0xa4] ss:$16 sps:$4 sm:$0xff]  }
   0x8   :  { %224 = vmatpush1.bf16.msra.mxu0 %v482_v7  ;;  %267 = vmatpush1.bf16.msra.mxu1 %v483_v8  ;;  %v504_v22 = vld [vmem:[%s733_s1 + $0xac] ss:$16 sps:$4 sm:$0xff]   ;;  %v506_v23 = vld [vmem:[%s733_s1 + $0xa0] ss:$16 sps:$4 sm:$0xff]   ;;  %v507_v25 = vld [vmem:[%s733_s1 + $0xa8] ss:$16 sps:$4 sm:$0xff]  }
   0x9   :  { %225 = vmatprep.subr.bf16.mxu0 %v484_v9  ;;  %268 = vmatprep.subr.bf16.mxu1 %v486_v10  ;;  %v508_v24 = vld [vmem:[%s733_s1 + $0xc4] ss:$16 sps:$4 sm:$0x3f]   ;;  %v510_v26 = vld [vmem:[%s733_s1 + $0xcc] ss:$16 sps:$4 sm:$0x3f]  }
   0xa   :  { %v51_v27 = vld [vmem:[%s734_s2] sm:$0xff]  ;;  %v513_v29 = vld [vmem:[%s733_s1 + $0xc8] ss:$16 sps:$4 sm:$0x3f]  }
   0xb   :  { %v512_v28 = vld [vmem:[%s733_s1 + $0xc0] ss:$16 sps:$4 sm:$0x3f]   ;;  %55 = vperm.xlu0 %470, %v51_v27   ;;  %v52_v30 = vld [vmem:[%s734_s2 + $0x8] sm:$0xff]  ;;  %v216_v32 = vsel %vm208_vm0, %v513_v29, 0 }
   0xc   :  { %226 = vmatpush1.bf16.msra.mxu0 %v488_v11  ;;  %269 = vmatpush1.bf16.msra.mxu1 %v489_v12  ;;  %v210_v31 = vsel %vm208_vm0, %v512_v28, 0  ;;  %v514_v33 = vld [vmem:[%s735_s0] sm:$0xff]  }
   0xd   :  { %227 = vmatprep.subr.bf16.mxu0 %v490_v13  ;;  %270 = vmatprep.subr.bf16.mxu1 %v492_v14  ;;  %v350_v28 = vld [vmem:[%s736_s3] sm:$0xff] }
   0xf   :  { %60 = vperm.xlu0 %470, %v52_v30  }
  0x10   :  { %228 = vmatpush1.bf16.msra.mxu0 %v494_v15  ;;  %271 = vmatpush1.bf16.msra.mxu1 %v495_v16 }
  0x11   :  { %229 = vmatprep.subr.bf16.mxu0 %v496_v17  ;;  %272 = vmatprep.subr.bf16.mxu1 %v498_v18 }
  0x14   :  { %230 = vmatpush1.bf16.msra.mxu0 %v500_v19  ;;  %273 = vmatpush1.bf16.msra.mxu1 %v501_v20 }
  0x15   :  { %231 = vmatprep.subr.bf16.mxu0 %v502_v21  ;;  %274 = vmatprep.subr.bf16.mxu1 %v504_v22 }
  0x18   :  { %232 = vmatpush1.bf16.msra.mxu0 %v506_v23  ;;  %275 = vmatpush1.bf16.msra.mxu1 %v507_v25 }
  0x19   :  { %465 = vmatprep.subr.msk.bf16.mxu0 %vm208_vm0, %v508_v24  ;;  %467 = vmatprep.subr.msk.bf16.mxu1 %vm208_vm0, %v510_v26 }
  0x1c   :  { %234 = vmatpush1.bf16.msra.mxu0 %v210_v31  ;;  %277 = vmatpush1.bf16.msra.mxu1 %v216_v32  ;;  %v351_v31 = vld [vmem:[%s736_s3 + $0x8] sm:$0xff] }
  0x1f   :  { %466 = vmatmul.mubr.msk.bf16.vlgmr.msra.gmra.mrb[0].mxu0 %vm204_vm1, %v514_v33  ;;  %468 = vmatmul.mubr.msk.bf16.vlgmr.msra.gmra.mrb[0].mxu1 %vm204_vm1, %v514_v33 }
  0x8a   :  { %v56_v34 = vpop.permute.xlu0 %55 }
  0x8e   :  { %v61_v35 = vpop.permute.xlu0 %60 }
  0xf2   :  { %v255_v36 = vpop.f32.mrb[0].mxu0  ;;  %v298_v37 = vpop.f32.mrb[0].mxu1 }
  0xf3   :  { %v643_v38 = vadd.f32 %v255_v36, %v56_v34  ;;  %v645_v39 = vadd.f32 %v298_v37, %v56_v34  ;;  %v257_v40 = vpop.f32.mrb[1].mxu0  ;;  %v300_v41 = vpop.f32.mrb[1].mxu1 }
  0xf4   :  { %v647_v42 = vadd.f32 %v257_v40, %v56_v34  ;;  %v649_v43 = vadd.f32 %v300_v41, %v56_v34  ;;  %v259_v44 = vpop.f32.mrb[2].mxu0  ;;  %v302_v45 = vpop.f32.mrb[2].mxu1  ;;  %v359_v40 = vld [vmem:[%s737_s4 + $0x8] sm:$0xff] }
  0xf5   :  { %v320_v46 = vmul.f32 %v643_v38, %v643_v38  ;;  %v653_v47 = vadd.f32 %v259_v44, %v61_v35  ;;  %v261_v48 = vpop.f32.mrb[3].mxu0  ;;  %v304_v49 = vpop.f32.mrb[3].mxu1  ;;  %v322_v53 = vmul.f32 %v645_v39, %v645_v39  ;;  %v665_v55 = vadd.f32 %v302_v45, %v61_v35 }
  0xf6   :  { %v321_v50 = vmul.f32 %v647_v42, %v647_v42  ;;  %v657_v51 = vadd.f32 %v261_v48, %v61_v35  ;;  %v307_v52 = vadd.f32 %v647_v42, %v643_v38  ;;  %v323_v56 = vmul.f32 %v649_v43, %v649_v43 }
  0xf7   :  { %v324_v54 = vmul.f32 %v653_v47, %v653_v47  ;;  %v674_v61 = vadd.f32 %v304_v49, %v61_v35  ;;  %v310_v62 = vsel %vm309_vm2, %v649_v43, 0.0  ;;  %v326_v4 = vmul.f32 %v665_v55, %v665_v55  ;;  %v358_v35 = vld [vmem:[%s737_s4] sm:$0xff] }
  0xf8   :  { %v314_v57 = vadd.f32 %v657_v51, %v653_v47  ;;  %v325_v58 = vmul.f32 %v657_v51, %v657_v51  ;;  %v308_v59 = vadd.f32 %v307_v52, %v645_v39  ;;  %v328_v60 = vadd.f32 %v321_v50, %v320_v46 }
  0xf9   :  { %v330_v3 = vsel %vm309_vm2, %v323_v56, 0.0  ;;  %v316_v6 = vsel %vm309_vm2, %v674_v61, 0.0  ;;  %v327_v7 = vmul.f32 %v674_v61, %v674_v61 }
  0xfa   :  { %v311_v63 = vadd.f32 %v310_v62, %v308_v59  ;;  %v329_v0 = vadd.f32 %v328_v60, %v322_v53  ;;  %v315_v1 = vadd.f32 %v314_v57, %v665_v55  ;;  %v334_v2 = vadd.f32 %v325_v58, %v324_v54 }
  0xfb   :  { %v336_v10 = vsel %vm309_vm2, %v327_v7, 0.0 }
  0xfc   :  { %312 = vadd.xlane.f32.xlu1 %v311_v63  ;;  %v331_v5 = vadd.f32 %v330_v3, %v329_v0  ;;  %v317_v8 = vadd.f32 %v316_v6, %v315_v1  ;;  %v335_v9 = vadd.f32 %v334_v2, %v326_v4 }
  0xfe   :  { %332 = vadd.xlane.f32.xlu0 %v331_v5  ;;  %v337_v11 = vadd.f32 %v336_v10, %v335_v9 }
 0x100   :  { %318 = vadd.xlane.f32.xlu1 %v317_v8 }
 0x104   :  { %338 = vadd.xlane.f32.xlu1 %v337_v11 }
 0x189   :  { %v313_v12 = vpop.xlane.xlu1 %312 }
 0x18a   :  { %v340_v13 = vmul.f32 0.0023148148, %v313_v12 }
 0x18b   :  { %v333_v14 = vpop.xlane.xlu0 %332 }
 0x18c   :  { %v344_v15 = vmul.f32 %v340_v13, %v340_v13  ;;  %v342_v16 = vmul.f32 0.0023148148, %v333_v14 }
 0x18d   :  { %v319_v17 = vpop.xlane.xlu1 %318 }
 0x18e   :  { %v346_v18 = vsub.f32 %v342_v16, %v344_v15  ;;  %v341_v19 = vmul.f32 0.0023148148, %v319_v17 }
 0x190   :  { %v348_v20 = vmax.f32 %v346_v18, 0.0  ;;  %v345_v23 = vmul.f32 %v341_v19, %v341_v19 }
 0x191   :  { %v339_v21 = vpop.xlane.xlu1 %338 }
 0x192   :  { %v352_v22 = vadd.f32 1e-05, %v348_v20  ;;  %v343_v24 = vmul.f32 0.0023148148, %v339_v21 }
 0x194   :  { %515 = vrsqrt.f32 %v352_v22  ;;  %v347_v25 = vsub.f32 %v343_v24, %v345_v23 }
 0x196   :  { %v349_v26 = vmax.f32 %v347_v25, 0.0 }
 0x198   :  { %v353_v27 = vadd.f32 1e-05, %v349_v26 }
 0x19a   :  { %517 = vrsqrt.f32 %v353_v27 }
 0x19e   :  { %v516_v29 = vpop.eup %515 }
 0x19f   :  { %v356_v30 = vmul.f32 %v516_v29, %v350_v28 }
 0x1a1   :  { %366 = vperm.xlu1 %471, %v356_v30   ;;  %v360_v34 = vmul.f32 %v356_v30, %v340_v13 }
 0x1a3   :  { %v362_v36 = vsub.f32 %v358_v35, %v360_v34 }
 0x1a4   :  { %v518_v32 = vpop.eup %517 }
 0x1a5   :  { %v357_v33 = vmul.f32 %v518_v32, %v351_v31 }
 0x1a7   :  { %371 = vperm.xlu1 %471, %v357_v33   ;;  %v361_v37 = vmul.f32 %v357_v33, %v341_v19 }
 0x1a9   :  { %v363_v41 = vsub.f32 %v359_v40, %v361_v37 }
 0x1ab   :  { %384 = vperm.xlu1 %471, %v362_v36  }
 0x1af   :  { %389 = vperm.xlu1 %471, %v363_v41  }
 0x220   :  { %v367_v44 = vpop.permute.xlu1 %366 }
 0x221   :  { %v374_v46 = vmul.f32 %v367_v44, %v643_v38  ;;  %v375_v48 = vmul.f32 %v367_v44, %v647_v42  ;;  %v376_v49 = vmul.f32 %v367_v44, %v645_v39  ;;  %v377_v50 = vmul.f32 %v367_v44, %v649_v43 }
 0x226   :  { %v372_v45 = vpop.permute.xlu1 %371 }
 0x227   :  { %v378_v58 = vmul.f32 %v372_v45, %v653_v47  ;;  %v379_v59 = vmul.f32 %v372_v45, %v657_v51  ;;  %v380_v60 = vmul.f32 %v372_v45, %v665_v55  ;;  %v381_v43 = vmul.f32 %v372_v45, %v674_v61 }
 0x22a   :  { %v385_v52 = vpop.permute.xlu1 %384 }
 0x22b   :  { %v392_v53 = vadd.f32 %v385_v52, %v374_v46  ;;  %v393_v54 = vadd.f32 %v385_v52, %v375_v48  ;;  %v394_v56 = vadd.f32 %v385_v52, %v376_v49  ;;  %v395_v57 = vadd.f32 %v385_v52, %v377_v50 }
 0x22d   :  { %vm400_vm3 = vcmp.gt.f32.partialorder %v392_v53, 0.0  ;;  %vm401_vm4 = vcmp.gt.f32.partialorder %v393_v54, 0.0  ;;  %vm402_vm5 = vcmp.gt.f32.partialorder %v394_v56, 0.0  ;;  %vm403_vm6 = vcmp.gt.f32.partialorder %v395_v57, 0.0 }
 0x22e   :  { %v408_v38 = vmul.f32 0.01, %v392_v53  ;;  %v409_v42 = vmul.f32 0.01, %v393_v54  ;;  %v410_v39 = vmul.f32 0.01, %v394_v56  ;;  %v390_v62 = vpop.permute.xlu1 %389 }
 0x22f   :  { %v411_v63 = vmul.f32 0.01, %v395_v57  ;;  %v396_v0 = vadd.f32 %v390_v62, %v378_v58  ;;  %v397_v1 = vadd.f32 %v390_v62, %v379_v59  ;;  %v398_v2 = vadd.f32 %v390_v62, %v380_v60 }
 0x230   :  { %v416_v3 = vsel %vm400_vm3, %v392_v53, %v408_v38  ;;  %v417_v47 = vsel %vm401_vm4, %v393_v54, %v409_v42  ;;  %v418_v4 = vsel %vm402_vm5, %v394_v56, %v410_v39  ;;  %v399_v51 = vadd.f32 %v390_v62, %v381_v43 }
 0x231   :  { %v419_v5 = vsel %vm403_vm6, %v395_v57, %v411_v63  ;;  %424 = vst [vmem:[%s738_s5] sm:$0xff] %v416_v3  ;;  %425 = vst [vmem:[%s738_s5 + $0x8] sm:$0xff] %v417_v47  ;;  %vm404_vm7 = vcmp.gt.f32.partialorder %v396_v0, 0.0  ;;  %vm405_vm8 = vcmp.gt.f32.partialorder %v397_v1, 0.0  ;;  %vm406_vm9 = vcmp.gt.f32.partialorder %v398_v2, 0.0 }
 0x232   :  { %426 = vst [vmem:[%s738_s5 + $0x10] sm:$0xff] %v418_v4  ;;  %427 = vst.msk [vmem:[%s738_s5 + $0x18] sm:$0xff] %vm309_vm2, %v419_v5  ;;  %vm407_vm10 = vcmp.gt.f32.partialorder %v399_v51, 0.0  ;;  %v412_v55 = vmul.f32 0.01, %v396_v0 }
 0x233   :  { %v413_v61 = vmul.f32 0.01, %v397_v1  ;;  %v414_v6 = vmul.f32 0.01, %v398_v2  ;;  %v415_v7 = vmul.f32 0.01, %v399_v51 }
 0x234   :  { %v420_v8 = vsel %vm404_vm7, %v396_v0, %v412_v55 }
 0x235   :  { %v421_v9 = vsel %vm405_vm8, %v397_v1, %v413_v61  ;;  %v422_v10 = vsel %vm406_vm9, %v398_v2, %v414_v6  ;;  %v423_v11 = vsel %vm407_vm10, %v399_v51, %v415_v7  ;;  %428 = vst [vmem:[%s738_s5 + $0x20] sm:$0xff] %v420_v8 }
 0x236   :  { %429 = vst [vmem:[%s738_s5 + $0x28] sm:$0xff] %v421_v9  ;;  %430 = vst [vmem:[%s738_s5 + $0x30] sm:$0xff] %v422_v10 }
 0x237   :  { %431 = vst.msk [vmem:[%s738_s5 + $0x38] sm:$0xff] %vm309_vm2, %v423_v11 }

// kernel: mutil_stride_module_v2_1.6
= control target key start
LH: loop header
LB: loop body
LE: loop exit
PB: predicated region body
PF: predicated region fallthrough
CT: control target
= control target key end

     0   :  { %v838_v3 = vmov 0   ;;  %vm372_vm0 = vcmask 1045504   ;;  %vm368_vm1 = vcmask 883712   ;;  %s1252_s1 = inlined_call_operand.vmem [shape: bf16[108,1024], index: 1, kind: input, shape index: {}]   ;;  %s1253_s0 = inlined_call_operand.vmem [shape: bf16[16,108], index: 0, kind: input, shape index: {}]   ;;  %s1254_s2 = inlined_call_operand.vmem [shape: f32[16,1], index: 2, kind: input, shape index: {}]   ;;  %s1255_s3 = inlined_call_operand.vmem [shape: f32[16,1], index: 3, kind: input, shape index: {}]   ;;  %s1256_s4 = inlined_call_operand.vmem [shape: f32[16,1], index: 4, kind: input, shape index: {}]   ;;  %s1257_s5 = inlined_call_operand.vmem [shape: f32[16,1024], index: 5, kind: output, shape index: {}]  }
   0x1   :  { %v23_v0 = vld [vmem:[%s1252_s1] sm:$0xff]  ;;  %v24_v2 = vld [vmem:[%s1252_s1 + $0x8] sm:$0xff]  ;;  %429 = vmatprep.mubr.bf16.mxu0 %v838_v3  ;;  %472 = vmatprep.mubr.bf16.mxu1 %v838_v3  ;;  %v25_v59 = vld [vmem:[%s1252_s1 + $0x10] sm:$0xff] }
   0x2   :  { %v27_v1 = vld [vmem:[%s1252_s1 + $0x20] sm:$0xff]  ;;  %v28_v5 = vld [vmem:[%s1252_s1 + $0x28] sm:$0xff]  ;;  %831 = vset.pattern.permute.xlu0 %v838_v3  ;;  %832 = vset.pattern.permute.xlu1 %v838_v3  ;;  %v29_v60 = vld [vmem:[%s1252_s1 + $0x30] sm:$0xff] }
   0x3   :  { %v767_v4 = vcombine.high %v23_v0, %v27_v1  ;;  %v766_v6 = vcombine.low %v23_v0, %v27_v1  ;;  %v31_v7 = vld [vmem:[%s1252_s1 + $0x40] sm:$0xff]  ;;  %v769_v9 = vcombine.high %v24_v2, %v28_v5  ;;  %v768_v10 = vcombine.low %v24_v2, %v28_v5  ;;  %v32_v12 = vld [vmem:[%s1252_s1 + $0x48] sm:$0xff]  ;;  %v26_v61 = vld [vmem:[%s1252_s1 + $0x18] sm:$0xff] }
   0x4   :  { %v35_v8 = vld [vmem:[%s1252_s1 + $0x60] sm:$0xff]  ;;  %v36_v13 = vld [vmem:[%s1252_s1 + $0x68] sm:$0xff]  ;;  %v30_v62 = vld [vmem:[%s1252_s1 + $0x38] sm:$0xff]  ;;  %v771_v0 = vcombine.high %v25_v59, %v29_v60 }
   0x5   :  { %v775_v11 = vcombine.high %v31_v7, %v35_v8  ;;  %v39_v14 = vld [vmem:[%s1252_s1 + $0x80] sm:$0xff]  ;;  %397 = vmatprep.subr.bf16.mxu0 %v767_v4  ;;  %v777_v15 = vcombine.high %v32_v12, %v36_v13  ;;  %v40_v17 = vld [vmem:[%s1252_s1 + $0x88] sm:$0xff]  ;;  %440 = vmatprep.subr.bf16.mxu1 %v769_v9  ;;  %v774_v19 = vcombine.low %v31_v7, %v35_v8  ;;  %v33_v4 = vld [vmem:[%s1252_s1 + $0x50] sm:$0xff] }
   0x6   :  { %v43_v16 = vld [vmem:[%s1252_s1 + $0xa0] sm:$0xff]  ;;  %v44_v18 = vld [vmem:[%s1252_s1 + $0xa8] sm:$0xff]  ;;  %398 = vmatpush1.bf16.msra.mxu0 %v766_v6  ;;  %441 = vmatpush1.bf16.msra.mxu1 %v768_v10  ;;  %v776_v20 = vcombine.low %v32_v12, %v36_v13  ;;  %v773_v2 = vcombine.high %v26_v61, %v30_v62  ;;  %v37_v5 = vld [vmem:[%s1252_s1 + $0x70] sm:$0xff]  ;;  %v770_v9 = vcombine.low %v25_v59, %v29_v60 }
   0x7   :  { %399 = vmatprep.subr.bf16.mxu0 %v775_v11  ;;  %v783_v21 = vcombine.high %v39_v14, %v43_v16  ;;  %442 = vmatprep.subr.bf16.mxu1 %v777_v15  ;;  %v785_v22 = vcombine.high %v40_v17, %v44_v18  ;;  %v47_v23 = vld [vmem:[%s1252_s1 + $0xc0] sm:$0xff]  ;;  %v48_v25 = vld [vmem:[%s1252_s1 + $0xc8] sm:$0xff]  ;;  %v782_v27 = vcombine.low %v39_v14, %v43_v16  ;;  %v34_v7 = vld [vmem:[%s1252_s1 + $0x58] sm:$0xff] }
   0x8   :  { %v51_v24 = vld [vmem:[%s1252_s1 + $0xe0] sm:$0xff]  ;;  %v52_v26 = vld [vmem:[%s1252_s1 + $0xe8] sm:$0xff]  ;;  %v784_v28 = vcombine.low %v40_v17, %v44_v18  ;;  %v38_v8 = vld [vmem:[%s1252_s1 + $0x78] sm:$0xff]  ;;  %v772_v10 = vcombine.low %v26_v61, %v30_v62  ;;  %v779_v11 = vcombine.high %v33_v4, %v37_v5  ;;  %v778_v17 = vcombine.low %v33_v4, %v37_v5 }
   0x9   :  { %v791_v29 = vcombine.high %v47_v23, %v51_v24  ;;  %v793_v30 = vcombine.high %v48_v25, %v52_v26  ;;  %v55_v31 = vld [vmem:[%s1252_s1 + $0x100] sm:$0xff]  ;;  %v56_v33 = vld [vmem:[%s1252_s1 + $0x108] sm:$0xff]  ;;  %v790_v35 = vcombine.low %v47_v23, %v51_v24  ;;  %v792_v36 = vcombine.low %v48_v25, %v52_v26  ;;  %v41_v13 = vld [vmem:[%s1252_s1 + $0x90] sm:$0xff] }
   0xa   :  { %400 = vmatpush1.bf16.msra.mxu0 %v774_v19  ;;  %443 = vmatpush1.bf16.msra.mxu1 %v776_v20  ;;  %v59_v32 = vld [vmem:[%s1252_s1 + $0x120] sm:$0xff]  ;;  %v60_v34 = vld [vmem:[%s1252_s1 + $0x128] sm:$0xff]  ;;  %v781_v12 = vcombine.high %v34_v7, %v38_v8  ;;  %v45_v14 = vld [vmem:[%s1252_s1 + $0xb0] sm:$0xff]  ;;  %v780_v18 = vcombine.low %v34_v7, %v38_v8 }
   0xb   :  { %401 = vmatprep.subr.bf16.mxu0 %v783_v21  ;;  %444 = vmatprep.subr.bf16.mxu1 %v785_v22  ;;  %v799_v37 = vcombine.high %v55_v31, %v59_v32  ;;  %v801_v38 = vcombine.high %v56_v33, %v60_v34  ;;  %v63_v39 = vld [vmem:[%s1252_s1 + $0x140] sm:$0xff]  ;;  %v64_v41 = vld [vmem:[%s1252_s1 + $0x148] sm:$0xff]  ;;  %v798_v43 = vcombine.low %v55_v31, %v59_v32  ;;  %v42_v15 = vld [vmem:[%s1252_s1 + $0x98] sm:$0xff] }
   0xc   :  { %v67_v40 = vld [vmem:[%s1252_s1 + $0x160] sm:$0xff]  ;;  %v68_v42 = vld [vmem:[%s1252_s1 + $0x168] sm:$0xff]  ;;  %v800_v44 = vcombine.low %v56_v33, %v60_v34  ;;  %v46_v16 = vld [vmem:[%s1252_s1 + $0xb8] sm:$0xff]  ;;  %v787_v19 = vcombine.high %v41_v13, %v45_v14  ;;  %v786_v25 = vcombine.low %v41_v13, %v45_v14 }
   0xd   :  { %v807_v45 = vcombine.high %v63_v39, %v67_v40  ;;  %v809_v46 = vcombine.high %v64_v41, %v68_v42  ;;  %v71_v47 = vld [vmem:[%s1252_s1 + $0x180] sm:$0xff]  ;;  %v72_v49 = vld [vmem:[%s1252_s1 + $0x188] sm:$0xff]  ;;  %v806_v52 = vcombine.low %v63_v39, %v67_v40  ;;  %v808_v53 = vcombine.low %v64_v41, %v68_v42  ;;  %v49_v21 = vld [vmem:[%s1252_s1 + $0xd0] sm:$0xff] }
   0xe   :  { %402 = vmatpush1.bf16.msra.mxu0 %v782_v27  ;;  %445 = vmatpush1.bf16.msra.mxu1 %v784_v28  ;;  %v75_v48 = vld [vmem:[%s1252_s1 + $0x1a0] sm:$0x33]  ;;  %v76_v50 = vld [vmem:[%s1252_s1 + $0x1a8] sm:$0x33]  ;;  %v789_v20 = vcombine.high %v42_v15, %v46_v16  ;;  %v53_v22 = vld [vmem:[%s1252_s1 + $0xf0] sm:$0xff]  ;;  %v788_v26 = vcombine.low %v42_v15, %v46_v16 }
   0xf   :  { %403 = vmatprep.subr.bf16.mxu0 %v791_v29  ;;  %446 = vmatprep.subr.bf16.mxu1 %v793_v30  ;;  %v79_v51 = vld [vmem:[%s1254_s2] sm:$0xff]  ;;  %v815_v54 = vcombine.high %v71_v47, %v75_v48  ;;  %v814_v55 = vcombine.low %v71_v47, %v75_v48  ;;  %v80_v56 = vld [vmem:[%s1254_s2 + $0x8] sm:$0xff]  ;;  %v817_v57 = vcombine.high %v72_v49, %v76_v50  ;;  %v50_v23 = vld [vmem:[%s1252_s1 + $0xd8] sm:$0xff] }
  0x10   :  { %83 = vperm.xlu0 %831, %v79_v51   ;;  %v816_v58 = vcombine.low %v72_v49, %v76_v50  ;;  %v988_v6 = vld [vmem:[%s1253_s0] sm:$0xff]   ;;  %v54_v24 = vld [vmem:[%s1252_s1 + $0xf8] sm:$0xff]  ;;  %v795_v27 = vcombine.high %v49_v21, %v53_v22  ;;  %v57_v29 = vld [vmem:[%s1252_s1 + $0x110] sm:$0xff]  ;;  %v794_v32 = vcombine.low %v49_v21, %v53_v22 }
  0x11   :  { %v374_v63 = vsel %vm372_vm0, %v814_v55, 0  ;;  %v797_v28 = vcombine.high %v50_v23, %v54_v24  ;;  %v61_v30 = vld [vmem:[%s1252_s1 + $0x130] sm:$0xff]  ;;  %v62_v31 = vld [vmem:[%s1252_s1 + $0x138] sm:$0xff]  ;;  %v796_v33 = vcombine.low %v50_v23, %v54_v24 }
  0x12   :  { %404 = vmatpush1.bf16.msra.mxu0 %v790_v35  ;;  %447 = vmatpush1.bf16.msra.mxu1 %v792_v36  ;;  %v380_v1 = vsel %vm372_vm0, %v816_v58, 0  ;;  %v803_v34 = vcombine.high %v57_v29, %v61_v30  ;;  %v65_v36 = vld [vmem:[%s1252_s1 + $0x150] sm:$0xff]  ;;  %v70_v39 = vld [vmem:[%s1252_s1 + $0x178] sm:$0xff]  ;;  %v802_v40 = vcombine.low %v57_v29, %v61_v30 }
  0x13   :  { %405 = vmatprep.subr.bf16.mxu0 %v799_v37  ;;  %448 = vmatprep.subr.bf16.mxu1 %v801_v38  ;;  %v69_v37 = vld [vmem:[%s1252_s1 + $0x170] sm:$0xff]  ;;  %v66_v38 = vld [vmem:[%s1252_s1 + $0x158] sm:$0xff] }
  0x14   :  { %88 = vperm.xlu0 %831, %v80_v56   ;;  %v811_v42 = vcombine.high %v65_v36, %v69_v37  ;;  %v78_v47 = vld [vmem:[%s1252_s1 + $0x1b8] sm:$0x33]  ;;  %v810_v48 = vcombine.low %v65_v36, %v69_v37  ;;  %v812_v49 = vcombine.low %v66_v38, %v70_v39 }
  0x16   :  { %406 = vmatpush1.bf16.msra.mxu0 %v798_v43  ;;  %449 = vmatpush1.bf16.msra.mxu1 %v800_v44  ;;  %v813_v43 = vcombine.high %v66_v38, %v70_v39  ;;  %v73_v44 = vld [vmem:[%s1252_s1 + $0x190] sm:$0xff] }
  0x17   :  { %407 = vmatprep.subr.bf16.mxu0 %v807_v45  ;;  %450 = vmatprep.subr.bf16.mxu1 %v809_v46  ;;  %v77_v45 = vld [vmem:[%s1252_s1 + $0x1b0] sm:$0x33]  ;;  %v74_v46 = vld [vmem:[%s1252_s1 + $0x198] sm:$0xff] }
  0x18   :  { %v819_v50 = vcombine.high %v73_v44, %v77_v45  ;;  %v818_v51 = vcombine.low %v73_v44, %v77_v45 }
  0x1a   :  { %408 = vmatpush1.bf16.msra.mxu0 %v806_v52  ;;  %451 = vmatpush1.bf16.msra.mxu1 %v808_v53  ;;  %v821_v52 = vcombine.high %v74_v46, %v78_v47  ;;  %v820_v53 = vcombine.low %v74_v46, %v78_v47 }
  0x1b   :  { %822 = vmatprep.subr.msk.bf16.mxu0 %vm372_vm0, %v815_v54  ;;  %824 = vmatprep.subr.msk.bf16.mxu1 %vm372_vm0, %v817_v57  ;;  %v386_v54 = vsel %vm372_vm0, %v818_v51, 0 }
  0x1c   :  { %v392_v55 = vsel %vm372_vm0, %v820_v53, 0 }
  0x1e   :  { %410 = vmatpush1.bf16.msra.mxu0 %v374_v63  ;;  %453 = vmatpush1.bf16.msra.mxu1 %v380_v1 }
  0x1f   :  { %483 = vmatprep.subr.bf16.mxu0 %v771_v0  ;;  %526 = vmatprep.subr.bf16.mxu1 %v773_v2 }
  0x21   :  { %823 = vmatmul.mubr.msk.bf16.vlgmr.msra.gmra.mrb[0].mxu0 %vm368_vm1, %v988_v6  ;;  %825 = vmatmul.mubr.msk.bf16.vlgmr.msra.gmra.mrb[0].mxu1 %vm368_vm1, %v988_v6 }
  0x22   :  { %484 = vmatpush1.bf16.msra.mxu0 %v770_v9  ;;  %527 = vmatpush1.bf16.msra.mxu1 %v772_v10 }
  0x23   :  { %485 = vmatprep.subr.bf16.mxu0 %v779_v11  ;;  %528 = vmatprep.subr.bf16.mxu1 %v781_v12 }
  0x24   :  { %515 = vmatprep.mubr.bf16.mxu0 %v838_v3  ;;  %558 = vmatprep.mubr.bf16.mxu1 %v838_v3  ;;  %v58_v3 = vld [vmem:[%s1252_s1 + $0x118] sm:$0xff] }
  0x25   :  { %v805_v35 = vcombine.high %v58_v3, %v62_v31  ;;  %v804_v41 = vcombine.low %v58_v3, %v62_v31 }
  0x26   :  { %486 = vmatpush1.bf16.msra.mxu0 %v778_v17  ;;  %529 = vmatpush1.bf16.msra.mxu1 %v780_v18 }
  0x27   :  { %487 = vmatprep.subr.bf16.mxu0 %v787_v19  ;;  %530 = vmatprep.subr.bf16.mxu1 %v789_v20 }
  0x2a   :  { %488 = vmatpush1.bf16.msra.mxu0 %v786_v25  ;;  %531 = vmatpush1.bf16.msra.mxu1 %v788_v26 }
  0x2b   :  { %489 = vmatprep.subr.bf16.mxu0 %v795_v27  ;;  %532 = vmatprep.subr.bf16.mxu1 %v797_v28 }
  0x2e   :  { %490 = vmatpush1.bf16.msra.mxu0 %v794_v32  ;;  %533 = vmatpush1.bf16.msra.mxu1 %v796_v33 }
  0x2f   :  { %491 = vmatprep.subr.bf16.mxu0 %v803_v34  ;;  %534 = vmatprep.subr.bf16.mxu1 %v805_v35 }
  0x32   :  { %492 = vmatpush1.bf16.msra.mxu0 %v802_v40  ;;  %535 = vmatpush1.bf16.msra.mxu1 %v804_v41 }
  0x33   :  { %493 = vmatprep.subr.bf16.mxu0 %v811_v42  ;;  %536 = vmatprep.subr.bf16.mxu1 %v813_v43 }
  0x36   :  { %494 = vmatpush1.bf16.msra.mxu0 %v810_v48  ;;  %537 = vmatpush1.bf16.msra.mxu1 %v812_v49 }
  0x37   :  { %826 = vmatprep.subr.msk.bf16.mxu0 %vm372_vm0, %v819_v50  ;;  %828 = vmatprep.subr.msk.bf16.mxu1 %vm372_vm0, %v821_v52 }
  0x3a   :  { %496 = vmatpush1.bf16.msra.mxu0 %v386_v54  ;;  %539 = vmatpush1.bf16.msra.mxu1 %v392_v55 }
  0x3d   :  { %827 = vmatmul.mubr.msk.bf16.vlgmr.msra.gmra.mrb[4].mxu0 %vm368_vm1, %v988_v6  ;;  %829 = vmatmul.mubr.msk.bf16.vlgmr.msra.gmra.mrb[4].mxu1 %vm368_vm1, %v988_v6 }
  0x8f   :  { %v84_v0 = vpop.permute.xlu0 %83 }
  0x93   :  { %v1070_v1 = vpop.permute.xlu0 %88 }
  0xf4   :  { %v431_v56 = vpop.f32.mrb[0].mxu0  ;;  %v474_v58 = vpop.f32.mrb[0].mxu1 }
  0xf5   :  { %v433_v57 = vpop.f32.mrb[1].mxu0  ;;  %v476_v60 = vpop.f32.mrb[1].mxu1  ;;  %v1072_v2 = vadd.f32 %v431_v56, %v84_v0  ;;  %v1086_v9 = vadd.f32 %v474_v58, %v84_v0 }
  0xf6   :  { %v435_v59 = vpop.f32.mrb[2].mxu0  ;;  %v478_v62 = vpop.f32.mrb[2].mxu1  ;;  %v1074_v4 = vadd.f32 %v433_v57, %v84_v0  ;;  %v1101_v17 = vadd.f32 %v476_v60, %v84_v0 }
  0xf7   :  { %v437_v61 = vpop.f32.mrb[3].mxu0  ;;  %v480_v63 = vpop.f32.mrb[3].mxu1  ;;  %v1077_v5 = vadd.f32 %v435_v59, %v1070_v1  ;;  %v587_v7 = vmul.f32 %v1072_v2, %v1072_v2  ;;  %v1093_v12 = vadd.f32 %v478_v62, %v1070_v1  ;;  %v589_v15 = vmul.f32 %v1086_v9, %v1086_v9 }
  0xf8   :  { %v1080_v6 = vadd.f32 %v437_v61, %v1070_v1  ;;  %v588_v8 = vmul.f32 %v1074_v4, %v1074_v4  ;;  %v569_v13 = vadd.f32 %v1074_v4, %v1072_v2  ;;  %v590_v22 = vmul.f32 %v1101_v17, %v1101_v17 }
  0xf9   :  { %v595_v10 = vmul.f32 %v1077_v5, %v1077_v5  ;;  %v597_v19 = vmul.f32 %v1093_v12, %v1093_v12  ;;  %v1110_v24 = vadd.f32 %v480_v63, %v1070_v1 }
  0xfa   :  { %v596_v11 = vmul.f32 %v1080_v6, %v1080_v6  ;;  %v603_v14 = vadd.f32 %v588_v8, %v587_v7  ;;  %v578_v16 = vadd.f32 %v1080_v6, %v1077_v5  ;;  %v570_v20 = vadd.f32 %v569_v13, %v1086_v9 }
  0xfb   :  { %v598_v32 = vmul.f32 %v1110_v24, %v1110_v24 }
  0xfc   :  { %v612_v18 = vadd.f32 %v596_v11, %v595_v10  ;;  %v604_v21 = vadd.f32 %v603_v14, %v589_v15  ;;  %v579_v23 = vadd.f32 %v578_v16, %v1093_v12  ;;  %v571_v27 = vadd.f32 %v570_v20, %v1101_v17 }
  0xfe   :  { %v613_v25 = vadd.f32 %v612_v18, %v597_v19  ;;  %v605_v3 = vadd.f32 %v604_v21, %v590_v22  ;;  %v580_v31 = vadd.f32 %v579_v23, %v1110_v24 }
 0x100   :  { %v614_v42 = vadd.f32 %v613_v25, %v598_v32 }
 0x110   :  { %v517_v26 = vpop.f32.mrb[4].mxu0  ;;  %v560_v29 = vpop.f32.mrb[4].mxu1 }
 0x111   :  { %v1113_v28 = vadd.f32 %v517_v26, %v84_v0  ;;  %v519_v30 = vpop.f32.mrb[5].mxu0  ;;  %v562_v34 = vpop.f32.mrb[5].mxu1  ;;  %v1123_v38 = vadd.f32 %v560_v29, %v84_v0 }
 0x112   :  { %v1118_v33 = vadd.f32 %v519_v30, %v84_v0  ;;  %v521_v35 = vpop.f32.mrb[6].mxu0  ;;  %v564_v40 = vpop.f32.mrb[6].mxu1  ;;  %v1133_v47 = vadd.f32 %v562_v34, %v84_v0 }
 0x113   :  { %v572_v36 = vadd.f32 %v571_v27, %v1113_v28  ;;  %v591_v37 = vmul.f32 %v1113_v28, %v1113_v28  ;;  %v1126_v39 = vadd.f32 %v521_v35, %v1070_v1  ;;  %v523_v41 = vpop.f32.mrb[7].mxu0  ;;  %v566_v45 = vpop.f32.mrb[7].mxu1  ;;  %v593_v52 = vmul.f32 %v1123_v38, %v1123_v38  ;;  %v632_v35 = vld [vmem:[%s1255_s3 + $0x8] sm:$0xff] }
 0x114   :  { %v592_v43 = vmul.f32 %v1118_v33, %v1118_v33  ;;  %v1131_v44 = vadd.f32 %v523_v41, %v1070_v1  ;;  %v1145_v56 = vadd.f32 %v564_v40, %v1070_v1  ;;  %v594_v58 = vmul.f32 %v1133_v47, %v1133_v47  ;;  %v639_v41 = vld [vmem:[%s1256_s4] sm:$0xff] }
 0x115   :  { %v606_v46 = vadd.f32 %v605_v3, %v591_v37  ;;  %v581_v48 = vadd.f32 %v580_v31, %v1126_v39  ;;  %v599_v49 = vmul.f32 %v1126_v39, %v1126_v39  ;;  %v573_v51 = vadd.f32 %v572_v36, %v1118_v33  ;;  %v631_v31 = vld [vmem:[%s1255_s3] sm:$0xff] }
 0x116   :  { %v600_v50 = vmul.f32 %v1131_v44, %v1131_v44  ;;  %v601_v0 = vmul.f32 %v1145_v56, %v1145_v56  ;;  %v1155_v7 = vadd.f32 %v566_v45, %v1070_v1  ;;  %v640_v45 = vld [vmem:[%s1256_s4 + $0x8] sm:$0xff] }
 0x117   :  { %v615_v53 = vadd.f32 %v614_v42, %v599_v49  ;;  %v582_v54 = vadd.f32 %v581_v48, %v1131_v44  ;;  %v607_v55 = vadd.f32 %v606_v46, %v592_v43  ;;  %v574_v57 = vadd.f32 %v573_v51, %v1123_v38 }
 0x118   :  { %v602_v11 = vmul.f32 %v1155_v7, %v1155_v7 }
 0x119   :  { %v608_v59 = vadd.f32 %v607_v55, %v593_v52  ;;  %v575_v60 = vadd.f32 %v574_v57, %v1133_v47  ;;  %v583_v61 = vadd.f32 %v582_v54, %v1145_v56  ;;  %v616_v62 = vadd.f32 %v615_v53, %v600_v50 }
 0x11b   :  { %v609_v63 = vadd.f32 %v608_v59, %v594_v58  ;;  %576 = vadd.xlane.f32.xlu1 %v575_v60  ;;  %v584_v8 = vadd.f32 %v583_v61, %v1155_v7  ;;  %v617_v10 = vadd.f32 %v616_v62, %v601_v0 }
 0x11d   :  { %610 = vadd.xlane.f32.xlu0 %v609_v63  ;;  %v618_v13 = vadd.f32 %v617_v10, %v602_v11 }
 0x11f   :  { %585 = vadd.xlane.f32.xlu1 %v584_v8 }
 0x123   :  { %619 = vadd.xlane.f32.xlu1 %v618_v13 }
 0x1a8   :  { %v577_v14 = vpop.xlane.xlu1 %576 }
 0x1a9   :  { %v621_v15 = vmul.f32 0.0009765625, %v577_v14 }
 0x1aa   :  { %v611_v16 = vpop.xlane.xlu0 %610 }
 0x1ab   :  { %v623_v18 = vmul.f32 0.0009765625, %v611_v16  ;;  %v625_v19 = vmul.f32 %v621_v15, %v621_v15 }
 0x1ac   :  { %v586_v20 = vpop.xlane.xlu1 %585 }
 0x1ad   :  { %v627_v21 = vsub.f32 %v623_v18, %v625_v19  ;;  %v622_v1 = vmul.f32 0.0009765625, %v586_v20 }
 0x1af   :  { %v629_v22 = vmax.f32 %v627_v21, 0.0  ;;  %v626_v26 = vmul.f32 %v622_v1, %v622_v1 }
 0x1b0   :  { %v620_v23 = vpop.xlane.xlu1 %619 }
 0x1b1   :  { %v633_v25 = vadd.f32 1e-05, %v629_v22  ;;  %v624_v27 = vmul.f32 0.0009765625, %v620_v23 }
 0x1b3   :  { %834 = vrsqrt.f32 %v633_v25  ;;  %v628_v29 = vsub.f32 %v624_v27, %v626_v26 }
 0x1b5   :  { %v630_v30 = vmax.f32 %v628_v29, 0.0 }
 0x1b7   :  { %v634_v3 = vadd.f32 1e-05, %v630_v30 }
 0x1b9   :  { %836 = vrsqrt.f32 %v634_v3 }
 0x1bd   :  { %v835_v32 = vpop.eup %834 }
 0x1be   :  { %v637_v34 = vmul.f32 %v835_v32, %v631_v31 }
 0x1c0   :  { %647 = vperm.xlu1 %832, %v637_v34   ;;  %v641_v40 = vmul.f32 %v637_v34, %v621_v15 }
 0x1c2   :  { %v643_v42 = vsub.f32 %v639_v41, %v641_v40 }
 0x1c3   :  { %v837_v36 = vpop.eup %836 }
 0x1c4   :  { %v638_v37 = vmul.f32 %v837_v36, %v632_v35 }
 0x1c6   :  { %652 = vperm.xlu1 %832, %v638_v37   ;;  %v642_v43 = vmul.f32 %v638_v37, %v622_v1 }
 0x1c8   :  { %v644_v46 = vsub.f32 %v640_v45, %v642_v43 }
 0x1ca   :  { %673 = vperm.xlu1 %832, %v643_v42  }
 0x1ce   :  { %678 = vperm.xlu1 %832, %v644_v46  }
 0x23f   :  { %v648_v48 = vpop.permute.xlu1 %647 }
 0x240   :  { %v655_v50 = vmul.f32 %v648_v48, %v1072_v2  ;;  %v656_v51 = vmul.f32 %v648_v48, %v1074_v4  ;;  %v657_v52 = vmul.f32 %v648_v48, %v1086_v9  ;;  %v658_v53 = vmul.f32 %v648_v48, %v1101_v17 }
 0x241   :  { %v659_v54 = vmul.f32 %v648_v48, %v1113_v28  ;;  %v660_v55 = vmul.f32 %v648_v48, %v1118_v33  ;;  %v661_v57 = vmul.f32 %v648_v48, %v1123_v38  ;;  %v662_v58 = vmul.f32 %v648_v48, %v1133_v47 }
 0x245   :  { %v653_v49 = vpop.permute.xlu1 %652 }
 0x246   :  { %v663_v59 = vmul.f32 %v653_v49, %v1077_v5  ;;  %v664_v60 = vmul.f32 %v653_v49, %v1080_v6  ;;  %v665_v2 = vmul.f32 %v653_v49, %v1093_v12  ;;  %v666_v4 = vmul.f32 %v653_v49, %v1110_v24 }
 0x247   :  { %v667_v9 = vmul.f32 %v653_v49, %v1126_v39  ;;  %v668_v17 = vmul.f32 %v653_v49, %v1131_v44  ;;  %v669_v28 = vmul.f32 %v653_v49, %v1145_v56  ;;  %v670_v33 = vmul.f32 %v653_v49, %v1155_v7 }
 0x249   :  { %v674_v61 = vpop.permute.xlu1 %673 }
 0x24a   :  { %v681_v38 = vadd.f32 %v674_v61, %v655_v50  ;;  %v682_v62 = vadd.f32 %v674_v61, %v656_v51  ;;  %v683_v47 = vadd.f32 %v674_v61, %v657_v52  ;;  %v684_v63 = vadd.f32 %v674_v61, %v658_v53 }
 0x24b   :  { %v685_v5 = vadd.f32 %v674_v61, %v659_v54  ;;  %v686_v0 = vadd.f32 %v674_v61, %v660_v55  ;;  %v687_v6 = vadd.f32 %v674_v61, %v661_v57  ;;  %v688_v8 = vadd.f32 %v674_v61, %v662_v58 }
 0x24c   :  { %vm697_vm2 = vcmp.gt.f32.partialorder %v681_v38, 0.0  ;;  %vm698_vm3 = vcmp.gt.f32.partialorder %v682_v62, 0.0  ;;  %vm699_vm4 = vcmp.gt.f32.partialorder %v683_v47, 0.0  ;;  %vm700_vm5 = vcmp.gt.f32.partialorder %v684_v63, 0.0 }
 0x24d   :  { %vm701_vm6 = vcmp.gt.f32.partialorder %v685_v5, 0.0  ;;  %vm702_vm7 = vcmp.gt.f32.partialorder %v686_v0, 0.0  ;;  %vm703_vm8 = vcmp.gt.f32.partialorder %v687_v6, 0.0  ;;  %vm704_vm9 = vcmp.gt.f32.partialorder %v688_v8, 0.0  ;;  %v679_v12 = vpop.permute.xlu1 %678 }
 0x24e   :  { %v713_v24 = vmul.f32 0.01, %v681_v38  ;;  %v714_v39 = vmul.f32 0.01, %v682_v62  ;;  %v715_v44 = vmul.f32 0.01, %v683_v47  ;;  %v689_v56 = vadd.f32 %v679_v12, %v663_v59 }
 0x24f   :  { %v716_v7 = vmul.f32 0.01, %v684_v63  ;;  %v717_v10 = vmul.f32 0.01, %v685_v5  ;;  %v718_v11 = vmul.f32 0.01, %v686_v0  ;;  %v690_v13 = vadd.f32 %v679_v12, %v664_v60 }
 0x250   :  { %v719_v14 = vmul.f32 0.01, %v687_v6  ;;  %v720_v15 = vmul.f32 0.01, %v688_v8  ;;  %v729_v16 = vsel %vm697_vm2, %v681_v38, %v713_v24  ;;  %v730_v18 = vsel %vm698_vm3, %v682_v62, %v714_v39 }
 0x251   :  { %v731_v19 = vsel %vm699_vm4, %v683_v47, %v715_v44  ;;  %v732_v20 = vsel %vm700_vm5, %v684_v63, %v716_v7  ;;  %v733_v21 = vsel %vm701_vm6, %v685_v5, %v717_v10  ;;  %v734_v1 = vsel %vm702_vm7, %v686_v0, %v718_v11  ;;  %745 = vst [vmem:[%s1257_s5] sm:$0xff] %v729_v16 }
 0x252   :  { %746 = vst [vmem:[%s1257_s5 + $0x8] sm:$0xff] %v730_v18  ;;  %v735_v22 = vsel %vm703_vm8, %v687_v6, %v719_v14  ;;  %v736_v23 = vsel %vm704_vm9, %v688_v8, %v720_v15  ;;  %747 = vst [vmem:[%s1257_s5 + $0x10] sm:$0xff] %v731_v19  ;;  %v691_v25 = vadd.f32 %v679_v12, %v665_v2  ;;  %vm705_vm10 = vcmp.gt.f32.partialorder %v689_v56, 0.0 }
 0x253   :  { %748 = vst [vmem:[%s1257_s5 + $0x18] sm:$0xff] %v732_v20  ;;  %749 = vst [vmem:[%s1257_s5 + $0x20] sm:$0xff] %v733_v21  ;;  %v692_v26 = vadd.f32 %v679_v12, %v666_v4  ;;  %v693_v27 = vadd.f32 %v679_v12, %v667_v9  ;;  %v694_v29 = vadd.f32 %v679_v12, %v668_v17  ;;  %vm706_vm11 = vcmp.gt.f32.partialorder %v690_v13, 0.0 }
 0x254   :  { %750 = vst [vmem:[%s1257_s5 + $0x28] sm:$0xff] %v734_v1  ;;  %751 = vst [vmem:[%s1257_s5 + $0x30] sm:$0xff] %v735_v22  ;;  %v695_v30 = vadd.f32 %v679_v12, %v669_v28  ;;  %v696_v3 = vadd.f32 %v679_v12, %v670_v33  ;;  %vm707_vm12 = vcmp.gt.f32.partialorder %v691_v25, 0.0  ;;  %v721_v31 = vmul.f32 0.01, %v689_v56 }
 0x255   :  { %752 = vst [vmem:[%s1257_s5 + $0x38] sm:$0xff] %v736_v23  ;;  %vm708_vm13 = vcmp.gt.f32.partialorder %v692_v26, 0.0  ;;  %vm709_vm14 = vcmp.gt.f32.partialorder %v693_v27, 0.0  ;;  %vm710_vm15 = vcmp.gt.f32.partialorder %v694_v29, 0.0  ;;  %v722_v32 = vmul.f32 0.01, %v690_v13 }
 0x256   :  { %vm711_vm0 = vcmp.gt.f32.partialorder %v695_v30, 0.0  ;;  %vm712_vm1 = vcmp.gt.f32.partialorder %v696_v3, 0.0  ;;  %v723_v34 = vmul.f32 0.01, %v691_v25  ;;  %v724_v35 = vmul.f32 0.01, %v692_v26 }
 0x257   :  { %v725_v36 = vmul.f32 0.01, %v693_v27  ;;  %v726_v37 = vmul.f32 0.01, %v694_v29  ;;  %v727_v40 = vmul.f32 0.01, %v695_v30  ;;  %v737_v42 = vsel %vm705_vm10, %v689_v56, %v721_v31 }
 0x258   :  { %v728_v41 = vmul.f32 0.01, %v696_v3  ;;  %v738_v43 = vsel %vm706_vm11, %v690_v13, %v722_v32  ;;  %v739_v45 = vsel %vm707_vm12, %v691_v25, %v723_v34  ;;  %v740_v46 = vsel %vm708_vm13, %v692_v26, %v724_v35  ;;  %753 = vst [vmem:[%s1257_s5 + $0x40] sm:$0xff] %v737_v42 }
 0x259   :  { %v741_v48 = vsel %vm709_vm14, %v693_v27, %v725_v36  ;;  %v742_v49 = vsel %vm710_vm15, %v694_v29, %v726_v37  ;;  %754 = vst [vmem:[%s1257_s5 + $0x48] sm:$0xff] %v738_v43  ;;  %v743_v50 = vsel %vm711_vm0, %v695_v30, %v727_v40  ;;  %755 = vst [vmem:[%s1257_s5 + $0x50] sm:$0xff] %v739_v45 }
 0x25a   :  { %v744_v51 = vsel %vm712_vm1, %v696_v3, %v728_v41  ;;  %756 = vst [vmem:[%s1257_s5 + $0x58] sm:$0xff] %v740_v46  ;;  %757 = vst [vmem:[%s1257_s5 + $0x60] sm:$0xff] %v741_v48 }
 0x25b   :  { %758 = vst [vmem:[%s1257_s5 + $0x68] sm:$0xff] %v742_v49  ;;  %759 = vst [vmem:[%s1257_s5 + $0x70] sm:$0xff] %v743_v50 }
 0x25c   :  { %760 = vst [vmem:[%s1257_s5 + $0x78] sm:$0xff] %v744_v51 }

// kernel: mutil_stride_module_v2_1.8
= control target key start
LH: loop header
LB: loop body
LE: loop exit
PB: predicated region body
PF: predicated region fallthrough
CT: control target
= control target key end

     0   :  { %v401_v3 = vmov 0   ;;  %vm133_vm0 = vcmask 261120   ;;  %s546_s1 = inlined_call_operand.vmem [shape: bf16[16,1024], index: 1, kind: input, shape index: {}]   ;;  %s547_s2 = inlined_call_operand.vmem [shape: bf16[16,1024], index: 2, kind: input, shape index: {}]   ;;  %s548_s0 = inlined_call_operand.vmem [shape: bf16[16,32], index: 0, kind: input, shape index: {}]   ;;  %s549_s3 = inlined_call_operand.vmem [shape: f32[16,1], index: 3, kind: input, shape index: {}]   ;;  %s550_s4 = inlined_call_operand.vmem [shape: f32[16,1024], index: 4, kind: output, shape index: {}]  }
   0x1   :  { %v18_v0 = vld [vmem:[%s546_s1] sm:$0xff]  ;;  %v19_v2 = vld [vmem:[%s546_s1 + $0x8] sm:$0xff]  ;;  %169 = vmatprep.mubr.bf16.mxu0 %v401_v3  ;;  %212 = vmatprep.mubr.bf16.mxu1 %v401_v3  ;;  %v20_v15 = vld [vmem:[%s546_s1 + $0x10] sm:$0xff] }
   0x2   :  { %v22_v1 = vld [vmem:[%s546_s1 + $0x20] sm:$0xff]  ;;  %v23_v5 = vld [vmem:[%s546_s1 + $0x28] sm:$0xff]  ;;  %399 = vset.pattern.permute.xlu0 %v401_v3  ;;  %v24_v17 = vld [vmem:[%s546_s1 + $0x30] sm:$0xff] }
   0x3   :  { %v378_v4 = vcombine.high %v18_v0, %v22_v1  ;;  %v377_v6 = vcombine.low %v18_v0, %v22_v1  ;;  %v26_v7 = vld [vmem:[%s547_s2] sm:$0xff]  ;;  %v380_v9 = vcombine.high %v19_v2, %v23_v5  ;;  %v379_v10 = vcombine.low %v19_v2, %v23_v5  ;;  %v27_v12 = vld [vmem:[%s547_s2 + $0x8] sm:$0xff]  ;;  %v21_v18 = vld [vmem:[%s546_s1 + $0x18] sm:$0xff] }
   0x4   :  { %v30_v8 = vld [vmem:[%s547_s2 + $0x20] sm:$0xff]  ;;  %v31_v13 = vld [vmem:[%s547_s2 + $0x28] sm:$0xff]  ;;  %v25_v19 = vld [vmem:[%s546_s1 + $0x38] sm:$0xff]  ;;  %v382_v21 = vcombine.high %v20_v15, %v24_v17  ;;  %v381_v29 = vcombine.low %v20_v15, %v24_v17 }
   0x5   :  { %v386_v11 = vcombine.high %v26_v7, %v30_v8  ;;  %137 = vmatprep.subr.bf16.mxu0 %v378_v4  ;;  %v388_v14 = vcombine.high %v27_v12, %v31_v13  ;;  %180 = vmatprep.subr.bf16.mxu1 %v380_v9  ;;  %v385_v16 = vcombine.low %v26_v7, %v30_v8  ;;  %v28_v23 = vld [vmem:[%s547_s2 + $0x10] sm:$0xff]  ;;  %v116_v25 = vld [vmem:[%s549_s3] sm:$0xff]  ;;  %v29_v27 = vld [vmem:[%s547_s2 + $0x18] sm:$0xff] }
   0x6   :  { %138 = vmatpush1.bf16.msra.mxu0 %v377_v6  ;;  %181 = vmatpush1.bf16.msra.mxu1 %v379_v10  ;;  %v387_v20 = vcombine.low %v27_v12, %v31_v13  ;;  %v384_v22 = vcombine.high %v21_v18, %v25_v19  ;;  %v32_v24 = vld [vmem:[%s547_s2 + $0x30] sm:$0xff]  ;;  %v400_v26 = vld [vmem:[%s548_s0] sm:$0xff]   ;;  %v33_v28 = vld [vmem:[%s547_s2 + $0x38] sm:$0xff]  ;;  %v383_v31 = vcombine.low %v21_v18, %v25_v19 }
   0x7   :  { %139 = vmatprep.subr.bf16.mxu0 %v386_v11  ;;  %182 = vmatprep.subr.bf16.mxu1 %v388_v14  ;;  %v117_v30 = vld [vmem:[%s549_s3 + $0x8] sm:$0xff]  ;;  %v390_v32 = vcombine.high %v28_v23, %v32_v24  ;;  %v392_v33 = vcombine.high %v29_v27, %v33_v28  ;;  %v389_v34 = vcombine.low %v28_v23, %v32_v24 }
   0x8   :  { %120 = vperm.xlu0 %399, %v116_v25   ;;  %v391_v35 = vcombine.low %v29_v27, %v33_v28 }
   0xa   :  { %140 = vmatpush1.bf16.msra.mxu0 %v385_v16  ;;  %183 = vmatpush1.bf16.msra.mxu1 %v387_v20 }
   0xb   :  { %223 = vmatprep.subr.bf16.mxu0 %v382_v21  ;;  %266 = vmatprep.subr.bf16.mxu1 %v384_v22 }
   0xc   :  { %125 = vperm.xlu0 %399, %v117_v30  }
   0xd   :  { %394 = vmatmul.mubr.msk.bf16.vlgmr.msra.gmra.mrb[0].mxu0 %vm133_vm0, %v400_v26  ;;  %395 = vmatmul.mubr.msk.bf16.vlgmr.msra.gmra.mrb[0].mxu1 %vm133_vm0, %v400_v26 }
   0xe   :  { %224 = vmatpush1.bf16.msra.mxu0 %v381_v29  ;;  %267 = vmatpush1.bf16.msra.mxu1 %v383_v31 }
   0xf   :  { %225 = vmatprep.subr.bf16.mxu0 %v390_v32  ;;  %268 = vmatprep.subr.bf16.mxu1 %v392_v33 }
  0x10   :  { %255 = vmatprep.mubr.bf16.mxu0 %v401_v3  ;;  %298 = vmatprep.mubr.bf16.mxu1 %v401_v3 }
  0x12   :  { %226 = vmatpush1.bf16.msra.mxu0 %v389_v34  ;;  %269 = vmatpush1.bf16.msra.mxu1 %v391_v35 }
  0x15   :  { %396 = vmatmul.mubr.msk.bf16.vlgmr.msra.gmra.mrb[4].mxu0 %vm133_vm0, %v400_v26  ;;  %397 = vmatmul.mubr.msk.bf16.vlgmr.msra.gmra.mrb[4].mxu1 %vm133_vm0, %v400_v26 }
  0x87   :  { %v121_v36 = vpop.permute.xlu0 %120 }
  0x8b   :  { %v488_v38 = vpop.permute.xlu0 %125 }
  0xe0   :  { %v171_v37 = vpop.f32.mrb[0].mxu0  ;;  %v214_v40 = vpop.f32.mrb[0].mxu1 }
  0xe1   :  { %v172_v39 = vadd.f32 %v171_v37, %v121_v36  ;;  %v173_v41 = vpop.f32.mrb[1].mxu0  ;;  %v215_v42 = vadd.f32 %v214_v40, %v121_v36  ;;  %v216_v44 = vpop.f32.mrb[1].mxu1 }
  0xe2   :  { %v174_v43 = vadd.f32 %v173_v41, %v121_v36  ;;  %v175_v45 = vpop.f32.mrb[2].mxu0  ;;  %v217_v47 = vadd.f32 %v216_v44, %v121_v36  ;;  %v218_v49 = vpop.f32.mrb[2].mxu1 }
  0xe3   :  { %vm309_vm1 = vcmp.gt.f32.partialorder %v172_v39, 0.0  ;;  %v325_v46 = vmul.f32 0.01, %v172_v39  ;;  %v176_v48 = vadd.f32 %v175_v45, %v488_v38  ;;  %v177_v50 = vpop.f32.mrb[3].mxu0  ;;  %vm311_vm2 = vcmp.gt.f32.partialorder %v215_v42, 0.0  ;;  %v220_v55 = vpop.f32.mrb[3].mxu1 }
  0xe4   :  { %v327_v51 = vmul.f32 0.01, %v215_v42  ;;  %vm310_vm3 = vcmp.gt.f32.partialorder %v174_v43, 0.0  ;;  %v326_v52 = vmul.f32 0.01, %v174_v43  ;;  %vm312_vm4 = vcmp.gt.f32.partialorder %v217_v47, 0.0 }
  0xe5   :  { %v341_v53 = vsel %vm309_vm1, %v172_v39, %v325_v46  ;;  %v328_v54 = vmul.f32 0.01, %v217_v47  ;;  %vm317_vm5 = vcmp.gt.f32.partialorder %v176_v48, 0.0  ;;  %v333_v58 = vmul.f32 0.01, %v176_v48 }
  0xe6   :  { %357 = vst [vmem:[%s550_s4] sm:$0xff] %v341_v53  ;;  %v343_v56 = vsel %vm311_vm2, %v215_v42, %v327_v51  ;;  %v342_v57 = vsel %vm310_vm3, %v174_v43, %v326_v52  ;;  %v219_v59 = vadd.f32 %v218_v49, %v488_v38  ;;  %v178_v61 = vadd.f32 %v177_v50, %v488_v38 }
  0xe7   :  { %359 = vst [vmem:[%s550_s4 + $0x10] sm:$0xff] %v343_v56  ;;  %358 = vst [vmem:[%s550_s4 + $0x8] sm:$0xff] %v342_v57  ;;  %v344_v60 = vsel %vm312_vm4, %v217_v47, %v328_v54  ;;  %v221_v62 = vadd.f32 %v220_v55, %v488_v38  ;;  %v349_v63 = vsel %vm317_vm5, %v176_v48, %v333_v58 }
  0xe8   :  { %360 = vst [vmem:[%s550_s4 + $0x18] sm:$0xff] %v344_v60  ;;  %vm319_vm6 = vcmp.gt.f32.partialorder %v219_v59, 0.0  ;;  %v335_v0 = vmul.f32 0.01, %v219_v59  ;;  %v257_v1 = vpop.f32.mrb[4].mxu0  ;;  %365 = vst [vmem:[%s550_s4 + $0x40] sm:$0xff] %v349_v63 }
  0xe9   :  { %vm318_vm7 = vcmp.gt.f32.partialorder %v178_v61, 0.0  ;;  %v334_v2 = vmul.f32 0.01, %v178_v61  ;;  %vm320_vm8 = vcmp.gt.f32.partialorder %v221_v62, 0.0  ;;  %v336_v3 = vmul.f32 0.01, %v221_v62 }
  0xea   :  { %v351_v4 = vsel %vm319_vm6, %v219_v59, %v335_v0  ;;  %v258_v5 = vadd.f32 %v257_v1, %v121_v36  ;;  %v300_v6 = vpop.f32.mrb[4].mxu1  ;;  %v259_v7 = vpop.f32.mrb[5].mxu0 }
  0xeb   :  { %367 = vst [vmem:[%s550_s4 + $0x50] sm:$0xff] %v351_v4  ;;  %v350_v8 = vsel %vm318_vm7, %v178_v61, %v334_v2  ;;  %v352_v9 = vsel %vm320_vm8, %v221_v62, %v336_v3  ;;  %v301_v10 = vadd.f32 %v300_v6, %v121_v36  ;;  %v260_v11 = vadd.f32 %v259_v7, %v121_v36  ;;  %v302_v12 = vpop.f32.mrb[5].mxu1  ;;  %v261_v13 = vpop.f32.mrb[6].mxu0 }
  0xec   :  { %366 = vst [vmem:[%s550_s4 + $0x48] sm:$0xff] %v350_v8  ;;  %368 = vst [vmem:[%s550_s4 + $0x58] sm:$0xff] %v352_v9  ;;  %vm313_vm9 = vcmp.gt.f32.partialorder %v258_v5, 0.0  ;;  %v329_v14 = vmul.f32 0.01, %v258_v5  ;;  %v303_v15 = vadd.f32 %v302_v12, %v121_v36  ;;  %v262_v16 = vadd.f32 %v261_v13, %v488_v38  ;;  %v304_v17 = vpop.f32.mrb[6].mxu1 }
  0xed   :  { %v263_v18 = vpop.f32.mrb[7].mxu0  ;;  %vm315_vm10 = vcmp.gt.f32.partialorder %v301_v10, 0.0  ;;  %v331_v19 = vmul.f32 0.01, %v301_v10  ;;  %vm314_vm11 = vcmp.gt.f32.partialorder %v260_v11, 0.0  ;;  %v306_v23 = vpop.f32.mrb[7].mxu1  ;;  %v305_v27 = vadd.f32 %v304_v17, %v488_v38 }
  0xee   :  { %v330_v20 = vmul.f32 0.01, %v260_v11  ;;  %v345_v21 = vsel %vm313_vm9, %v258_v5, %v329_v14  ;;  %vm316_vm12 = vcmp.gt.f32.partialorder %v303_v15, 0.0  ;;  %v332_v22 = vmul.f32 0.01, %v303_v15 }
  0xef   :  { %vm321_vm13 = vcmp.gt.f32.partialorder %v262_v16, 0.0  ;;  %361 = vst [vmem:[%s550_s4 + $0x20] sm:$0xff] %v345_v21  ;;  %v347_v24 = vsel %vm315_vm10, %v301_v10, %v331_v19  ;;  %v337_v26 = vmul.f32 0.01, %v262_v16  ;;  %v264_v29 = vadd.f32 %v263_v18, %v488_v38 }
  0xf0   :  { %v346_v25 = vsel %vm314_vm11, %v260_v11, %v330_v20  ;;  %363 = vst [vmem:[%s550_s4 + $0x30] sm:$0xff] %v347_v24  ;;  %v348_v28 = vsel %vm316_vm12, %v303_v15, %v332_v22  ;;  %v307_v30 = vadd.f32 %v306_v23, %v488_v38  ;;  %vm323_vm14 = vcmp.gt.f32.partialorder %v305_v27, 0.0 }
  0xf1   :  { %362 = vst [vmem:[%s550_s4 + $0x28] sm:$0xff] %v346_v25  ;;  %364 = vst [vmem:[%s550_s4 + $0x38] sm:$0xff] %v348_v28  ;;  %v353_v31 = vsel %vm321_vm13, %v262_v16, %v337_v26  ;;  %v339_v32 = vmul.f32 0.01, %v305_v27  ;;  %vm322_vm15 = vcmp.gt.f32.partialorder %v264_v29, 0.0 }
  0xf2   :  { %369 = vst [vmem:[%s550_s4 + $0x60] sm:$0xff] %v353_v31  ;;  %v338_v33 = vmul.f32 0.01, %v264_v29  ;;  %vm324_vm0 = vcmp.gt.f32.partialorder %v307_v30, 0.0  ;;  %v340_v34 = vmul.f32 0.01, %v307_v30 }
  0xf3   :  { %v355_v35 = vsel %vm323_vm14, %v305_v27, %v339_v32 }
  0xf4   :  { %371 = vst [vmem:[%s550_s4 + $0x70] sm:$0xff] %v355_v35  ;;  %v354_v36 = vsel %vm322_vm15, %v264_v29, %v338_v33  ;;  %v356_v37 = vsel %vm324_vm0, %v307_v30, %v340_v34 }
  0xf5   :  { %370 = vst [vmem:[%s550_s4 + $0x68] sm:$0xff] %v354_v36  ;;  %372 = vst [vmem:[%s550_s4 + $0x78] sm:$0xff] %v356_v37 }

// kernel: mutil_stride_module_v2_1.9
= control target key start
LH: loop header
LB: loop body
LE: loop exit
PB: predicated region body
PF: predicated region fallthrough
CT: control target
= control target key end

     0   :  { %s2520_s18 = smov 0   ;;  %s2522_s19 = smov 0   ;;  %s3234_s0 = inlined_call_operand.vmem [shape: bf16[16,48], index: 0, kind: input, shape index: {}]   ;;  %s3235_s1 = inlined_call_operand.vmem [shape: bf16[16,8192], index: 1, kind: input, shape index: {}]   ;;  %s3236_s2 = inlined_call_operand.vmem [shape: bf16[16,8192], index: 2, kind: input, shape index: {}]   ;;  %s3237_s3 = inlined_call_operand.vmem [shape: bf16[16,8192], index: 3, kind: input, shape index: {}]   ;;  %s3238_s4 = inlined_call_operand.vmem [shape: f32[16,1], index: 4, kind: input, shape index: {}]   ;;  %s3239_s5 = inlined_call_operand.vmem [shape: f32[16,8192], index: 5, kind: output, shape index: {}]  }
   0x1   :  { %s2524_s20 = smov 0  }
   0x2 LB: > { %s2298_s21 = sadd.s32 4294967295, %s2487_s20   ;;  %s2537_s22 = sadd.s32 1, %s2487_s20   ;;  %s2487_s20 = sphi %s2524_s20, %s3244_s20   ;;  %s2483_s19 = sphi %s2522_s19, %s3243_s19   ;;  %s2479_s18 = sphi %s2520_s18, %s3242_s18  }
   0x3   : > { %s40_s23 = ssub.s32 %s2487_s20, %s2537_s22  ;;  %s43_s24 = sadd.s32 1, %s2483_s19 }
   0x4   : > { %p41_p0 = scmp.eq.s32.totalorder %s40_s23, 0  ;;  %p50_p1 = scmp.ne.s32.totalorder %s2483_s19, %s2479_s18 }
   0x5   : > { %p51_p2 = scmp.eq.s32.totalorder %s2487_s20, 0  ;;  %p153_p3 = scmp.eq.s32.totalorder %s2298_s21, 1 }
   0x6   : > { %s2548_s25 = scalar_select %p41_p0, %s2483_s19, %s43_s24  }
   0x7   : > { %p2550_p4 = por %p51_p2, %p50_p1  ;;  %p2554_p5 = por %p153_p3, %p50_p1 }
   0x8   : > { %p2301_p6 = scmp.ge.s32.totalorder %s2487_s20, 2 }
   0xa   : > { %181 = sbr.rel (%p2301_p6) target bundleno = 77 (0x4d), region = 24 }
  0x11   : > { %184 = sbr.rel (!%p2550_p4) target bundleno = 37 (0x25), region = 28  ;;  %s186_s28 = sand.u32 (%p2550_p4), 1, %s2483_s19  }
  0x12   : > { %s2434_s29 = sshll.u32 (%p2550_p4), %s2487_s20, 7  ;;  %s2302_s30 = sshll.u32 (%p2550_p4), %s186_s28, 8 }
  0x13   : > { %s2566_s8 = scalar_lea.vmem (%p2550_p4), %s3235_s1, %s2434_s29  ;;  %s2571_s9 = scalar_lea.vmem (%p2550_p4), [#allocation2], %s2302_s30 }
  0x14   : > { %v204_v0 = vld [vmem:[%s2566_s8] sm:$0xff] (%p2550_p4)  ;;  %v206_v1 = vld [vmem:[%s2566_s8 + $0x8] sm:$0xff] (%p2550_p4)  ;;  %v208_v2 = vld [vmem:[%s2566_s8 + $0x10] sm:$0xff] (%p2550_p4) }
  0x15   : > { %205 = vst [vmem:[%s2571_s9] sm:$0xff] (%p2550_p4), %v204_v0  ;;  %207 = vst [vmem:[%s2571_s9 + $0x8] sm:$0xff] (%p2550_p4), %v206_v1  ;;  %v210_v3 = vld [vmem:[%s2566_s8 + $0x18] sm:$0xff] (%p2550_p4)  ;;  %v212_v4 = vld [vmem:[%s2566_s8 + $0x20] sm:$0xff] (%p2550_p4) }
  0x16   : > { %209 = vst [vmem:[%s2571_s9 + $0x10] sm:$0xff] (%p2550_p4), %v208_v2  ;;  %v214_v5 = vld [vmem:[%s2566_s8 + $0x28] sm:$0xff] (%p2550_p4)  ;;  %211 = vst [vmem:[%s2571_s9 + $0x18] sm:$0xff] (%p2550_p4), %v210_v3  ;;  %v216_v6 = vld [vmem:[%s2566_s8 + $0x30] sm:$0xff] (%p2550_p4) }
  0x17   : > { %213 = vst [vmem:[%s2571_s9 + $0x20] sm:$0xff] (%p2550_p4), %v212_v4  ;;  %215 = vst [vmem:[%s2571_s9 + $0x28] sm:$0xff] (%p2550_p4), %v214_v5  ;;  %v218_v7 = vld [vmem:[%s2566_s8 + $0x38] sm:$0xff] (%p2550_p4)  ;;  %v220_v8 = vld [vmem:[%s2566_s8 + $0x40] sm:$0xff] (%p2550_p4) }
  0x18   : > { %217 = vst [vmem:[%s2571_s9 + $0x30] sm:$0xff] %v216_v6  ;;  %219 = vst [vmem:[%s2571_s9 + $0x38] sm:$0xff] %v218_v7  ;;  %v222_v9 = vld [vmem:[%s2566_s8 + $0x48] sm:$0xff]  ;;  %v224_v10 = vld [vmem:[%s2566_s8 + $0x50] sm:$0xff] }
  0x19   : > { %221 = vst [vmem:[%s2571_s9 + $0x40] sm:$0xff] %v220_v8  ;;  %v226_v11 = vld [vmem:[%s2566_s8 + $0x58] sm:$0xff]  ;;  %223 = vst [vmem:[%s2571_s9 + $0x48] sm:$0xff] %v222_v9  ;;  %v228_v12 = vld [vmem:[%s2566_s8 + $0x60] sm:$0xff] }
  0x1a   : > { %225 = vst [vmem:[%s2571_s9 + $0x50] sm:$0xff] %v224_v10  ;;  %227 = vst [vmem:[%s2571_s9 + $0x58] sm:$0xff] %v226_v11  ;;  %v230_v13 = vld [vmem:[%s2566_s8 + $0x68] sm:$0xff]  ;;  %v232_v14 = vld [vmem:[%s2566_s8 + $0x70] sm:$0xff] }
  0x1b   : > { %229 = vst [vmem:[%s2571_s9 + $0x60] sm:$0xff] %v228_v12  ;;  %231 = vst [vmem:[%s2571_s9 + $0x68] sm:$0xff] %v230_v13  ;;  %v234_v15 = vld [vmem:[%s2566_s8 + $0x78] sm:$0xff]  ;;  %v236_v16 = vld [vmem:[%s2566_s8 + $0x100] sm:$0xff] }
  0x1c   : > { %233 = vst [vmem:[%s2571_s9 + $0x70] sm:$0xff] %v232_v14  ;;  %v238_v17 = vld [vmem:[%s2566_s8 + $0x108] sm:$0xff]  ;;  %235 = vst [vmem:[%s2571_s9 + $0x78] sm:$0xff] %v234_v15  ;;  %v240_v18 = vld [vmem:[%s2566_s8 + $0x110] sm:$0xff] }
  0x1d   : > { %237 = vst [vmem:[%s2571_s9 + $0x80] sm:$0xff] %v236_v16  ;;  %239 = vst [vmem:[%s2571_s9 + $0x88] sm:$0xff] %v238_v17  ;;  %v242_v19 = vld [vmem:[%s2566_s8 + $0x118] sm:$0xff]  ;;  %v244_v20 = vld [vmem:[%s2566_s8 + $0x120] sm:$0xff] }
  0x1e   : > { %241 = vst [vmem:[%s2571_s9 + $0x90] sm:$0xff] %v240_v18  ;;  %243 = vst [vmem:[%s2571_s9 + $0x98] sm:$0xff] %v242_v19  ;;  %v246_v21 = vld [vmem:[%s2566_s8 + $0x128] sm:$0xff]  ;;  %v248_v22 = vld [vmem:[%s2566_s8 + $0x130] sm:$0xff] }
  0x1f   : > { %245 = vst [vmem:[%s2571_s9 + $0xa0] sm:$0xff] %v244_v20  ;;  %v250_v23 = vld [vmem:[%s2566_s8 + $0x138] sm:$0xff]  ;;  %247 = vst [vmem:[%s2571_s9 + $0xa8] sm:$0xff] %v246_v21  ;;  %v252_v24 = vld [vmem:[%s2566_s8 + $0x140] sm:$0xff] }
  0x20   : > { %249 = vst [vmem:[%s2571_s9 + $0xb0] sm:$0xff] %v248_v22  ;;  %251 = vst [vmem:[%s2571_s9 + $0xb8] sm:$0xff] %v250_v23  ;;  %v254_v25 = vld [vmem:[%s2566_s8 + $0x148] sm:$0xff]  ;;  %v256_v26 = vld [vmem:[%s2566_s8 + $0x150] sm:$0xff] }
  0x21   : > { %253 = vst [vmem:[%s2571_s9 + $0xc0] sm:$0xff] %v252_v24  ;;  %255 = vst [vmem:[%s2571_s9 + $0xc8] sm:$0xff] %v254_v25  ;;  %v258_v27 = vld [vmem:[%s2566_s8 + $0x158] sm:$0xff]  ;;  %v260_v28 = vld [vmem:[%s2566_s8 + $0x160] sm:$0xff] }
  0x22   : > { %257 = vst [vmem:[%s2571_s9 + $0xd0] sm:$0xff] %v256_v26  ;;  %v262_v29 = vld [vmem:[%s2566_s8 + $0x168] sm:$0xff]  ;;  %259 = vst [vmem:[%s2571_s9 + $0xd8] sm:$0xff] %v258_v27  ;;  %v264_v30 = vld [vmem:[%s2566_s8 + $0x170] sm:$0xff] }
  0x23   : > { %261 = vst [vmem:[%s2571_s9 + $0xe0] sm:$0xff] %v260_v28  ;;  %263 = vst [vmem:[%s2571_s9 + $0xe8] sm:$0xff] %v262_v29  ;;  %v266_v31 = vld [vmem:[%s2566_s8 + $0x178] sm:$0xff] }
  0x24   : > { %265 = vst [vmem:[%s2571_s9 + $0xf0] sm:$0xff] %v264_v30  ;;  %267 = vst [vmem:[%s2571_s9 + $0xf8] sm:$0xff] %v266_v31 }
  0x25 PF: > { %273 = sbr.rel (!%p2550_p4) target bundleno = 57 (0x39), region = 51  ;;  %s275_s10 = sand.u32 (%p2550_p4), 1, %s2483_s19  }
  0x26   : > { %s2435_s11 = sshll.u32 (%p2550_p4), %s2487_s20, 7  ;;  %s2305_s12 = sshll.u32 (%p2550_p4), %s275_s10, 8 }
  0x27   : > { %s2641_s15 = scalar_lea.vmem (%p2550_p4), %s3236_s2, %s2435_s11  ;;  %s2646_s16 = scalar_lea.vmem (%p2550_p4), [#allocation3], %s2305_s12 }
  0x28   : > { %v293_v32 = vld [vmem:[%s2641_s15] sm:$0xff] (%p2550_p4)  ;;  %v295_v33 = vld [vmem:[%s2641_s15 + $0x8] sm:$0xff] (%p2550_p4)  ;;  %v297_v34 = vld [vmem:[%s2641_s15 + $0x10] sm:$0xff] (%p2550_p4) }
  0x29   : > { %294 = vst [vmem:[%s2646_s16] sm:$0xff] (%p2550_p4), %v293_v32  ;;  %296 = vst [vmem:[%s2646_s16 + $0x8] sm:$0xff] (%p2550_p4), %v295_v33  ;;  %v299_v35 = vld [vmem:[%s2641_s15 + $0x18] sm:$0xff] (%p2550_p4)  ;;  %v301_v36 = vld [vmem:[%s2641_s15 + $0x20] sm:$0xff] (%p2550_p4) }
  0x2a   : > { %298 = vst [vmem:[%s2646_s16 + $0x10] sm:$0xff] (%p2550_p4), %v297_v34  ;;  %v303_v37 = vld [vmem:[%s2641_s15 + $0x28] sm:$0xff] (%p2550_p4)  ;;  %300 = vst [vmem:[%s2646_s16 + $0x18] sm:$0xff] (%p2550_p4), %v299_v35  ;;  %v305_v38 = vld [vmem:[%s2641_s15 + $0x30] sm:$0xff] (%p2550_p4) }
  0x2b   : > { %302 = vst [vmem:[%s2646_s16 + $0x20] sm:$0xff] (%p2550_p4), %v301_v36  ;;  %304 = vst [vmem:[%s2646_s16 + $0x28] sm:$0xff] (%p2550_p4), %v303_v37  ;;  %v307_v39 = vld [vmem:[%s2641_s15 + $0x38] sm:$0xff] (%p2550_p4)  ;;  %v309_v40 = vld [vmem:[%s2641_s15 + $0x40] sm:$0xff] (%p2550_p4) }
  0x2c   : > { %306 = vst [vmem:[%s2646_s16 + $0x30] sm:$0xff] %v305_v38  ;;  %308 = vst [vmem:[%s2646_s16 + $0x38] sm:$0xff] %v307_v39  ;;  %v311_v41 = vld [vmem:[%s2641_s15 + $0x48] sm:$0xff]  ;;  %v313_v42 = vld [vmem:[%s2641_s15 + $0x50] sm:$0xff] }
  0x2d   : > { %310 = vst [vmem:[%s2646_s16 + $0x40] sm:$0xff] %v309_v40  ;;  %v315_v43 = vld [vmem:[%s2641_s15 + $0x58] sm:$0xff]  ;;  %312 = vst [vmem:[%s2646_s16 + $0x48] sm:$0xff] %v311_v41  ;;  %v317_v44 = vld [vmem:[%s2641_s15 + $0x60] sm:$0xff] }
  0x2e   : > { %314 = vst [vmem:[%s2646_s16 + $0x50] sm:$0xff] %v313_v42  ;;  %316 = vst [vmem:[%s2646_s16 + $0x58] sm:$0xff] %v315_v43  ;;  %v319_v45 = vld [vmem:[%s2641_s15 + $0x68] sm:$0xff]  ;;  %v321_v46 = vld [vmem:[%s2641_s15 + $0x70] sm:$0xff] }
  0x2f   : > { %318 = vst [vmem:[%s2646_s16 + $0x60] sm:$0xff] %v317_v44  ;;  %320 = vst [vmem:[%s2646_s16 + $0x68] sm:$0xff] %v319_v45  ;;  %v323_v47 = vld [vmem:[%s2641_s15 + $0x78] sm:$0xff]  ;;  %v325_v48 = vld [vmem:[%s2641_s15 + $0x100] sm:$0xff] }
  0x30   : > { %322 = vst [vmem:[%s2646_s16 + $0x70] sm:$0xff] %v321_v46  ;;  %v327_v49 = vld [vmem:[%s2641_s15 + $0x108] sm:$0xff]  ;;  %324 = vst [vmem:[%s2646_s16 + $0x78] sm:$0xff] %v323_v47  ;;  %v329_v50 = vld [vmem:[%s2641_s15 + $0x110] sm:$0xff] }
  0x31   : > { %326 = vst [vmem:[%s2646_s16 + $0x80] sm:$0xff] %v325_v48  ;;  %328 = vst [vmem:[%s2646_s16 + $0x88] sm:$0xff] %v327_v49  ;;  %v331_v51 = vld [vmem:[%s2641_s15 + $0x118] sm:$0xff]  ;;  %v333_v52 = vld [vmem:[%s2641_s15 + $0x120] sm:$0xff] }
  0x32   : > { %330 = vst [vmem:[%s2646_s16 + $0x90] sm:$0xff] %v329_v50  ;;  %332 = vst [vmem:[%s2646_s16 + $0x98] sm:$0xff] %v331_v51  ;;  %v335_v53 = vld [vmem:[%s2641_s15 + $0x128] sm:$0xff]  ;;  %v337_v54 = vld [vmem:[%s2641_s15 + $0x130] sm:$0xff] }
  0x33   : > { %334 = vst [vmem:[%s2646_s16 + $0xa0] sm:$0xff] %v333_v52  ;;  %v339_v55 = vld [vmem:[%s2641_s15 + $0x138] sm:$0xff]  ;;  %336 = vst [vmem:[%s2646_s16 + $0xa8] sm:$0xff] %v335_v53  ;;  %v341_v56 = vld [vmem:[%s2641_s15 + $0x140] sm:$0xff] }
  0x34   : > { %338 = vst [vmem:[%s2646_s16 + $0xb0] sm:$0xff] %v337_v54  ;;  %340 = vst [vmem:[%s2646_s16 + $0xb8] sm:$0xff] %v339_v55  ;;  %v343_v57 = vld [vmem:[%s2641_s15 + $0x148] sm:$0xff]  ;;  %v345_v58 = vld [vmem:[%s2641_s15 + $0x150] sm:$0xff] }
  0x35   : > { %342 = vst [vmem:[%s2646_s16 + $0xc0] sm:$0xff] %v341_v56  ;;  %344 = vst [vmem:[%s2646_s16 + $0xc8] sm:$0xff] %v343_v57  ;;  %v347_v59 = vld [vmem:[%s2641_s15 + $0x158] sm:$0xff]  ;;  %v349_v60 = vld [vmem:[%s2641_s15 + $0x160] sm:$0xff] }
  0x36   : > { %346 = vst [vmem:[%s2646_s16 + $0xd0] sm:$0xff] %v345_v58  ;;  %v351_v61 = vld [vmem:[%s2641_s15 + $0x168] sm:$0xff]  ;;  %348 = vst [vmem:[%s2646_s16 + $0xd8] sm:$0xff] %v347_v59  ;;  %v353_v62 = vld [vmem:[%s2641_s15 + $0x170] sm:$0xff] }
  0x37   : > { %350 = vst [vmem:[%s2646_s16 + $0xe0] sm:$0xff] %v349_v60  ;;  %352 = vst [vmem:[%s2646_s16 + $0xe8] sm:$0xff] %v351_v61  ;;  %v355_v63 = vld [vmem:[%s2641_s15 + $0x178] sm:$0xff] }
  0x38   : > { %354 = vst [vmem:[%s2646_s16 + $0xf0] sm:$0xff] %v353_v62  ;;  %356 = vst [vmem:[%s2646_s16 + $0xf8] sm:$0xff] %v355_v63 }
  0x39 PF: > { %362 = sbr.rel (!%p2550_p4) target bundleno = 77 (0x4d), region = 74  ;;  %s364_s17 = sand.u32 (%p2550_p4), 1, %s2483_s19  }
  0x3a   : > { %s2436_s23 = sshll.u32 (%p2550_p4), %s2487_s20, 7  ;;  %s2308_s24 = sshll.u32 (%p2550_p4), %s364_s17, 8 }
  0x3b   : > { %s2716_s30 = scalar_lea.vmem (%p2550_p4), %s3237_s3, %s2436_s23  ;;  %s2721_s26 = scalar_lea.vmem (%p2550_p4), [#allocation4], %s2308_s24 }
  0x3c   : > { %v382_v0 = vld [vmem:[%s2716_s30] sm:$0xff] (%p2550_p4)  ;;  %v384_v1 = vld [vmem:[%s2716_s30 + $0x8] sm:$0xff] (%p2550_p4)  ;;  %v386_v2 = vld [vmem:[%s2716_s30 + $0x10] sm:$0xff] (%p2550_p4) }
  0x3d   : > { %383 = vst [vmem:[%s2721_s26] sm:$0xff] (%p2550_p4), %v382_v0  ;;  %385 = vst [vmem:[%s2721_s26 + $0x8] sm:$0xff] (%p2550_p4), %v384_v1  ;;  %v388_v3 = vld [vmem:[%s2716_s30 + $0x18] sm:$0xff] (%p2550_p4)  ;;  %v390_v4 = vld [vmem:[%s2716_s30 + $0x20] sm:$0xff] (%p2550_p4) }
  0x3e   : > { %387 = vst [vmem:[%s2721_s26 + $0x10] sm:$0xff] (%p2550_p4), %v386_v2  ;;  %v392_v5 = vld [vmem:[%s2716_s30 + $0x28] sm:$0xff] (%p2550_p4)  ;;  %389 = vst [vmem:[%s2721_s26 + $0x18] sm:$0xff] (%p2550_p4), %v388_v3  ;;  %v394_v6 = vld [vmem:[%s2716_s30 + $0x30] sm:$0xff] (%p2550_p4) }
  0x3f   : > { %391 = vst [vmem:[%s2721_s26 + $0x20] sm:$0xff] (%p2550_p4), %v390_v4  ;;  %393 = vst [vmem:[%s2721_s26 + $0x28] sm:$0xff] (%p2550_p4), %v392_v5  ;;  %v396_v7 = vld [vmem:[%s2716_s30 + $0x38] sm:$0xff] (%p2550_p4)  ;;  %v398_v8 = vld [vmem:[%s2716_s30 + $0x40] sm:$0xff] (%p2550_p4) }
  0x40   : > { %395 = vst [vmem:[%s2721_s26 + $0x30] sm:$0xff] %v394_v6  ;;  %397 = vst [vmem:[%s2721_s26 + $0x38] sm:$0xff] %v396_v7  ;;  %v400_v9 = vld [vmem:[%s2716_s30 + $0x48] sm:$0xff]  ;;  %v402_v10 = vld [vmem:[%s2716_s30 + $0x50] sm:$0xff] }
  0x41   : > { %399 = vst [vmem:[%s2721_s26 + $0x40] sm:$0xff] %v398_v8  ;;  %v404_v11 = vld [vmem:[%s2716_s30 + $0x58] sm:$0xff]  ;;  %401 = vst [vmem:[%s2721_s26 + $0x48] sm:$0xff] %v400_v9  ;;  %v406_v12 = vld [vmem:[%s2716_s30 + $0x60] sm:$0xff] }
  0x42   : > { %403 = vst [vmem:[%s2721_s26 + $0x50] sm:$0xff] %v402_v10  ;;  %405 = vst [vmem:[%s2721_s26 + $0x58] sm:$0xff] %v404_v11  ;;  %v408_v13 = vld [vmem:[%s2716_s30 + $0x68] sm:$0xff]  ;;  %v410_v14 = vld [vmem:[%s2716_s30 + $0x70] sm:$0xff] }
  0x43   : > { %407 = vst [vmem:[%s2721_s26 + $0x60] sm:$0xff] %v406_v12  ;;  %409 = vst [vmem:[%s2721_s26 + $0x68] sm:$0xff] %v408_v13  ;;  %v412_v15 = vld [vmem:[%s2716_s30 + $0x78] sm:$0xff]  ;;  %v414_v16 = vld [vmem:[%s2716_s30 + $0x100] sm:$0xff] }
  0x44   : > { %411 = vst [vmem:[%s2721_s26 + $0x70] sm:$0xff] %v410_v14  ;;  %v416_v17 = vld [vmem:[%s2716_s30 + $0x108] sm:$0xff]  ;;  %413 = vst [vmem:[%s2721_s26 + $0x78] sm:$0xff] %v412_v15  ;;  %v418_v18 = vld [vmem:[%s2716_s30 + $0x110] sm:$0xff] }
  0x45   : > { %415 = vst [vmem:[%s2721_s26 + $0x80] sm:$0xff] %v414_v16  ;;  %417 = vst [vmem:[%s2721_s26 + $0x88] sm:$0xff] %v416_v17  ;;  %v420_v19 = vld [vmem:[%s2716_s30 + $0x118] sm:$0xff]  ;;  %v422_v20 = vld [vmem:[%s2716_s30 + $0x120] sm:$0xff] }
  0x46   : > { %419 = vst [vmem:[%s2721_s26 + $0x90] sm:$0xff] %v418_v18  ;;  %421 = vst [vmem:[%s2721_s26 + $0x98] sm:$0xff] %v420_v19  ;;  %v424_v21 = vld [vmem:[%s2716_s30 + $0x128] sm:$0xff]  ;;  %v426_v22 = vld [vmem:[%s2716_s30 + $0x130] sm:$0xff] }
  0x47   : > { %423 = vst [vmem:[%s2721_s26 + $0xa0] sm:$0xff] %v422_v20  ;;  %v428_v23 = vld [vmem:[%s2716_s30 + $0x138] sm:$0xff]  ;;  %425 = vst [vmem:[%s2721_s26 + $0xa8] sm:$0xff] %v424_v21  ;;  %v430_v24 = vld [vmem:[%s2716_s30 + $0x140] sm:$0xff] }
  0x48   : > { %427 = vst [vmem:[%s2721_s26 + $0xb0] sm:$0xff] %v426_v22  ;;  %429 = vst [vmem:[%s2721_s26 + $0xb8] sm:$0xff] %v428_v23  ;;  %v432_v25 = vld [vmem:[%s2716_s30 + $0x148] sm:$0xff]  ;;  %v434_v26 = vld [vmem:[%s2716_s30 + $0x150] sm:$0xff] }
  0x49   : > { %431 = vst [vmem:[%s2721_s26 + $0xc0] sm:$0xff] %v430_v24  ;;  %433 = vst [vmem:[%s2721_s26 + $0xc8] sm:$0xff] %v432_v25  ;;  %v436_v27 = vld [vmem:[%s2716_s30 + $0x158] sm:$0xff]  ;;  %v438_v28 = vld [vmem:[%s2716_s30 + $0x160] sm:$0xff] }
  0x4a   : > { %435 = vst [vmem:[%s2721_s26 + $0xd0] sm:$0xff] %v434_v26  ;;  %v440_v29 = vld [vmem:[%s2716_s30 + $0x168] sm:$0xff]  ;;  %437 = vst [vmem:[%s2721_s26 + $0xd8] sm:$0xff] %v436_v27  ;;  %v442_v30 = vld [vmem:[%s2716_s30 + $0x170] sm:$0xff] }
  0x4b   : > { %439 = vst [vmem:[%s2721_s26 + $0xe0] sm:$0xff] %v438_v28  ;;  %441 = vst [vmem:[%s2721_s26 + $0xe8] sm:$0xff] %v440_v29  ;;  %v444_v31 = vld [vmem:[%s2716_s30 + $0x178] sm:$0xff] }
  0x4c   : > { %443 = vst [vmem:[%s2721_s26 + $0xf0] sm:$0xff] %v442_v30  ;;  %445 = vst [vmem:[%s2721_s26 + $0xf8] sm:$0xff] %v444_v31 }
  0x4d PF: > { %p2311_p7 = scmp.ge.s32.totalorder %s2487_s20, 1  ;;  %p450_p8 = scmp.lt.s32.totalorder %s2487_s20, 3 }
  0x4f   : > { %p451_p9 = pnand %p2311_p7, %p450_p8 }
  0x50   : > { %s457_s6 = sand.u32 (!%p451_p9), 1, %s2479_s18   ;;  %v2489_v32 = vmov (!%p451_p9), 0   ;;  %v1088_v33 = vld [vmem:[%s3238_s4] sm:$0xff] (!%p451_p9)  ;;  %v1089_v53 = vld [vmem:[%s3238_s4 + $0x8] sm:$0xff] (!%p451_p9)  ;;  %vm1105_vm0 = vcmask (!%p451_p9), 392192  }
  0x51   : > { %454 = sbr.rel (%p451_p9) target bundleno = 432 (0x1b0), region = 97  ;;  %s2312_s7 = sshll.u32 (!%p451_p9), %s457_s6, 8  ;;  %1141 = vmatprep.mubr.bf16.mxu0 (!%p451_p9), %v2489_v32  ;;  %1184 = vmatprep.mubr.bf16.mxu1 (!%p451_p9), %v2489_v32  ;;  %v2825_v3 = vld [vmem:[%s3234_s0] sm:$0xff] (!%p451_p9)  }
  0x52   : > { %2463 = vset.pattern.permute.xlu0 (!%p451_p9), %v2489_v32  ;;  %s2795_s10 = scalar_lea.vmem (!%p451_p9), [#allocation2], %s2312_s7  ;;  %s2801_s11 = scalar_lea.vmem (!%p451_p9), [#allocation3], %s2312_s7 }
  0x53   : > { %v510_v34 = vld [vmem:[%s2795_s10] sm:$0xff] (!%p451_p9)  ;;  %v511_v36 = vld [vmem:[%s2795_s10 + $0x8] sm:$0xff] (!%p451_p9)  ;;  %1092 = vperm.xlu0 (!%p451_p9), %2463, %v1088_v33   ;;  %s2807_s12 = scalar_lea.vmem (!%p451_p9), [#allocation4], %s2312_s7  ;;  %v512_v57 = vld [vmem:[%s2795_s10 + $0x10] sm:$0xff] (!%p451_p9)  ;;  %s2315_s17 = sshll.u32 (!%p451_p9), %s457_s6, 9 }
  0x54   : > { %v526_v35 = vld [vmem:[%s2795_s10 + $0x80] sm:$0xff] (!%p451_p9)  ;;  %v527_v38 = vld [vmem:[%s2795_s10 + $0x88] sm:$0xff] (!%p451_p9)  ;;  %v528_v58 = vld [vmem:[%s2795_s10 + $0x90] sm:$0xff] (!%p451_p9)  ;;  %s2962_s18 = scalar_lea.vmem (!%p451_p9), [#allocation5], %s2315_s17 }
  0x55   : > { %v2317_v37 = vcombine.high (!%p451_p9), %v510_v34, %v526_v35  ;;  %v2316_v39 = vcombine.low (!%p451_p9), %v510_v34, %v526_v35  ;;  %v542_v40 = vld [vmem:[%s2801_s11] sm:$0xff] (!%p451_p9)  ;;  %v2319_v42 = vcombine.high (!%p451_p9), %v511_v36, %v527_v38  ;;  %v2318_v43 = vcombine.low (!%p451_p9), %v511_v36, %v527_v38  ;;  %v543_v45 = vld [vmem:[%s2801_s11 + $0x8] sm:$0xff] (!%p451_p9)  ;;  %v513_v59 = vld [vmem:[%s2795_s10 + $0x18] sm:$0xff] (!%p451_p9) }
  0x56   : > { %v558_v41 = vld [vmem:[%s2801_s11 + $0x80] sm:$0xff] (!%p451_p9)  ;;  %v559_v46 = vld [vmem:[%s2801_s11 + $0x88] sm:$0xff] (!%p451_p9)  ;;  %v529_v60 = vld [vmem:[%s2795_s10 + $0x98] sm:$0xff] (!%p451_p9)  ;;  %v2321_v63 = vcombine.high (!%p451_p9), %v512_v57, %v528_v58  ;;  %v2320_v6 = vcombine.low (!%p451_p9), %v512_v57, %v528_v58 }
  0x57   : > { %v2349_v44 = vcombine.high (!%p451_p9), %v542_v40, %v558_v41  ;;  %v574_v47 = vld [vmem:[%s2807_s12] sm:$0xff] (!%p451_p9)  ;;  %1109 = vmatprep.subr.bf16.mxu0 (!%p451_p9), %v2317_v37  ;;  %v2351_v48 = vcombine.high (!%p451_p9), %v543_v45, %v559_v46  ;;  %v575_v50 = vld [vmem:[%s2807_s12 + $0x8] sm:$0xff] (!%p451_p9)  ;;  %1152 = vmatprep.subr.bf16.mxu1 (!%p451_p9), %v2319_v42  ;;  %v2348_v52 = vcombine.low (!%p451_p9), %v542_v40, %v558_v41  ;;  %v544_v1 = vld [vmem:[%s2801_s11 + $0x10] sm:$0xff] (!%p451_p9) }
  0x58   : > { %v590_v49 = vld [vmem:[%s2807_s12 + $0x80] sm:$0xff]  ;;  %v591_v51 = vld [vmem:[%s2807_s12 + $0x88] sm:$0xff]  ;;  %1110 = vmatpush1.bf16.msra.mxu0 %v2316_v39  ;;  %1153 = vmatpush1.bf16.msra.mxu1 %v2318_v43  ;;  %v2350_v54 = vcombine.low %v543_v45, %v559_v46  ;;  %v2323_v0 = vcombine.high %v513_v59, %v529_v60  ;;  %v560_v2 = vld [vmem:[%s2801_s11 + $0x90] sm:$0xff]  ;;  %v2322_v7 = vcombine.low %v513_v59, %v529_v60  ;;  %s2437_s23 = sshll.u32 (%p2554_p5), %s2298_s21, 8 }
  0x59   : > { %1111 = vmatprep.subr.bf16.mxu0 %v2349_v44  ;;  %v2381_v55 = vcombine.high %v574_v47, %v590_v49  ;;  %1154 = vmatprep.subr.bf16.mxu1 %v2351_v48  ;;  %v2383_v56 = vcombine.high %v575_v50, %v591_v51  ;;  %v2380_v61 = vcombine.low %v574_v47, %v590_v49  ;;  %v545_v4 = vld [vmem:[%s2801_s11 + $0x18] sm:$0xff]  ;;  %v576_v10 = vld [vmem:[%s2807_s12 + $0x10] sm:$0xff]  ;;  %v514_v18 = vld [vmem:[%s2795_s10 + $0x20] sm:$0xff]  ;;  %s3097_s27 = scalar_lea.vmem (%p2554_p5), %s3239_s5, %s2437_s23 }
  0x5a   : > { %1097 = vperm.xlu0 %2463, %v1089_v53   ;;  %v2382_v62 = vcombine.low %v575_v50, %v591_v51  ;;  %v561_v5 = vld [vmem:[%s2801_s11 + $0x98] sm:$0xff]  ;;  %v2353_v8 = vcombine.high %v544_v1, %v560_v2  ;;  %v592_v11 = vld [vmem:[%s2807_s12 + $0x90] sm:$0xff]  ;;  %v2352_v14 = vcombine.low %v544_v1, %v560_v2  ;;  %v530_v19 = vld [vmem:[%s2795_s10 + $0xa0] sm:$0xff] }
  0x5b   : > { %v2355_v9 = vcombine.high %v545_v4, %v561_v5  ;;  %v577_v12 = vld [vmem:[%s2807_s12 + $0x18] sm:$0xff]  ;;  %v2354_v15 = vcombine.low %v545_v4, %v561_v5  ;;  %v2385_v16 = vcombine.high %v576_v10, %v592_v11  ;;  %v515_v20 = vld [vmem:[%s2795_s10 + $0x28] sm:$0xff]  ;;  %v2384_v22 = vcombine.low %v576_v10, %v592_v11  ;;  %v546_v26 = vld [vmem:[%s2801_s11 + $0x20] sm:$0xff] }
  0x5c   : > { %1112 = vmatpush1.bf16.msra.mxu0 %v2348_v52  ;;  %1155 = vmatpush1.bf16.msra.mxu1 %v2350_v54  ;;  %v593_v13 = vld [vmem:[%s2807_s12 + $0x98] sm:$0xff]  ;;  %v531_v21 = vld [vmem:[%s2795_s10 + $0xa8] sm:$0xff]  ;;  %v2325_v24 = vcombine.high %v514_v18, %v530_v19  ;;  %v562_v27 = vld [vmem:[%s2801_s11 + $0xa0] sm:$0xff]  ;;  %v2324_v30 = vcombine.low %v514_v18, %v530_v19 }
  0x5d   : > { %1113 = vmatprep.subr.bf16.mxu0 %v2381_v55  ;;  %1156 = vmatprep.subr.bf16.mxu1 %v2383_v56  ;;  %v2387_v17 = vcombine.high %v577_v12, %v593_v13  ;;  %v2386_v23 = vcombine.low %v577_v12, %v593_v13  ;;  %v2327_v25 = vcombine.high %v515_v20, %v531_v21  ;;  %v547_v28 = vld [vmem:[%s2801_s11 + $0x28] sm:$0xff]  ;;  %v578_v35 = vld [vmem:[%s2807_s12 + $0x20] sm:$0xff]  ;;  %v516_v43 = vld [vmem:[%s2795_s10 + $0x30] sm:$0xff] }
  0x5e   : > { %v563_v29 = vld [vmem:[%s2801_s11 + $0xa8] sm:$0xff]  ;;  %v2326_v31 = vcombine.low %v515_v20, %v531_v21  ;;  %v2357_v33 = vcombine.high %v546_v26, %v562_v27  ;;  %v594_v36 = vld [vmem:[%s2807_s12 + $0xa0] sm:$0xff]  ;;  %v2356_v39 = vcombine.low %v546_v26, %v562_v27  ;;  %v532_v44 = vld [vmem:[%s2795_s10 + $0xb0] sm:$0xff] }
  0x5f   : > { %v2359_v34 = vcombine.high %v547_v28, %v563_v29  ;;  %v579_v37 = vld [vmem:[%s2807_s12 + $0x28] sm:$0xff]  ;;  %v2358_v40 = vcombine.low %v547_v28, %v563_v29  ;;  %v2389_v41 = vcombine.high %v578_v35, %v594_v36  ;;  %v517_v45 = vld [vmem:[%s2795_s10 + $0x38] sm:$0xff]  ;;  %v2388_v47 = vcombine.low %v578_v35, %v594_v36  ;;  %v548_v51 = vld [vmem:[%s2801_s11 + $0x30] sm:$0xff] }
  0x60   : > { %1114 = vmatpush1.bf16.msra.mxu0 %v2380_v61  ;;  %1157 = vmatpush1.bf16.msra.mxu1 %v2382_v62  ;;  %v595_v38 = vld [vmem:[%s2807_s12 + $0xa8] sm:$0xff]  ;;  %v533_v46 = vld [vmem:[%s2795_s10 + $0xb8] sm:$0xff]  ;;  %v2329_v49 = vcombine.high %v516_v43, %v532_v44  ;;  %v564_v52 = vld [vmem:[%s2801_s11 + $0xb0] sm:$0xff]  ;;  %v2328_v55 = vcombine.low %v516_v43, %v532_v44 }
  0x61   : > { %1195 = vmatprep.subr.bf16.mxu0 %v2321_v63  ;;  %1238 = vmatprep.subr.bf16.mxu1 %v2323_v0  ;;  %v2391_v42 = vcombine.high %v579_v37, %v595_v38  ;;  %v2390_v48 = vcombine.low %v579_v37, %v595_v38  ;;  %v2331_v50 = vcombine.high %v517_v45, %v533_v46  ;;  %v549_v53 = vld [vmem:[%s2801_s11 + $0x38] sm:$0xff]  ;;  %v580_v59 = vld [vmem:[%s2807_s12 + $0x30] sm:$0xff]  ;;  %v518_v4 = vld [vmem:[%s2795_s10 + $0x40] sm:$0xff] }
  0x62   : > { %v565_v54 = vld [vmem:[%s2801_s11 + $0xb8] sm:$0xff]  ;;  %v2330_v56 = vcombine.low %v517_v45, %v533_v46  ;;  %v2361_v57 = vcombine.high %v548_v51, %v564_v52  ;;  %v596_v60 = vld [vmem:[%s2807_s12 + $0xb0] sm:$0xff]  ;;  %v2360_v63 = vcombine.low %v548_v51, %v564_v52  ;;  %v534_v5 = vld [vmem:[%s2795_s10 + $0xc0] sm:$0xff] }
  0x63   : > { %2413 = vmatmul.mubr.msk.bf16.vlgmr.msra.gmra.mrb[0].mxu0 %vm1105_vm0, %v2825_v3  ;;  %2414 = vmatmul.mubr.msk.bf16.vlgmr.msra.gmra.mrb[0].mxu1 %vm1105_vm0, %v2825_v3  ;;  %v2363_v58 = vcombine.high %v549_v53, %v565_v54  ;;  %v581_v61 = vld [vmem:[%s2807_s12 + $0x38] sm:$0xff]  ;;  %v2362_v0 = vcombine.low %v549_v53, %v565_v54  ;;  %v2393_v1 = vcombine.high %v580_v59, %v596_v60  ;;  %v550_v12 = vld [vmem:[%s2801_s11 + $0x40] sm:$0xff]  ;;  %v520_v28 = vld [vmem:[%s2795_s10 + $0x50] sm:$0xff] }
  0x64   : > { %1196 = vmatpush1.bf16.msra.mxu0 %v2320_v6  ;;  %1239 = vmatpush1.bf16.msra.mxu1 %v2322_v7  ;;  %v597_v62 = vld [vmem:[%s2807_s12 + $0xb8] sm:$0xff]  ;;  %v519_v6 = vld [vmem:[%s2795_s10 + $0x48] sm:$0xff]  ;;  %v2333_v10 = vcombine.high %v518_v4, %v534_v5  ;;  %v566_v13 = vld [vmem:[%s2801_s11 + $0xc0] sm:$0xff] }
  0x65   : > { %1197 = vmatprep.subr.bf16.mxu0 %v2353_v8  ;;  %1240 = vmatprep.subr.bf16.mxu1 %v2355_v9  ;;  %v2395_v2 = vcombine.high %v581_v61, %v597_v62  ;;  %v535_v7 = vld [vmem:[%s2795_s10 + $0xc8] sm:$0xff]  ;;  %v2392_v8 = vcombine.low %v580_v59, %v596_v60  ;;  %v2394_v9 = vcombine.low %v581_v61, %v597_v62  ;;  %v582_v20 = vld [vmem:[%s2807_s12 + $0x40] sm:$0xff]  ;;  %v536_v29 = vld [vmem:[%s2795_s10 + $0xd0] sm:$0xff] }
  0x66   : > { %1227 = vmatprep.mubr.bf16.mxu0 %v2489_v32  ;;  %1270 = vmatprep.mubr.bf16.mxu1 %v2489_v32  ;;  %v2335_v11 = vcombine.high %v519_v6, %v535_v7  ;;  %v2365_v18 = vcombine.high %v550_v12, %v566_v13  ;;  %v598_v21 = vld [vmem:[%s2807_s12 + $0xc0] sm:$0xff]  ;;  %v2337_v35 = vcombine.high %v520_v28, %v536_v29  ;;  %v552_v37 = vld [vmem:[%s2801_s11 + $0x50] sm:$0xff] }
  0x67   : > { %v2397_v26 = vcombine.high %v582_v20, %v598_v21  ;;  %v568_v38 = vld [vmem:[%s2801_s11 + $0xd0] sm:$0xff]  ;;  %v522_v53 = vld [vmem:[%s2795_s10 + $0x60] sm:$0xff] }
  0x68   : > { %1198 = vmatpush1.bf16.msra.mxu0 %v2352_v14  ;;  %1241 = vmatpush1.bf16.msra.mxu1 %v2354_v15  ;;  %v551_v14 = vld [vmem:[%s2801_s11 + $0x48] sm:$0xff]  ;;  %v2369_v43 = vcombine.high %v552_v37, %v568_v38  ;;  %v584_v45 = vld [vmem:[%s2807_s12 + $0x50] sm:$0xff]  ;;  %v538_v54 = vld [vmem:[%s2795_s10 + $0xe0] sm:$0xff] }
  0x69   : > { %1199 = vmatprep.subr.bf16.mxu0 %v2385_v16  ;;  %1242 = vmatprep.subr.bf16.mxu1 %v2387_v17  ;;  %v567_v15 = vld [vmem:[%s2801_s11 + $0xc8] sm:$0xff]  ;;  %v2332_v16 = vcombine.low %v518_v4, %v534_v5  ;;  %v2334_v17 = vcombine.low %v519_v6, %v535_v7  ;;  %v600_v46 = vld [vmem:[%s2807_s12 + $0xd0] sm:$0xff]  ;;  %v2341_v59 = vcombine.high %v522_v53, %v538_v54  ;;  %v554_v61 = vld [vmem:[%s2801_s11 + $0x60] sm:$0xff] }
  0x6a   : > { %v2367_v19 = vcombine.high %v551_v14, %v567_v15  ;;  %v2401_v51 = vcombine.high %v584_v45, %v600_v46  ;;  %v570_v62 = vld [vmem:[%s2801_s11 + $0xe0] sm:$0xff] }
  0x6b   : > { %v2373_v4 = vcombine.high %v554_v61, %v570_v62  ;;  %v586_v6 = vld [vmem:[%s2807_s12 + $0x60] sm:$0xff] }
  0x6c   : > { %1200 = vmatpush1.bf16.msra.mxu0 %v2384_v22  ;;  %1243 = vmatpush1.bf16.msra.mxu1 %v2386_v23  ;;  %v583_v22 = vld [vmem:[%s2807_s12 + $0x48] sm:$0xff]  ;;  %v602_v7 = vld [vmem:[%s2807_s12 + $0xe0] sm:$0xff] }
  0x6d   : > { %1281 = vmatprep.subr.bf16.mxu0 %v2325_v24  ;;  %1324 = vmatprep.subr.bf16.mxu1 %v2327_v25  ;;  %v599_v23 = vld [vmem:[%s2807_s12 + $0xc8] sm:$0xff]  ;;  %v2364_v24 = vcombine.low %v550_v12, %v566_v13  ;;  %v2366_v25 = vcombine.low %v551_v14, %v567_v15  ;;  %v2405_v12 = vcombine.high %v586_v6, %v602_v7  ;;  %v524_v14 = vld [vmem:[%s2795_s10 + $0x70] sm:$0xff] }
  0x6e   : > { %v2399_v27 = vcombine.high %v583_v22, %v599_v23  ;;  %v540_v15 = vld [vmem:[%s2795_s10 + $0xf0] sm:$0xff] }
  0x6f   : > { %2415 = vmatmul.mubr.msk.bf16.vlgmr.msra.gmra.mrb[4].mxu0 %vm1105_vm0, %v2825_v3  ;;  %2416 = vmatmul.mubr.msk.bf16.vlgmr.msra.gmra.mrb[4].mxu1 %vm1105_vm0, %v2825_v3 }
  0x70   : > { %1282 = vmatpush1.bf16.msra.mxu0 %v2324_v30  ;;  %1325 = vmatpush1.bf16.msra.mxu1 %v2326_v31  ;;  %v521_v30 = vld [vmem:[%s2795_s10 + $0x58] sm:$0xff] }
  0x71   : > { %1283 = vmatprep.subr.bf16.mxu0 %v2357_v33  ;;  %1326 = vmatprep.subr.bf16.mxu1 %v2359_v34  ;;  %v537_v31 = vld [vmem:[%s2795_s10 + $0xd8] sm:$0xff]  ;;  %v2396_v33 = vcombine.low %v582_v20, %v598_v21  ;;  %v2398_v34 = vcombine.low %v583_v22, %v599_v23  ;;  %v2345_v20 = vcombine.high %v524_v14, %v540_v15  ;;  %v556_v22 = vld [vmem:[%s2801_s11 + $0x70] sm:$0xff] }
  0x72   : > { %1313 = vmatprep.mubr.bf16.mxu0 %v2489_v32  ;;  %1356 = vmatprep.mubr.bf16.mxu1 %v2489_v32  ;;  %v2339_v36 = vcombine.high %v521_v30, %v537_v31  ;;  %v572_v23 = vld [vmem:[%s2801_s11 + $0xf0] sm:$0xff] }
  0x74   : > { %1284 = vmatpush1.bf16.msra.mxu0 %v2356_v39  ;;  %1327 = vmatpush1.bf16.msra.mxu1 %v2358_v40  ;;  %v553_v39 = vld [vmem:[%s2801_s11 + $0x58] sm:$0xff] }
  0x75   : > { %1285 = vmatprep.subr.bf16.mxu0 %v2389_v41  ;;  %1328 = vmatprep.subr.bf16.mxu1 %v2391_v42  ;;  %v569_v40 = vld [vmem:[%s2801_s11 + $0xd8] sm:$0xff]  ;;  %v2336_v41 = vcombine.low %v520_v28, %v536_v29  ;;  %v2338_v42 = vcombine.low %v521_v30, %v537_v31  ;;  %v2377_v28 = vcombine.high %v556_v22, %v572_v23  ;;  %v588_v30 = vld [vmem:[%s2807_s12 + $0x70] sm:$0xff] }
  0x76   : > { %v2371_v44 = vcombine.high %v553_v39, %v569_v40  ;;  %v604_v31 = vld [vmem:[%s2807_s12 + $0xf0] sm:$0xff] }
  0x78   : > { %1286 = vmatpush1.bf16.msra.mxu0 %v2388_v47  ;;  %1329 = vmatpush1.bf16.msra.mxu1 %v2390_v48  ;;  %v585_v47 = vld [vmem:[%s2807_s12 + $0x58] sm:$0xff] }
  0x79   : > { %1367 = vmatprep.subr.bf16.mxu0 %v2329_v49  ;;  %1410 = vmatprep.subr.bf16.mxu1 %v2331_v50  ;;  %v601_v48 = vld [vmem:[%s2807_s12 + $0xd8] sm:$0xff]  ;;  %v2368_v49 = vcombine.low %v552_v37, %v568_v38  ;;  %v2370_v50 = vcombine.low %v553_v39, %v569_v40  ;;  %v2409_v37 = vcombine.high %v588_v30, %v604_v31 }
  0x7a   : > { %v2403_v52 = vcombine.high %v585_v47, %v601_v48  ;;  %v2408_v39 = vcombine.low %v588_v30, %v604_v31 }
  0x7b   : > { %2417 = vmatmul.mubr.msk.bf16.vlgmr.msra.gmra.mrb[8].mxu0 %vm1105_vm0, %v2825_v3  ;;  %2418 = vmatmul.mubr.msk.bf16.vlgmr.msra.gmra.mrb[8].mxu1 %vm1105_vm0, %v2825_v3 }
  0x7c   : > { %1368 = vmatpush1.bf16.msra.mxu0 %v2328_v55  ;;  %1411 = vmatpush1.bf16.msra.mxu1 %v2330_v56  ;;  %v523_v55 = vld [vmem:[%s2795_s10 + $0x68] sm:$0xff] }
  0x7d   : > { %1369 = vmatprep.subr.bf16.mxu0 %v2361_v57  ;;  %1412 = vmatprep.subr.bf16.mxu1 %v2363_v58  ;;  %v539_v56 = vld [vmem:[%s2795_s10 + $0xe8] sm:$0xff]  ;;  %v2400_v57 = vcombine.low %v584_v45, %v600_v46  ;;  %v2402_v58 = vcombine.low %v585_v47, %v601_v48 }
  0x7e   : > { %1399 = vmatprep.mubr.bf16.mxu0 %v2489_v32  ;;  %1442 = vmatprep.mubr.bf16.mxu1 %v2489_v32  ;;  %v2343_v60 = vcombine.high %v523_v55, %v539_v56 }
  0x80   : > { %1370 = vmatpush1.bf16.msra.mxu0 %v2360_v63  ;;  %1413 = vmatpush1.bf16.msra.mxu1 %v2362_v0  ;;  %v555_v63 = vld [vmem:[%s2801_s11 + $0x68] sm:$0xff] }
  0x81   : > { %1371 = vmatprep.subr.bf16.mxu0 %v2393_v1  ;;  %1414 = vmatprep.subr.bf16.mxu1 %v2395_v2  ;;  %v571_v0 = vld [vmem:[%s2801_s11 + $0xe8] sm:$0xff]  ;;  %v2340_v1 = vcombine.low %v522_v53, %v538_v54  ;;  %v2342_v2 = vcombine.low %v523_v55, %v539_v56 }
  0x82   : > { %v2375_v5 = vcombine.high %v555_v63, %v571_v0 }
  0x84   : > { %1372 = vmatpush1.bf16.msra.mxu0 %v2392_v8  ;;  %1415 = vmatpush1.bf16.msra.mxu1 %v2394_v9  ;;  %v587_v8 = vld [vmem:[%s2807_s12 + $0x68] sm:$0xff] }
  0x85   : > { %1453 = vmatprep.subr.bf16.mxu0 %v2333_v10  ;;  %1496 = vmatprep.subr.bf16.mxu1 %v2335_v11  ;;  %v603_v9 = vld [vmem:[%s2807_s12 + $0xe8] sm:$0xff]  ;;  %v2372_v10 = vcombine.low %v554_v61, %v570_v62  ;;  %v2374_v11 = vcombine.low %v555_v63, %v571_v0 }
  0x86   : > { %v2407_v13 = vcombine.high %v587_v8, %v603_v9 }
  0x87   : > { %2419 = vmatmul.mubr.msk.bf16.vlgmr.msra.gmra.mrb[12].mxu0 %vm1105_vm0, %v2825_v3  ;;  %2420 = vmatmul.mubr.msk.bf16.vlgmr.msra.gmra.mrb[12].mxu1 %vm1105_vm0, %v2825_v3 }
  0x88   : > { %1454 = vmatpush1.bf16.msra.mxu0 %v2332_v16  ;;  %1497 = vmatpush1.bf16.msra.mxu1 %v2334_v17  ;;  %v525_v16 = vld [vmem:[%s2795_s10 + $0x78] sm:$0xff] }
  0x89   : > { %1455 = vmatprep.subr.bf16.mxu0 %v2365_v18  ;;  %1498 = vmatprep.subr.bf16.mxu1 %v2367_v19  ;;  %v541_v17 = vld [vmem:[%s2795_s10 + $0xf8] sm:$0xff]  ;;  %v2404_v18 = vcombine.low %v586_v6, %v602_v7  ;;  %v2406_v19 = vcombine.low %v587_v8, %v603_v9 }
  0x8a   : > { %1485 = vmatprep.mubr.bf16.mxu0 %v2489_v32  ;;  %1528 = vmatprep.mubr.bf16.mxu1 %v2489_v32  ;;  %v2347_v21 = vcombine.high %v525_v16, %v541_v17 }
  0x8c   : > { %1456 = vmatpush1.bf16.msra.mxu0 %v2364_v24  ;;  %1499 = vmatpush1.bf16.msra.mxu1 %v2366_v25  ;;  %v557_v24 = vld [vmem:[%s2801_s11 + $0x78] sm:$0xff] }
  0x8d   : > { %1457 = vmatprep.subr.bf16.mxu0 %v2397_v26  ;;  %1500 = vmatprep.subr.bf16.mxu1 %v2399_v27  ;;  %v573_v25 = vld [vmem:[%s2801_s11 + $0xf8] sm:$0xff]  ;;  %v2344_v26 = vcombine.low %v524_v14, %v540_v15  ;;  %v2346_v27 = vcombine.low %v525_v16, %v541_v17 }
  0x8e   : > { %v2379_v29 = vcombine.high %v557_v24, %v573_v25 }
  0x90   : > { %1458 = vmatpush1.bf16.msra.mxu0 %v2396_v33  ;;  %1501 = vmatpush1.bf16.msra.mxu1 %v2398_v34  ;;  %v589_v33 = vld [vmem:[%s2807_s12 + $0x78] sm:$0xff] }
  0x91   : > { %1539 = vmatprep.subr.bf16.mxu0 %v2337_v35  ;;  %1582 = vmatprep.subr.bf16.mxu1 %v2339_v36  ;;  %v605_v34 = vld [vmem:[%s2807_s12 + $0xf8] sm:$0xff]  ;;  %v2376_v35 = vcombine.low %v556_v22, %v572_v23  ;;  %v2378_v36 = vcombine.low %v557_v24, %v573_v25 }
  0x92   : > { %v2411_v38 = vcombine.high %v589_v33, %v605_v34  ;;  %v2410_v40 = vcombine.low %v589_v33, %v605_v34 }
  0x93   : > { %2421 = vmatmul.mubr.msk.bf16.vlgmr.msra.gmra.mrb[16].mxu0 %vm1105_vm0, %v2825_v3  ;;  %2422 = vmatmul.mubr.msk.bf16.vlgmr.msra.gmra.mrb[16].mxu1 %vm1105_vm0, %v2825_v3 }
  0x94   : > { %1540 = vmatpush1.bf16.msra.mxu0 %v2336_v41  ;;  %1583 = vmatpush1.bf16.msra.mxu1 %v2338_v42 }
  0x95   : > { %1541 = vmatprep.subr.bf16.mxu0 %v2369_v43  ;;  %1584 = vmatprep.subr.bf16.mxu1 %v2371_v44 }
  0x96   : > { %1571 = vmatprep.mubr.bf16.mxu0 %v2489_v32  ;;  %1614 = vmatprep.mubr.bf16.mxu1 %v2489_v32 }
  0x98   : > { %1542 = vmatpush1.bf16.msra.mxu0 %v2368_v49  ;;  %1585 = vmatpush1.bf16.msra.mxu1 %v2370_v50 }
  0x99   : > { %1543 = vmatprep.subr.bf16.mxu0 %v2401_v51  ;;  %1586 = vmatprep.subr.bf16.mxu1 %v2403_v52 }
  0x9c   : > { %1544 = vmatpush1.bf16.msra.mxu0 %v2400_v57  ;;  %1587 = vmatpush1.bf16.msra.mxu1 %v2402_v58 }
  0x9d   : > { %1625 = vmatprep.subr.bf16.mxu0 %v2341_v59  ;;  %1668 = vmatprep.subr.bf16.mxu1 %v2343_v60 }
  0x9f   : > { %2423 = vmatmul.mubr.msk.bf16.vlgmr.msra.gmra.mrb[20].mxu0 %vm1105_vm0, %v2825_v3  ;;  %2424 = vmatmul.mubr.msk.bf16.vlgmr.msra.gmra.mrb[20].mxu1 %vm1105_vm0, %v2825_v3 }
  0xa0   : > { %1626 = vmatpush1.bf16.msra.mxu0 %v2340_v1  ;;  %1669 = vmatpush1.bf16.msra.mxu1 %v2342_v2 }
  0xa1   : > { %1627 = vmatprep.subr.bf16.mxu0 %v2373_v4  ;;  %1670 = vmatprep.subr.bf16.mxu1 %v2375_v5 }
  0xa2   : > { %1657 = vmatprep.mubr.bf16.mxu0 %v2489_v32  ;;  %1700 = vmatprep.mubr.bf16.mxu1 %v2489_v32 }
  0xa4   : > { %1628 = vmatpush1.bf16.msra.mxu0 %v2372_v10  ;;  %1671 = vmatpush1.bf16.msra.mxu1 %v2374_v11 }
  0xa5   : > { %1629 = vmatprep.subr.bf16.mxu0 %v2405_v12  ;;  %1672 = vmatprep.subr.bf16.mxu1 %v2407_v13 }
  0xa8   : > { %1630 = vmatpush1.bf16.msra.mxu0 %v2404_v18  ;;  %1673 = vmatpush1.bf16.msra.mxu1 %v2406_v19 }
  0xa9   : > { %1711 = vmatprep.subr.bf16.mxu0 %v2345_v20  ;;  %1754 = vmatprep.subr.bf16.mxu1 %v2347_v21 }
  0xab   : > { %2425 = vmatmul.mubr.msk.bf16.vlgmr.msra.gmra.mrb[24].mxu0 %vm1105_vm0, %v2825_v3  ;;  %2426 = vmatmul.mubr.msk.bf16.vlgmr.msra.gmra.mrb[24].mxu1 %vm1105_vm0, %v2825_v3 }
  0xac   : > { %1712 = vmatpush1.bf16.msra.mxu0 %v2344_v26  ;;  %1755 = vmatpush1.bf16.msra.mxu1 %v2346_v27 }
  0xad   : > { %1713 = vmatprep.subr.bf16.mxu0 %v2377_v28  ;;  %1756 = vmatprep.subr.bf16.mxu1 %v2379_v29 }
  0xae   : > { %1743 = vmatprep.mubr.bf16.mxu0 %v2489_v32  ;;  %1786 = vmatprep.mubr.bf16.mxu1 %v2489_v32 }
  0xb0   : > { %1714 = vmatpush1.bf16.msra.mxu0 %v2376_v35  ;;  %1757 = vmatpush1.bf16.msra.mxu1 %v2378_v36 }
  0xb1   : > { %1715 = vmatprep.subr.bf16.mxu0 %v2409_v37  ;;  %1758 = vmatprep.subr.bf16.mxu1 %v2411_v38 }
  0xb4   : > { %1716 = vmatpush1.bf16.msra.mxu0 %v2408_v39  ;;  %1759 = vmatpush1.bf16.msra.mxu1 %v2410_v40 }
  0xb7   : > { %2427 = vmatmul.mubr.msk.bf16.vlgmr.msra.gmra.mrb[28].mxu0 %vm1105_vm0, %v2825_v3  ;;  %2428 = vmatmul.mubr.msk.bf16.vlgmr.msra.gmra.mrb[28].mxu1 %vm1105_vm0, %v2825_v3 }
  0xd2   : > { %v2951_v41 = vpop.permute.xlu0 %1092 }
  0xd9   : > { %v2955_v32 = vpop.permute.xlu0 %1097 }
 0x136   : > { %v1143_v42 = vpop.f32.mrb[0].mxu0  ;;  %v1186_v44 = vpop.f32.mrb[0].mxu1 }
 0x137   : > { %v1144_v43 = vadd.f32 %v1143_v42, %v2951_v41  ;;  %v1145_v45 = vpop.f32.mrb[1].mxu0  ;;  %v1187_v46 = vadd.f32 %v1186_v44, %v2951_v41  ;;  %v1188_v48 = vpop.f32.mrb[1].mxu1 }
 0x138   : > { %v1146_v47 = vadd.f32 %v1145_v45, %v2951_v41  ;;  %v1147_v49 = vpop.f32.mrb[2].mxu0  ;;  %v1189_v3 = vadd.f32 %v1188_v48, %v2951_v41  ;;  %v1190_v52 = vpop.f32.mrb[2].mxu1 }
 0x139   : > { %vm1797_vm1 = vcmp.gt.f32.partialorder %v1144_v43, 0.0  ;;  %v1861_v50 = vmul.f32 0.01, %v1144_v43  ;;  %v1148_v51 = vadd.f32 %v1147_v49, %v2955_v32  ;;  %v1149_v53 = vpop.f32.mrb[3].mxu0  ;;  %vm1799_vm2 = vcmp.gt.f32.partialorder %v1187_v46, 0.0  ;;  %v1192_v58 = vpop.f32.mrb[3].mxu1 }
 0x13a   : > { %v1863_v54 = vmul.f32 0.01, %v1187_v46  ;;  %vm1798_vm3 = vcmp.gt.f32.partialorder %v1146_v47, 0.0  ;;  %v1862_v55 = vmul.f32 0.01, %v1146_v47  ;;  %vm1800_vm4 = vcmp.gt.f32.partialorder %v1189_v3, 0.0 }
 0x13b   : > { %v1925_v56 = vsel %vm1797_vm1, %v1144_v43, %v1861_v50  ;;  %v1864_v57 = vmul.f32 0.01, %v1189_v3  ;;  %vm1829_vm5 = vcmp.gt.f32.partialorder %v1148_v51, 0.0  ;;  %v1893_v61 = vmul.f32 0.01, %v1148_v51 }
 0x13c   : > { %1989 = vst [vmem:[%s2962_s18] sm:$0xff] %v1925_v56  ;;  %v1927_v59 = vsel %vm1799_vm2, %v1187_v46, %v1863_v54  ;;  %v1926_v60 = vsel %vm1798_vm3, %v1146_v47, %v1862_v55  ;;  %v1191_v62 = vadd.f32 %v1190_v52, %v2955_v32  ;;  %v1150_v0 = vadd.f32 %v1149_v53, %v2955_v32 }
 0x13d   : > { %1991 = vst [vmem:[%s2962_s18 + $0x10] sm:$0xff] %v1927_v59  ;;  %1990 = vst [vmem:[%s2962_s18 + $0x8] sm:$0xff] %v1926_v60  ;;  %v1928_v63 = vsel %vm1800_vm4, %v1189_v3, %v1864_v57  ;;  %v1193_v1 = vadd.f32 %v1192_v58, %v2955_v32  ;;  %v1957_v2 = vsel %vm1829_vm5, %v1148_v51, %v1893_v61 }
 0x13e   : > { %1992 = vst [vmem:[%s2962_s18 + $0x18] sm:$0xff] %v1928_v63  ;;  %vm1831_vm6 = vcmp.gt.f32.partialorder %v1191_v62, 0.0  ;;  %v1895_v4 = vmul.f32 0.01, %v1191_v62  ;;  %2021 = vst [vmem:[%s2962_s18 + $0x100] sm:$0xff] %v1957_v2  ;;  %vm1830_vm7 = vcmp.gt.f32.partialorder %v1150_v0, 0.0 }
 0x13f   : > { %v1894_v5 = vmul.f32 0.01, %v1150_v0  ;;  %vm1832_vm8 = vcmp.gt.f32.partialorder %v1193_v1, 0.0  ;;  %v1896_v6 = vmul.f32 0.01, %v1193_v1 }
 0x140   : > { %v1959_v7 = vsel %vm1831_vm6, %v1191_v62, %v1895_v4 }
 0x141   : > { %2023 = vst [vmem:[%s2962_s18 + $0x110] sm:$0xff] %v1959_v7  ;;  %v1958_v8 = vsel %vm1830_vm7, %v1150_v0, %v1894_v5  ;;  %v1960_v9 = vsel %vm1832_vm8, %v1193_v1, %v1896_v6 }
 0x142   : > { %2022 = vst [vmem:[%s2962_s18 + $0x108] sm:$0xff] %v1958_v8  ;;  %2024 = vst [vmem:[%s2962_s18 + $0x118] sm:$0xff] %v1960_v9  ;;  %v1229_v10 = vpop.f32.mrb[4].mxu0  ;;  %v1272_v12 = vpop.f32.mrb[4].mxu1 }
 0x143   : > { %v1230_v11 = vadd.f32 %v1229_v10, %v2951_v41  ;;  %v1231_v13 = vpop.f32.mrb[5].mxu0  ;;  %v1273_v14 = vadd.f32 %v1272_v12, %v2951_v41  ;;  %v1274_v16 = vpop.f32.mrb[5].mxu1 }
 0x144   : > { %v1232_v15 = vadd.f32 %v1231_v13, %v2951_v41  ;;  %v1233_v17 = vpop.f32.mrb[6].mxu0  ;;  %v1275_v19 = vadd.f32 %v1274_v16, %v2951_v41  ;;  %v1276_v21 = vpop.f32.mrb[6].mxu1 }
 0x145   : > { %vm1801_vm9 = vcmp.gt.f32.partialorder %v1230_v11, 0.0  ;;  %v1865_v18 = vmul.f32 0.01, %v1230_v11  ;;  %v1234_v20 = vadd.f32 %v1233_v17, %v2955_v32  ;;  %v1235_v22 = vpop.f32.mrb[7].mxu0  ;;  %vm1803_vm10 = vcmp.gt.f32.partialorder %v1273_v14, 0.0  ;;  %v1278_v27 = vpop.f32.mrb[7].mxu1 }
 0x146   : > { %v1867_v23 = vmul.f32 0.01, %v1273_v14  ;;  %vm1802_vm11 = vcmp.gt.f32.partialorder %v1232_v15, 0.0  ;;  %v1866_v24 = vmul.f32 0.01, %v1232_v15  ;;  %vm1804_vm12 = vcmp.gt.f32.partialorder %v1275_v19, 0.0 }
 0x147   : > { %v1929_v25 = vsel %vm1801_vm9, %v1230_v11, %v1865_v18  ;;  %v1868_v26 = vmul.f32 0.01, %v1275_v19  ;;  %vm1833_vm13 = vcmp.gt.f32.partialorder %v1234_v20, 0.0  ;;  %v1897_v30 = vmul.f32 0.01, %v1234_v20 }
 0x148   : > { %1993 = vst [vmem:[%s2962_s18 + $0x20] sm:$0xff] %v1929_v25  ;;  %v1931_v28 = vsel %vm1803_vm10, %v1273_v14, %v1867_v23  ;;  %v1930_v29 = vsel %vm1802_vm11, %v1232_v15, %v1866_v24  ;;  %v1277_v31 = vadd.f32 %v1276_v21, %v2955_v32  ;;  %v1236_v34 = vadd.f32 %v1235_v22, %v2955_v32 }
 0x149   : > { %1995 = vst [vmem:[%s2962_s18 + $0x30] sm:$0xff] %v1931_v28  ;;  %1994 = vst [vmem:[%s2962_s18 + $0x28] sm:$0xff] %v1930_v29  ;;  %v1932_v33 = vsel %vm1804_vm12, %v1275_v19, %v1868_v26  ;;  %v1279_v35 = vadd.f32 %v1278_v27, %v2955_v32  ;;  %v1961_v36 = vsel %vm1833_vm13, %v1234_v20, %v1897_v30 }
 0x14a   : > { %1996 = vst [vmem:[%s2962_s18 + $0x38] sm:$0xff] %v1932_v33  ;;  %vm1835_vm14 = vcmp.gt.f32.partialorder %v1277_v31, 0.0  ;;  %v1899_v37 = vmul.f32 0.01, %v1277_v31  ;;  %2025 = vst [vmem:[%s2962_s18 + $0x120] sm:$0xff] %v1961_v36  ;;  %vm1834_vm15 = vcmp.gt.f32.partialorder %v1236_v34, 0.0 }
 0x14b   : > { %v1898_v38 = vmul.f32 0.01, %v1236_v34  ;;  %vm1836_vm0 = vcmp.gt.f32.partialorder %v1279_v35, 0.0  ;;  %v1900_v39 = vmul.f32 0.01, %v1279_v35 }
 0x14c   : > { %v1963_v40 = vsel %vm1835_vm14, %v1277_v31, %v1899_v37 }
 0x14d   : > { %2027 = vst [vmem:[%s2962_s18 + $0x130] sm:$0xff] %v1963_v40  ;;  %v1962_v42 = vsel %vm1834_vm15, %v1236_v34, %v1898_v38  ;;  %v1964_v43 = vsel %vm1836_vm0, %v1279_v35, %v1900_v39 }
 0x14e   : > { %2026 = vst [vmem:[%s2962_s18 + $0x128] sm:$0xff] %v1962_v42  ;;  %2028 = vst [vmem:[%s2962_s18 + $0x138] sm:$0xff] %v1964_v43  ;;  %v1315_v44 = vpop.f32.mrb[8].mxu0  ;;  %v1358_v46 = vpop.f32.mrb[8].mxu1 }
 0x14f   : > { %v1316_v45 = vadd.f32 %v1315_v44, %v2951_v41  ;;  %v1317_v47 = vpop.f32.mrb[9].mxu0  ;;  %v1359_v48 = vadd.f32 %v1358_v46, %v2951_v41  ;;  %v1360_v50 = vpop.f32.mrb[9].mxu1 }
 0x150   : > { %v1318_v49 = vadd.f32 %v1317_v47, %v2951_v41  ;;  %v1319_v3 = vpop.f32.mrb[10].mxu0  ;;  %v1361_v52 = vadd.f32 %v1360_v50, %v2951_v41  ;;  %v1362_v54 = vpop.f32.mrb[10].mxu1 }
 0x151   : > { %vm1805_vm1 = vcmp.gt.f32.partialorder %v1316_v45, 0.0  ;;  %v1869_v51 = vmul.f32 0.01, %v1316_v45  ;;  %v1320_v53 = vadd.f32 %v1319_v3, %v2955_v32  ;;  %v1321_v55 = vpop.f32.mrb[11].mxu0  ;;  %vm1807_vm2 = vcmp.gt.f32.partialorder %v1359_v48, 0.0  ;;  %v1364_v60 = vpop.f32.mrb[11].mxu1 }
 0x152   : > { %v1871_v56 = vmul.f32 0.01, %v1359_v48  ;;  %vm1806_vm3 = vcmp.gt.f32.partialorder %v1318_v49, 0.0  ;;  %v1870_v57 = vmul.f32 0.01, %v1318_v49  ;;  %vm1808_vm4 = vcmp.gt.f32.partialorder %v1361_v52, 0.0 }
 0x153   : > { %v1933_v58 = vsel %vm1805_vm1, %v1316_v45, %v1869_v51  ;;  %v1872_v59 = vmul.f32 0.01, %v1361_v52  ;;  %vm1837_vm5 = vcmp.gt.f32.partialorder %v1320_v53, 0.0  ;;  %v1901_v63 = vmul.f32 0.01, %v1320_v53 }
 0x154   : > { %1997 = vst [vmem:[%s2962_s18 + $0x40] sm:$0xff] %v1933_v58  ;;  %v1935_v61 = vsel %vm1807_vm2, %v1359_v48, %v1871_v56  ;;  %v1934_v62 = vsel %vm1806_vm3, %v1318_v49, %v1870_v57  ;;  %v1363_v0 = vadd.f32 %v1362_v54, %v2955_v32  ;;  %v1322_v2 = vadd.f32 %v1321_v55, %v2955_v32 }
 0x155   : > { %1999 = vst [vmem:[%s2962_s18 + $0x50] sm:$0xff] %v1935_v61  ;;  %1998 = vst [vmem:[%s2962_s18 + $0x48] sm:$0xff] %v1934_v62  ;;  %v1936_v1 = vsel %vm1808_vm4, %v1361_v52, %v1872_v59  ;;  %v1365_v4 = vadd.f32 %v1364_v60, %v2955_v32  ;;  %v1965_v5 = vsel %vm1837_vm5, %v1320_v53, %v1901_v63 }
 0x156   : > { %2000 = vst [vmem:[%s2962_s18 + $0x58] sm:$0xff] %v1936_v1  ;;  %vm1839_vm6 = vcmp.gt.f32.partialorder %v1363_v0, 0.0  ;;  %v1903_v6 = vmul.f32 0.01, %v1363_v0  ;;  %2029 = vst [vmem:[%s2962_s18 + $0x140] sm:$0xff] %v1965_v5  ;;  %vm1838_vm7 = vcmp.gt.f32.partialorder %v1322_v2, 0.0 }
 0x157   : > { %v1902_v7 = vmul.f32 0.01, %v1322_v2  ;;  %vm1840_vm8 = vcmp.gt.f32.partialorder %v1365_v4, 0.0  ;;  %v1904_v8 = vmul.f32 0.01, %v1365_v4 }
 0x158   : > { %v1967_v9 = vsel %vm1839_vm6, %v1363_v0, %v1903_v6 }
 0x159   : > { %2031 = vst [vmem:[%s2962_s18 + $0x150] sm:$0xff] %v1967_v9  ;;  %v1966_v10 = vsel %vm1838_vm7, %v1322_v2, %v1902_v7  ;;  %v1968_v11 = vsel %vm1840_vm8, %v1365_v4, %v1904_v8 }
 0x15a   : > { %2030 = vst [vmem:[%s2962_s18 + $0x148] sm:$0xff] %v1966_v10  ;;  %2032 = vst [vmem:[%s2962_s18 + $0x158] sm:$0xff] %v1968_v11  ;;  %v1401_v12 = vpop.f32.mrb[12].mxu0  ;;  %v1444_v14 = vpop.f32.mrb[12].mxu1 }
 0x15b   : > { %v1402_v13 = vadd.f32 %v1401_v12, %v2951_v41  ;;  %v1403_v15 = vpop.f32.mrb[13].mxu0  ;;  %v1445_v16 = vadd.f32 %v1444_v14, %v2951_v41  ;;  %v1446_v18 = vpop.f32.mrb[13].mxu1 }
 0x15c   : > { %v1404_v17 = vadd.f32 %v1403_v15, %v2951_v41  ;;  %v1405_v19 = vpop.f32.mrb[14].mxu0  ;;  %v1447_v21 = vadd.f32 %v1446_v18, %v2951_v41  ;;  %v1448_v23 = vpop.f32.mrb[14].mxu1 }
 0x15d   : > { %vm1809_vm9 = vcmp.gt.f32.partialorder %v1402_v13, 0.0  ;;  %v1873_v20 = vmul.f32 0.01, %v1402_v13  ;;  %v1406_v22 = vadd.f32 %v1405_v19, %v2955_v32  ;;  %v1407_v24 = vpop.f32.mrb[15].mxu0  ;;  %vm1811_vm10 = vcmp.gt.f32.partialorder %v1445_v16, 0.0  ;;  %v1450_v29 = vpop.f32.mrb[15].mxu1 }
 0x15e   : > { %v1875_v25 = vmul.f32 0.01, %v1445_v16  ;;  %vm1810_vm11 = vcmp.gt.f32.partialorder %v1404_v17, 0.0  ;;  %v1874_v26 = vmul.f32 0.01, %v1404_v17  ;;  %vm1812_vm12 = vcmp.gt.f32.partialorder %v1447_v21, 0.0 }
 0x15f   : > { %v1937_v27 = vsel %vm1809_vm9, %v1402_v13, %v1873_v20  ;;  %v1876_v28 = vmul.f32 0.01, %v1447_v21  ;;  %vm1841_vm13 = vcmp.gt.f32.partialorder %v1406_v22, 0.0  ;;  %v1905_v33 = vmul.f32 0.01, %v1406_v22 }
 0x160   : > { %2001 = vst [vmem:[%s2962_s18 + $0x60] sm:$0xff] %v1937_v27  ;;  %v1939_v30 = vsel %vm1811_vm10, %v1445_v16, %v1875_v25  ;;  %v1938_v31 = vsel %vm1810_vm11, %v1404_v17, %v1874_v26  ;;  %v1449_v34 = vadd.f32 %v1448_v23, %v2955_v32  ;;  %v1408_v36 = vadd.f32 %v1407_v24, %v2955_v32 }
 0x161   : > { %2003 = vst [vmem:[%s2962_s18 + $0x70] sm:$0xff] %v1939_v30  ;;  %2002 = vst [vmem:[%s2962_s18 + $0x68] sm:$0xff] %v1938_v31  ;;  %v1940_v35 = vsel %vm1812_vm12, %v1447_v21, %v1876_v28  ;;  %v1451_v37 = vadd.f32 %v1450_v29, %v2955_v32  ;;  %v1969_v38 = vsel %vm1841_vm13, %v1406_v22, %v1905_v33 }
 0x162   : > { %2004 = vst [vmem:[%s2962_s18 + $0x78] sm:$0xff] %v1940_v35  ;;  %vm1843_vm14 = vcmp.gt.f32.partialorder %v1449_v34, 0.0  ;;  %v1907_v39 = vmul.f32 0.01, %v1449_v34  ;;  %2033 = vst [vmem:[%s2962_s18 + $0x160] sm:$0xff] %v1969_v38  ;;  %vm1842_vm15 = vcmp.gt.f32.partialorder %v1408_v36, 0.0 }
 0x163   : > { %v1906_v40 = vmul.f32 0.01, %v1408_v36  ;;  %vm1844_vm0 = vcmp.gt.f32.partialorder %v1451_v37, 0.0  ;;  %v1908_v42 = vmul.f32 0.01, %v1451_v37 }
 0x164   : > { %v1971_v43 = vsel %vm1843_vm14, %v1449_v34, %v1907_v39 }
 0x165   : > { %2035 = vst [vmem:[%s2962_s18 + $0x170] sm:$0xff] %v1971_v43  ;;  %v1970_v44 = vsel %vm1842_vm15, %v1408_v36, %v1906_v40  ;;  %v1972_v45 = vsel %vm1844_vm0, %v1451_v37, %v1908_v42 }
 0x166   : > { %2034 = vst [vmem:[%s2962_s18 + $0x168] sm:$0xff] %v1970_v44  ;;  %2036 = vst [vmem:[%s2962_s18 + $0x178] sm:$0xff] %v1972_v45  ;;  %v1487_v46 = vpop.f32.mrb[16].mxu0  ;;  %v1530_v48 = vpop.f32.mrb[16].mxu1 }
 0x167   : > { %v1488_v47 = vadd.f32 %v1487_v46, %v2951_v41  ;;  %v1489_v49 = vpop.f32.mrb[17].mxu0  ;;  %v1531_v50 = vadd.f32 %v1530_v48, %v2951_v41  ;;  %v1532_v51 = vpop.f32.mrb[17].mxu1 }
 0x168   : > { %v1490_v3 = vadd.f32 %v1489_v49, %v2951_v41  ;;  %v1491_v52 = vpop.f32.mrb[18].mxu0  ;;  %v1533_v54 = vadd.f32 %v1532_v51, %v2951_v41  ;;  %v1534_v56 = vpop.f32.mrb[18].mxu1 }
 0x169   : > { %vm1813_vm1 = vcmp.gt.f32.partialorder %v1488_v47, 0.0  ;;  %v1877_v53 = vmul.f32 0.01, %v1488_v47  ;;  %v1492_v55 = vadd.f32 %v1491_v52, %v2955_v32  ;;  %v1493_v57 = vpop.f32.mrb[19].mxu0  ;;  %vm1815_vm2 = vcmp.gt.f32.partialorder %v1531_v50, 0.0  ;;  %v1536_v62 = vpop.f32.mrb[19].mxu1 }
 0x16a   : > { %v1879_v58 = vmul.f32 0.01, %v1531_v50  ;;  %vm1814_vm3 = vcmp.gt.f32.partialorder %v1490_v3, 0.0  ;;  %v1878_v59 = vmul.f32 0.01, %v1490_v3  ;;  %vm1816_vm4 = vcmp.gt.f32.partialorder %v1533_v54, 0.0 }
 0x16b   : > { %v1941_v60 = vsel %vm1813_vm1, %v1488_v47, %v1877_v53  ;;  %v1880_v61 = vmul.f32 0.01, %v1533_v54  ;;  %vm1845_vm5 = vcmp.gt.f32.partialorder %v1492_v55, 0.0  ;;  %v1909_v1 = vmul.f32 0.01, %v1492_v55 }
 0x16c   : > { %2005 = vst [vmem:[%s2962_s18 + $0x80] sm:$0xff] %v1941_v60  ;;  %v1943_v63 = vsel %vm1815_vm2, %v1531_v50, %v1879_v58  ;;  %v1942_v0 = vsel %vm1814_vm3, %v1490_v3, %v1878_v59  ;;  %v1535_v2 = vadd.f32 %v1534_v56, %v2955_v32  ;;  %v1494_v5 = vadd.f32 %v1493_v57, %v2955_v32 }
 0x16d   : > { %2007 = vst [vmem:[%s2962_s18 + $0x90] sm:$0xff] %v1943_v63  ;;  %2006 = vst [vmem:[%s2962_s18 + $0x88] sm:$0xff] %v1942_v0  ;;  %v1944_v4 = vsel %vm1816_vm4, %v1533_v54, %v1880_v61  ;;  %v1537_v6 = vadd.f32 %v1536_v62, %v2955_v32  ;;  %v1973_v7 = vsel %vm1845_vm5, %v1492_v55, %v1909_v1 }
 0x16e   : > { %2008 = vst [vmem:[%s2962_s18 + $0x98] sm:$0xff] %v1944_v4  ;;  %vm1847_vm6 = vcmp.gt.f32.partialorder %v1535_v2, 0.0  ;;  %v1911_v8 = vmul.f32 0.01, %v1535_v2  ;;  %2037 = vst [vmem:[%s2962_s18 + $0x180] sm:$0xff] %v1973_v7  ;;  %vm1846_vm7 = vcmp.gt.f32.partialorder %v1494_v5, 0.0 }
 0x16f   : > { %v1910_v9 = vmul.f32 0.01, %v1494_v5  ;;  %vm1848_vm8 = vcmp.gt.f32.partialorder %v1537_v6, 0.0  ;;  %v1912_v10 = vmul.f32 0.01, %v1537_v6 }
 0x170   : > { %v1975_v11 = vsel %vm1847_vm6, %v1535_v2, %v1911_v8 }
 0x171   : > { %2039 = vst [vmem:[%s2962_s18 + $0x190] sm:$0xff] %v1975_v11  ;;  %v1974_v12 = vsel %vm1846_vm7, %v1494_v5, %v1910_v9  ;;  %v1976_v13 = vsel %vm1848_vm8, %v1537_v6, %v1912_v10 }
 0x172   : > { %2038 = vst [vmem:[%s2962_s18 + $0x188] sm:$0xff] %v1974_v12  ;;  %2040 = vst [vmem:[%s2962_s18 + $0x198] sm:$0xff] %v1976_v13  ;;  %v1573_v14 = vpop.f32.mrb[20].mxu0  ;;  %v1616_v16 = vpop.f32.mrb[20].mxu1 }
 0x173   : > { %v1574_v15 = vadd.f32 %v1573_v14, %v2951_v41  ;;  %v1575_v17 = vpop.f32.mrb[21].mxu0  ;;  %v1617_v18 = vadd.f32 %v1616_v16, %v2951_v41  ;;  %v1618_v20 = vpop.f32.mrb[21].mxu1 }
 0x174   : > { %v1576_v19 = vadd.f32 %v1575_v17, %v2951_v41  ;;  %v1577_v21 = vpop.f32.mrb[22].mxu0  ;;  %v1619_v23 = vadd.f32 %v1618_v20, %v2951_v41  ;;  %v1620_v25 = vpop.f32.mrb[22].mxu1 }
 0x175   : > { %vm1817_vm9 = vcmp.gt.f32.partialorder %v1574_v15, 0.0  ;;  %v1881_v22 = vmul.f32 0.01, %v1574_v15  ;;  %v1578_v24 = vadd.f32 %v1577_v21, %v2955_v32  ;;  %v1579_v26 = vpop.f32.mrb[23].mxu0  ;;  %vm1819_vm10 = vcmp.gt.f32.partialorder %v1617_v18, 0.0  ;;  %v1622_v31 = vpop.f32.mrb[23].mxu1 }
 0x176   : > { %v1883_v27 = vmul.f32 0.01, %v1617_v18  ;;  %vm1818_vm11 = vcmp.gt.f32.partialorder %v1576_v19, 0.0  ;;  %v1882_v28 = vmul.f32 0.01, %v1576_v19  ;;  %vm1820_vm12 = vcmp.gt.f32.partialorder %v1619_v23, 0.0 }
 0x177   : > { %v1945_v29 = vsel %vm1817_vm9, %v1574_v15, %v1881_v22  ;;  %v1884_v30 = vmul.f32 0.01, %v1619_v23  ;;  %vm1849_vm13 = vcmp.gt.f32.partialorder %v1578_v24, 0.0  ;;  %v1913_v35 = vmul.f32 0.01, %v1578_v24 }
 0x178   : > { %2009 = vst [vmem:[%s2962_s18 + $0xa0] sm:$0xff] %v1945_v29  ;;  %v1947_v33 = vsel %vm1819_vm10, %v1617_v18, %v1883_v27  ;;  %v1946_v34 = vsel %vm1818_vm11, %v1576_v19, %v1882_v28  ;;  %v1621_v36 = vadd.f32 %v1620_v25, %v2955_v32  ;;  %v1580_v38 = vadd.f32 %v1579_v26, %v2955_v32 }
 0x179   : > { %2011 = vst [vmem:[%s2962_s18 + $0xb0] sm:$0xff] %v1947_v33  ;;  %2010 = vst [vmem:[%s2962_s18 + $0xa8] sm:$0xff] %v1946_v34  ;;  %v1948_v37 = vsel %vm1820_vm12, %v1619_v23, %v1884_v30  ;;  %v1623_v39 = vadd.f32 %v1622_v31, %v2955_v32  ;;  %v1977_v40 = vsel %vm1849_vm13, %v1578_v24, %v1913_v35 }
 0x17a   : > { %2012 = vst [vmem:[%s2962_s18 + $0xb8] sm:$0xff] %v1948_v37  ;;  %vm1851_vm14 = vcmp.gt.f32.partialorder %v1621_v36, 0.0  ;;  %v1915_v42 = vmul.f32 0.01, %v1621_v36  ;;  %2041 = vst [vmem:[%s2962_s18 + $0x1a0] sm:$0xff] %v1977_v40  ;;  %vm1850_vm15 = vcmp.gt.f32.partialorder %v1580_v38, 0.0 }
 0x17b   : > { %v1914_v43 = vmul.f32 0.01, %v1580_v38  ;;  %vm1852_vm0 = vcmp.gt.f32.partialorder %v1623_v39, 0.0  ;;  %v1916_v44 = vmul.f32 0.01, %v1623_v39 }
 0x17c   : > { %v1979_v45 = vsel %vm1851_vm14, %v1621_v36, %v1915_v42 }
 0x17d   : > { %2043 = vst [vmem:[%s2962_s18 + $0x1b0] sm:$0xff] %v1979_v45  ;;  %v1978_v46 = vsel %vm1850_vm15, %v1580_v38, %v1914_v43  ;;  %v1980_v47 = vsel %vm1852_vm0, %v1623_v39, %v1916_v44 }
 0x17e   : > { %2042 = vst [vmem:[%s2962_s18 + $0x1a8] sm:$0xff] %v1978_v46  ;;  %2044 = vst [vmem:[%s2962_s18 + $0x1b8] sm:$0xff] %v1980_v47  ;;  %v1659_v48 = vpop.f32.mrb[24].mxu0  ;;  %v1702_v50 = vpop.f32.mrb[24].mxu1 }
 0x17f   : > { %v1660_v49 = vadd.f32 %v1659_v48, %v2951_v41  ;;  %v1661_v3 = vpop.f32.mrb[25].mxu0  ;;  %v1703_v51 = vadd.f32 %v1702_v50, %v2951_v41  ;;  %v1704_v53 = vpop.f32.mrb[25].mxu1  ;;  %v2079_v50 = vld [vmem:[%s2962_s18 + $0x10] sm:$0xff] (%p2554_p5) }
 0x180   : > { %v1662_v52 = vadd.f32 %v1661_v3, %v2951_v41  ;;  %v1663_v54 = vpop.f32.mrb[26].mxu0  ;;  %v1705_v56 = vadd.f32 %v1704_v53, %v2951_v41  ;;  %v1706_v58 = vpop.f32.mrb[26].mxu1  ;;  %v2081_v3 = vld [vmem:[%s2962_s18 + $0x18] sm:$0xff] (%p2554_p5)  ;;  %2080 = vst [vmem:[%s3097_s27 + $0x10] sm:$0xff] (%p2554_p5), %v2079_v50  ;;  %v2087_v53 = vld [vmem:[%s2962_s18 + $0x30] sm:$0xff] (%p2554_p5) }
 0x181   : > { %vm1821_vm1 = vcmp.gt.f32.partialorder %v1660_v49, 0.0  ;;  %v1885_v55 = vmul.f32 0.01, %v1660_v49  ;;  %v1664_v57 = vadd.f32 %v1663_v54, %v2955_v32  ;;  %v1665_v59 = vpop.f32.mrb[27].mxu0  ;;  %vm1823_vm2 = vcmp.gt.f32.partialorder %v1703_v51, 0.0  ;;  %v1708_v0 = vpop.f32.mrb[27].mxu1 }
 0x182   : > { %v1887_v60 = vmul.f32 0.01, %v1703_v51  ;;  %vm1822_vm3 = vcmp.gt.f32.partialorder %v1662_v52, 0.0  ;;  %v1886_v61 = vmul.f32 0.01, %v1662_v52  ;;  %vm1824_vm4 = vcmp.gt.f32.partialorder %v1705_v56, 0.0 }
 0x183   : > { %v1949_v62 = vsel %vm1821_vm1, %v1660_v49, %v1885_v55  ;;  %v1888_v63 = vmul.f32 0.01, %v1705_v56  ;;  %vm1853_vm5 = vcmp.gt.f32.partialorder %v1664_v57, 0.0  ;;  %v1917_v4 = vmul.f32 0.01, %v1664_v57  ;;  %v2077_v49 = vld [vmem:[%s2962_s18 + $0x8] sm:$0xff] (%p2554_p5) }
 0x184   : > { %2013 = vst [vmem:[%s2962_s18 + $0xc0] sm:$0xff] %v1949_v62  ;;  %v1951_v1 = vsel %vm1823_vm2, %v1703_v51, %v1887_v60  ;;  %v1950_v2 = vsel %vm1822_vm3, %v1662_v52, %v1886_v61  ;;  %v1707_v5 = vadd.f32 %v1706_v58, %v2955_v32  ;;  %v1666_v7 = vadd.f32 %v1665_v59, %v2955_v32  ;;  %v2083_v51 = vld [vmem:[%s2962_s18 + $0x20] sm:$0xff] (%p2554_p5)  ;;  %v2085_v52 = vld [vmem:[%s2962_s18 + $0x28] sm:$0xff] (%p2554_p5)  ;;  %v2089_v54 = vld [vmem:[%s2962_s18 + $0x38] sm:$0xff] (%p2554_p5) }
 0x185   : > { %2015 = vst [vmem:[%s2962_s18 + $0xd0] sm:$0xff] %v1951_v1  ;;  %2014 = vst [vmem:[%s2962_s18 + $0xc8] sm:$0xff] %v1950_v2  ;;  %v1952_v6 = vsel %vm1824_vm4, %v1705_v56, %v1888_v63  ;;  %v1709_v8 = vadd.f32 %v1708_v0, %v2955_v32  ;;  %v1981_v9 = vsel %vm1853_vm5, %v1664_v57, %v1917_v4  ;;  %v2091_v55 = vld [vmem:[%s2962_s18 + $0x40] sm:$0xff] (%p2554_p5)  ;;  %v2093_v56 = vld [vmem:[%s2962_s18 + $0x48] sm:$0xff] (%p2554_p5) }
 0x186   : > { %2016 = vst [vmem:[%s2962_s18 + $0xd8] sm:$0xff] %v1952_v6  ;;  %vm1855_vm6 = vcmp.gt.f32.partialorder %v1707_v5, 0.0  ;;  %v1919_v10 = vmul.f32 0.01, %v1707_v5  ;;  %2045 = vst [vmem:[%s2962_s18 + $0x1c0] sm:$0xff] %v1981_v9  ;;  %vm1854_vm7 = vcmp.gt.f32.partialorder %v1666_v7, 0.0 }
 0x187   : > { %v1918_v11 = vmul.f32 0.01, %v1666_v7  ;;  %vm1856_vm8 = vcmp.gt.f32.partialorder %v1709_v8, 0.0  ;;  %v1920_v12 = vmul.f32 0.01, %v1709_v8  ;;  %2078 = vst [vmem:[%s3097_s27 + $0x8] sm:$0xff] (%p2554_p5), %v2077_v49 }
 0x188   : > { %v1983_v13 = vsel %vm1855_vm6, %v1707_v5, %v1919_v10  ;;  %2082 = vst [vmem:[%s3097_s27 + $0x18] sm:$0xff] (%p2554_p5), %v2081_v3  ;;  %2084 = vst [vmem:[%s3097_s27 + $0x20] sm:$0xff] (%p2554_p5), %v2083_v51  ;;  %v2095_v57 = vld [vmem:[%s2962_s18 + $0x50] sm:$0xff] (%p2554_p5)  ;;  %v2097_v58 = vld [vmem:[%s2962_s18 + $0x58] sm:$0xff] (%p2554_p5) }
 0x189   : > { %2047 = vst [vmem:[%s2962_s18 + $0x1d0] sm:$0xff] %v1983_v13  ;;  %v1982_v14 = vsel %vm1854_vm7, %v1666_v7, %v1918_v11  ;;  %v1984_v15 = vsel %vm1856_vm8, %v1709_v8, %v1920_v12  ;;  %2086 = vst [vmem:[%s3097_s27 + $0x28] sm:$0xff] (%p2554_p5), %v2085_v52  ;;  %v2099_v59 = vld [vmem:[%s2962_s18 + $0x60] sm:$0xff] (%p2554_p5)  ;;  %v2101_v60 = vld [vmem:[%s2962_s18 + $0x68] sm:$0xff] (%p2554_p5) }
 0x18a   : > { %2046 = vst [vmem:[%s2962_s18 + $0x1c8] sm:$0xff] %v1982_v14  ;;  %2048 = vst [vmem:[%s2962_s18 + $0x1d8] sm:$0xff] %v1984_v15  ;;  %v1745_v16 = vpop.f32.mrb[28].mxu0  ;;  %v1788_v18 = vpop.f32.mrb[28].mxu1  ;;  %v2103_v61 = vld [vmem:[%s2962_s18 + $0x70] sm:$0xff] (%p2554_p5)  ;;  %v2105_v62 = vld [vmem:[%s2962_s18 + $0x78] sm:$0xff] (%p2554_p5) }
 0x18b   : > { %v1746_v17 = vadd.f32 %v1745_v16, %v2951_v41  ;;  %v1747_v19 = vpop.f32.mrb[29].mxu0  ;;  %v1789_v20 = vadd.f32 %v1788_v18, %v2951_v41  ;;  %v1790_v22 = vpop.f32.mrb[29].mxu1  ;;  %2088 = vst [vmem:[%s3097_s27 + $0x30] sm:$0xff] (%p2554_p5), %v2087_v53  ;;  %2090 = vst [vmem:[%s3097_s27 + $0x38] sm:$0xff] (%p2554_p5), %v2089_v54  ;;  %v2107_v63 = vld [vmem:[%s2962_s18 + $0x80] sm:$0xff] (%p2554_p5)  ;;  %v2109_v0 = vld [vmem:[%s2962_s18 + $0x88] sm:$0xff] (%p2554_p5) }
 0x18c   : > { %v1748_v21 = vadd.f32 %v1747_v19, %v2951_v41  ;;  %v1749_v23 = vpop.f32.mrb[30].mxu0  ;;  %v1791_v25 = vadd.f32 %v1790_v22, %v2951_v41  ;;  %v1792_v27 = vpop.f32.mrb[30].mxu1  ;;  %2092 = vst [vmem:[%s3097_s27 + $0x40] sm:$0xff] (%p2554_p5), %v2091_v55  ;;  %2094 = vst [vmem:[%s3097_s27 + $0x48] sm:$0xff] (%p2554_p5), %v2093_v56  ;;  %v2111_v1 = vld [vmem:[%s2962_s18 + $0x90] sm:$0xff] (%p2554_p5)  ;;  %v2113_v2 = vld [vmem:[%s2962_s18 + $0x98] sm:$0xff] (%p2554_p5) }
 0x18d   : > { %vm1825_vm9 = vcmp.gt.f32.partialorder %v1746_v17, 0.0  ;;  %v1889_v24 = vmul.f32 0.01, %v1746_v17  ;;  %v1750_v26 = vadd.f32 %v1749_v23, %v2955_v32  ;;  %v1751_v28 = vpop.f32.mrb[31].mxu0  ;;  %vm1827_vm10 = vcmp.gt.f32.partialorder %v1789_v20, 0.0  ;;  %v1794_v34 = vpop.f32.mrb[31].mxu1 }
 0x18e   : > { %v1891_v29 = vmul.f32 0.01, %v1789_v20  ;;  %vm1826_vm11 = vcmp.gt.f32.partialorder %v1748_v21, 0.0  ;;  %v1890_v30 = vmul.f32 0.01, %v1748_v21  ;;  %vm1828_vm12 = vcmp.gt.f32.partialorder %v1791_v25, 0.0 }
 0x18f   : > { %v1953_v31 = vsel %vm1825_vm9, %v1746_v17, %v1889_v24  ;;  %v1892_v33 = vmul.f32 0.01, %v1791_v25  ;;  %vm1857_vm13 = vcmp.gt.f32.partialorder %v1750_v26, 0.0  ;;  %v1921_v36 = vmul.f32 0.01, %v1750_v26  ;;  %2096 = vst [vmem:[%s3097_s27 + $0x50] sm:$0xff] (%p2554_p5), %v2095_v57 }
 0x190   : > { %2017 = vst [vmem:[%s2962_s18 + $0xe0] sm:$0xff] %v1953_v31  ;;  %v1955_v35 = vsel %vm1827_vm10, %v1789_v20, %v1891_v29  ;;  %v1954_v41 = vsel %vm1826_vm11, %v1748_v21, %v1890_v30  ;;  %v1793_v37 = vadd.f32 %v1792_v27, %v2955_v32  ;;  %v1752_v39 = vadd.f32 %v1751_v28, %v2955_v32  ;;  %2059 = sbr.rel (!%p2554_p5) target bundleno = 432 (0x1b0), region = 113  ;;  %v2115_v4 = vld [vmem:[%s2962_s18 + $0xa0] sm:$0xff] (%p2554_p5)  ;;  %v2117_v5 = vld [vmem:[%s2962_s18 + $0xa8] sm:$0xff] (%p2554_p5)  ;;  %v2119_v6 = vld [vmem:[%s2962_s18 + $0xb0] sm:$0xff] (%p2554_p5) }
 0x191   : > { %2019 = vst [vmem:[%s2962_s18 + $0xf0] sm:$0xff] %v1955_v35  ;;  %2018 = vst [vmem:[%s2962_s18 + $0xe8] sm:$0xff] %v1954_v41  ;;  %v1956_v38 = vsel %vm1828_vm12, %v1791_v25, %v1892_v33  ;;  %v1795_v40 = vadd.f32 %v1794_v34, %v2955_v32  ;;  %v1985_v42 = vsel %vm1857_vm13, %v1750_v26, %v1921_v36  ;;  %v2075_v32 = vld [vmem:[%s2962_s18] sm:$0xff] (%p2554_p5)  ;;  %v2121_v7 = vld [vmem:[%s2962_s18 + $0xb8] sm:$0xff] (%p2554_p5) }
 0x192   : > { %2020 = vst [vmem:[%s2962_s18 + $0xf8] sm:$0xff] %v1956_v38  ;;  %vm1859_vm14 = vcmp.gt.f32.partialorder %v1793_v37, 0.0  ;;  %v1923_v43 = vmul.f32 0.01, %v1793_v37  ;;  %2049 = vst [vmem:[%s2962_s18 + $0x1e0] sm:$0xff] %v1985_v42  ;;  %vm1858_vm15 = vcmp.gt.f32.partialorder %v1752_v39, 0.0 }
 0x193   : > { %v1922_v44 = vmul.f32 0.01, %v1752_v39  ;;  %vm1860_vm0 = vcmp.gt.f32.partialorder %v1795_v40, 0.0  ;;  %v1924_v45 = vmul.f32 0.01, %v1795_v40  ;;  %2076 = vst [vmem:[%s3097_s27] sm:$0xff] (%p2554_p5), %v2075_v32  ;;  %2098 = vst [vmem:[%s3097_s27 + $0x58] sm:$0xff] (%p2554_p5), %v2097_v58 }
 0x194   : > { %v1987_v46 = vsel %vm1859_vm14, %v1793_v37, %v1923_v43  ;;  %2100 = vst [vmem:[%s3097_s27 + $0x60] sm:$0xff] (%p2554_p5), %v2099_v59  ;;  %2102 = vst [vmem:[%s3097_s27 + $0x68] sm:$0xff] (%p2554_p5), %v2101_v60  ;;  %v2123_v8 = vld [vmem:[%s2962_s18 + $0xc0] sm:$0xff] (%p2554_p5)  ;;  %v2125_v9 = vld [vmem:[%s2962_s18 + $0xc8] sm:$0xff] (%p2554_p5) }
 0x195   : > { %2051 = vst [vmem:[%s2962_s18 + $0x1f0] sm:$0xff] %v1987_v46  ;;  %v1986_v47 = vsel %vm1858_vm15, %v1752_v39, %v1922_v44  ;;  %v1988_v48 = vsel %vm1860_vm0, %v1795_v40, %v1924_v45  ;;  %2104 = vst [vmem:[%s3097_s27 + $0x70] sm:$0xff] (%p2554_p5), %v2103_v61  ;;  %v2127_v10 = vld [vmem:[%s2962_s18 + $0xd0] sm:$0xff] (%p2554_p5)  ;;  %v2129_v11 = vld [vmem:[%s2962_s18 + $0xd8] sm:$0xff] (%p2554_p5) }
 0x196   : > { %2050 = vst [vmem:[%s2962_s18 + $0x1e8] sm:$0xff] %v1986_v47  ;;  %2052 = vst [vmem:[%s2962_s18 + $0x1f8] sm:$0xff] %v1988_v48  ;;  %v2139_v16 = vld [vmem:[%s2962_s18 + $0x100] sm:$0xff] (%p2554_p5)  ;;  %v2141_v17 = vld [vmem:[%s2962_s18 + $0x108] sm:$0xff] (%p2554_p5) }
 0x197   : > { %2106 = vst [vmem:[%s3097_s27 + $0x78] sm:$0xff] %v2105_v62  ;;  %2108 = vst [vmem:[%s3097_s27 + $0x80] sm:$0xff] %v2107_v63  ;;  %v2131_v12 = vld [vmem:[%s2962_s18 + $0xe0] sm:$0xff]  ;;  %v2143_v18 = vld [vmem:[%s2962_s18 + $0x110] sm:$0xff] }
 0x198   : > { %2110 = vst [vmem:[%s3097_s27 + $0x88] sm:$0xff] %v2109_v0  ;;  %2112 = vst [vmem:[%s3097_s27 + $0x90] sm:$0xff] %v2111_v1  ;;  %v2133_v13 = vld [vmem:[%s2962_s18 + $0xe8] sm:$0xff]  ;;  %v2135_v14 = vld [vmem:[%s2962_s18 + $0xf0] sm:$0xff] }
 0x199   : > { %2114 = vst [vmem:[%s3097_s27 + $0x98] sm:$0xff] %v2113_v2  ;;  %2116 = vst [vmem:[%s3097_s27 + $0xa0] sm:$0xff] %v2115_v4  ;;  %v2137_v15 = vld [vmem:[%s2962_s18 + $0xf8] sm:$0xff]  ;;  %v2147_v20 = vld [vmem:[%s2962_s18 + $0x120] sm:$0xff] }
 0x19a   : > { %2118 = vst [vmem:[%s3097_s27 + $0xa8] sm:$0xff] %v2117_v5  ;;  %2120 = vst [vmem:[%s3097_s27 + $0xb0] sm:$0xff] %v2119_v6  ;;  %v2145_v19 = vld [vmem:[%s2962_s18 + $0x118] sm:$0xff]  ;;  %v2149_v21 = vld [vmem:[%s2962_s18 + $0x128] sm:$0xff] }
 0x19b   : > { %2122 = vst [vmem:[%s3097_s27 + $0xb8] sm:$0xff] %v2121_v7  ;;  %2124 = vst [vmem:[%s3097_s27 + $0xc0] sm:$0xff] %v2123_v8  ;;  %v2151_v22 = vld [vmem:[%s2962_s18 + $0x130] sm:$0xff]  ;;  %v2153_v23 = vld [vmem:[%s2962_s18 + $0x138] sm:$0xff] }
 0x19c   : > { %2126 = vst [vmem:[%s3097_s27 + $0xc8] sm:$0xff] %v2125_v9  ;;  %2128 = vst [vmem:[%s3097_s27 + $0xd0] sm:$0xff] %v2127_v10  ;;  %v2155_v24 = vld [vmem:[%s2962_s18 + $0x140] sm:$0xff]  ;;  %v2157_v25 = vld [vmem:[%s2962_s18 + $0x148] sm:$0xff] }
 0x19d   : > { %2130 = vst [vmem:[%s3097_s27 + $0xd8] sm:$0xff] %v2129_v11  ;;  %2132 = vst [vmem:[%s3097_s27 + $0xe0] sm:$0xff] %v2131_v12  ;;  %v2159_v26 = vld [vmem:[%s2962_s18 + $0x150] sm:$0xff]  ;;  %v2161_v27 = vld [vmem:[%s2962_s18 + $0x158] sm:$0xff] }
 0x19e   : > { %2134 = vst [vmem:[%s3097_s27 + $0xe8] sm:$0xff] %v2133_v13  ;;  %2136 = vst [vmem:[%s3097_s27 + $0xf0] sm:$0xff] %v2135_v14  ;;  %v2163_v28 = vld [vmem:[%s2962_s18 + $0x160] sm:$0xff]  ;;  %v2165_v29 = vld [vmem:[%s2962_s18 + $0x168] sm:$0xff] }
 0x19f   : > { %2138 = vst [vmem:[%s3097_s27 + $0xf8] sm:$0xff] %v2137_v15  ;;  %2140 = vst [vmem:[%s3097_s27 + $0x200] sm:$0xff] %v2139_v16  ;;  %v2167_v30 = vld [vmem:[%s2962_s18 + $0x170] sm:$0xff]  ;;  %v2169_v31 = vld [vmem:[%s2962_s18 + $0x178] sm:$0xff] }
 0x1a0   : > { %2142 = vst [vmem:[%s3097_s27 + $0x208] sm:$0xff] %v2141_v17  ;;  %2144 = vst [vmem:[%s3097_s27 + $0x210] sm:$0xff] %v2143_v18  ;;  %v2171_v33 = vld [vmem:[%s2962_s18 + $0x180] sm:$0xff]  ;;  %v2173_v34 = vld [vmem:[%s2962_s18 + $0x188] sm:$0xff] }
 0x1a1   : > { %2146 = vst [vmem:[%s3097_s27 + $0x218] sm:$0xff] %v2145_v19  ;;  %2148 = vst [vmem:[%s3097_s27 + $0x220] sm:$0xff] %v2147_v20  ;;  %v2175_v35 = vld [vmem:[%s2962_s18 + $0x190] sm:$0xff]  ;;  %v2177_v41 = vld [vmem:[%s2962_s18 + $0x198] sm:$0xff] }
 0x1a2   : > { %2150 = vst [vmem:[%s3097_s27 + $0x228] sm:$0xff] %v2149_v21  ;;  %2152 = vst [vmem:[%s3097_s27 + $0x230] sm:$0xff] %v2151_v22  ;;  %v2179_v36 = vld [vmem:[%s2962_s18 + $0x1a0] sm:$0xff]  ;;  %v2181_v37 = vld [vmem:[%s2962_s18 + $0x1a8] sm:$0xff] }
 0x1a3   : > { %2154 = vst [vmem:[%s3097_s27 + $0x238] sm:$0xff] %v2153_v23  ;;  %2156 = vst [vmem:[%s3097_s27 + $0x240] sm:$0xff] %v2155_v24  ;;  %v2183_v38 = vld [vmem:[%s2962_s18 + $0x1b0] sm:$0xff]  ;;  %v2185_v39 = vld [vmem:[%s2962_s18 + $0x1b8] sm:$0xff] }
 0x1a4   : > { %2158 = vst [vmem:[%s3097_s27 + $0x248] sm:$0xff] %v2157_v25  ;;  %2160 = vst [vmem:[%s3097_s27 + $0x250] sm:$0xff] %v2159_v26  ;;  %v2187_v40 = vld [vmem:[%s2962_s18 + $0x1c0] sm:$0xff]  ;;  %v2189_v42 = vld [vmem:[%s2962_s18 + $0x1c8] sm:$0xff] }
 0x1a5   : > { %2162 = vst [vmem:[%s3097_s27 + $0x258] sm:$0xff] %v2161_v27  ;;  %2164 = vst [vmem:[%s3097_s27 + $0x260] sm:$0xff] %v2163_v28  ;;  %v2191_v43 = vld [vmem:[%s2962_s18 + $0x1d0] sm:$0xff]  ;;  %v2193_v44 = vld [vmem:[%s2962_s18 + $0x1d8] sm:$0xff] }
 0x1a6   : > { %2166 = vst [vmem:[%s3097_s27 + $0x268] sm:$0xff] %v2165_v29  ;;  %2168 = vst [vmem:[%s3097_s27 + $0x270] sm:$0xff] %v2167_v30  ;;  %v2195_v45 = vld [vmem:[%s2962_s18 + $0x1e0] sm:$0xff]  ;;  %v2197_v46 = vld [vmem:[%s2962_s18 + $0x1e8] sm:$0xff] }
 0x1a7   : > { %2170 = vst [vmem:[%s3097_s27 + $0x278] sm:$0xff] %v2169_v31  ;;  %2172 = vst [vmem:[%s3097_s27 + $0x280] sm:$0xff] %v2171_v33  ;;  %v2199_v47 = vld [vmem:[%s2962_s18 + $0x1f0] sm:$0xff]  ;;  %v2201_v48 = vld [vmem:[%s2962_s18 + $0x1f8] sm:$0xff] }
 0x1a8   : > { %2174 = vst [vmem:[%s3097_s27 + $0x288] sm:$0xff] %v2173_v34  ;;  %2176 = vst [vmem:[%s3097_s27 + $0x290] sm:$0xff] %v2175_v35 }
 0x1a9   : > { %2178 = vst [vmem:[%s3097_s27 + $0x298] sm:$0xff] %v2177_v41  ;;  %2180 = vst [vmem:[%s3097_s27 + $0x2a0] sm:$0xff] %v2179_v36 }
 0x1aa   : > { %2182 = vst [vmem:[%s3097_s27 + $0x2a8] sm:$0xff] %v2181_v37  ;;  %2184 = vst [vmem:[%s3097_s27 + $0x2b0] sm:$0xff] %v2183_v38 }
 0x1ab   : > { %2186 = vst [vmem:[%s3097_s27 + $0x2b8] sm:$0xff] %v2185_v39  ;;  %2188 = vst [vmem:[%s3097_s27 + $0x2c0] sm:$0xff] %v2187_v40 }
 0x1ac   : > { %2190 = vst [vmem:[%s3097_s27 + $0x2c8] sm:$0xff] %v2189_v42  ;;  %2192 = vst [vmem:[%s3097_s27 + $0x2d0] sm:$0xff] %v2191_v43 }
 0x1ad   : > { %2194 = vst [vmem:[%s3097_s27 + $0x2d8] sm:$0xff] %v2193_v44  ;;  %2196 = vst [vmem:[%s3097_s27 + $0x2e0] sm:$0xff] %v2195_v45 }
 0x1ae   : > { %2198 = vst [vmem:[%s3097_s27 + $0x2e8] sm:$0xff] %v2197_v46  ;;  %2200 = vst [vmem:[%s3097_s27 + $0x2f0] sm:$0xff] %v2199_v47 }
 0x1af   : > { %2202 = vst [vmem:[%s3097_s27 + $0x2f8] sm:$0xff] %v2201_v48 }
 0x1b0 PF: > { %p12_p10 = scmp.ge.s32.totalorder %s2537_s22, 4   ;;  %s3242_s18 = smov %s2483_s19 }
 0x1b1   : > { %s3243_s19 = smov %s2548_s25  ;;  %s3244_s20 = smov %s2537_s22 }
 0x1b2   :  { %14 = sbr.rel (!%p12_p10) target bundleno = 2 (0x2), region = 183 }

</bundles_post_ra>
